<compile_context>
chip_gen: v5e
topology: v5e:2x2
jax: 0.10.0
libtpu: 0.0.40
codegen_flags: <defaults>
</compile_context>

<pallas_src>
import functools

import jax
import jax.numpy as jnp
from jax.experimental import pallas as pl
from jax.experimental.pallas import tpu as pltpu


# Actual footprint per call at tn=512 / bf16 weights:
#   2 x (2048*512*2)B weight double-buffer + ~0.3 MiB activations/bias/out ~ 4.5 MiB.
# 24 MiB leaves ample headroom on every generation (v7x scoped default = 32 MiB).
_VMEM_LIMIT = 24 * 1024 * 1024

_LANES = 128  # pad the tiny head output dim to one full lane tile


# ----------------------------------------------------------------------------
# Kernel 1: fused Linear + ReLU, full-K block (no reduction loop).
#   grid = (N // tn,)  -- one weight-column tile per step, axis is "parallel"
#   so the column stream shards across both TensorCores on v7x.
# ----------------------------------------------------------------------------
def _linear_relu_kernel(x_ref, w_ref, b_ref, o_ref):
    # bf16 x bf16 on the MXU, f32 accumulation, f32 bias / ReLU / output.
    x = x_ref[...].astype(jnp.bfloat16)
    o_ref[...] = jnp.maximum(
        jnp.dot(x, w_ref[...], preferred_element_type=jnp.float32) + b_ref[...],
        0.0,
    ).astype(o_ref.dtype)


def linear_relu(x, w, b, *, tn=512):
    """y = relu(x @ w + b); x:(M,K) f32, w:(K,N) bf16, b:(N,) f32 -> (M,N) f32."""
    M, K = x.shape
    Kw, N = w.shape
    assert Kw == K and b.shape == (N,)
    tn = min(tn, N)
    assert N % tn == 0
    b2 = b.reshape(1, N)
    return pl.pallas_call(
        _linear_relu_kernel,
        out_shape=jax.ShapeDtypeStruct((M, N), jnp.float32),
        grid_spec=pltpu.PrefetchScalarGridSpec(
            num_scalar_prefetch=0,
            grid=(N // tn,),
            in_specs=[
                pl.BlockSpec((M, K), lambda j: (0, 0)),    # activations resident (64 KiB)
                pl.BlockSpec((K, tn), lambda j: (0, j)),   # streamed bf16 weight tile
                pl.BlockSpec((1, tn), lambda j: (0, j)),   # bias tile
            ],
            out_specs=pl.BlockSpec((M, tn), lambda j: (0, j)),
        ),
        compiler_params=pltpu.CompilerParams(
            # "parallel" => megacore sharding of the weight-column axis on v7x.
            # TODO(synk): if profiling shows single-TC, switch to pltpu.CORE_PARALLEL.
            dimension_semantics=("parallel",),
            vmem_limit_bytes=_VMEM_LIMIT,
        ),
    )(x, w, b2)


# ----------------------------------------------------------------------------
# Kernel 2: tiny head: out = mean_over_batch( relu( s @ W3p + b3p ) )
# Everything is resident (s = 64 KiB, W3 padded to (2048,128) f32 = 1 MiB).
# ----------------------------------------------------------------------------
def _head_mean_kernel(s_ref, w_ref, b_ref, o_ref):
    y = jnp.maximum(
        jnp.dot(s_ref[...], w_ref[...], preferred_element_type=jnp.float32)
        + b_ref[...],
        0.0,
    )
    o_ref[...] = jnp.mean(y, axis=0, keepdims=True).astype(o_ref.dtype)


def head_mean(s, w_pad, b_pad):
    """mean_0(relu(s @ w_pad + b_pad)) -> (1, Npad); single fully-resident block."""
    M, K = s.shape
    Kw, Np = w_pad.shape
    assert Kw == K and b_pad.shape == (1, Np)
    return pl.pallas_call(
        _head_mean_kernel,
        out_shape=jax.ShapeDtypeStruct((1, Np), jnp.float32),
        grid_spec=pltpu.PrefetchScalarGridSpec(
            num_scalar_prefetch=0,
            grid=(1,),
            in_specs=[
                pl.BlockSpec((M, K), lambda i: (0, 0)),
                pl.BlockSpec((K, Np), lambda i: (0, 0)),
                pl.BlockSpec((1, Np), lambda i: (0, 0)),
            ],
            out_specs=pl.BlockSpec((1, Np), lambda i: (0, 0)),
        ),
        compiler_params=pltpu.CompilerParams(
            dimension_semantics=("arbitrary",),
            vmem_limit_bytes=_VMEM_LIMIT,
        ),
    )(s, w_pad, b_pad)


# ----------------------------------------------------------------------------
# Net forward pass: 4 pallas_calls (tile0, tile1, slide0, tiny head+mean).
# ----------------------------------------------------------------------------
@functools.partial(jax.jit, static_argnames=("out_dim",))
def net_forward(x, kparams, *, out_dim):
    (w0, b0), (w1, b1), (w2, b2), (w3p, b3p) = kparams
    h = linear_relu(x, w0, b0)                       # tile: Linear + ReLU
    f = linear_relu(h, w1, b1)                       # tile: Linear + ReLU
    s = linear_relu(f, w2, b2)                       # slide: Linear + ReLU (dual-TC)
    out = head_mean(s, w3p, b3p)[:, :out_dim]        # slide: Linear(2048,2)+ReLU, mean(0)
    return f, out


def init_params(key, dim=2048, out_dim=2):
    """f32 master params; weights stored as (in_features, out_features)."""
    shapes = [(dim, dim), (dim, dim), (dim, dim), (dim, out_dim)]
    params = []
    for kin, kout in shapes:
        kw, kb, key = jax.random.split(key, 3)
        bound = 1.0 / (kin ** 0.5)  # PyTorch nn.Linear default uniform bound
        w = jax.random.uniform(kw, (kin, kout), jnp.float32, minval=-bound, maxval=bound)
        b = jax.random.uniform(kb, (kout,), jnp.float32, minval=-bound, maxval=bound)
        params.append((w, b))
    return params


def prepare_kernel_params(params):
    """One-time prep: big weights -> bf16 (halve streamed HBM bytes); pad head to 128 lanes."""
    (w0, b0), (w1, b1), (w2, b2), (w3, b3) = params
    kin, n_out = w3.shape
    n_pad = max(_LANES, n_out)
    w3p = jnp.zeros((kin, n_pad), jnp.float32).at[:, :n_out].set(w3)
    b3p = jnp.zeros((1, n_pad), jnp.float32).at[:, :n_out].set(b3)
    return (
        (w0.astype(jnp.bfloat16), b0),
        (w1.astype(jnp.bfloat16), b1),
        (w2.astype(jnp.bfloat16), b2),
        (w3p, b3p),
    )


def ref_forward(x, kparams, out_dim):
    """Plain-JAX reference with the same mixed-precision policy as the kernels."""
    (w0, b0), (w1, b1), (w2, b2), (w3p, b3p) = kparams

    def lin(h, w, b):
        y = jnp.dot(h.astype(w.dtype), w, preferred_element_type=jnp.float32)
        return jnp.maximum(y + b, 0.0)

    h = lin(x, w0, b0)
    f = lin(h, w1, b1)
    s = lin(f, w2, b2)
    y = jnp.maximum(
        jnp.dot(s, w3p, preferred_element_type=jnp.float32) + b3p, 0.0)
    return f, jnp.mean(y, axis=0, keepdims=True)[:, :out_dim]


if __name__ == "__main__":
    key = jax.random.PRNGKey(0)
    kx, kp = jax.random.split(key)

    batch, dim, out_dim = 8, 2048, 2   # 2048 / 2 are fixed by the nn.Linear definitions
    x = jax.random.normal(kx, (batch, dim), dtype=jnp.float32)
    params = init_params(kp, dim=dim, out_dim=out_dim)
    kparams = prepare_kernel_params(params)

    f, out = net_forward(x, kparams, out_dim=out_dim)
    jax.block_until_ready((f, out))

    f_ref, out_ref = ref_forward(x, kparams, out_dim)
    assert f.shape == (batch, dim) and out.shape == (1, out_dim)
    assert jnp.allclose(f, f_ref, atol=1e-2, rtol=1e-2)
    assert jnp.allclose(out, out_ref, atol=1e-2, rtol=1e-2)

    print("KERNEL_OK")
</pallas_src>

<mosaic_0001>
module attributes {stable_mosaic.version = 11 : i64} {
  func.func @_linear_relu_kernel(%arg0: i32, %arg1: memref<8x2048xf32, #tpu.memory_space<vmem>>, %arg2: memref<2048x512xbf16, #tpu.memory_space<vmem>>, %arg3: memref<1x512xf32, #tpu.memory_space<vmem>>, %arg4: memref<8x512xf32, #tpu.memory_space<vmem>>) attributes {dimension_semantics = [#tpu.dimension_semantics<parallel>], iteration_bounds = array<i64: 4>, scalar_prefetch = 0 : i64, scratch_operands = 0 : i64, tpu.core_type = #tpu.core_type<tc>, window_params = [{pipeline_mode = #tpu.pipeline_mode<synchronous>, transform_indices = @transform_0, window_bounds = array<i64: 8, 2048>}, {transform_indices = @transform_1, window_bounds = array<i64: 2048, 512>}, {transform_indices = @transform_2, window_bounds = array<i64: 1, 512>}, {transform_indices = @transform_3, window_bounds = array<i64: 8, 512>}]} {
    %c0 = arith.constant 0 : index
    %c0_0 = arith.constant 0 : index
    %0 = vector.load %arg1[%c0, %c0_0] : memref<8x2048xf32, #tpu.memory_space<vmem>>, vector<8x2048xf32>
    %1 = arith.truncf %0 : vector<8x2048xf32> to vector<8x2048xbf16>
    %c0_1 = arith.constant 0 : index
    %c0_2 = arith.constant 0 : index
    %2 = vector.load %arg2[%c0_1, %c0_2] : memref<2048x512xbf16, #tpu.memory_space<vmem>>, vector<2048x512xbf16>
    %cst = arith.constant dense<0.000000e+00> : vector<8x512xf32>
    %3 = tpu.matmul %1, %2, %cst {dimension_numbers = #tpu.dot_dimension_numbers<[1], [0], [0], [1], [0, 0, 1, 1], [], []>} : vector<8x2048xbf16>, vector<2048x512xbf16>, vector<8x512xf32> -> vector<8x512xf32>
    %c0_3 = arith.constant 0 : index
    %c0_4 = arith.constant 0 : index
    %4 = vector.load %arg3[%c0_3, %c0_4] : memref<1x512xf32, #tpu.memory_space<vmem>>, vector<1x512xf32>
    %5 = vector.broadcast %4 : vector<1x512xf32> to vector<8x512xf32>
    %6 = arith.addf %3, %5 : vector<8x512xf32>
    %cst_5 = arith.constant 0.000000e+00 : f32
    %7 = vector.broadcast %cst_5 : f32 to vector<8x512xf32>
    %8 = arith.maximumf %6, %7 : vector<8x512xf32>
    %c0_6 = arith.constant 0 : index
    %c0_7 = arith.constant 0 : index
    %9 = vector.load %arg4[%c0_6, %c0_7] : memref<8x512xf32, #tpu.memory_space<vmem>>, vector<8x512xf32>
    tpu.vector_store %arg4[%c0_6, %c0_7], %8 {strides = array<i32>} : memref<8x512xf32, #tpu.memory_space<vmem>>, vector<8x512xf32>,
    return
  }
  func.func @transform_0(%arg0: i32) -> (i32, i32) {
    %c0_i32 = arith.constant 0 : i32
    %c0_i32_0 = arith.constant 0 : i32
    %c0_i32_1 = arith.constant 0 : i32
    return %c0_i32, %c0_i32_0 : i32, i32
  }
  func.func @transform_1(%arg0: i32) -> (i32, i32) {
    %c0_i32 = arith.constant 0 : i32
    %c0_i32_0 = arith.constant 0 : i32
    return %c0_i32, %arg0 : i32, i32
  }
  func.func @transform_2(%arg0: i32) -> (i32, i32) {
    %c0_i32 = arith.constant 0 : i32
    %c0_i32_0 = arith.constant 0 : i32
    return %c0_i32, %arg0 : i32, i32
  }
  func.func @transform_3(%arg0: i32) -> (i32, i32) {
    %c0_i32 = arith.constant 0 : i32
    %c0_i32_0 = arith.constant 0 : i32
    return %c0_i32, %arg0 : i32, i32
  }
}

module attributes {stable_mosaic.version = 11 : i64} {
  func.func @_linear_relu_kernel(%arg0: i32, %arg1: memref<8x2048xf32, #tpu.memory_space<vmem>>, %arg2: memref<2048x512xbf16, #tpu.memory_space<vmem>>, %arg3: memref<1x512xf32, #tpu.memory_space<vmem>>, %arg4: memref<8x512xf32, #tpu.memory_space<vmem>>) attributes {dimension_semantics = [#tpu.dimension_semantics<parallel>], iteration_bounds = array<i64: 4>, scalar_prefetch = 0 : i64, scratch_operands = 0 : i64, tpu.core_type = #tpu.core_type<tc>, window_params = [{pipeline_mode = #tpu.pipeline_mode<synchronous>, transform_indices = @transform_0, window_bounds = array<i64: 8, 2048>}, {transform_indices = @transform_1, window_bounds = array<i64: 2048, 512>}, {transform_indices = @transform_2, window_bounds = array<i64: 1, 512>}, {transform_indices = @transform_3, window_bounds = array<i64: 8, 512>}]} {
    %c0 = arith.constant 0 : index
    %c0_0 = arith.constant 0 : index
    %0 = vector.load %arg1[%c0, %c0_0] : memref<8x2048xf32, #tpu.memory_space<vmem>>, vector<8x2048xf32>
    %1 = arith.truncf %0 : vector<8x2048xf32> to vector<8x2048xbf16>
    %c0_1 = arith.constant 0 : index
    %c0_2 = arith.constant 0 : index
    %2 = vector.load %arg2[%c0_1, %c0_2] : memref<2048x512xbf16, #tpu.memory_space<vmem>>, vector<2048x512xbf16>
    %cst = arith.constant dense<0.000000e+00> : vector<8x512xf32>
    %3 = tpu.matmul %1, %2, %cst {dimension_numbers = #tpu.dot_dimension_numbers<[1], [0], [0], [1], [0, 0, 1, 1], [], []>} : vector<8x2048xbf16>, vector<2048x512xbf16>, vector<8x512xf32> -> vector<8x512xf32>
    %c0_3 = arith.constant 0 : index
    %c0_4 = arith.constant 0 : index
    %4 = vector.load %arg3[%c0_3, %c0_4] : memref<1x512xf32, #tpu.memory_space<vmem>>, vector<1x512xf32>
    %5 = vector.broadcast %4 : vector<1x512xf32> to vector<8x512xf32>
    %6 = arith.addf %3, %5 : vector<8x512xf32>
    %cst_5 = arith.constant 0.000000e+00 : f32
    %7 = vector.broadcast %cst_5 : f32 to vector<8x512xf32>
    %8 = arith.maximumf %6, %7 : vector<8x512xf32>
    %c0_6 = arith.constant 0 : index
    %c0_7 = arith.constant 0 : index
    %9 = vector.load %arg4[%c0_6, %c0_7] : memref<8x512xf32, #tpu.memory_space<vmem>>, vector<8x512xf32>
    tpu.vector_store %arg4[%c0_6, %c0_7], %8 {strides = array<i32>} : memref<8x512xf32, #tpu.memory_space<vmem>>, vector<8x512xf32>,
    return
  }
  func.func @transform_0(%arg0: i32) -> (i32, i32) {
    %c0_i32 = arith.constant 0 : i32
    %c0_i32_0 = arith.constant 0 : i32
    %c0_i32_1 = arith.constant 0 : i32
    return %c0_i32, %c0_i32_0 : i32, i32
  }
  func.func @transform_1(%arg0: i32) -> (i32, i32) {
    %c0_i32 = arith.constant 0 : i32
    %c0_i32_0 = arith.constant 0 : i32
    return %c0_i32, %arg0 : i32, i32
  }
  func.func @transform_2(%arg0: i32) -> (i32, i32) {
    %c0_i32 = arith.constant 0 : i32
    %c0_i32_0 = arith.constant 0 : i32
    return %c0_i32, %arg0 : i32, i32
  }
  func.func @transform_3(%arg0: i32) -> (i32, i32) {
    %c0_i32 = arith.constant 0 : i32
    %c0_i32_0 = arith.constant 0 : i32
    return %c0_i32, %arg0 : i32, i32
  }
}

module attributes {stable_mosaic.version = 11 : i64} {
  func.func @_head_mean_kernel(%arg0: i32, %arg1: memref<8x2048xf32, #tpu.memory_space<vmem>>, %arg2: memref<2048x128xf32, #tpu.memory_space<vmem>>, %arg3: memref<1x128xf32, #tpu.memory_space<vmem>>, %arg4: memref<1x128xf32, #tpu.memory_space<vmem>>) attributes {dimension_semantics = [#tpu.dimension_semantics<arbitrary>], iteration_bounds = array<i64: 1>, scalar_prefetch = 0 : i64, scratch_operands = 0 : i64, tpu.core_type = #tpu.core_type<tc>, window_params = [{pipeline_mode = #tpu.pipeline_mode<synchronous>, transform_indices = @transform_0, window_bounds = array<i64: 8, 2048>}, {pipeline_mode = #tpu.pipeline_mode<synchronous>, transform_indices = @transform_1, window_bounds = array<i64: 2048, 128>}, {pipeline_mode = #tpu.pipeline_mode<synchronous>, transform_indices = @transform_2, window_bounds = array<i64: 1, 128>}, {pipeline_mode = #tpu.pipeline_mode<synchronous>, transform_indices = @transform_3, window_bounds = array<i64: 1, 128>}]} {
    %c0 = arith.constant 0 : index
    %c0_0 = arith.constant 0 : index
    %0 = vector.load %arg1[%c0, %c0_0] : memref<8x2048xf32, #tpu.memory_space<vmem>>, vector<8x2048xf32>
    %c0_1 = arith.constant 0 : index
    %c0_2 = arith.constant 0 : index
    %1 = vector.load %arg2[%c0_1, %c0_2] : memref<2048x128xf32, #tpu.memory_space<vmem>>, vector<2048x128xf32>
    %cst = arith.constant dense<0.000000e+00> : vector<8x128xf32>
    %2 = tpu.matmul %0, %1, %cst {dimension_numbers = #tpu.dot_dimension_numbers<[1], [0], [0], [1], [0, 0, 1, 1], [], []>} : vector<8x2048xf32>, vector<2048x128xf32>, vector<8x128xf32> -> vector<8x128xf32>
    %c0_3 = arith.constant 0 : index
    %c0_4 = arith.constant 0 : index
    %3 = vector.load %arg3[%c0_3, %c0_4] : memref<1x128xf32, #tpu.memory_space<vmem>>, vector<1x128xf32>
    %4 = vector.broadcast %3 : vector<1x128xf32> to vector<8x128xf32>
    %5 = arith.addf %2, %4 : vector<8x128xf32>
    %cst_5 = arith.constant 0.000000e+00 : f32
    %6 = vector.broadcast %cst_5 : f32 to vector<8x128xf32>
    %7 = arith.maximumf %5, %6 : vector<8x128xf32>
    %cst_6 = arith.constant dense<0.000000e+00> : vector<128xf32>
    %8 = vector.multi_reduction <add>, %7, %cst_6 [0] : vector<8x128xf32> to vector<128xf32>
    %9 = vector.shape_cast %8 : vector<128xf32> to vector<1x128xf32>
    %cst_7 = arith.constant 8.000000e+00 : f32
    %10 = vector.broadcast %cst_7 : f32 to vector<1x128xf32>
    %11 = arith.divf %9, %10 : vector<1x128xf32>
    %c0_8 = arith.constant 0 : index
    %c0_9 = arith.constant 0 : index
    %12 = vector.load %arg4[%c0_8, %c0_9] : memref<1x128xf32, #tpu.memory_space<vmem>>, vector<1x128xf32>
    tpu.vector_store %arg4[%c0_8, %c0_9], %11 {strides = array<i32>} : memref<1x128xf32, #tpu.memory_space<vmem>>, vector<1x128xf32>,
    return
  }
  func.func @transform_0(%arg0: i32) -> (i32, i32) {
    %c0_i32 = arith.constant 0 : i32
    %c0_i32_0 = arith.constant 0 : i32
    %c0_i32_1 = arith.constant 0 : i32
    return %c0_i32, %c0_i32_0 : i32, i32
  }
  func.func @transform_1(%arg0: i32) -> (i32, i32) {
    %c0_i32 = arith.constant 0 : i32
    %c0_i32_0 = arith.constant 0 : i32
    %c0_i32_1 = arith.constant 0 : i32
    return %c0_i32, %c0_i32_0 : i32, i32
  }
  func.func @transform_2(%arg0: i32) -> (i32, i32) {
    %c0_i32 = arith.constant 0 : i32
    %c0_i32_0 = arith.constant 0 : i32
    %c0_i32_1 = arith.constant 0 : i32
    return %c0_i32, %c0_i32_0 : i32, i32
  }
  func.func @transform_3(%arg0: i32) -> (i32, i32) {
    %c0_i32 = arith.constant 0 : i32
    %c0_i32_0 = arith.constant 0 : i32
    %c0_i32_1 = arith.constant 0 : i32
    return %c0_i32, %c0_i32_0 : i32, i32
  }
}

</mosaic_0001>

<bundles_post_ra>
// kernel: net_forward.7
= control target key start
LH: loop header
LB: loop body
LE: loop exit
PB: predicated region body
PF: predicated region fallthrough
CT: control target
= control target key end

     0   :  { %8 = vsyncpa [#allocation3], 0  ;;  %s845_s0 = inlined_call_operand.vmem [shape: f32[8,2048], index: 0, kind: input, shape index: {}]   ;;  %s846_s1 = inlined_call_operand.hbm [shape: f32[2048,128], index: 1, kind: input, shape index: {}]   ;;  %s847_s2 = inlined_call_operand.hbm [shape: f32[1,128], index: 2, kind: input, shape index: {}]   ;;  %s848_s3 = inlined_call_operand.hbm [shape: f32[1,128], index: 3, kind: output, shape index: {}]  }
   0x1   :  { %9 = vsyncpa [#allocation6], 0 }
   0x2   :  { %10 = vsyncpa [#allocation4], 0  ;;  %s17_s14 = sshll.u32 %s846_s1, 4  ;;  %s762_s15 = smov [#allocation2]   ;;  %s18_s14 = int_to_ptr.hbm [resolvable:$true] %s17_s14 }
   0x3   :  { %s19_s16 = sshll.u32 %s762_s15, 4  ;;  %s31_s19 = sshll.u32 %s847_s2, 4  ;;  %s20_s16 = int_to_ptr.vmem [resolvable:$true] %s19_s16  ;;  %s32_s19 = int_to_ptr.hbm [resolvable:$true] %s31_s19 }
   0x4   :  { %s763_s20 = smov 128   ;;  %s764_s21 = smov 8  }
   0x5   :  { %25 = dma.hbm_to_vmem [thread:$0]  %s18_s14, 32768, %s20_s16, [#allocation3], %s763_s20, %s763_s20, %s764_s21  }
   0x6   :  { %s765_s22 = smov [#allocation5]  }
   0x7   :  { %s33_s23 = sshll.u32 %s765_s22, 4  ;;  %s34_s23 = int_to_ptr.vmem [resolvable:$true] %s33_s23 }
   0x8   :  { %36 = dma.hbm_to_vmem [thread:$0]  %s32_s19, 16, %s34_s23, [#allocation6]  }
   0x9   :  { %756 = dma.done.wait [#allocation3], 32768  }
   0xa   :  { %757 = vsyncadd [#allocation3], 4294934528 }
   0xb   :  { %758 = dma.done.wait [#allocation6], 16  }
   0xc   :  { %759 = vsyncadd [#allocation6], 4294967280  ;;  %v76_v0 = vld [vmem:[#allocation2 + $0x78] sm:$0xff]  ;;  %v75_v2 = vld [vmem:[#allocation2 + $0x70] sm:$0xff]  ;;  %s664_s28 = sshll.u32 %s848_s3, 4  ;;  %s665_s28 = int_to_ptr.hbm [resolvable:$true] %s664_s28 }
   0xd   :  { %v108_v1 = vld [vmem:[#allocation2 + $0x178] sm:$0xff]  ;;  %321 = vmatpush.msra.mxu0 %v76_v0  ;;  %v107_v4 = vld [vmem:[#allocation2 + $0x170] sm:$0xff]  ;;  %v74_v6 = vld [vmem:[#allocation2 + $0x68] sm:$0xff] }
   0xe   :  { %361 = vmatpush.msra.mxu2 %v108_v1  ;;  %v92_v3 = vld [vmem:[#allocation2 + $0xf8] sm:$0xff]  ;;  %v91_v7 = vld [vmem:[#allocation2 + $0xf0] sm:$0xff]  ;;  %v106_v8 = vld [vmem:[#allocation2 + $0x168] sm:$0xff] }
   0xf   :  { %v124_v5 = vld [vmem:[#allocation2 + $0x1f8] sm:$0xff]  ;;  %341 = vmatpush.msra.mxu1 %v92_v3  ;;  %322 = vmatpush.msra.mxu0 %v75_v2  ;;  %v123_v9 = vld [vmem:[#allocation2 + $0x1f0] sm:$0xff]  ;;  %v90_v10 = vld [vmem:[#allocation2 + $0xe8] sm:$0xff] }
  0x10   :  { %381 = vmatpush.msra.mxu3 %v124_v5  ;;  %362 = vmatpush.msra.mxu2 %v107_v4  ;;  %v73_v11 = vld [vmem:[#allocation2 + $0x60] sm:$0xff]  ;;  %v122_v13 = vld [vmem:[#allocation2 + $0x1e8] sm:$0xff]  ;;  %v72_v16 = vld [vmem:[#allocation2 + $0x58] sm:$0xff] }
  0x11   :  { %342 = vmatpush.msra.mxu1 %v91_v7  ;;  %v105_v12 = vld [vmem:[#allocation2 + $0x160] sm:$0xff]  ;;  %323 = vmatpush.msra.mxu0 %v74_v6  ;;  %v104_v17 = vld [vmem:[#allocation2 + $0x158] sm:$0xff]  ;;  %v71_v20 = vld [vmem:[#allocation2 + $0x50] sm:$0xff] }
  0x12   :  { %382 = vmatpush.msra.mxu3 %v123_v9  ;;  %363 = vmatpush.msra.mxu2 %v106_v8  ;;  %v89_v14 = vld [vmem:[#allocation2 + $0xe0] sm:$0xff]  ;;  %v88_v18 = vld [vmem:[#allocation2 + $0xd8] sm:$0xff]  ;;  %v103_v21 = vld [vmem:[#allocation2 + $0x150] sm:$0xff] }
  0x13   :  { %v121_v15 = vld [vmem:[#allocation2 + $0x1e0] sm:$0xff]  ;;  %343 = vmatpush.msra.mxu1 %v90_v10  ;;  %324 = vmatpush.msra.mxu0 %v73_v11  ;;  %v120_v19 = vld [vmem:[#allocation2 + $0x1d8] sm:$0xff]  ;;  %v87_v22 = vld [vmem:[#allocation2 + $0xd0] sm:$0xff] }
  0x14   :  { %383 = vmatpush.msra.mxu3 %v122_v13  ;;  %364 = vmatpush.msra.mxu2 %v105_v12  ;;  %v119_v23 = vld [vmem:[#allocation2 + $0x1d0] sm:$0xff]  ;;  %v70_v24 = vld [vmem:[#allocation2 + $0x48] sm:$0xff]  ;;  %v69_v28 = vld [vmem:[#allocation2 + $0x40] sm:$0xff] }
  0x15   :  { %344 = vmatpush.msra.mxu1 %v89_v14  ;;  %325 = vmatpush.msra.mxu0 %v72_v16  ;;  %v102_v25 = vld [vmem:[#allocation2 + $0x148] sm:$0xff]  ;;  %v101_v29 = vld [vmem:[#allocation2 + $0x140] sm:$0xff]  ;;  %v68_v32 = vld [vmem:[#allocation2 + $0x38] sm:$0xff] }
  0x16   :  { %384 = vmatpush.msra.mxu3 %v121_v15  ;;  %365 = vmatpush.msra.mxu2 %v104_v17  ;;  %v86_v26 = vld [vmem:[#allocation2 + $0xc8] sm:$0xff]  ;;  %v85_v30 = vld [vmem:[#allocation2 + $0xc0] sm:$0xff]  ;;  %v100_v33 = vld [vmem:[#allocation2 + $0x138] sm:$0xff] }
  0x17   :  { %345 = vmatpush.msra.mxu1 %v88_v18  ;;  %326 = vmatpush.msra.mxu0 %v71_v20  ;;  %v118_v27 = vld [vmem:[#allocation2 + $0x1c8] sm:$0xff]  ;;  %v117_v31 = vld [vmem:[#allocation2 + $0x1c0] sm:$0xff]  ;;  %v84_v34 = vld [vmem:[#allocation2 + $0xb8] sm:$0xff] }
  0x18   :  { %385 = vmatpush.msra.mxu3 %v120_v19  ;;  %366 = vmatpush.msra.mxu2 %v103_v21  ;;  %v116_v35 = vld [vmem:[#allocation2 + $0x1b8] sm:$0xff]  ;;  %v67_v36 = vld [vmem:[#allocation2 + $0x30] sm:$0xff]  ;;  %v66_v40 = vld [vmem:[#allocation2 + $0x28] sm:$0xff] }
  0x19   :  { %346 = vmatpush.msra.mxu1 %v87_v22  ;;  %327 = vmatpush.msra.mxu0 %v70_v24  ;;  %v99_v37 = vld [vmem:[#allocation2 + $0x130] sm:$0xff]  ;;  %v98_v41 = vld [vmem:[#allocation2 + $0x128] sm:$0xff]  ;;  %v65_v44 = vld [vmem:[#allocation2 + $0x20] sm:$0xff] }
  0x1a   :  { %386 = vmatpush.msra.mxu3 %v119_v23  ;;  %367 = vmatpush.msra.mxu2 %v102_v25  ;;  %v83_v38 = vld [vmem:[#allocation2 + $0xb0] sm:$0xff]  ;;  %v82_v42 = vld [vmem:[#allocation2 + $0xa8] sm:$0xff]  ;;  %v97_v45 = vld [vmem:[#allocation2 + $0x120] sm:$0xff] }
  0x1b   :  { %347 = vmatpush.msra.mxu1 %v86_v26  ;;  %328 = vmatpush.msra.mxu0 %v69_v28  ;;  %v115_v39 = vld [vmem:[#allocation2 + $0x1b0] sm:$0xff]  ;;  %v114_v43 = vld [vmem:[#allocation2 + $0x1a8] sm:$0xff]  ;;  %v81_v46 = vld [vmem:[#allocation2 + $0xa0] sm:$0xff] }
  0x1c   :  { %387 = vmatpush.msra.mxu3 %v118_v27  ;;  %368 = vmatpush.msra.mxu2 %v101_v29  ;;  %v113_v47 = vld [vmem:[#allocation2 + $0x1a0] sm:$0xff]  ;;  %v64_v48 = vld [vmem:[#allocation2 + $0x18] sm:$0xff]  ;;  %v63_v52 = vld [vmem:[#allocation2 + $0x10] sm:$0xff] }
  0x1d   :  { %348 = vmatpush.msra.mxu1 %v85_v30  ;;  %329 = vmatpush.msra.mxu0 %v68_v32  ;;  %v96_v49 = vld [vmem:[#allocation2 + $0x118] sm:$0xff]  ;;  %v95_v53 = vld [vmem:[#allocation2 + $0x110] sm:$0xff]  ;;  %v62_v56 = vld [vmem:[#allocation2 + $0x8] sm:$0xff] }
  0x1e   :  { %388 = vmatpush.msra.mxu3 %v117_v31  ;;  %369 = vmatpush.msra.mxu2 %v100_v33  ;;  %v80_v50 = vld [vmem:[#allocation2 + $0x98] sm:$0xff]  ;;  %v79_v54 = vld [vmem:[#allocation2 + $0x90] sm:$0xff]  ;;  %v94_v57 = vld [vmem:[#allocation2 + $0x108] sm:$0xff] }
  0x1f   :  { %349 = vmatpush.msra.mxu1 %v84_v34  ;;  %330 = vmatpush.msra.mxu0 %v67_v36  ;;  %v112_v51 = vld [vmem:[#allocation2 + $0x198] sm:$0xff]  ;;  %v111_v55 = vld [vmem:[#allocation2 + $0x190] sm:$0xff]  ;;  %v78_v58 = vld [vmem:[#allocation2 + $0x88] sm:$0xff] }
  0x20   :  { %389 = vmatpush.msra.mxu3 %v116_v35  ;;  %370 = vmatpush.msra.mxu2 %v99_v37  ;;  %v110_v59 = vld [vmem:[#allocation2 + $0x188] sm:$0xff]  ;;  %v61_v60 = vld [vmem:[#allocation2] sm:$0xff]  ;;  %v140_v62 = vld [vmem:[#allocation2 + $0x278] sm:$0xff] }
  0x21   :  { %350 = vmatpush.msra.mxu1 %v83_v38  ;;  %331 = vmatpush.msra.mxu0 %v66_v40  ;;  %v93_v61 = vld [vmem:[#allocation2 + $0x100] sm:$0xff]  ;;  %v172_v63 = vld [vmem:[#allocation2 + $0x378] sm:$0xff]  ;;  %v139_v2 = vld [vmem:[#allocation2 + $0x270] sm:$0xff] }
  0x22   :  { %390 = vmatpush.msra.mxu3 %v115_v39  ;;  %371 = vmatpush.msra.mxu2 %v98_v41  ;;  %v77_v0 = vld [vmem:[#allocation2 + $0x80] sm:$0xff]  ;;  %v156_v3 = vld [vmem:[#allocation2 + $0x2f8] sm:$0xff]  ;;  %v171_v4 = vld [vmem:[#allocation2 + $0x370] sm:$0xff] }
  0x23   :  { %351 = vmatpush.msra.mxu1 %v82_v42  ;;  %332 = vmatpush.msra.mxu0 %v65_v44  ;;  %v109_v1 = vld [vmem:[#allocation2 + $0x180] sm:$0xff]  ;;  %v188_v5 = vld [vmem:[#allocation2 + $0x3f8] sm:$0xff]  ;;  %v138_v6 = vld [vmem:[#allocation2 + $0x268] sm:$0xff] }
  0x24   :  { %391 = vmatpush.msra.mxu3 %v114_v43  ;;  %372 = vmatpush.msra.mxu2 %v97_v45  ;;  %v155_v7 = vld [vmem:[#allocation2 + $0x2f0] sm:$0xff]  ;;  %v170_v8 = vld [vmem:[#allocation2 + $0x368] sm:$0xff]  ;;  %v137_v10 = vld [vmem:[#allocation2 + $0x260] sm:$0xff] }
  0x25   :  { %352 = vmatpush.msra.mxu1 %v81_v46  ;;  %333 = vmatpush.msra.mxu0 %v64_v48  ;;  %v187_v9 = vld [vmem:[#allocation2 + $0x3f0] sm:$0xff]  ;;  %v154_v11 = vld [vmem:[#allocation2 + $0x2e8] sm:$0xff]  ;;  %v169_v12 = vld [vmem:[#allocation2 + $0x360] sm:$0xff] }
  0x26   :  { %392 = vmatpush.msra.mxu3 %v113_v47  ;;  %373 = vmatpush.msra.mxu2 %v96_v49  ;;  %v186_v13 = vld [vmem:[#allocation2 + $0x3e8] sm:$0xff]  ;;  %v136_v14 = vld [vmem:[#allocation2 + $0x258] sm:$0xff]  ;;  %v153_v15 = vld [vmem:[#allocation2 + $0x2e0] sm:$0xff] }
  0x27   :  { %353 = vmatpush.msra.mxu1 %v80_v50  ;;  %334 = vmatpush.msra.mxu0 %v63_v52  ;;  %v168_v16 = vld [vmem:[#allocation2 + $0x358] sm:$0xff]  ;;  %v185_v17 = vld [vmem:[#allocation2 + $0x3e0] sm:$0xff]  ;;  %v135_v18 = vld [vmem:[#allocation2 + $0x250] sm:$0xff] }
  0x28   :  { %393 = vmatpush.msra.mxu3 %v112_v51  ;;  %374 = vmatpush.msra.mxu2 %v95_v53  ;;  %v152_v19 = vld [vmem:[#allocation2 + $0x2d8] sm:$0xff]  ;;  %v167_v20 = vld [vmem:[#allocation2 + $0x350] sm:$0xff]  ;;  %v134_v22 = vld [vmem:[#allocation2 + $0x248] sm:$0xff] }
  0x29   :  { %354 = vmatpush.msra.mxu1 %v79_v54  ;;  %335 = vmatpush.msra.mxu0 %v62_v56  ;;  %v184_v21 = vld [vmem:[#allocation2 + $0x3d8] sm:$0xff]  ;;  %v151_v23 = vld [vmem:[#allocation2 + $0x2d0] sm:$0xff]  ;;  %v166_v24 = vld [vmem:[#allocation2 + $0x348] sm:$0xff] }
  0x2a   :  { %394 = vmatpush.msra.mxu3 %v111_v55  ;;  %375 = vmatpush.msra.mxu2 %v94_v57  ;;  %v183_v25 = vld [vmem:[#allocation2 + $0x3d0] sm:$0xff]  ;;  %v133_v26 = vld [vmem:[#allocation2 + $0x240] sm:$0xff]  ;;  %v150_v27 = vld [vmem:[#allocation2 + $0x2c8] sm:$0xff] }
  0x2b   :  { %355 = vmatpush.msra.mxu1 %v78_v58  ;;  %336 = vmatpush.msra.mxu0 %v61_v60  ;;  %v165_v28 = vld [vmem:[#allocation2 + $0x340] sm:$0xff]  ;;  %v182_v29 = vld [vmem:[#allocation2 + $0x3c8] sm:$0xff]  ;;  %v132_v30 = vld [vmem:[#allocation2 + $0x238] sm:$0xff] }
  0x2c   :  { %395 = vmatpush.msra.mxu3 %v110_v59  ;;  %376 = vmatpush.msra.mxu2 %v93_v61  ;;  %v149_v31 = vld [vmem:[#allocation2 + $0x2c0] sm:$0xff]  ;;  %v164_v32 = vld [vmem:[#allocation2 + $0x338] sm:$0xff]  ;;  %v131_v34 = vld [vmem:[#allocation2 + $0x230] sm:$0xff] }
  0x2d   :  { %401 = vmatpush.msrb.mxu0 %v140_v62  ;;  %356 = vmatpush.msra.mxu1 %v77_v0  ;;  %v181_v33 = vld [vmem:[#allocation2 + $0x3c0] sm:$0xff]  ;;  %v148_v35 = vld [vmem:[#allocation2 + $0x2b8] sm:$0xff]  ;;  %v163_v36 = vld [vmem:[#allocation2 + $0x330] sm:$0xff] }
  0x2e   :  { %441 = vmatpush.msrb.mxu2 %v172_v63  ;;  %396 = vmatpush.msra.mxu3 %v109_v1  ;;  %v180_v37 = vld [vmem:[#allocation2 + $0x3b8] sm:$0xff]  ;;  %v130_v38 = vld [vmem:[#allocation2 + $0x228] sm:$0xff]  ;;  %v147_v39 = vld [vmem:[#allocation2 + $0x2b0] sm:$0xff] }
  0x2f   :  { %402 = vmatpush.msrb.mxu0 %v139_v2  ;;  %421 = vmatpush.msrb.mxu1 %v156_v3  ;;  %v162_v40 = vld [vmem:[#allocation2 + $0x328] sm:$0xff]  ;;  %v179_v41 = vld [vmem:[#allocation2 + $0x3b0] sm:$0xff]  ;;  %v129_v42 = vld [vmem:[#allocation2 + $0x220] sm:$0xff] }
  0x30   :  { %442 = vmatpush.msrb.mxu2 %v171_v4  ;;  %461 = vmatpush.msrb.mxu3 %v188_v5  ;;  %v146_v43 = vld [vmem:[#allocation2 + $0x2a8] sm:$0xff]  ;;  %v161_v44 = vld [vmem:[#allocation2 + $0x320] sm:$0xff]  ;;  %v128_v46 = vld [vmem:[#allocation2 + $0x218] sm:$0xff] }
  0x31   :  { %403 = vmatpush.msrb.mxu0 %v138_v6  ;;  %422 = vmatpush.msrb.mxu1 %v155_v7  ;;  %v178_v45 = vld [vmem:[#allocation2 + $0x3a8] sm:$0xff]  ;;  %v145_v47 = vld [vmem:[#allocation2 + $0x2a0] sm:$0xff]  ;;  %v160_v48 = vld [vmem:[#allocation2 + $0x318] sm:$0xff] }
  0x32   :  { %443 = vmatpush.msrb.mxu2 %v170_v8  ;;  %462 = vmatpush.msrb.mxu3 %v187_v9  ;;  %v177_v49 = vld [vmem:[#allocation2 + $0x3a0] sm:$0xff]  ;;  %v127_v50 = vld [vmem:[#allocation2 + $0x210] sm:$0xff]  ;;  %v144_v51 = vld [vmem:[#allocation2 + $0x298] sm:$0xff] }
  0x33   :  { %404 = vmatpush.msrb.mxu0 %v137_v10  ;;  %423 = vmatpush.msrb.mxu1 %v154_v11  ;;  %v159_v52 = vld [vmem:[#allocation2 + $0x310] sm:$0xff]  ;;  %v176_v53 = vld [vmem:[#allocation2 + $0x398] sm:$0xff]  ;;  %v126_v54 = vld [vmem:[#allocation2 + $0x208] sm:$0xff] }
  0x34   :  { %444 = vmatpush.msrb.mxu2 %v169_v12  ;;  %463 = vmatpush.msrb.mxu3 %v186_v13  ;;  %v143_v55 = vld [vmem:[#allocation2 + $0x290] sm:$0xff]  ;;  %v158_v56 = vld [vmem:[#allocation2 + $0x308] sm:$0xff]  ;;  %v125_v58 = vld [vmem:[#allocation2 + $0x200] sm:$0xff] }
  0x35   :  { %405 = vmatpush.msrb.mxu0 %v136_v14  ;;  %424 = vmatpush.msrb.mxu1 %v153_v15  ;;  %v175_v57 = vld [vmem:[#allocation2 + $0x390] sm:$0xff]  ;;  %v142_v59 = vld [vmem:[#allocation2 + $0x288] sm:$0xff]  ;;  %v157_v60 = vld [vmem:[#allocation2 + $0x300] sm:$0xff] }
  0x36   :  { %445 = vmatpush.msrb.mxu2 %v168_v16  ;;  %464 = vmatpush.msrb.mxu3 %v185_v17  ;;  %v174_v61 = vld [vmem:[#allocation2 + $0x388] sm:$0xff]  ;;  %v45_v62 = vld [vmem:[%s845_s0] sm:$0xff]  ;;  %v47_v63 = vld [vmem:[%s845_s0 + $0x10] sm:$0xff] }
  0x37   :  { %406 = vmatpush.msrb.mxu0 %v135_v18  ;;  %425 = vmatpush.msrb.mxu1 %v152_v19  ;;  %v204_v0 = vld [vmem:[#allocation2 + $0x478] sm:$0xff]  ;;  %v141_v2 = vld [vmem:[#allocation2 + $0x280] sm:$0xff]  ;;  %v46_v4 = vld [vmem:[%s845_s0 + $0x8] sm:$0xff] }
  0x38   :  { %446 = vmatpush.msrb.mxu2 %v167_v20  ;;  %465 = vmatpush.msrb.mxu3 %v184_v21  ;;  %v236_v1 = vld [vmem:[#allocation2 + $0x578] sm:$0xff]  ;;  %v173_v3 = vld [vmem:[#allocation2 + $0x380] sm:$0xff]  ;;  %v203_v6 = vld [vmem:[#allocation2 + $0x470] sm:$0xff] }
  0x39   :  { %407 = vmatpush.msrb.mxu0 %v134_v22  ;;  %426 = vmatpush.msrb.mxu1 %v151_v23  ;;  %v48_v5 = vld [vmem:[%s845_s0 + $0x18] sm:$0xff]  ;;  %v235_v8 = vld [vmem:[#allocation2 + $0x570] sm:$0xff]  ;;  %v202_v10 = vld [vmem:[#allocation2 + $0x468] sm:$0xff] }
  0x3a   :  { %447 = vmatpush.msrb.mxu2 %v166_v24  ;;  %466 = vmatpush.msrb.mxu3 %v183_v25  ;;  %v220_v7 = vld [vmem:[#allocation2 + $0x4f8] sm:$0xff]  ;;  %v219_v11 = vld [vmem:[#allocation2 + $0x4f0] sm:$0xff]  ;;  %v234_v12 = vld [vmem:[#allocation2 + $0x568] sm:$0xff] }
  0x3b   :  { %408 = vmatpush.msrb.mxu0 %v133_v26  ;;  %427 = vmatpush.msrb.mxu1 %v150_v27  ;;  %v252_v9 = vld [vmem:[#allocation2 + $0x5f8] sm:$0xff]  ;;  %v251_v13 = vld [vmem:[#allocation2 + $0x5f0] sm:$0xff]  ;;  %v201_v14 = vld [vmem:[#allocation2 + $0x460] sm:$0xff] }
  0x3c   :  { %448 = vmatpush.msrb.mxu2 %v165_v28  ;;  %467 = vmatpush.msrb.mxu3 %v182_v29  ;;  %v218_v15 = vld [vmem:[#allocation2 + $0x4e8] sm:$0xff]  ;;  %v233_v16 = vld [vmem:[#allocation2 + $0x560] sm:$0xff]  ;;  %v51_v18 = vld [vmem:[%s845_s0 + $0x30] sm:$0xff] }
  0x3d   :  { %409 = vmatpush.msrb.mxu0 %v132_v30  ;;  %428 = vmatpush.msrb.mxu1 %v149_v31  ;;  %v250_v17 = vld [vmem:[#allocation2 + $0x5e8] sm:$0xff]  ;;  %v200_v19 = vld [vmem:[#allocation2 + $0x458] sm:$0xff]  ;;  %v217_v20 = vld [vmem:[#allocation2 + $0x4e0] sm:$0xff] }
  0x3e   :  { %449 = vmatpush.msrb.mxu2 %v164_v32  ;;  %468 = vmatpush.msrb.mxu3 %v181_v33  ;;  %v232_v21 = vld [vmem:[#allocation2 + $0x558] sm:$0xff]  ;;  %v249_v22 = vld [vmem:[#allocation2 + $0x5e0] sm:$0xff]  ;;  %v199_v25 = vld [vmem:[#allocation2 + $0x450] sm:$0xff] }
  0x3f   :  { %410 = vmatpush.msrb.mxu0 %v131_v34  ;;  %429 = vmatpush.msrb.mxu1 %v148_v35  ;;  %v49_v23 = vld [vmem:[%s845_s0 + $0x20] sm:$0xff]  ;;  %v52_v24 = vld [vmem:[%s845_s0 + $0x38] sm:$0xff]  ;;  %v231_v27 = vld [vmem:[#allocation2 + $0x550] sm:$0xff] }
  0x40   :  { %450 = vmatpush.msrb.mxu2 %v163_v36  ;;  %469 = vmatpush.msrb.mxu3 %v180_v37  ;;  %v216_v26 = vld [vmem:[#allocation2 + $0x4d8] sm:$0xff]  ;;  %v50_v29 = vld [vmem:[%s845_s0 + $0x28] sm:$0xff]  ;;  %v215_v31 = vld [vmem:[#allocation2 + $0x4d0] sm:$0xff] }
  0x41   :  { %411 = vmatpush.msrb.mxu0 %v130_v38  ;;  %430 = vmatpush.msrb.mxu1 %v147_v39  ;;  %v248_v28 = vld [vmem:[#allocation2 + $0x5d8] sm:$0xff]  ;;  %v198_v30 = vld [vmem:[#allocation2 + $0x448] sm:$0xff]  ;;  %v247_v33 = vld [vmem:[#allocation2 + $0x5d0] sm:$0xff] }
  0x42   :  { %451 = vmatpush.msrb.mxu2 %v162_v40  ;;  %470 = vmatpush.msrb.mxu3 %v179_v41  ;;  %v230_v32 = vld [vmem:[#allocation2 + $0x548] sm:$0xff]  ;;  %v197_v34 = vld [vmem:[#allocation2 + $0x440] sm:$0xff]  ;;  %v196_v38 = vld [vmem:[#allocation2 + $0x438] sm:$0xff] }
  0x43   :  { %412 = vmatpush.msrb.mxu0 %v129_v42  ;;  %431 = vmatpush.msrb.mxu1 %v146_v43  ;;  %v214_v35 = vld [vmem:[#allocation2 + $0x4c8] sm:$0xff]  ;;  %v229_v36 = vld [vmem:[#allocation2 + $0x540] sm:$0xff]  ;;  %v228_v40 = vld [vmem:[#allocation2 + $0x538] sm:$0xff] }
  0x44   :  { %452 = vmatpush.msrb.mxu2 %v161_v44  ;;  %471 = vmatpush.msrb.mxu3 %v178_v45  ;;  %v246_v37 = vld [vmem:[#allocation2 + $0x5c8] sm:$0xff]  ;;  %v213_v39 = vld [vmem:[#allocation2 + $0x4c0] sm:$0xff]  ;;  %v195_v42 = vld [vmem:[#allocation2 + $0x430] sm:$0xff] }
  0x45   :  { %413 = vmatpush.msrb.mxu0 %v128_v46  ;;  %432 = vmatpush.msrb.mxu1 %v145_v47  ;;  %v245_v41 = vld [vmem:[#allocation2 + $0x5c0] sm:$0xff]  ;;  %v212_v43 = vld [vmem:[#allocation2 + $0x4b8] sm:$0xff]  ;;  %v227_v44 = vld [vmem:[#allocation2 + $0x530] sm:$0xff] }
  0x46   :  { %453 = vmatpush.msrb.mxu2 %v160_v48  ;;  %472 = vmatpush.msrb.mxu3 %v177_v49  ;;  %v244_v45 = vld [vmem:[#allocation2 + $0x5b8] sm:$0xff]  ;;  %v194_v46 = vld [vmem:[#allocation2 + $0x428] sm:$0xff]  ;;  %v211_v47 = vld [vmem:[#allocation2 + $0x4b0] sm:$0xff] }
  0x47   :  { %414 = vmatpush.msrb.mxu0 %v127_v50  ;;  %433 = vmatpush.msrb.mxu1 %v144_v51  ;;  %v226_v48 = vld [vmem:[#allocation2 + $0x528] sm:$0xff]  ;;  %v243_v49 = vld [vmem:[#allocation2 + $0x5b0] sm:$0xff]  ;;  %v193_v50 = vld [vmem:[#allocation2 + $0x420] sm:$0xff] }
  0x48   :  { %454 = vmatpush.msrb.mxu2 %v159_v52  ;;  %473 = vmatpush.msrb.mxu3 %v176_v53  ;;  %v210_v51 = vld [vmem:[#allocation2 + $0x4a8] sm:$0xff]  ;;  %v225_v52 = vld [vmem:[#allocation2 + $0x520] sm:$0xff] }
  0x49   :  { %415 = vmatpush.msrb.mxu0 %v126_v54  ;;  %434 = vmatpush.msrb.mxu1 %v143_v55  ;;  %v242_v53 = vld [vmem:[#allocation2 + $0x5a8] sm:$0xff]  ;;  %v192_v54 = vld [vmem:[#allocation2 + $0x418] sm:$0xff]  ;;  %v209_v55 = vld [vmem:[#allocation2 + $0x4a0] sm:$0xff] }
  0x4a   :  { %455 = vmatpush.msrb.mxu2 %v158_v56  ;;  %474 = vmatpush.msrb.mxu3 %v175_v57  ;;  %v224_v56 = vld [vmem:[#allocation2 + $0x518] sm:$0xff]  ;;  %v241_v57 = vld [vmem:[#allocation2 + $0x5a0] sm:$0xff] }
  0x4b   :  { %416 = vmatpush.msrb.mxu0 %v125_v58  ;;  %435 = vmatpush.msrb.mxu1 %v142_v59  ;;  %v191_v58 = vld [vmem:[#allocation2 + $0x410] sm:$0xff]  ;;  %v208_v59 = vld [vmem:[#allocation2 + $0x498] sm:$0xff] }
  0x4c   :  { %456 = vmatpush.msrb.mxu2 %v157_v60  ;;  %475 = vmatpush.msrb.mxu3 %v174_v61  ;;  %v223_v60 = vld [vmem:[#allocation2 + $0x510] sm:$0xff]  ;;  %v240_v61 = vld [vmem:[#allocation2 + $0x598] sm:$0xff] }
  0x4d   :  { %337 = vmatmul.f32.vlgmr.msra.gmra.mxu0 %v45_v62  ;;  %377 = vmatmul.f32.vlgmr.msra.gmra.mxu2 %v47_v63  ;;  %v190_v62 = vld [vmem:[#allocation2 + $0x408] sm:$0xff]  ;;  %v207_v63 = vld [vmem:[#allocation2 + $0x490] sm:$0xff] }
  0x4e   :  { %481 = vmatpush.msra.mxu0 %v204_v0  ;;  %521 = vmatpush.msra.mxu2 %v236_v1  ;;  %v222_v0 = vld [vmem:[#allocation2 + $0x508] sm:$0xff]  ;;  %v239_v1 = vld [vmem:[#allocation2 + $0x590] sm:$0xff] }
  0x4f   :  { %436 = vmatpush.msrb.mxu1 %v141_v2  ;;  %476 = vmatpush.msrb.mxu3 %v173_v3  ;;  %v189_v2 = vld [vmem:[#allocation2 + $0x400] sm:$0xff]  ;;  %v206_v3 = vld [vmem:[#allocation2 + $0x488] sm:$0xff] }
  0x50   :  { %357 = vmatmul.f32.vlgmr.msra.gmra.mxu1 %v46_v4  ;;  %397 = vmatmul.f32.vlgmr.msra.gmra.mxu3 %v48_v5  ;;  %v221_v4 = vld [vmem:[#allocation2 + $0x500] sm:$0xff]  ;;  %v238_v5 = vld [vmem:[#allocation2 + $0x588] sm:$0xff] }
  0x51   :  { %482 = vmatpush.msra.mxu0 %v203_v6  ;;  %501 = vmatpush.msra.mxu1 %v220_v7  ;;  %v53_v6 = vld [vmem:[%s845_s0 + $0x40] sm:$0xff]  ;;  %v55_v7 = vld [vmem:[%s845_s0 + $0x50] sm:$0xff] }
  0x52   :  { %522 = vmatpush.msra.mxu2 %v235_v8  ;;  %541 = vmatpush.msra.mxu3 %v252_v9  ;;  %v268_v8 = vld [vmem:[#allocation2 + $0x678] sm:$0xff] }
  0x53   :  { %483 = vmatpush.msra.mxu0 %v202_v10  ;;  %502 = vmatpush.msra.mxu1 %v219_v11  ;;  %v300_v9 = vld [vmem:[#allocation2 + $0x778] sm:$0xff]  ;;  %v205_v10 = vld [vmem:[#allocation2 + $0x480] sm:$0xff] }
  0x54   :  { %523 = vmatpush.msra.mxu2 %v234_v12  ;;  %542 = vmatpush.msra.mxu3 %v251_v13  ;;  %v237_v11 = vld [vmem:[#allocation2 + $0x580] sm:$0xff]  ;;  %v54_v12 = vld [vmem:[%s845_s0 + $0x48] sm:$0xff]  ;;  %v56_v13 = vld [vmem:[%s845_s0 + $0x58] sm:$0xff] }
  0x55   :  { %484 = vmatpush.msra.mxu0 %v201_v14  ;;  %503 = vmatpush.msra.mxu1 %v218_v15  ;;  %v267_v14 = vld [vmem:[#allocation2 + $0x670] sm:$0xff]  ;;  %v284_v15 = vld [vmem:[#allocation2 + $0x6f8] sm:$0xff] }
  0x56   :  { %524 = vmatpush.msra.mxu2 %v233_v16  ;;  %543 = vmatpush.msra.mxu3 %v250_v17  ;;  %v299_v16 = vld [vmem:[#allocation2 + $0x770] sm:$0xff]  ;;  %v316_v17 = vld [vmem:[#allocation2 + $0x7f8] sm:$0xff] }
  0x57   :  { %457 = vmatmul.f32.vlgmr.msrb.gmra.mxu2 %v51_v18  ;;  %485 = vmatpush.msra.mxu0 %v200_v19  ;;  %v266_v18 = vld [vmem:[#allocation2 + $0x668] sm:$0xff]  ;;  %v283_v19 = vld [vmem:[#allocation2 + $0x6f0] sm:$0xff] }
  0x58   :  { %504 = vmatpush.msra.mxu1 %v217_v20  ;;  %525 = vmatpush.msra.mxu2 %v232_v21  ;;  %v298_v20 = vld [vmem:[#allocation2 + $0x768] sm:$0xff]  ;;  %v315_v21 = vld [vmem:[#allocation2 + $0x7f0] sm:$0xff] }
  0x59   :  { %544 = vmatpush.msra.mxu3 %v249_v22  ;;  %417 = vmatmul.f32.vlgmr.msrb.gmra.mxu0 %v49_v23  ;;  %v265_v22 = vld [vmem:[#allocation2 + $0x660] sm:$0xff]  ;;  %v282_v23 = vld [vmem:[#allocation2 + $0x6e8] sm:$0xff] }
  0x5a   :  { %477 = vmatmul.f32.vlgmr.msrb.gmra.mxu3 %v52_v24  ;;  %486 = vmatpush.msra.mxu0 %v199_v25  ;;  %v297_v24 = vld [vmem:[#allocation2 + $0x760] sm:$0xff]  ;;  %v314_v25 = vld [vmem:[#allocation2 + $0x7e8] sm:$0xff] }
  0x5b   :  { %505 = vmatpush.msra.mxu1 %v216_v26  ;;  %526 = vmatpush.msra.mxu2 %v231_v27  ;;  %v264_v26 = vld [vmem:[#allocation2 + $0x658] sm:$0xff]  ;;  %v281_v27 = vld [vmem:[#allocation2 + $0x6e0] sm:$0xff] }
  0x5c   :  { %545 = vmatpush.msra.mxu3 %v248_v28  ;;  %437 = vmatmul.f32.vlgmr.msrb.gmra.mxu1 %v50_v29  ;;  %v296_v28 = vld [vmem:[#allocation2 + $0x758] sm:$0xff]  ;;  %v313_v29 = vld [vmem:[#allocation2 + $0x7e0] sm:$0xff] }
  0x5d   :  { %487 = vmatpush.msra.mxu0 %v198_v30  ;;  %506 = vmatpush.msra.mxu1 %v215_v31  ;;  %v263_v30 = vld [vmem:[#allocation2 + $0x650] sm:$0xff]  ;;  %v280_v31 = vld [vmem:[#allocation2 + $0x6d8] sm:$0xff] }
  0x5e   :  { %527 = vmatpush.msra.mxu2 %v230_v32  ;;  %546 = vmatpush.msra.mxu3 %v247_v33  ;;  %v295_v32 = vld [vmem:[#allocation2 + $0x750] sm:$0xff]  ;;  %v312_v33 = vld [vmem:[#allocation2 + $0x7d8] sm:$0xff] }
  0x5f   :  { %488 = vmatpush.msra.mxu0 %v197_v34  ;;  %507 = vmatpush.msra.mxu1 %v214_v35  ;;  %v262_v34 = vld [vmem:[#allocation2 + $0x648] sm:$0xff]  ;;  %v279_v35 = vld [vmem:[#allocation2 + $0x6d0] sm:$0xff] }
  0x60   :  { %528 = vmatpush.msra.mxu2 %v229_v36  ;;  %547 = vmatpush.msra.mxu3 %v246_v37  ;;  %v294_v36 = vld [vmem:[#allocation2 + $0x748] sm:$0xff]  ;;  %v311_v37 = vld [vmem:[#allocation2 + $0x7d0] sm:$0xff] }
  0x61   :  { %489 = vmatpush.msra.mxu0 %v196_v38  ;;  %508 = vmatpush.msra.mxu1 %v213_v39  ;;  %v261_v38 = vld [vmem:[#allocation2 + $0x640] sm:$0xff]  ;;  %v278_v39 = vld [vmem:[#allocation2 + $0x6c8] sm:$0xff] }
  0x62   :  { %529 = vmatpush.msra.mxu2 %v228_v40  ;;  %548 = vmatpush.msra.mxu3 %v245_v41  ;;  %v293_v40 = vld [vmem:[#allocation2 + $0x740] sm:$0xff]  ;;  %v310_v41 = vld [vmem:[#allocation2 + $0x7c8] sm:$0xff] }
  0x63   :  { %490 = vmatpush.msra.mxu0 %v195_v42  ;;  %509 = vmatpush.msra.mxu1 %v212_v43  ;;  %v260_v42 = vld [vmem:[#allocation2 + $0x638] sm:$0xff]  ;;  %v277_v43 = vld [vmem:[#allocation2 + $0x6c0] sm:$0xff] }
  0x64   :  { %530 = vmatpush.msra.mxu2 %v227_v44  ;;  %549 = vmatpush.msra.mxu3 %v244_v45  ;;  %v292_v44 = vld [vmem:[#allocation2 + $0x738] sm:$0xff]  ;;  %v309_v45 = vld [vmem:[#allocation2 + $0x7c0] sm:$0xff] }
  0x65   :  { %491 = vmatpush.msra.mxu0 %v194_v46  ;;  %510 = vmatpush.msra.mxu1 %v211_v47  ;;  %v259_v46 = vld [vmem:[#allocation2 + $0x630] sm:$0xff]  ;;  %v276_v47 = vld [vmem:[#allocation2 + $0x6b8] sm:$0xff] }
  0x66   :  { %531 = vmatpush.msra.mxu2 %v226_v48  ;;  %550 = vmatpush.msra.mxu3 %v243_v49  ;;  %v291_v48 = vld [vmem:[#allocation2 + $0x730] sm:$0xff]  ;;  %v308_v49 = vld [vmem:[#allocation2 + $0x7b8] sm:$0xff] }
  0x67   :  { %492 = vmatpush.msra.mxu0 %v193_v50  ;;  %511 = vmatpush.msra.mxu1 %v210_v51  ;;  %v258_v50 = vld [vmem:[#allocation2 + $0x628] sm:$0xff]  ;;  %v275_v51 = vld [vmem:[#allocation2 + $0x6b0] sm:$0xff] }
  0x68   :  { %532 = vmatpush.msra.mxu2 %v225_v52  ;;  %551 = vmatpush.msra.mxu3 %v242_v53  ;;  %v290_v52 = vld [vmem:[#allocation2 + $0x728] sm:$0xff]  ;;  %v307_v53 = vld [vmem:[#allocation2 + $0x7b0] sm:$0xff] }
  0x69   :  { %493 = vmatpush.msra.mxu0 %v192_v54  ;;  %512 = vmatpush.msra.mxu1 %v209_v55  ;;  %v257_v54 = vld [vmem:[#allocation2 + $0x620] sm:$0xff]  ;;  %v274_v55 = vld [vmem:[#allocation2 + $0x6a8] sm:$0xff] }
  0x6a   :  { %533 = vmatpush.msra.mxu2 %v224_v56  ;;  %552 = vmatpush.msra.mxu3 %v241_v57  ;;  %v289_v56 = vld [vmem:[#allocation2 + $0x720] sm:$0xff]  ;;  %v306_v57 = vld [vmem:[#allocation2 + $0x7a8] sm:$0xff] }
  0x6b   :  { %494 = vmatpush.msra.mxu0 %v191_v58  ;;  %513 = vmatpush.msra.mxu1 %v208_v59  ;;  %v256_v58 = vld [vmem:[#allocation2 + $0x618] sm:$0xff]  ;;  %v273_v59 = vld [vmem:[#allocation2 + $0x6a0] sm:$0xff] }
  0x6c   :  { %534 = vmatpush.msra.mxu2 %v223_v60  ;;  %553 = vmatpush.msra.mxu3 %v240_v61  ;;  %v288_v60 = vld [vmem:[#allocation2 + $0x718] sm:$0xff]  ;;  %v305_v61 = vld [vmem:[#allocation2 + $0x7a0] sm:$0xff] }
  0x6d   :  { %495 = vmatpush.msra.mxu0 %v190_v62  ;;  %514 = vmatpush.msra.mxu1 %v207_v63  ;;  %v255_v62 = vld [vmem:[#allocation2 + $0x610] sm:$0xff]  ;;  %v272_v63 = vld [vmem:[#allocation2 + $0x698] sm:$0xff] }
  0x6e   :  { %535 = vmatpush.msra.mxu2 %v222_v0  ;;  %554 = vmatpush.msra.mxu3 %v239_v1  ;;  %v287_v0 = vld [vmem:[#allocation2 + $0x710] sm:$0xff]  ;;  %v304_v1 = vld [vmem:[#allocation2 + $0x798] sm:$0xff] }
  0x6f   :  { %496 = vmatpush.msra.mxu0 %v189_v2  ;;  %515 = vmatpush.msra.mxu1 %v206_v3  ;;  %v254_v2 = vld [vmem:[#allocation2 + $0x608] sm:$0xff]  ;;  %v271_v3 = vld [vmem:[#allocation2 + $0x690] sm:$0xff] }
  0x70   :  { %536 = vmatpush.msra.mxu2 %v221_v4  ;;  %555 = vmatpush.msra.mxu3 %v238_v5  ;;  %v286_v4 = vld [vmem:[#allocation2 + $0x708] sm:$0xff]  ;;  %v303_v5 = vld [vmem:[#allocation2 + $0x790] sm:$0xff] }
  0x71   :  { %497 = vmatmul.f32.vlgmr.msra.gmra.mxu0 %v53_v6  ;;  %537 = vmatmul.f32.vlgmr.msra.gmra.mxu2 %v55_v7  ;;  %v253_v6 = vld [vmem:[#allocation2 + $0x600] sm:$0xff]  ;;  %v270_v7 = vld [vmem:[#allocation2 + $0x688] sm:$0xff] }
  0x72   :  { %561 = vmatpush.msrb.mxu0 %v268_v8  ;;  %601 = vmatpush.msrb.mxu2 %v300_v9  ;;  %v285_v8 = vld [vmem:[#allocation2 + $0x700] sm:$0xff]  ;;  %v302_v9 = vld [vmem:[#allocation2 + $0x788] sm:$0xff] }
  0x73   :  { %516 = vmatpush.msra.mxu1 %v205_v10  ;;  %556 = vmatpush.msra.mxu3 %v237_v11  ;;  %v57_v10 = vld [vmem:[%s845_s0 + $0x60] sm:$0xff]  ;;  %v59_v11 = vld [vmem:[%s845_s0 + $0x70] sm:$0xff] }
  0x74   :  { %517 = vmatmul.f32.vlgmr.msra.gmra.mxu1 %v54_v12  ;;  %557 = vmatmul.f32.vlgmr.msra.gmra.mxu3 %v56_v13  ;;  %v269_v12 = vld [vmem:[#allocation2 + $0x680] sm:$0xff] }
  0x75   :  { %562 = vmatpush.msrb.mxu0 %v267_v14  ;;  %581 = vmatpush.msrb.mxu1 %v284_v15  ;;  %v301_v13 = vld [vmem:[#allocation2 + $0x780] sm:$0xff]  ;;  %v58_v14 = vld [vmem:[%s845_s0 + $0x68] sm:$0xff]  ;;  %v60_v15 = vld [vmem:[%s845_s0 + $0x78] sm:$0xff]  ;;  %s767_s0 = smov [#allocation7]  }
  0x76   :  { %602 = vmatpush.msrb.mxu2 %v299_v16  ;;  %621 = vmatpush.msrb.mxu3 %v316_v17  ;;  %v681_v16 = vld [vmem:[#allocation5] ss:$0 sm:$0xff]  ;;  %s662_s25 = sshll.u32 %s767_s0, 4  ;;  %s663_s25 = int_to_ptr.vmem [resolvable:$true] %s662_s25 }
  0x77   :  { %563 = vmatpush.msrb.mxu0 %v266_v18  ;;  %582 = vmatpush.msrb.mxu1 %v283_v19 }
  0x78   :  { %603 = vmatpush.msrb.mxu2 %v298_v20  ;;  %622 = vmatpush.msrb.mxu3 %v315_v21 }
  0x79   :  { %564 = vmatpush.msrb.mxu0 %v265_v22  ;;  %583 = vmatpush.msrb.mxu1 %v282_v23 }
  0x7a   :  { %604 = vmatpush.msrb.mxu2 %v297_v24  ;;  %623 = vmatpush.msrb.mxu3 %v314_v25 }
  0x7b   :  { %565 = vmatpush.msrb.mxu0 %v264_v26  ;;  %584 = vmatpush.msrb.mxu1 %v281_v27 }
  0x7c   :  { %605 = vmatpush.msrb.mxu2 %v296_v28  ;;  %624 = vmatpush.msrb.mxu3 %v313_v29 }
  0x7d   :  { %566 = vmatpush.msrb.mxu0 %v263_v30  ;;  %585 = vmatpush.msrb.mxu1 %v280_v31 }
  0x7e   :  { %606 = vmatpush.msrb.mxu2 %v295_v32  ;;  %625 = vmatpush.msrb.mxu3 %v312_v33 }
  0x7f   :  { %567 = vmatpush.msrb.mxu0 %v262_v34  ;;  %586 = vmatpush.msrb.mxu1 %v279_v35 }
  0x80   :  { %607 = vmatpush.msrb.mxu2 %v294_v36  ;;  %626 = vmatpush.msrb.mxu3 %v311_v37 }
  0x81   :  { %568 = vmatpush.msrb.mxu0 %v261_v38  ;;  %587 = vmatpush.msrb.mxu1 %v278_v39 }
  0x82   :  { %608 = vmatpush.msrb.mxu2 %v293_v40  ;;  %627 = vmatpush.msrb.mxu3 %v310_v41  ;;  %v766_v40 = vmov 8.0  }
  0x83   :  { %569 = vmatpush.msrb.mxu0 %v260_v42  ;;  %588 = vmatpush.msrb.mxu1 %v277_v43  ;;  %682 = vrcp.f32 %v766_v40 }
  0x84   :  { %609 = vmatpush.msrb.mxu2 %v292_v44  ;;  %628 = vmatpush.msrb.mxu3 %v309_v45 }
  0x85   :  { %570 = vmatpush.msrb.mxu0 %v259_v46  ;;  %589 = vmatpush.msrb.mxu1 %v276_v47 }
  0x86   :  { %610 = vmatpush.msrb.mxu2 %v291_v48  ;;  %629 = vmatpush.msrb.mxu3 %v308_v49 }
  0x87   :  { %571 = vmatpush.msrb.mxu0 %v258_v50  ;;  %590 = vmatpush.msrb.mxu1 %v275_v51 }
  0x88   :  { %611 = vmatpush.msrb.mxu2 %v290_v52  ;;  %630 = vmatpush.msrb.mxu3 %v307_v53 }
  0x89   :  { %572 = vmatpush.msrb.mxu0 %v257_v54  ;;  %591 = vmatpush.msrb.mxu1 %v274_v55  ;;  %v683_v45 = vpop.eup %682 }
  0x8a   :  { %612 = vmatpush.msrb.mxu2 %v289_v56  ;;  %631 = vmatpush.msrb.mxu3 %v306_v57  ;;  %v649_v48 = vmul.f32 8.0, %v683_v45  ;;  %vm653_vm0 = vweird.f32 %v683_v45 }
  0x8b   :  { %573 = vmatpush.msrb.mxu0 %v256_v58  ;;  %592 = vmatpush.msrb.mxu1 %v273_v59 }
  0x8c   :  { %613 = vmatpush.msrb.mxu2 %v288_v60  ;;  %632 = vmatpush.msrb.mxu3 %v305_v61  ;;  %v650_v52 = vsub.f32 1.0, %v649_v48 }
  0x8d   :  { %574 = vmatpush.msrb.mxu0 %v255_v62  ;;  %593 = vmatpush.msrb.mxu1 %v272_v63 }
  0x8e   :  { %614 = vmatpush.msrb.mxu2 %v287_v0  ;;  %633 = vmatpush.msrb.mxu3 %v304_v1  ;;  %v651_v55 = vmul.f32 %v683_v45, %v650_v52 }
  0x8f   :  { %575 = vmatpush.msrb.mxu0 %v254_v2  ;;  %594 = vmatpush.msrb.mxu1 %v271_v3 }
  0x90   :  { %615 = vmatpush.msrb.mxu2 %v286_v4  ;;  %634 = vmatpush.msrb.mxu3 %v303_v5  ;;  %v652_v58 = vadd.f32 %v683_v45, %v651_v55 }
  0x91   :  { %576 = vmatpush.msrb.mxu0 %v253_v6  ;;  %595 = vmatpush.msrb.mxu1 %v270_v7 }
  0x92   :  { %616 = vmatpush.msrb.mxu2 %v285_v8  ;;  %635 = vmatpush.msrb.mxu3 %v302_v9  ;;  %v654_v61 = vsel %vm653_vm0, %v683_v45, %v652_v58 }
  0x93   :  { %577 = vmatmul.f32.vlgmr.msrb.gmra.mxu0 %v57_v10  ;;  %617 = vmatmul.f32.vlgmr.msrb.gmra.mxu2 %v59_v11 }
  0x94   :  { %596 = vmatpush.msrb.mxu1 %v269_v12  ;;  %636 = vmatpush.msrb.mxu3 %v301_v13 }
  0x95   :  { %597 = vmatmul.f32.vlgmr.msrb.gmra.mxu1 %v58_v14  ;;  %637 = vmatmul.f32.vlgmr.msrb.gmra.mxu3 %v60_v15 }
  0xca   :  { %v338_v17 = vpop.f32.mrf.mxu0 }
  0xcb   :  { %v339_v18 = vadd.f32 %v681_v16, %v338_v17 }
  0xcd   :  { %v358_v19 = vpop.f32.mrf.mxu1 }
  0xce   :  { %v359_v20 = vadd.f32 %v358_v19, %v339_v18 }
  0xd0   :  { %v378_v21 = vpop.f32.mrf.mxu2 }
  0xd1   :  { %v379_v22 = vadd.f32 %v378_v21, %v359_v20 }
  0xd3   :  { %v398_v23 = vpop.f32.mrf.mxu3 }
  0xd4   :  { %v399_v24 = vadd.f32 %v398_v23, %v379_v22 }
  0xd6   :  { %v418_v25 = vpop.f32.mrf.mxu0 }
  0xd7   :  { %v419_v26 = vadd.f32 %v418_v25, %v399_v24 }
  0xd9   :  { %v438_v27 = vpop.f32.mrf.mxu1 }
  0xda   :  { %v439_v28 = vadd.f32 %v438_v27, %v419_v26  ;;  %v458_v29 = vpop.f32.mrf.mxu2 }
  0xdc   :  { %v459_v30 = vadd.f32 %v458_v29, %v439_v28 }
  0xdd   :  { %v478_v31 = vpop.f32.mrf.mxu3 }
  0xde   :  { %v479_v33 = vadd.f32 %v478_v31, %v459_v30 }
  0xee   :  { %v498_v32 = vpop.f32.mrf.mxu0 }
  0xef   :  { %v499_v34 = vadd.f32 %v498_v32, %v479_v33 }
  0xf1   :  { %v518_v35 = vpop.f32.mrf.mxu1 }
  0xf2   :  { %v519_v37 = vadd.f32 %v518_v35, %v499_v34 }
  0xf4   :  { %v538_v36 = vpop.f32.mrf.mxu2 }
  0xf5   :  { %v539_v38 = vadd.f32 %v538_v36, %v519_v37 }
  0xf7   :  { %v558_v39 = vpop.f32.mrf.mxu3 }
  0xf8   :  { %v559_v41 = vadd.f32 %v558_v39, %v539_v38 }
 0x110   :  { %v578_v42 = vpop.f32.mrf.mxu0 }
 0x111   :  { %v579_v43 = vadd.f32 %v578_v42, %v559_v41 }
 0x112   :  { %v598_v44 = vpop.f32.mrf.mxu1 }
 0x113   :  { %v599_v46 = vadd.f32 %v598_v44, %v579_v43 }
 0x116   :  { %v618_v47 = vpop.f32.mrf.mxu2 }
 0x117   :  { %v619_v49 = vadd.f32 %v618_v47, %v599_v46 }
 0x118   :  { %v638_v50 = vpop.f32.mrf.mxu3 }
 0x119   :  { %v639_v51 = vadd.f32 %v638_v50, %v619_v49 }
 0x11b   :  { %v641_v53 = vmax.f32 %v639_v51, 0.0 }
 0x11d   :  { %v642_v54 = vrot.slane %v641_v53, 4 }
 0x11f   :  { %v643_v56 = vadd.f32 %v642_v54, %v641_v53 }
 0x121   :  { %v644_v57 = vrot.slane %v643_v56, 2 }
 0x123   :  { %v645_v59 = vadd.f32 %v644_v57, %v643_v56 }
 0x125   :  { %v646_v60 = vrot.slane %v645_v59, 1 }
 0x127   :  { %v647_v62 = vadd.f32 %v646_v60, %v645_v59 }
 0x129   :  { %v655_v63 = vmul.f32 %v654_v61, %v647_v62 }
 0x12b   :  { %656 = vst [vmem:[#allocation7] sm:$0x1] %v655_v63 }
 0x12c   :  { %667 = dma.vmem_to_hbm [thread:$0]  %s663_s25, 16, %s665_s28, [#allocation4]  }
 0x12d   :  { %760 = dma.done.wait [#allocation4], 16  }
 0x12e   :  { %761 = vsyncadd [#allocation4], 4294967280 }
 0x12f   :  { %672 = vsyncpa [#allocation3], 1 }
 0x130   :  { %673 = vsyncpa [#allocation6], 1 }
 0x131   :  { %674 = vsyncpa [#allocation4], 1 }

// kernel: net_forward.4
= control target key start
LH: loop header
LB: loop body
LE: loop exit
PB: predicated region body
PF: predicated region fallthrough
CT: control target
= control target key end

     0   :  { %8 = vsyncpa [#allocation3], 0  ;;  %s8466_s0 = inlined_call_operand.hbm [shape: f32[8,2048], index: 0, kind: input, shape index: {}]   ;;  %s8467_s1 = inlined_call_operand.hbm [shape: bf16[2048,2048], index: 1, kind: input, shape index: {}]   ;;  %s8468_s2 = inlined_call_operand.hbm [shape: f32[1,2048], index: 2, kind: input, shape index: {}]   ;;  %s8469_s3 = inlined_call_operand.vmem [shape: f32[8,2048], index: 3, kind: output, shape index: {}]  }
   0x1   :  { %9 = vsyncpa [#allocation5], 0 }
   0x2   :  { %11 = vsyncpa [#allocation5 + $0x1], 0  ;;  %s7093_s12 = smov 0   ;;  %s7095_s13 = smov 0  }
   0x3   :  { %s7097_s14 = smov 0   ;;  %s7099_s15 = smov 0  }
   0x4 LB: > { %s7114_s16 = sadd.s32 1, %s7067_s15   ;;  %s45_s17 = sadd.s32 1, %s7063_s14  ;;  %s7067_s15 = sphi %s7099_s15, %s8477_s15   ;;  %s7063_s14 = sphi %s7097_s14, %s8476_s14   ;;  %s7059_s13 = sphi %s7095_s13, %s8475_s13   ;;  %s7055_s12 = sphi %s7093_s12, %s8474_s12  }
   0x5   : > { %s42_s18 = ssub.s32 %s7067_s15, %s7114_s16  ;;  %p52_p0 = scmp.ne.s32.totalorder %s7063_s14, %s7059_s13 }
   0x6   : > { %p43_p1 = scmp.eq.s32.totalorder %s42_s18, 0  ;;  %p53_p2 = scmp.eq.s32.totalorder %s7067_s15, 0 }
   0x7   : > { %p6899_p3 = scmp.lt.s32.totalorder %s7067_s15, 4  ;;  %s146_s20 = sand.u32 1, %s7067_s15  }
   0x8   : > { %s7124_s19 = scalar_select %p43_p1, %s7063_s14, %s45_s17  }
   0x9   : > { %p54_p4 = por %p53_p2, %p52_p0  ;;  %s148_s21 = sand.u32 1, %s7063_s14  }
   0xa   : > { %s4305_s22 = sshll.u32 %s148_s21, 12  ;;  %s6366_s23 = sshll.u32 %s7067_s15, 4 }
   0xb   : > { %s155_s26 = scalar_lea.hbm %s8467_s1, %s6366_s23  ;;  %s150_s28 = scalar_lea.vmem [#allocation4], %s4305_s22 }
   0xc   : > { %s156_s27 = sshll.u32 %s155_s26, 4  ;;  %s158_s29 = sshll.u32 %s150_s28, 4  ;;  %s157_s27 = int_to_ptr.hbm [resolvable:$true] %s156_s27  ;;  %s159_s29 = int_to_ptr.vmem [resolvable:$true] %s158_s29 }
   0xd   : > { %p7136_p5 = pnand %p6899_p3, %p54_p4  ;;  %s7140_s4 = scalar_lea.sflag [#allocation5], %s146_s20 }
   0xe   : > { %s6939_s5 = sshra.s32 %s157_s27, 4  ;;  %s6946_s9 = scalar_lea.hbm %s8467_s1, 16384  ;;  %s6940_s5 = int_to_ptr.hbm [resolvable:$true] %s6939_s5 }
   0xf   : > { %s6941_s6 = scalar_lea.hbm %s6940_s5, 4096  ;;  %p6943_p7 = pneg %p7136_p5 }
  0x10   : > { %p6942_p6 = scmp.ne.s32.totalorder %s6940_s5, %s6941_s6  ;;  %p6947_p10 = scmp.lt.s32.totalorder %s6940_s5, %s8467_s1 }
  0x11   : > { %p6948_p11 = scmp.lt.s32.totalorder %s6946_s9, %s6941_s6 }
  0x12   : > { %p6944_p8 = pnand %p6943_p7, %p6942_p6 }
  0x13   : > { %p6949_p12 = por %p6948_p11, %p6947_p10 }
  0x14   : > { %p6945_p9 = pneg %p6944_p8 }
  0x16   : > { %p6950_p13 = pnand %p6949_p12, %p6945_p9 }
  0x18   : > { %6953 = shalt.err (!%p6950_p13)
}
  0x19   : > { %s7069_s17 = smov 1024   ;;  %s7070_s18 = smov 256  }
  0x1a   : > { %s7071_s20 = smov 16   ;;  %s7157_s22 = sadd.s32 4294967295, %s7067_s15  }
  0x1b   : > { %6894 = dma.hbm_to_vmem [thread:$0]  (!%p7136_p5), %s157_s27, 65536, %s159_s29, %s7140_s4, %s7069_s17, %s7070_s18, %s7071_s20  }
  0x1c   : > { %p58_p0 = scmp.ne.s32.totalorder %s7059_s13, %s7055_s12  ;;  %p59_p1 = scmp.eq.s32.totalorder %s7157_s22, 0 }
  0x1d   : > { %p4302_p2 = scmp.ge.s32.totalorder %s7067_s15, 1  ;;  %p121_p3 = scmp.lt.s32.totalorder %s7067_s15, 5 }
  0x1e   : > { %p7166_p4 = por %p59_p1, %p58_p0  ;;  %s133_s27 = sshll.u32 %s8466_s0, 4  ;;  %s134_s27 = int_to_ptr.hbm [resolvable:$true] %s133_s27 }
  0x1f   : > { %p7170_p6 = pnand %p4302_p2, %p121_p3  ;;  %s7072_s12 = smov [#allocation2]  }
  0x20   : > { %s135_s28 = sshll.u32 %s7072_s12, 4  ;;  %s4308_s29 = sshll.u32 %s148_s21, 2  ;;  %s136_s28 = int_to_ptr.vmem [resolvable:$true] %s135_s28 }
  0x21   : > { %p6887_p8 = pneg %p7170_p6  ;;  %s4309_s5 = sshll.u32 %s7067_s15, 2 }
  0x22   : > { %s172_s6 = scalar_lea.vmem [#allocation6], %s4308_s29  ;;  %s176_s10 = scalar_lea.hbm %s8468_s2, %s4309_s5 }
  0x23   : > { %p6888_p9 = pnand %p6887_p8, %p59_p1  ;;  %s180_s7 = sshll.u32 %s172_s6, 4  ;;  %s181_s7 = int_to_ptr.vmem [resolvable:$true] %s180_s7 }
  0x24   : > { %s178_s11 = sshll.u32 %s176_s10, 4  ;;  %s7006_s20 = scalar_lea.hbm %s8468_s2, 16  ;;  %s179_s11 = int_to_ptr.hbm [resolvable:$true] %s178_s11 }
  0x25   : > { %6890 = dma.hbm_to_vmem [thread:$0]  (!%p6888_p9), %s134_s27, 2048, %s136_s28, [#allocation3]  }
  0x26   : > { %s6999_s17 = sshra.s32 %s179_s11, 4  ;;  %s7000_s17 = int_to_ptr.hbm [resolvable:$true] %s6999_s17 }
  0x27   : > { %s7001_s18 = scalar_lea.hbm %s7000_s17, 4  ;;  %p7007_p13 = scmp.lt.s32.totalorder %s7000_s17, %s8468_s2 }
  0x28   : > { %p7002_p10 = scmp.ne.s32.totalorder %s7000_s17, %s7001_s18  ;;  %p7008_p0 = scmp.lt.s32.totalorder %s7006_s20, %s7001_s18 }
  0x2a   : > { %p7004_p11 = pnand %p7002_p10, %p6943_p7  ;;  %p7009_p2 = por %p7008_p0, %p7007_p13 }
  0x2c   : > { %p7005_p12 = pneg %p7004_p11 }
  0x2e   : > { %p7010_p3 = pnand %p7009_p2, %p7005_p12 }
  0x30   : > { %7013 = shalt.err (!%p7010_p3)
}
  0x31   : > { %6897 = dma.hbm_to_vmem [thread:$0]  (!%p7136_p5), %s179_s11, 64, %s181_s7, %s7140_s4  }
  0x32   : > { %189 = sbr.rel (%p7170_p6) target bundleno = 720 (0x2d0), region = 32 }
  0x37   : > { %7046 = dma.done.wait (%p59_p1), [#allocation3], 2048  }
  0x38   : > { %7048 = vsyncadd (%p59_p1), [#allocation3], 4294965248  ;;  %s196_s27 = sand.u32 1, %s7157_s22   ;;  %s198_s12 = sand.u32 1, %s7059_s13  }
  0x39   : > { %s4312_s28 = sshll.u32 %s198_s12, 12  ;;  %s197_s30 = scalar_lea.sflag [#allocation5], %s196_s27 }
  0x3a   : > { %s7209_s29 = scalar_lea.vmem [#allocation4], %s4312_s28 }
  0x3b   : > { %7050 = dma.done.wait (%p7166_p4), %s197_s30, 65600  }
  0x3c   : > { %7052 = vsyncadd (%p7166_p4), %s197_s30, 4294901696  ;;  %v4430_v0 = vld [vmem:[%s7209_s29 + $0xe0] sm:$0xf]  ;;  %v6397_v1 = vld [vmem:[%s7209_s29 + $0xec] sm:$0xf0]  ;;  %s7601_s4 = sshll.u32 %s198_s12, 2 }
  0x3d   : > { %v4558_v2 = vld [vmem:[%s7209_s29 + $0x1e0] sm:$0xf]  ;;  %v4431_v3 = vor.u32 %v6397_v1, %v4430_v0  ;;  %v6429_v4 = vld [vmem:[%s7209_s29 + $0x1ec] sm:$0xf0]  ;;  %s7622_s23 = scalar_lea.vmem [#allocation6], %s7601_s4  ;;  %s4314_s24 = sshll.u32 %s7157_s22, 2 }
  0x3e   : > { %v4686_v5 = vld [vmem:[%s7209_s29 + $0x2e0] sm:$0xf]  ;;  %v6461_v6 = vld [vmem:[%s7209_s29 + $0x2ec] sm:$0xf0]  ;;  %v4559_v7 = vor.u32 %v6429_v4, %v4558_v2  ;;  %p7864_p5 = scmp.lt.s32.totalorder %s4314_s24, 15 }
  0x3f   : > { %v4687_v8 = vor.u32 %v6461_v6, %v4686_v5  ;;  %v4814_v9 = vld [vmem:[%s7209_s29 + $0x3e0] sm:$0xf]  ;;  %v6493_v10 = vld [vmem:[%s7209_s29 + $0x3ec] sm:$0xf0]  ;;  %3361 = vmatpush.bf16.msra.mxu0 %v4431_v3 }
  0x40   : > { %v4414_v11 = vld [vmem:[%s7209_s29 + $0xc0] sm:$0xf]  ;;  %v4815_v12 = vor.u32 %v6493_v10, %v4814_v9  ;;  %v6393_v13 = vld [vmem:[%s7209_s29 + $0xcc] sm:$0xf0]  ;;  %3374 = vmatpush.bf16.msra.mxu1 %v4559_v7  ;;  %s8479_s24 = smov (!%p7864_p5, %s4314_s24), 15 }
  0x41   : > { %v4542_v14 = vld [vmem:[%s7209_s29 + $0x1c0] sm:$0xf]  ;;  %v6425_v15 = vld [vmem:[%s7209_s29 + $0x1cc] sm:$0xf0]  ;;  %3387 = vmatpush.bf16.msra.mxu2 %v4687_v8  ;;  %v4415_v16 = vor.u32 %v6393_v13, %v4414_v11  ;;  %s4315_s22 = sshll.u32 %s8479_s24, 3 }
  0x42   : > { %v4543_v17 = vor.u32 %v6425_v15, %v4542_v14  ;;  %v4670_v18 = vld [vmem:[%s7209_s29 + $0x2c0] sm:$0xf]  ;;  %v6457_v19 = vld [vmem:[%s7209_s29 + $0x2cc] sm:$0xf0]  ;;  %3400 = vmatpush.bf16.msra.mxu3 %v4815_v12  ;;  %s7897_s8 = scalar_lea.vmem %s8469_s3, %s4315_s22 }
  0x43   : > { %v4798_v20 = vld [vmem:[%s7209_s29 + $0x3c0] sm:$0xf]  ;;  %v4671_v21 = vor.u32 %v6457_v19, %v4670_v18  ;;  %v6489_v22 = vld [vmem:[%s7209_s29 + $0x3cc] sm:$0xf0]  ;;  %3362 = vmatpush.bf16.msra.mxu0 %v4415_v16 }
  0x44   : > { %v4398_v23 = vld [vmem:[%s7209_s29 + $0xa0] sm:$0xf]  ;;  %v6389_v24 = vld [vmem:[%s7209_s29 + $0xac] sm:$0xf0]  ;;  %v4799_v25 = vor.u32 %v6489_v22, %v4798_v20  ;;  %3375 = vmatpush.bf16.msra.mxu1 %v4543_v17 }
  0x45   : > { %v4526_v26 = vld [vmem:[%s7209_s29 + $0x1a0] sm:$0xf]  ;;  %v6421_v27 = vld [vmem:[%s7209_s29 + $0x1ac] sm:$0xf0]  ;;  %v4399_v29 = vor.u32 %v6389_v24, %v4398_v23  ;;  %3388 = vmatpush.bf16.msra.mxu2 %v4671_v21 }
  0x46   : > { %v4654_v28 = vld [vmem:[%s7209_s29 + $0x2a0] sm:$0xf]  ;;  %v6453_v30 = vld [vmem:[%s7209_s29 + $0x2ac] sm:$0xf0]  ;;  %v4527_v33 = vor.u32 %v6421_v27, %v4526_v26  ;;  %3401 = vmatpush.bf16.msra.mxu3 %v4799_v25 }
  0x47   : > { %v4782_v31 = vld [vmem:[%s7209_s29 + $0x3a0] sm:$0xf]  ;;  %v6485_v32 = vld [vmem:[%s7209_s29 + $0x3ac] sm:$0xf0]  ;;  %v4655_v34 = vor.u32 %v6453_v30, %v4654_v28  ;;  %3363 = vmatpush.bf16.msra.mxu0 %v4399_v29 }
  0x48   : > { %v4382_v35 = vld [vmem:[%s7209_s29 + $0x80] sm:$0xf]  ;;  %v6385_v36 = vld [vmem:[%s7209_s29 + $0x8c] sm:$0xf0]  ;;  %v4783_v38 = vor.u32 %v6485_v32, %v4782_v31  ;;  %3376 = vmatpush.bf16.msra.mxu1 %v4527_v33 }
  0x49   : > { %v4510_v37 = vld [vmem:[%s7209_s29 + $0x180] sm:$0xf]  ;;  %v6417_v39 = vld [vmem:[%s7209_s29 + $0x18c] sm:$0xf0]  ;;  %v4383_v44 = vor.u32 %v6385_v36, %v4382_v35  ;;  %3389 = vmatpush.bf16.msra.mxu2 %v4655_v34 }
  0x4a   : > { %v4638_v40 = vld [vmem:[%s7209_s29 + $0x280] sm:$0xf]  ;;  %v6449_v41 = vld [vmem:[%s7209_s29 + $0x28c] sm:$0xf0]  ;;  %v4511_v45 = vor.u32 %v6417_v39, %v4510_v37  ;;  %3402 = vmatpush.bf16.msra.mxu3 %v4783_v38 }
  0x4b   : > { %v4766_v42 = vld [vmem:[%s7209_s29 + $0x380] sm:$0xf]  ;;  %v6481_v43 = vld [vmem:[%s7209_s29 + $0x38c] sm:$0xf0]  ;;  %v4639_v46 = vor.u32 %v6449_v41, %v4638_v40  ;;  %3364 = vmatpush.bf16.msra.mxu0 %v4383_v44 }
  0x4c   : > { %v4366_v47 = vld [vmem:[%s7209_s29 + $0x60] sm:$0xf]  ;;  %v6381_v48 = vld [vmem:[%s7209_s29 + $0x6c] sm:$0xf0]  ;;  %v4767_v50 = vor.u32 %v6481_v43, %v4766_v42  ;;  %3377 = vmatpush.bf16.msra.mxu1 %v4511_v45 }
  0x4d   : > { %v4494_v49 = vld [vmem:[%s7209_s29 + $0x160] sm:$0xf]  ;;  %v6413_v51 = vld [vmem:[%s7209_s29 + $0x16c] sm:$0xf0]  ;;  %v4367_v56 = vor.u32 %v6381_v48, %v4366_v47  ;;  %3390 = vmatpush.bf16.msra.mxu2 %v4639_v46 }
  0x4e   : > { %v4622_v52 = vld [vmem:[%s7209_s29 + $0x260] sm:$0xf]  ;;  %v6445_v53 = vld [vmem:[%s7209_s29 + $0x26c] sm:$0xf0]  ;;  %v4495_v57 = vor.u32 %v6413_v51, %v4494_v49  ;;  %3403 = vmatpush.bf16.msra.mxu3 %v4767_v50 }
  0x4f   : > { %v4750_v54 = vld [vmem:[%s7209_s29 + $0x360] sm:$0xf]  ;;  %v6477_v55 = vld [vmem:[%s7209_s29 + $0x36c] sm:$0xf0]  ;;  %v4623_v58 = vor.u32 %v6445_v53, %v4622_v52  ;;  %3365 = vmatpush.bf16.msra.mxu0 %v4367_v56 }
  0x50   : > { %v4350_v59 = vld [vmem:[%s7209_s29 + $0x40] sm:$0xf]  ;;  %v6377_v60 = vld [vmem:[%s7209_s29 + $0x4c] sm:$0xf0]  ;;  %v4751_v62 = vor.u32 %v6477_v55, %v4750_v54  ;;  %3378 = vmatpush.bf16.msra.mxu1 %v4495_v57 }
  0x51   : > { %v4478_v61 = vld [vmem:[%s7209_s29 + $0x140] sm:$0xf]  ;;  %v6409_v63 = vld [vmem:[%s7209_s29 + $0x14c] sm:$0xf0]  ;;  %v4351_v4 = vor.u32 %v6377_v60, %v4350_v59  ;;  %3391 = vmatpush.bf16.msra.mxu2 %v4623_v58 }
  0x52   : > { %v4606_v0 = vld [vmem:[%s7209_s29 + $0x240] sm:$0xf]  ;;  %v6441_v1 = vld [vmem:[%s7209_s29 + $0x24c] sm:$0xf0]  ;;  %v4479_v5 = vor.u32 %v6409_v63, %v4478_v61  ;;  %3404 = vmatpush.bf16.msra.mxu3 %v4751_v62 }
  0x53   : > { %v4734_v2 = vld [vmem:[%s7209_s29 + $0x340] sm:$0xf]  ;;  %v6473_v3 = vld [vmem:[%s7209_s29 + $0x34c] sm:$0xf0]  ;;  %v4607_v6 = vor.u32 %v6441_v1, %v4606_v0  ;;  %3366 = vmatpush.bf16.msra.mxu0 %v4351_v4 }
  0x54   : > { %v4334_v7 = vld [vmem:[%s7209_s29 + $0x20] sm:$0xf]  ;;  %v6373_v8 = vld [vmem:[%s7209_s29 + $0x2c] sm:$0xf0]  ;;  %v4735_v10 = vor.u32 %v6473_v3, %v4734_v2  ;;  %3379 = vmatpush.bf16.msra.mxu1 %v4479_v5 }
  0x55   : > { %v4462_v9 = vld [vmem:[%s7209_s29 + $0x120] sm:$0xf]  ;;  %v6405_v11 = vld [vmem:[%s7209_s29 + $0x12c] sm:$0xf0]  ;;  %v4335_v16 = vor.u32 %v6373_v8, %v4334_v7  ;;  %3392 = vmatpush.bf16.msra.mxu2 %v4607_v6 }
  0x56   : > { %v4590_v12 = vld [vmem:[%s7209_s29 + $0x220] sm:$0xf]  ;;  %v6437_v13 = vld [vmem:[%s7209_s29 + $0x22c] sm:$0xf0]  ;;  %v4463_v19 = vor.u32 %v6405_v11, %v4462_v9  ;;  %3405 = vmatpush.bf16.msra.mxu3 %v4735_v10  ;;  %v250_v10 = vld [vmem:[#allocation2 + $0x18] sm:$0xff] }
  0x57   : > { %v4718_v14 = vld [vmem:[%s7209_s29 + $0x320] sm:$0xf]  ;;  %v6469_v15 = vld [vmem:[%s7209_s29 + $0x32c] sm:$0xf0]  ;;  %v4591_v20 = vor.u32 %v6437_v13, %v4590_v12  ;;  %3367 = vmatpush.bf16.msra.mxu0 %v4335_v16  ;;  %v248_v11 = vld [vmem:[#allocation2 + $0x8] sm:$0xff]  ;;  %v7314_v16 = vpack.c.bf16 %v250_v10, %v250_v10 }
  0x58   : > { %v4318_v17 = vld [vmem:[%s7209_s29] sm:$0xf]  ;;  %v6369_v18 = vld [vmem:[%s7209_s29 + $0xc] sm:$0xf0]  ;;  %v4719_v24 = vor.u32 %v6469_v15, %v4718_v14  ;;  %3380 = vmatpush.bf16.msra.mxu1 %v4463_v19 }
  0x59   : > { %v4446_v21 = vld [vmem:[%s7209_s29 + $0x100] sm:$0xf]  ;;  %v6401_v22 = vld [vmem:[%s7209_s29 + $0x10c] sm:$0xf0]  ;;  %v4319_v31 = vor.u32 %v6369_v18, %v4318_v17  ;;  %3393 = vmatpush.bf16.msra.mxu2 %v4591_v20  ;;  %v7316_v17 = vpack.c.bf16 %v248_v11, %v248_v11 }
  0x5a   : > { %v4574_v23 = vld [vmem:[%s7209_s29 + $0x200] sm:$0xf]  ;;  %v6433_v25 = vld [vmem:[%s7209_s29 + $0x20c] sm:$0xf0]  ;;  %v4447_v35 = vor.u32 %v6401_v22, %v4446_v21  ;;  %3406 = vmatpush.bf16.msra.mxu3 %v4719_v24 }
  0x5b   : > { %v4702_v26 = vld [vmem:[%s7209_s29 + $0x300] sm:$0xf]  ;;  %v6465_v27 = vld [vmem:[%s7209_s29 + $0x30c] sm:$0xf0]  ;;  %v4575_v36 = vor.u32 %v6433_v25, %v4574_v23  ;;  %3368 = vmatpush.bf16.msra.mxu0 %v4319_v31 }
  0x5c   : > { %v4942_v28 = vld [vmem:[%s7209_s29 + $0x4e0] sm:$0xf]  ;;  %v6525_v29 = vld [vmem:[%s7209_s29 + $0x4ec] sm:$0xf0]  ;;  %v4703_v39 = vor.u32 %v6465_v27, %v4702_v26  ;;  %3381 = vmatpush.bf16.msra.mxu1 %v4447_v35 }
  0x5d   : > { %v5070_v30 = vld [vmem:[%s7209_s29 + $0x5e0] sm:$0xf]  ;;  %v6557_v32 = vld [vmem:[%s7209_s29 + $0x5ec] sm:$0xf0]  ;;  %v4943_v40 = vor.u32 %v6525_v29, %v4942_v28  ;;  %3394 = vmatpush.bf16.msra.mxu2 %v4575_v36 }
  0x5e   : > { %v5198_v33 = vld [vmem:[%s7209_s29 + $0x6e0] sm:$0xf]  ;;  %v6589_v34 = vld [vmem:[%s7209_s29 + $0x6ec] sm:$0xf0]  ;;  %v5071_v41 = vor.u32 %v6557_v32, %v5070_v30  ;;  %3407 = vmatpush.bf16.msra.mxu3 %v4703_v39 }
  0x5f   : > { %v5326_v37 = vld [vmem:[%s7209_s29 + $0x7e0] sm:$0xf]  ;;  %v6621_v38 = vld [vmem:[%s7209_s29 + $0x7ec] sm:$0xf0]  ;;  %v5199_v42 = vor.u32 %v6589_v34, %v5198_v33  ;;  %3413 = vmatpush.bf16.msrb.mxu0 %v4943_v40  ;;  %3382 = vmatmul.bf16.vlgmr.msra.gmra.mxu1 %v7316_v17 }
  0x60   : > { %v4926_v43 = vld [vmem:[%s7209_s29 + $0x4c0] sm:$0xf]  ;;  %v6521_v44 = vld [vmem:[%s7209_s29 + $0x4cc] sm:$0xf0]  ;;  %v5327_v46 = vor.u32 %v6621_v38, %v5326_v37  ;;  %3426 = vmatpush.bf16.msrb.mxu1 %v5071_v41 }
  0x61   : > { %v5054_v45 = vld [vmem:[%s7209_s29 + $0x5c0] sm:$0xf]  ;;  %v6553_v47 = vld [vmem:[%s7209_s29 + $0x5cc] sm:$0xf0]  ;;  %v4927_v52 = vor.u32 %v6521_v44, %v4926_v43  ;;  %3439 = vmatpush.bf16.msrb.mxu2 %v5199_v42  ;;  %3408 = vmatmul.bf16.vlgmr.msra.gmra.mxu3 %v7314_v16 }
  0x62   : > { %v5182_v48 = vld [vmem:[%s7209_s29 + $0x6c0] sm:$0xf]  ;;  %v6585_v49 = vld [vmem:[%s7209_s29 + $0x6cc] sm:$0xf0]  ;;  %v5055_v54 = vor.u32 %v6553_v47, %v5054_v45  ;;  %3452 = vmatpush.bf16.msrb.mxu3 %v5327_v46 }
  0x63   : > { %v5310_v50 = vld [vmem:[%s7209_s29 + $0x7c0] sm:$0xf]  ;;  %v6617_v51 = vld [vmem:[%s7209_s29 + $0x7cc] sm:$0xf0]  ;;  %v5183_v55 = vor.u32 %v6585_v49, %v5182_v48  ;;  %3414 = vmatpush.bf16.msrb.mxu0 %v4927_v52 }
  0x64   : > { %v4910_v53 = vld [vmem:[%s7209_s29 + $0x4a0] sm:$0xf]  ;;  %v6517_v56 = vld [vmem:[%s7209_s29 + $0x4ac] sm:$0xf0]  ;;  %v5311_v59 = vor.u32 %v6617_v51, %v5310_v50  ;;  %3427 = vmatpush.bf16.msrb.mxu1 %v5055_v54 }
  0x65   : > { %v5038_v57 = vld [vmem:[%s7209_s29 + $0x5a0] sm:$0xf]  ;;  %v249_v58 = vld [vmem:[#allocation2 + $0x10] sm:$0xff]  ;;  %v4911_v2 = vor.u32 %v6517_v56, %v4910_v53  ;;  %3440 = vmatpush.bf16.msrb.mxu2 %v5183_v55 }
  0x66   : > { %v6549_v60 = vld [vmem:[%s7209_s29 + $0x5ac] sm:$0xf0]  ;;  %v5166_v61 = vld [vmem:[%s7209_s29 + $0x6a0] sm:$0xf]  ;;  %v7301_v63 = vpack.c.bf16 %v249_v58, %v249_v58  ;;  %3453 = vmatpush.bf16.msrb.mxu3 %v5311_v59 }
  0x67   : > { %v6581_v62 = vld [vmem:[%s7209_s29 + $0x6ac] sm:$0xf0]  ;;  %v5294_v0 = vld [vmem:[%s7209_s29 + $0x7a0] sm:$0xf]  ;;  %v5039_v6 = vor.u32 %v6549_v60, %v5038_v57  ;;  %3415 = vmatpush.bf16.msrb.mxu0 %v4911_v2 }
  0x68   : > { %v6613_v1 = vld [vmem:[%s7209_s29 + $0x7ac] sm:$0xf0]  ;;  %v4894_v3 = vld [vmem:[%s7209_s29 + $0x480] sm:$0xf]  ;;  %3395 = vmatmul.bf16.vlgmr.msra.gmra.mxu2 %v7301_v63  ;;  %v5167_v7 = vor.u32 %v6581_v62, %v5166_v61 }
  0x69   : > { %v6513_v4 = vld [vmem:[%s7209_s29 + $0x48c] sm:$0xf0]  ;;  %v247_v5 = vld [vmem:[#allocation2] sm:$0xff]  ;;  %v5295_v12 = vor.u32 %v6613_v1, %v5294_v0  ;;  %3428 = vmatpush.bf16.msrb.mxu1 %v5039_v6 }
  0x6a   : > { %v5022_v8 = vld [vmem:[%s7209_s29 + $0x580] sm:$0xf]  ;;  %v7309_v9 = vpack.c.bf16 %v247_v5, %v247_v5  ;;  %v6545_v13 = vld [vmem:[%s7209_s29 + $0x58c] sm:$0xf0]  ;;  %v4895_v20 = vor.u32 %v6513_v4, %v4894_v3  ;;  %3441 = vmatpush.bf16.msrb.mxu2 %v5167_v7 }
  0x6b   : > { %v5150_v14 = vld [vmem:[%s7209_s29 + $0x680] sm:$0xf]  ;;  %v6577_v15 = vld [vmem:[%s7209_s29 + $0x68c] sm:$0xf0]  ;;  %v5023_v21 = vor.u32 %v6545_v13, %v5022_v8  ;;  %3454 = vmatpush.bf16.msrb.mxu3 %v5295_v12 }
  0x6c   : > { %v5278_v18 = vld [vmem:[%s7209_s29 + $0x780] sm:$0xf]  ;;  %v6609_v19 = vld [vmem:[%s7209_s29 + $0x78c] sm:$0xf0]  ;;  %3369 = vmatmul.bf16.vlgmr.msra.gmra.mxu0 %v7309_v9  ;;  %v5151_v22 = vor.u32 %v6577_v15, %v5150_v14 }
  0x6d   : > { %v4878_v23 = vld [vmem:[%s7209_s29 + $0x460] sm:$0xf]  ;;  %v6509_v24 = vld [vmem:[%s7209_s29 + $0x46c] sm:$0xf0]  ;;  %v5279_v26 = vor.u32 %v6609_v19, %v5278_v18  ;;  %3416 = vmatpush.bf16.msrb.mxu0 %v4895_v20  ;;  %3429 = vmatpush.bf16.msrb.mxu1 %v5023_v21 }
  0x6e   : > { %v5006_v25 = vld [vmem:[%s7209_s29 + $0x560] sm:$0xf]  ;;  %v6541_v27 = vld [vmem:[%s7209_s29 + $0x56c] sm:$0xf0]  ;;  %v4879_v32 = vor.u32 %v6509_v24, %v4878_v23  ;;  %3442 = vmatpush.bf16.msrb.mxu2 %v5151_v22  ;;  %v254_v24 = vld [vmem:[#allocation2 + $0x38] sm:$0xff] }
  0x6f   : > { %v5134_v28 = vld [vmem:[%s7209_s29 + $0x660] sm:$0xf]  ;;  %v6573_v29 = vld [vmem:[%s7209_s29 + $0x66c] sm:$0xf0]  ;;  %v5007_v33 = vor.u32 %v6541_v27, %v5006_v25  ;;  %3455 = vmatpush.bf16.msrb.mxu3 %v5279_v26 }
  0x70   : > { %v5262_v30 = vld [vmem:[%s7209_s29 + $0x760] sm:$0xf]  ;;  %v6605_v31 = vld [vmem:[%s7209_s29 + $0x76c] sm:$0xf0]  ;;  %v5135_v34 = vor.u32 %v6573_v29, %v5134_v28  ;;  %v252_v29 = vld [vmem:[#allocation2 + $0x28] sm:$0xff] }
  0x71   : > { %v4862_v35 = vld [vmem:[%s7209_s29 + $0x440] sm:$0xf]  ;;  %v6505_v36 = vld [vmem:[%s7209_s29 + $0x44c] sm:$0xf0]  ;;  %v5263_v38 = vor.u32 %v6605_v31, %v5262_v30  ;;  %3417 = vmatpush.bf16.msrb.mxu0 %v4879_v32  ;;  %3430 = vmatpush.bf16.msrb.mxu1 %v5007_v33 }
  0x72   : > { %v4990_v37 = vld [vmem:[%s7209_s29 + $0x540] sm:$0xf]  ;;  %v6537_v39 = vld [vmem:[%s7209_s29 + $0x54c] sm:$0xf0]  ;;  %v4863_v44 = vor.u32 %v6505_v36, %v4862_v35  ;;  %3443 = vmatpush.bf16.msrb.mxu2 %v5135_v34 }
  0x73   : > { %v5118_v40 = vld [vmem:[%s7209_s29 + $0x640] sm:$0xf]  ;;  %v6569_v41 = vld [vmem:[%s7209_s29 + $0x64c] sm:$0xf0]  ;;  %v4991_v45 = vor.u32 %v6537_v39, %v4990_v37  ;;  %3456 = vmatpush.bf16.msrb.mxu3 %v5263_v38  ;;  %v7375_v38 = vpack.c.bf16 %v254_v24, %v254_v24 }
  0x74   : > { %v5246_v42 = vld [vmem:[%s7209_s29 + $0x740] sm:$0xf]  ;;  %v6601_v43 = vld [vmem:[%s7209_s29 + $0x74c] sm:$0xf0]  ;;  %v5119_v46 = vor.u32 %v6569_v41, %v5118_v40  ;;  %v7377_v40 = vpack.c.bf16 %v252_v29, %v252_v29 }
  0x75   : > { %v4846_v47 = vld [vmem:[%s7209_s29 + $0x420] sm:$0xf]  ;;  %v6501_v48 = vld [vmem:[%s7209_s29 + $0x42c] sm:$0xf0]  ;;  %v5247_v50 = vor.u32 %v6601_v43, %v5246_v42  ;;  %3418 = vmatpush.bf16.msrb.mxu0 %v4863_v44  ;;  %3431 = vmatpush.bf16.msrb.mxu1 %v4991_v45 }
  0x76   : > { %v4974_v49 = vld [vmem:[%s7209_s29 + $0x520] sm:$0xf]  ;;  %v6533_v51 = vld [vmem:[%s7209_s29 + $0x52c] sm:$0xf0]  ;;  %v4847_v56 = vor.u32 %v6501_v48, %v4846_v47  ;;  %3444 = vmatpush.bf16.msrb.mxu2 %v5119_v46 }
  0x77   : > { %v5102_v52 = vld [vmem:[%s7209_s29 + $0x620] sm:$0xf]  ;;  %v6565_v53 = vld [vmem:[%s7209_s29 + $0x62c] sm:$0xf0]  ;;  %v4975_v59 = vor.u32 %v6533_v51, %v4974_v49  ;;  %3457 = vmatpush.bf16.msrb.mxu3 %v5247_v50 }
  0x78   : > { %v5230_v54 = vld [vmem:[%s7209_s29 + $0x720] sm:$0xf]  ;;  %v6597_v55 = vld [vmem:[%s7209_s29 + $0x72c] sm:$0xf0]  ;;  %v5103_v60 = vor.u32 %v6565_v53, %v5102_v52 }
  0x79   : > { %v4830_v57 = vld [vmem:[%s7209_s29 + $0x400] sm:$0xf]  ;;  %v6497_v58 = vld [vmem:[%s7209_s29 + $0x40c] sm:$0xf0]  ;;  %v5231_v1 = vor.u32 %v6597_v55, %v5230_v54  ;;  %3419 = vmatpush.bf16.msrb.mxu0 %v4847_v56  ;;  %3432 = vmatpush.bf16.msrb.mxu1 %v4975_v59 }
  0x7a   : > { %v4958_v61 = vld [vmem:[%s7209_s29 + $0x500] sm:$0xf]  ;;  %v6529_v62 = vld [vmem:[%s7209_s29 + $0x50c] sm:$0xf0]  ;;  %v4831_v8 = vor.u32 %v6497_v58, %v4830_v57  ;;  %3445 = vmatpush.bf16.msrb.mxu2 %v5103_v60 }
  0x7b   : > { %v5086_v0 = vld [vmem:[%s7209_s29 + $0x600] sm:$0xf]  ;;  %v6561_v2 = vld [vmem:[%s7209_s29 + $0x60c] sm:$0xf0]  ;;  %v4959_v13 = vor.u32 %v6529_v62, %v4958_v61  ;;  %3458 = vmatpush.bf16.msrb.mxu3 %v5231_v1 }
  0x7c   : > { %v5214_v3 = vld [vmem:[%s7209_s29 + $0x700] sm:$0xf]  ;;  %v6593_v4 = vld [vmem:[%s7209_s29 + $0x70c] sm:$0xf0]  ;;  %v5087_v14 = vor.u32 %v6561_v2, %v5086_v0 }
  0x7d   : > { %v5454_v5 = vld [vmem:[%s7209_s29 + $0x8e0] sm:$0xf]  ;;  %v6653_v6 = vld [vmem:[%s7209_s29 + $0x8ec] sm:$0xf0]  ;;  %v5215_v20 = vor.u32 %v6593_v4, %v5214_v3  ;;  %3420 = vmatpush.bf16.msrb.mxu0 %v4831_v8  ;;  %3433 = vmatpush.bf16.msrb.mxu1 %v4959_v13 }
  0x7e   : > { %v5582_v7 = vld [vmem:[%s7209_s29 + $0x9e0] sm:$0xf]  ;;  %v6685_v10 = vld [vmem:[%s7209_s29 + $0x9ec] sm:$0xf0]  ;;  %v5455_v21 = vor.u32 %v6653_v6, %v5454_v5  ;;  %3446 = vmatpush.bf16.msrb.mxu2 %v5087_v14 }
  0x7f   : > { %v5710_v11 = vld [vmem:[%s7209_s29 + $0xae0] sm:$0xf]  ;;  %v6717_v12 = vld [vmem:[%s7209_s29 + $0xaec] sm:$0xf0]  ;;  %v5583_v25 = vor.u32 %v6685_v10, %v5582_v7  ;;  %3459 = vmatpush.bf16.msrb.mxu3 %v5215_v20 }
  0x80   : > { %v5838_v15 = vld [vmem:[%s7209_s29 + $0xbe0] sm:$0xf]  ;;  %v6749_v18 = vld [vmem:[%s7209_s29 + $0xbec] sm:$0xf0]  ;;  %v5711_v26 = vor.u32 %v6717_v12, %v5710_v11  ;;  %3434 = vmatmul.bf16.vlgmr.msrb.gmra.mxu1 %v7377_v40 }
  0x81   : > { %v253_v19 = vld [vmem:[#allocation2 + $0x30] sm:$0xff]  ;;  %v5438_v22 = vld [vmem:[%s7209_s29 + $0x8c0] sm:$0xf]  ;;  %v5839_v30 = vor.u32 %v6749_v18, %v5838_v15  ;;  %3465 = vmatpush.bf16.msra.mxu0 %v5455_v21  ;;  %3478 = vmatpush.bf16.msra.mxu1 %v5583_v25 }
  0x82   : > { %v251_v23 = vld [vmem:[#allocation2 + $0x20] sm:$0xff]  ;;  %v6649_v27 = vld [vmem:[%s7209_s29 + $0x8cc] sm:$0xf0]  ;;  %v7369_v34 = vpack.c.bf16 %v253_v19, %v253_v19  ;;  %3491 = vmatpush.bf16.msra.mxu2 %v5711_v26  ;;  %3460 = vmatmul.bf16.vlgmr.msrb.gmra.mxu3 %v7375_v38 }
  0x83   : > { %v5566_v28 = vld [vmem:[%s7209_s29 + $0x9c0] sm:$0xf]  ;;  %v6681_v31 = vld [vmem:[%s7209_s29 + $0x9cc] sm:$0xf0]  ;;  %v7373_v37 = vpack.c.bf16 %v251_v23, %v251_v23  ;;  %v5439_v39 = vor.u32 %v6649_v27, %v5438_v22  ;;  %3504 = vmatpush.bf16.msra.mxu3 %v5839_v30 }
  0x84   : > { %v5694_v32 = vld [vmem:[%s7209_s29 + $0xac0] sm:$0xf]  ;;  %v6713_v33 = vld [vmem:[%s7209_s29 + $0xacc] sm:$0xf0]  ;;  %v5567_v41 = vor.u32 %v6681_v31, %v5566_v28  ;;  %3447 = vmatmul.bf16.vlgmr.msrb.gmra.mxu2 %v7369_v34 }
  0x85   : > { %v5822_v35 = vld [vmem:[%s7209_s29 + $0xbc0] sm:$0xf]  ;;  %v6745_v36 = vld [vmem:[%s7209_s29 + $0xbcc] sm:$0xf0]  ;;  %v5695_v42 = vor.u32 %v6713_v33, %v5694_v32  ;;  %3421 = vmatmul.bf16.vlgmr.msrb.gmra.mxu0 %v7373_v37 }
  0x86   : > { %v5422_v43 = vld [vmem:[%s7209_s29 + $0x8a0] sm:$0xf]  ;;  %v6645_v44 = vld [vmem:[%s7209_s29 + $0x8ac] sm:$0xf0]  ;;  %v5823_v46 = vor.u32 %v6745_v36, %v5822_v35  ;;  %3466 = vmatpush.bf16.msra.mxu0 %v5439_v39  ;;  %3479 = vmatpush.bf16.msra.mxu1 %v5567_v41 }
  0x87   : > { %v5550_v45 = vld [vmem:[%s7209_s29 + $0x9a0] sm:$0xf]  ;;  %v6677_v47 = vld [vmem:[%s7209_s29 + $0x9ac] sm:$0xf0]  ;;  %v5423_v52 = vor.u32 %v6645_v44, %v5422_v43  ;;  %3492 = vmatpush.bf16.msra.mxu2 %v5695_v42 }
  0x88   : > { %v5678_v48 = vld [vmem:[%s7209_s29 + $0xaa0] sm:$0xf]  ;;  %v6709_v49 = vld [vmem:[%s7209_s29 + $0xaac] sm:$0xf0]  ;;  %v5551_v53 = vor.u32 %v6677_v47, %v5550_v45  ;;  %3505 = vmatpush.bf16.msra.mxu3 %v5823_v46 }
  0x89   : > { %v5806_v50 = vld [vmem:[%s7209_s29 + $0xba0] sm:$0xf]  ;;  %v6741_v51 = vld [vmem:[%s7209_s29 + $0xbac] sm:$0xf0]  ;;  %v5679_v54 = vor.u32 %v6709_v49, %v5678_v48 }
  0x8a   : > { %v5406_v55 = vld [vmem:[%s7209_s29 + $0x880] sm:$0xf]  ;;  %v6641_v56 = vld [vmem:[%s7209_s29 + $0x88c] sm:$0xf0]  ;;  %v5807_v58 = vor.u32 %v6741_v51, %v5806_v50  ;;  %3467 = vmatpush.bf16.msra.mxu0 %v5423_v52  ;;  %3480 = vmatpush.bf16.msra.mxu1 %v5551_v53 }
  0x8b   : > { %v5534_v57 = vld [vmem:[%s7209_s29 + $0x980] sm:$0xf]  ;;  %v6673_v59 = vld [vmem:[%s7209_s29 + $0x98c] sm:$0xf0]  ;;  %v5407_v1 = vor.u32 %v6641_v56, %v5406_v55  ;;  %3493 = vmatpush.bf16.msra.mxu2 %v5679_v54 }
  0x8c   : > { %v5662_v60 = vld [vmem:[%s7209_s29 + $0xa80] sm:$0xf]  ;;  %v6705_v61 = vld [vmem:[%s7209_s29 + $0xa8c] sm:$0xf0]  ;;  %v5535_v2 = vor.u32 %v6673_v59, %v5534_v57  ;;  %3506 = vmatpush.bf16.msra.mxu3 %v5807_v58 }
  0x8d   : > { %v5790_v62 = vld [vmem:[%s7209_s29 + $0xb80] sm:$0xf]  ;;  %v6737_v0 = vld [vmem:[%s7209_s29 + $0xb8c] sm:$0xf0]  ;;  %v5663_v3 = vor.u32 %v6705_v61, %v5662_v60 }
  0x8e   : > { %v5390_v4 = vld [vmem:[%s7209_s29 + $0x860] sm:$0xf]  ;;  %v6637_v5 = vld [vmem:[%s7209_s29 + $0x86c] sm:$0xf0]  ;;  %v5791_v7 = vor.u32 %v6737_v0, %v5790_v62  ;;  %3468 = vmatpush.bf16.msra.mxu0 %v5407_v1  ;;  %3481 = vmatpush.bf16.msra.mxu1 %v5535_v2 }
  0x8f   : > { %v5518_v6 = vld [vmem:[%s7209_s29 + $0x960] sm:$0xf]  ;;  %v6669_v8 = vld [vmem:[%s7209_s29 + $0x96c] sm:$0xf0]  ;;  %v5391_v14 = vor.u32 %v6637_v5, %v5390_v4  ;;  %3494 = vmatpush.bf16.msra.mxu2 %v5663_v3 }
  0x90   : > { %v5646_v10 = vld [vmem:[%s7209_s29 + $0xa60] sm:$0xf]  ;;  %v6701_v11 = vld [vmem:[%s7209_s29 + $0xa6c] sm:$0xf0]  ;;  %v5519_v15 = vor.u32 %v6669_v8, %v5518_v6  ;;  %3507 = vmatpush.bf16.msra.mxu3 %v5791_v7  ;;  %v256_v8 = vld [vmem:[#allocation2 + $0x48] sm:$0xff] }
  0x91   : > { %v5774_v12 = vld [vmem:[%s7209_s29 + $0xb60] sm:$0xf]  ;;  %v6733_v13 = vld [vmem:[%s7209_s29 + $0xb6c] sm:$0xf0]  ;;  %v5647_v18 = vor.u32 %v6701_v11, %v5646_v10  ;;  %v258_v10 = vld [vmem:[#allocation2 + $0x58] sm:$0xff] }
  0x92   : > { %v5374_v19 = vld [vmem:[%s7209_s29 + $0x840] sm:$0xf]  ;;  %v6633_v20 = vld [vmem:[%s7209_s29 + $0x84c] sm:$0xf0]  ;;  %v5775_v22 = vor.u32 %v6733_v13, %v5774_v12  ;;  %3469 = vmatpush.bf16.msra.mxu0 %v5391_v14  ;;  %3482 = vmatpush.bf16.msra.mxu1 %v5519_v15 }
  0x93   : > { %v5502_v21 = vld [vmem:[%s7209_s29 + $0x940] sm:$0xf]  ;;  %v6665_v23 = vld [vmem:[%s7209_s29 + $0x94c] sm:$0xf0]  ;;  %v5375_v28 = vor.u32 %v6633_v20, %v5374_v19  ;;  %3495 = vmatpush.bf16.msra.mxu2 %v5647_v18 }
  0x94   : > { %v5630_v24 = vld [vmem:[%s7209_s29 + $0xa40] sm:$0xf]  ;;  %v6697_v25 = vld [vmem:[%s7209_s29 + $0xa4c] sm:$0xf0]  ;;  %v5503_v29 = vor.u32 %v6665_v23, %v5502_v21  ;;  %3508 = vmatpush.bf16.msra.mxu3 %v5775_v22 }
  0x95   : > { %v5758_v26 = vld [vmem:[%s7209_s29 + $0xb40] sm:$0xf]  ;;  %v6729_v27 = vld [vmem:[%s7209_s29 + $0xb4c] sm:$0xf0]  ;;  %v5631_v30 = vor.u32 %v6697_v25, %v5630_v24  ;;  %v7449_v24 = vpack.c.bf16 %v256_v8, %v256_v8 }
  0x96   : > { %v5358_v31 = vld [vmem:[%s7209_s29 + $0x820] sm:$0xf]  ;;  %v6629_v32 = vld [vmem:[%s7209_s29 + $0x82c] sm:$0xf0]  ;;  %v5759_v35 = vor.u32 %v6729_v27, %v5758_v26  ;;  %3470 = vmatpush.bf16.msra.mxu0 %v5375_v28  ;;  %3483 = vmatpush.bf16.msra.mxu1 %v5503_v29  ;;  %v7453_v27 = vpack.c.bf16 %v258_v10, %v258_v10 }
  0x97   : > { %v5486_v33 = vld [vmem:[%s7209_s29 + $0x920] sm:$0xf]  ;;  %v6661_v36 = vld [vmem:[%s7209_s29 + $0x92c] sm:$0xf0]  ;;  %v5359_v44 = vor.u32 %v6629_v32, %v5358_v31  ;;  %3496 = vmatpush.bf16.msra.mxu2 %v5631_v30 }
  0x98   : > { %v5614_v39 = vld [vmem:[%s7209_s29 + $0xa20] sm:$0xf]  ;;  %v6693_v41 = vld [vmem:[%s7209_s29 + $0xa2c] sm:$0xf0]  ;;  %v5487_v47 = vor.u32 %v6661_v36, %v5486_v33  ;;  %3509 = vmatpush.bf16.msra.mxu3 %v5759_v35 }
  0x99   : > { %v5742_v42 = vld [vmem:[%s7209_s29 + $0xb20] sm:$0xf]  ;;  %v6725_v43 = vld [vmem:[%s7209_s29 + $0xb2c] sm:$0xf0]  ;;  %v5615_v48 = vor.u32 %v6693_v41, %v5614_v39 }
  0x9a   : > { %v5342_v45 = vld [vmem:[%s7209_s29 + $0x800] sm:$0xf]  ;;  %v6625_v46 = vld [vmem:[%s7209_s29 + $0x80c] sm:$0xf0]  ;;  %v5743_v52 = vor.u32 %v6725_v43, %v5742_v42  ;;  %3471 = vmatpush.bf16.msra.mxu0 %v5359_v44  ;;  %3484 = vmatpush.bf16.msra.mxu1 %v5487_v47 }
  0x9b   : > { %v5470_v49 = vld [vmem:[%s7209_s29 + $0x900] sm:$0xf]  ;;  %v6657_v50 = vld [vmem:[%s7209_s29 + $0x90c] sm:$0xf0]  ;;  %v5343_v59 = vor.u32 %v6625_v46, %v5342_v45  ;;  %3497 = vmatpush.bf16.msra.mxu2 %v5615_v48 }
  0x9c   : > { %v5598_v51 = vld [vmem:[%s7209_s29 + $0xa00] sm:$0xf]  ;;  %v6689_v53 = vld [vmem:[%s7209_s29 + $0xa0c] sm:$0xf0]  ;;  %v5471_v0 = vor.u32 %v6657_v50, %v5470_v49  ;;  %3510 = vmatpush.bf16.msra.mxu3 %v5743_v52 }
  0x9d   : > { %v5726_v54 = vld [vmem:[%s7209_s29 + $0xb00] sm:$0xf]  ;;  %v6721_v55 = vld [vmem:[%s7209_s29 + $0xb0c] sm:$0xf0]  ;;  %v5599_v1 = vor.u32 %v6689_v53, %v5598_v51 }
  0x9e   : > { %v5966_v56 = vld [vmem:[%s7209_s29 + $0xce0] sm:$0xf]  ;;  %v6781_v57 = vld [vmem:[%s7209_s29 + $0xcec] sm:$0xf0]  ;;  %v5727_v5 = vor.u32 %v6721_v55, %v5726_v54  ;;  %3472 = vmatpush.bf16.msra.mxu0 %v5343_v59  ;;  %3485 = vmatpush.bf16.msra.mxu1 %v5471_v0 }
  0x9f   : > { %v6094_v58 = vld [vmem:[%s7209_s29 + $0xde0] sm:$0xf]  ;;  %v6813_v60 = vld [vmem:[%s7209_s29 + $0xdec] sm:$0xf0]  ;;  %v5967_v6 = vor.u32 %v6781_v57, %v5966_v56  ;;  %3498 = vmatpush.bf16.msra.mxu2 %v5599_v1 }
  0xa0   : > { %v6222_v61 = vld [vmem:[%s7209_s29 + $0xee0] sm:$0xf]  ;;  %v6845_v62 = vld [vmem:[%s7209_s29 + $0xeec] sm:$0xf0]  ;;  %v6095_v11 = vor.u32 %v6813_v60, %v6094_v58  ;;  %3511 = vmatpush.bf16.msra.mxu3 %v5727_v5 }
  0xa1   : > { %v6350_v2 = vld [vmem:[%s7209_s29 + $0xfe0] sm:$0xf]  ;;  %v6877_v3 = vld [vmem:[%s7209_s29 + $0xfec] sm:$0xf0]  ;;  %v6223_v12 = vor.u32 %v6845_v62, %v6222_v61  ;;  %3486 = vmatmul.bf16.vlgmr.msra.gmra.mxu1 %v7449_v24 }
  0xa2   : > { %v255_v4 = vld [vmem:[#allocation2 + $0x40] sm:$0xff]  ;;  %v257_v7 = vld [vmem:[#allocation2 + $0x50] sm:$0xff]  ;;  %v6351_v18 = vor.u32 %v6877_v3, %v6350_v2  ;;  %3517 = vmatpush.bf16.msrb.mxu0 %v5967_v6  ;;  %3530 = vmatpush.bf16.msrb.mxu1 %v6095_v11 }
  0xa3   : > { %v5950_v13 = vld [vmem:[%s7209_s29 + $0xcc0] sm:$0xf]  ;;  %v6777_v14 = vld [vmem:[%s7209_s29 + $0xccc] sm:$0xf0]  ;;  %v7442_v19 = vpack.c.bf16 %v255_v4, %v255_v4  ;;  %v7447_v23 = vpack.c.bf16 %v257_v7, %v257_v7  ;;  %3543 = vmatpush.bf16.msrb.mxu2 %v6223_v12  ;;  %3512 = vmatmul.bf16.vlgmr.msra.gmra.mxu3 %v7453_v27 }
  0xa4   : > { %v6078_v15 = vld [vmem:[%s7209_s29 + $0xdc0] sm:$0xf]  ;;  %v6809_v20 = vld [vmem:[%s7209_s29 + $0xdcc] sm:$0xf0]  ;;  %v5951_v28 = vor.u32 %v6777_v14, %v5950_v13  ;;  %3556 = vmatpush.bf16.msrb.mxu3 %v6351_v18 }
  0xa5   : > { %v6206_v21 = vld [vmem:[%s7209_s29 + $0xec0] sm:$0xf]  ;;  %v6841_v22 = vld [vmem:[%s7209_s29 + $0xecc] sm:$0xf0]  ;;  %v6079_v29 = vor.u32 %v6809_v20, %v6078_v15  ;;  %3473 = vmatmul.bf16.vlgmr.msra.gmra.mxu0 %v7442_v19  ;;  %3499 = vmatmul.bf16.vlgmr.msra.gmra.mxu2 %v7447_v23 }
  0xa6   : > { %v6334_v25 = vld [vmem:[%s7209_s29 + $0xfc0] sm:$0xf]  ;;  %v6873_v26 = vld [vmem:[%s7209_s29 + $0xfcc] sm:$0xf0]  ;;  %v6207_v30 = vor.u32 %v6841_v22, %v6206_v21  ;;  %3518 = vmatpush.bf16.msrb.mxu0 %v5951_v28 }
  0xa7   : > { %v5934_v31 = vld [vmem:[%s7209_s29 + $0xca0] sm:$0xf]  ;;  %v6773_v32 = vld [vmem:[%s7209_s29 + $0xcac] sm:$0xf0]  ;;  %v6335_v35 = vor.u32 %v6873_v26, %v6334_v25  ;;  %3531 = vmatpush.bf16.msrb.mxu1 %v6079_v29 }
  0xa8   : > { %v6062_v33 = vld [vmem:[%s7209_s29 + $0xda0] sm:$0xf]  ;;  %v6805_v36 = vld [vmem:[%s7209_s29 + $0xdac] sm:$0xf0]  ;;  %v5935_v44 = vor.u32 %v6773_v32, %v5934_v31  ;;  %3544 = vmatpush.bf16.msrb.mxu2 %v6207_v30 }
  0xa9   : > { %v6190_v39 = vld [vmem:[%s7209_s29 + $0xea0] sm:$0xf]  ;;  %v6837_v41 = vld [vmem:[%s7209_s29 + $0xeac] sm:$0xf0]  ;;  %v6063_v45 = vor.u32 %v6805_v36, %v6062_v33  ;;  %3557 = vmatpush.bf16.msrb.mxu3 %v6335_v35 }
  0xaa   : > { %v6318_v42 = vld [vmem:[%s7209_s29 + $0xfa0] sm:$0xf]  ;;  %v6869_v43 = vld [vmem:[%s7209_s29 + $0xfac] sm:$0xf0]  ;;  %v6191_v46 = vor.u32 %v6837_v41, %v6190_v39  ;;  %3519 = vmatpush.bf16.msrb.mxu0 %v5935_v44 }
  0xab   : > { %v5918_v47 = vld [vmem:[%s7209_s29 + $0xc80] sm:$0xf]  ;;  %v6769_v48 = vld [vmem:[%s7209_s29 + $0xc8c] sm:$0xf0]  ;;  %v6319_v50 = vor.u32 %v6869_v43, %v6318_v42  ;;  %3532 = vmatpush.bf16.msrb.mxu1 %v6063_v45 }
  0xac   : > { %v6046_v49 = vld [vmem:[%s7209_s29 + $0xd80] sm:$0xf]  ;;  %v6801_v51 = vld [vmem:[%s7209_s29 + $0xd8c] sm:$0xf0]  ;;  %v5919_v56 = vor.u32 %v6769_v48, %v5918_v47  ;;  %3545 = vmatpush.bf16.msrb.mxu2 %v6191_v46 }
  0xad   : > { %v6174_v52 = vld [vmem:[%s7209_s29 + $0xe80] sm:$0xf]  ;;  %v6833_v53 = vld [vmem:[%s7209_s29 + $0xe8c] sm:$0xf0]  ;;  %v6047_v57 = vor.u32 %v6801_v51, %v6046_v49  ;;  %3558 = vmatpush.bf16.msrb.mxu3 %v6319_v50 }
  0xae   : > { %v6302_v54 = vld [vmem:[%s7209_s29 + $0xf80] sm:$0xf]  ;;  %v6865_v55 = vld [vmem:[%s7209_s29 + $0xf8c] sm:$0xf0]  ;;  %v6175_v58 = vor.u32 %v6833_v53, %v6174_v52  ;;  %3520 = vmatpush.bf16.msrb.mxu0 %v5919_v56  ;;  %v6395_v52 = vld [vmem:[%s7209_s29 + $0xe4] sm:$0xf] }
  0xaf   : > { %v5902_v59 = vld [vmem:[%s7209_s29 + $0xc60] sm:$0xf]  ;;  %v6765_v60 = vld [vmem:[%s7209_s29 + $0xc6c] sm:$0xf0]  ;;  %v6303_v62 = vor.u32 %v6865_v55, %v6302_v54  ;;  %3533 = vmatpush.bf16.msrb.mxu1 %v6047_v57  ;;  %v4432_v53 = vld [vmem:[%s7209_s29 + $0xf0] sm:$0xf0] }
  0xb0   : > { %v6030_v61 = vld [vmem:[%s7209_s29 + $0xd60] sm:$0xf]  ;;  %v6797_v0 = vld [vmem:[%s7209_s29 + $0xd6c] sm:$0xf0]  ;;  %v5903_v5 = vor.u32 %v6765_v60, %v5902_v59  ;;  %3546 = vmatpush.bf16.msrb.mxu2 %v6175_v58  ;;  %v6427_v54 = vld [vmem:[%s7209_s29 + $0x1e4] sm:$0xf] }
  0xb1   : > { %v6158_v1 = vld [vmem:[%s7209_s29 + $0xe60] sm:$0xf]  ;;  %v6829_v2 = vld [vmem:[%s7209_s29 + $0xe6c] sm:$0xf0]  ;;  %v6031_v6 = vor.u32 %v6797_v0, %v6030_v61  ;;  %3559 = vmatpush.bf16.msrb.mxu3 %v6303_v62  ;;  %v4560_v56 = vld [vmem:[%s7209_s29 + $0x1f0] sm:$0xf0] }
  0xb2   : > { %v6286_v3 = vld [vmem:[%s7209_s29 + $0xf60] sm:$0xf]  ;;  %v6861_v4 = vld [vmem:[%s7209_s29 + $0xf6c] sm:$0xf0]  ;;  %v6159_v7 = vor.u32 %v6829_v2, %v6158_v1  ;;  %3521 = vmatpush.bf16.msrb.mxu0 %v5903_v5  ;;  %v6459_v57 = vld [vmem:[%s7209_s29 + $0x2e4] sm:$0xf]  ;;  %v4435_v2 = vor.u32 %v6395_v52, %v4432_v53 }
  0xb3   : > { %v5886_v8 = vld [vmem:[%s7209_s29 + $0xc40] sm:$0xf]  ;;  %v6761_v10 = vld [vmem:[%s7209_s29 + $0xc4c] sm:$0xf0]  ;;  %v6287_v12 = vor.u32 %v6861_v4, %v6286_v3  ;;  %3534 = vmatpush.bf16.msrb.mxu1 %v6031_v6  ;;  %v4688_v58 = vld [vmem:[%s7209_s29 + $0x2f0] sm:$0xf0]  ;;  %v4563_v6 = vor.u32 %v6427_v54, %v4560_v56 }
  0xb4   : > { %v6014_v11 = vld [vmem:[%s7209_s29 + $0xd40] sm:$0xf]  ;;  %v6793_v13 = vld [vmem:[%s7209_s29 + $0xd4c] sm:$0xf0]  ;;  %v5887_v21 = vor.u32 %v6761_v10, %v5886_v8  ;;  %3547 = vmatpush.bf16.msrb.mxu2 %v6159_v7  ;;  %v6491_v61 = vld [vmem:[%s7209_s29 + $0x3e4] sm:$0xf]  ;;  %v4691_v7 = vor.u32 %v6459_v57, %v4688_v58 }
  0xb5   : > { %v6142_v14 = vld [vmem:[%s7209_s29 + $0xe40] sm:$0xf]  ;;  %v6825_v15 = vld [vmem:[%s7209_s29 + $0xe4c] sm:$0xf0]  ;;  %v6015_v22 = vor.u32 %v6793_v13, %v6014_v11  ;;  %3560 = vmatpush.bf16.msrb.mxu3 %v6287_v12  ;;  %v4816_v62 = vld [vmem:[%s7209_s29 + $0x3f0] sm:$0xf0] }
  0xb6   : > { %v6270_v18 = vld [vmem:[%s7209_s29 + $0xf40] sm:$0xf]  ;;  %v6857_v20 = vld [vmem:[%s7209_s29 + $0xf4c] sm:$0xf0]  ;;  %v6143_v25 = vor.u32 %v6825_v15, %v6142_v14  ;;  %3522 = vmatpush.bf16.msrb.mxu0 %v5887_v21  ;;  %v260_v4 = vld [vmem:[#allocation2 + $0x68] sm:$0xff]  ;;  %v4819_v12 = vor.u32 %v6491_v61, %v4816_v62 }
  0xb7   : > { %v5870_v26 = vld [vmem:[%s7209_s29 + $0xc20] sm:$0xf]  ;;  %v6757_v28 = vld [vmem:[%s7209_s29 + $0xc2c] sm:$0xf0]  ;;  %v6271_v30 = vor.u32 %v6857_v20, %v6270_v18  ;;  %3535 = vmatpush.bf16.msrb.mxu1 %v6015_v22  ;;  %v262_v5 = vld [vmem:[#allocation2 + $0x78] sm:$0xff]  ;;  %v7525_v21 = vpack.c.bf16 %v260_v4, %v260_v4 }
  0xb8   : > { %v5998_v29 = vld [vmem:[%s7209_s29 + $0xd20] sm:$0xf]  ;;  %v6789_v31 = vld [vmem:[%s7209_s29 + $0xd2c] sm:$0xf0]  ;;  %v5871_v39 = vor.u32 %v6757_v28, %v5870_v26  ;;  %3548 = vmatpush.bf16.msrb.mxu2 %v6143_v25  ;;  %v6391_v8 = vld [vmem:[%s7209_s29 + $0xc4] sm:$0xf]  ;;  %v7529_v26 = vpack.c.bf16 %v262_v5, %v262_v5 }
  0xb9   : > { %v6126_v32 = vld [vmem:[%s7209_s29 + $0xe20] sm:$0xf]  ;;  %v6821_v33 = vld [vmem:[%s7209_s29 + $0xe2c] sm:$0xf0]  ;;  %v5999_v43 = vor.u32 %v6789_v31, %v5998_v29  ;;  %3561 = vmatpush.bf16.msrb.mxu3 %v6271_v30  ;;  %v4416_v10 = vld [vmem:[%s7209_s29 + $0xd0] sm:$0xf0] }
  0xba   : > { %v6254_v35 = vld [vmem:[%s7209_s29 + $0xf20] sm:$0xf]  ;;  %v6853_v36 = vld [vmem:[%s7209_s29 + $0xf2c] sm:$0xf0]  ;;  %v6127_v44 = vor.u32 %v6821_v33, %v6126_v32  ;;  %3523 = vmatpush.bf16.msrb.mxu0 %v5871_v39  ;;  %v6423_v11 = vld [vmem:[%s7209_s29 + $0x1c4] sm:$0xf]  ;;  %v4419_v28 = vor.u32 %v6391_v8, %v4416_v10 }
  0xbb   : > { %v5854_v41 = vld [vmem:[%s7209_s29 + $0xc00] sm:$0xf]  ;;  %v6753_v42 = vld [vmem:[%s7209_s29 + $0xc0c] sm:$0xf0]  ;;  %v6255_v48 = vor.u32 %v6853_v36, %v6254_v35  ;;  %3536 = vmatpush.bf16.msrb.mxu1 %v5999_v43  ;;  %v4544_v14 = vld [vmem:[%s7209_s29 + $0x1d0] sm:$0xf0] }
  0xbc   : > { %v5982_v45 = vld [vmem:[%s7209_s29 + $0xd00] sm:$0xf]  ;;  %v6785_v46 = vld [vmem:[%s7209_s29 + $0xd0c] sm:$0xf0]  ;;  %v5855_v55 = vor.u32 %v6753_v42, %v5854_v41  ;;  %3549 = vmatpush.bf16.msrb.mxu2 %v6127_v44  ;;  %v6455_v15 = vld [vmem:[%s7209_s29 + $0x2c4] sm:$0xf]  ;;  %v4547_v29 = vor.u32 %v6423_v11, %v4544_v14 }
  0xbd   : > { %v6110_v47 = vld [vmem:[%s7209_s29 + $0xe00] sm:$0xf]  ;;  %v6817_v49 = vld [vmem:[%s7209_s29 + $0xe0c] sm:$0xf0]  ;;  %v5983_v59 = vor.u32 %v6785_v46, %v5982_v45  ;;  %3562 = vmatpush.bf16.msrb.mxu3 %v6255_v48  ;;  %v4672_v18 = vld [vmem:[%s7209_s29 + $0x2d0] sm:$0xf0] }
  0xbe   : > { %v6238_v50 = vld [vmem:[%s7209_s29 + $0xf00] sm:$0xf]  ;;  %v6849_v51 = vld [vmem:[%s7209_s29 + $0xf0c] sm:$0xf0]  ;;  %v6111_v60 = vor.u32 %v6817_v49, %v6110_v47  ;;  %3524 = vmatpush.bf16.msrb.mxu0 %v5855_v55  ;;  %v6487_v22 = vld [vmem:[%s7209_s29 + $0x3c4] sm:$0xf]  ;;  %v4675_v30 = vor.u32 %v6455_v15, %v4672_v18 }
  0xbf   : > { %v259_v0 = vld [vmem:[#allocation2 + $0x60] sm:$0xff]  ;;  %v6239_v1 = vor.u32 %v6849_v51, %v6238_v50  ;;  %v261_v3 = vld [vmem:[#allocation2 + $0x70] sm:$0xff]  ;;  %3537 = vmatpush.bf16.msrb.mxu1 %v5983_v59 }
  0xc0   : > { %v7518_v13 = vpack.c.bf16 %v259_v0, %v259_v0  ;;  %3550 = vmatpush.bf16.msrb.mxu2 %v6111_v60  ;;  %v7523_v20 = vpack.c.bf16 %v261_v3, %v261_v3  ;;  %v4800_v25 = vld [vmem:[%s7209_s29 + $0x3d0] sm:$0xf0]  ;;  %v6387_v31 = vld [vmem:[%s7209_s29 + $0xa4] sm:$0xf] }
  0xc1   : > { %3563 = vmatpush.bf16.msrb.mxu3 %v6239_v1  ;;  %v4400_v32 = vld [vmem:[%s7209_s29 + $0xb0] sm:$0xf0]  ;;  %v6419_v33 = vld [vmem:[%s7209_s29 + $0x1a4] sm:$0xf]  ;;  %v4803_v35 = vor.u32 %v6487_v22, %v4800_v25 }
  0xc2   : > { %3569 = vmatpush.bf16.msra.mxu0 %v4435_v2  ;;  %v4528_v36 = vld [vmem:[%s7209_s29 + $0x1b0] sm:$0xf0]  ;;  %v6451_v39 = vld [vmem:[%s7209_s29 + $0x2a4] sm:$0xf]  ;;  %3538 = vmatmul.bf16.vlgmr.msrb.gmra.mxu1 %v7525_v21  ;;  %v4403_v44 = vor.u32 %v6387_v31, %v4400_v32 }
  0xc3   : > { %3582 = vmatpush.bf16.msra.mxu1 %v4563_v6  ;;  %3525 = vmatmul.bf16.vlgmr.msrb.gmra.mxu0 %v7518_v13  ;;  %v4656_v41 = vld [vmem:[%s7209_s29 + $0x2b0] sm:$0xf0]  ;;  %v6483_v42 = vld [vmem:[%s7209_s29 + $0x3a4] sm:$0xf]  ;;  %v4531_v45 = vor.u32 %v6419_v33, %v4528_v36 }
  0xc4   : > { %3595 = vmatpush.bf16.msra.mxu2 %v4691_v7  ;;  %v4784_v43 = vld [vmem:[%s7209_s29 + $0x3b0] sm:$0xf0]  ;;  %3564 = vmatmul.bf16.vlgmr.msrb.gmra.mxu3 %v7529_v26  ;;  %v4659_v46 = vor.u32 %v6451_v39, %v4656_v41  ;;  %v6383_v47 = vld [vmem:[%s7209_s29 + $0x84] sm:$0xf] }
  0xc5   : > { %3608 = vmatpush.bf16.msra.mxu3 %v4819_v12  ;;  %3551 = vmatmul.bf16.vlgmr.msrb.gmra.mxu2 %v7523_v20  ;;  %v4384_v48 = vld [vmem:[%s7209_s29 + $0x90] sm:$0xf0]  ;;  %v6415_v49 = vld [vmem:[%s7209_s29 + $0x184] sm:$0xf]  ;;  %v4787_v50 = vor.u32 %v6483_v42, %v4784_v43 }
  0xc6   : > { %3570 = vmatpush.bf16.msra.mxu0 %v4419_v28  ;;  %v4512_v51 = vld [vmem:[%s7209_s29 + $0x190] sm:$0xf0]  ;;  %v6447_v52 = vld [vmem:[%s7209_s29 + $0x284] sm:$0xf]  ;;  %v4387_v56 = vor.u32 %v6383_v47, %v4384_v48 }
  0xc7   : > { %3583 = vmatpush.bf16.msra.mxu1 %v4547_v29  ;;  %v4640_v53 = vld [vmem:[%s7209_s29 + $0x290] sm:$0xf0]  ;;  %v6479_v54 = vld [vmem:[%s7209_s29 + $0x384] sm:$0xf]  ;;  %v4515_v57 = vor.u32 %v6415_v49, %v4512_v51 }
  0xc8   : > { %3596 = vmatpush.bf16.msra.mxu2 %v4675_v30  ;;  %v4768_v55 = vld [vmem:[%s7209_s29 + $0x390] sm:$0xf0]  ;;  %v4643_v58 = vor.u32 %v6447_v52, %v4640_v53  ;;  %v6379_v59 = vld [vmem:[%s7209_s29 + $0x64] sm:$0xf] }
  0xc9   : > { %3609 = vmatpush.bf16.msra.mxu3 %v4803_v35  ;;  %v4368_v60 = vld [vmem:[%s7209_s29 + $0x70] sm:$0xf0]  ;;  %v6411_v61 = vld [vmem:[%s7209_s29 + $0x164] sm:$0xf]  ;;  %v4771_v62 = vor.u32 %v6479_v54, %v4768_v55 }
  0xca   : > { %3571 = vmatpush.bf16.msra.mxu0 %v4403_v44  ;;  %v4496_v0 = vld [vmem:[%s7209_s29 + $0x170] sm:$0xf0]  ;;  %v6443_v1 = vld [vmem:[%s7209_s29 + $0x264] sm:$0xf]  ;;  %v4371_v5 = vor.u32 %v6379_v59, %v4368_v60 }
  0xcb   : > { %3584 = vmatpush.bf16.msra.mxu1 %v4531_v45  ;;  %v4624_v2 = vld [vmem:[%s7209_s29 + $0x270] sm:$0xf0]  ;;  %v6475_v3 = vld [vmem:[%s7209_s29 + $0x364] sm:$0xf]  ;;  %v4499_v6 = vor.u32 %v6411_v61, %v4496_v0 }
  0xcc   : > { %3597 = vmatpush.bf16.msra.mxu2 %v4659_v46  ;;  %v4752_v4 = vld [vmem:[%s7209_s29 + $0x370] sm:$0xf0]  ;;  %v4627_v7 = vor.u32 %v6443_v1, %v4624_v2  ;;  %v6375_v8 = vld [vmem:[%s7209_s29 + $0x44] sm:$0xf] }
  0xcd   : > { %3610 = vmatpush.bf16.msra.mxu3 %v4787_v50  ;;  %v4352_v10 = vld [vmem:[%s7209_s29 + $0x50] sm:$0xf0]  ;;  %v6407_v11 = vld [vmem:[%s7209_s29 + $0x144] sm:$0xf]  ;;  %v4755_v12 = vor.u32 %v6475_v3, %v4752_v4 }
  0xce   : > { %3572 = vmatpush.bf16.msra.mxu0 %v4387_v56  ;;  %v4480_v14 = vld [vmem:[%s7209_s29 + $0x150] sm:$0xf0]  ;;  %v6439_v15 = vld [vmem:[%s7209_s29 + $0x244] sm:$0xf]  ;;  %v4355_v28 = vor.u32 %v6375_v8, %v4352_v10 }
  0xcf   : > { %3585 = vmatpush.bf16.msra.mxu1 %v4515_v57  ;;  %v4608_v18 = vld [vmem:[%s7209_s29 + $0x250] sm:$0xf0]  ;;  %v6471_v22 = vld [vmem:[%s7209_s29 + $0x344] sm:$0xf]  ;;  %v4483_v29 = vor.u32 %v6407_v11, %v4480_v14 }
  0xd0   : > { %3598 = vmatpush.bf16.msra.mxu2 %v4643_v58  ;;  %v4736_v25 = vld [vmem:[%s7209_s29 + $0x350] sm:$0xf0]  ;;  %v4611_v30 = vor.u32 %v6439_v15, %v4608_v18  ;;  %v6371_v31 = vld [vmem:[%s7209_s29 + $0x24] sm:$0xf] }
  0xd1   : > { %3611 = vmatpush.bf16.msra.mxu3 %v4771_v62  ;;  %v4336_v32 = vld [vmem:[%s7209_s29 + $0x30] sm:$0xf0]  ;;  %v6403_v33 = vld [vmem:[%s7209_s29 + $0x124] sm:$0xf]  ;;  %v4739_v35 = vor.u32 %v6471_v22, %v4736_v25 }
  0xd2   : > { %3573 = vmatpush.bf16.msra.mxu0 %v4371_v5  ;;  %v4464_v36 = vld [vmem:[%s7209_s29 + $0x130] sm:$0xf0]  ;;  %v6435_v39 = vld [vmem:[%s7209_s29 + $0x224] sm:$0xf]  ;;  %v4339_v44 = vor.u32 %v6371_v31, %v4336_v32 }
  0xd3   : > { %3586 = vmatpush.bf16.msra.mxu1 %v4499_v6  ;;  %v4592_v41 = vld [vmem:[%s7209_s29 + $0x230] sm:$0xf0]  ;;  %v6467_v42 = vld [vmem:[%s7209_s29 + $0x324] sm:$0xf]  ;;  %v4467_v47 = vor.u32 %v6403_v33, %v4464_v36 }
  0xd4   : > { %3599 = vmatpush.bf16.msra.mxu2 %v4627_v7  ;;  %v4720_v43 = vld [vmem:[%s7209_s29 + $0x330] sm:$0xf0]  ;;  %v6367_v45 = vld [vmem:[%s7209_s29 + $0x4] sm:$0xf]  ;;  %v4595_v48 = vor.u32 %v6435_v39, %v4592_v41 }
  0xd5   : > { %3612 = vmatpush.bf16.msra.mxu3 %v4755_v12  ;;  %v4320_v46 = vld [vmem:[%s7209_s29 + $0x10] sm:$0xf0]  ;;  %v6399_v49 = vld [vmem:[%s7209_s29 + $0x104] sm:$0xf]  ;;  %v4723_v52 = vor.u32 %v6467_v42, %v4720_v43 }
  0xd6   : > { %3574 = vmatpush.bf16.msra.mxu0 %v4355_v28  ;;  %v4448_v50 = vld [vmem:[%s7209_s29 + $0x110] sm:$0xf0]  ;;  %v6431_v51 = vld [vmem:[%s7209_s29 + $0x204] sm:$0xf]  ;;  %v4323_v59 = vor.u32 %v6367_v45, %v4320_v46 }
  0xd7   : > { %3587 = vmatpush.bf16.msra.mxu1 %v4483_v29  ;;  %v4576_v53 = vld [vmem:[%s7209_s29 + $0x210] sm:$0xf0]  ;;  %v6463_v54 = vld [vmem:[%s7209_s29 + $0x304] sm:$0xf]  ;;  %v4451_v0 = vor.u32 %v6399_v49, %v4448_v50 }
  0xd8   : > { %3600 = vmatpush.bf16.msra.mxu2 %v4611_v30  ;;  %v4704_v55 = vld [vmem:[%s7209_s29 + $0x310] sm:$0xf0]  ;;  %v6523_v56 = vld [vmem:[%s7209_s29 + $0x4e4] sm:$0xf]  ;;  %v4579_v1 = vor.u32 %v6431_v51, %v4576_v53 }
  0xd9   : > { %3613 = vmatpush.bf16.msra.mxu3 %v4739_v35  ;;  %v4944_v57 = vld [vmem:[%s7209_s29 + $0x4f0] sm:$0xf0]  ;;  %v6555_v58 = vld [vmem:[%s7209_s29 + $0x5e4] sm:$0xf]  ;;  %v4707_v4 = vor.u32 %v6463_v54, %v4704_v55 }
  0xda   : > { %3575 = vmatpush.bf16.msra.mxu0 %v4339_v44  ;;  %v5072_v60 = vld [vmem:[%s7209_s29 + $0x5f0] sm:$0xf0]  ;;  %v6587_v61 = vld [vmem:[%s7209_s29 + $0x6e4] sm:$0xf]  ;;  %v4947_v5 = vor.u32 %v6523_v56, %v4944_v57 }
  0xdb   : > { %v5200_v62 = vld [vmem:[%s7209_s29 + $0x6f0] sm:$0xf0]  ;;  %3588 = vmatpush.bf16.msra.mxu1 %v4467_v47  ;;  %v6619_v2 = vld [vmem:[%s7209_s29 + $0x7e4] sm:$0xf]  ;;  %v5075_v6 = vor.u32 %v6555_v58, %v5072_v60 }
  0xdc   : > { %3601 = vmatpush.bf16.msra.mxu2 %v4595_v48  ;;  %v5328_v3 = vld [vmem:[%s7209_s29 + $0x7f0] sm:$0xf0]  ;;  %v5203_v7 = vor.u32 %v6587_v61, %v5200_v62  ;;  %v6519_v8 = vld [vmem:[%s7209_s29 + $0x4c4] sm:$0xf] }
  0xdd   : > { %3614 = vmatpush.bf16.msra.mxu3 %v4723_v52  ;;  %v4928_v10 = vld [vmem:[%s7209_s29 + $0x4d0] sm:$0xf0]  ;;  %v6551_v11 = vld [vmem:[%s7209_s29 + $0x5c4] sm:$0xf]  ;;  %v5331_v12 = vor.u32 %v6619_v2, %v5328_v3 }
  0xde   : > { %3576 = vmatpush.bf16.msra.mxu0 %v4323_v59  ;;  %v5056_v14 = vld [vmem:[%s7209_s29 + $0x5d0] sm:$0xf0]  ;;  %v6583_v15 = vld [vmem:[%s7209_s29 + $0x6c4] sm:$0xf]  ;;  %v4931_v28 = vor.u32 %v6519_v8, %v4928_v10 }
  0xdf   : > { %v5184_v18 = vld [vmem:[%s7209_s29 + $0x6d0] sm:$0xf0]  ;;  %3589 = vmatpush.bf16.msra.mxu1 %v4451_v0  ;;  %v6615_v22 = vld [vmem:[%s7209_s29 + $0x7c4] sm:$0xf]  ;;  %v5059_v29 = vor.u32 %v6551_v11, %v5056_v14 }
  0xe0   : > { %3602 = vmatpush.bf16.msra.mxu2 %v4579_v1  ;;  %v5312_v25 = vld [vmem:[%s7209_s29 + $0x7d0] sm:$0xf0]  ;;  %v5187_v30 = vor.u32 %v6583_v15, %v5184_v18  ;;  %v6515_v31 = vld [vmem:[%s7209_s29 + $0x4a4] sm:$0xf] }
  0xe1   : > { %3615 = vmatpush.bf16.msra.mxu3 %v4707_v4  ;;  %v4912_v32 = vld [vmem:[%s7209_s29 + $0x4b0] sm:$0xf0]  ;;  %v6547_v33 = vld [vmem:[%s7209_s29 + $0x5a4] sm:$0xf]  ;;  %v5315_v35 = vor.u32 %v6615_v22, %v5312_v25  ;;  %3577 = vmatmul.bf16.vlgmr.msra.gmra.mxu0 %v7309_v9 }
  0xe2   : > { %3621 = vmatpush.bf16.msrb.mxu0 %v4947_v5  ;;  %v5040_v36 = vld [vmem:[%s7209_s29 + $0x5b0] sm:$0xf0]  ;;  %v6579_v39 = vld [vmem:[%s7209_s29 + $0x6a4] sm:$0xf]  ;;  %v4915_v44 = vor.u32 %v6515_v31, %v4912_v32  ;;  %3590 = vmatmul.bf16.vlgmr.msra.gmra.mxu1 %v7316_v17  ;;  %v3383_v32 = vpop.f32.mrf.mxu1 }
  0xe3   : > { %3634 = vmatpush.bf16.msrb.mxu1 %v5075_v6  ;;  %v5168_v41 = vld [vmem:[%s7209_s29 + $0x6b0] sm:$0xf0]  ;;  %3603 = vmatmul.bf16.vlgmr.msra.gmra.mxu2 %v7301_v63  ;;  %v6611_v42 = vld [vmem:[%s7209_s29 + $0x7a4] sm:$0xf]  ;;  %v5043_v46 = vor.u32 %v6547_v33, %v5040_v36 }
  0xe4   : > { %3647 = vmatpush.bf16.msrb.mxu2 %v5203_v7  ;;  %v5296_v43 = vld [vmem:[%s7209_s29 + $0x7b0] sm:$0xf0]  ;;  %3616 = vmatmul.bf16.vlgmr.msra.gmra.mxu3 %v7314_v16  ;;  %v6511_v45 = vld [vmem:[%s7209_s29 + $0x484] sm:$0xf]  ;;  %v5171_v47 = vor.u32 %v6579_v39, %v5168_v41 }
  0xe5   : > { %3660 = vmatpush.bf16.msrb.mxu3 %v5331_v12  ;;  %v4896_v48 = vld [vmem:[%s7209_s29 + $0x490] sm:$0xf0]  ;;  %v6543_v49 = vld [vmem:[%s7209_s29 + $0x584] sm:$0xf]  ;;  %v5299_v51 = vor.u32 %v6611_v42, %v5296_v43 }
  0xe6   : > { %3622 = vmatpush.bf16.msrb.mxu0 %v4931_v28  ;;  %v5024_v50 = vld [vmem:[%s7209_s29 + $0x590] sm:$0xf0]  ;;  %v6575_v52 = vld [vmem:[%s7209_s29 + $0x684] sm:$0xf]  ;;  %v4899_v57 = vor.u32 %v6511_v45, %v4896_v48 }
  0xe7   : > { %3635 = vmatpush.bf16.msrb.mxu1 %v5059_v29  ;;  %v5152_v53 = vld [vmem:[%s7209_s29 + $0x690] sm:$0xf0]  ;;  %v791_v54 = vld [vmem:[%s7622_s23] sm:$0xf]  ;;  %v5027_v59 = vor.u32 %v6543_v49, %v5024_v50 }
  0xe8   : > { %3648 = vmatpush.bf16.msrb.mxu2 %v5187_v30  ;;  %v6607_v55 = vld [vmem:[%s7209_s29 + $0x784] sm:$0xf]  ;;  %v5280_v56 = vld [vmem:[%s7209_s29 + $0x790] sm:$0xf0]  ;;  %v5155_v60 = vor.u32 %v6575_v52, %v5152_v53  ;;  %v793_v0 = vperm.slane %v791_v54, 0  ;;  %v7653_v52 = vpop.f32.mrf.mxu3 }
  0xe9   : > { %3661 = vmatpush.bf16.msrb.mxu3 %v5315_v35  ;;  %v6507_v58 = vld [vmem:[%s7209_s29 + $0x464] sm:$0xf]  ;;  %v4880_v61 = vld [vmem:[%s7209_s29 + $0x470] sm:$0xf0]  ;;  %v5283_v1 = vor.u32 %v6607_v55, %v5280_v56  ;;  %v3370_v8 = vpop.f32.mrf.mxu0 }
  0xea   : > { %3623 = vmatpush.bf16.msrb.mxu0 %v4915_v44  ;;  %v6539_v62 = vld [vmem:[%s7209_s29 + $0x564] sm:$0xf]  ;;  %v5008_v2 = vld [vmem:[%s7209_s29 + $0x570] sm:$0xf0]  ;;  %v4883_v7 = vor.u32 %v6507_v58, %v4880_v61  ;;  %v3371_v18 = vadd.f32 %v3370_v8, %v793_v0 }
  0xeb   : > { %3636 = vmatpush.bf16.msrb.mxu1 %v5043_v46  ;;  %v6571_v3 = vld [vmem:[%s7209_s29 + $0x664] sm:$0xf]  ;;  %v5136_v4 = vld [vmem:[%s7209_s29 + $0x670] sm:$0xf0]  ;;  %v5011_v10 = vor.u32 %v6539_v62, %v5008_v2  ;;  %v3396_v33 = vpop.f32.mrf.mxu2 }
  0xec   : > { %3649 = vmatpush.bf16.msrb.mxu2 %v5171_v47  ;;  %v6603_v5 = vld [vmem:[%s7209_s29 + $0x764] sm:$0xf]  ;;  %v5264_v6 = vld [vmem:[%s7209_s29 + $0x770] sm:$0xf0]  ;;  %v5139_v11 = vor.u32 %v6571_v3, %v5136_v4  ;;  %v3384_v36 = vadd.f32 %v3383_v32, %v3371_v18 }
  0xed   : > { %3662 = vmatpush.bf16.msrb.mxu3 %v5299_v51  ;;  %v6503_v12 = vld [vmem:[%s7209_s29 + $0x444] sm:$0xf]  ;;  %v4864_v14 = vld [vmem:[%s7209_s29 + $0x450] sm:$0xf0]  ;;  %v5267_v22 = vor.u32 %v6603_v5, %v5264_v6  ;;  %v3385_v6 = vpop.f32.mrf.mxu1 }
  0xee   : > { %3624 = vmatpush.bf16.msrb.mxu0 %v4899_v57  ;;  %v6535_v15 = vld [vmem:[%s7209_s29 + $0x544] sm:$0xf]  ;;  %v4992_v25 = vld [vmem:[%s7209_s29 + $0x550] sm:$0xf0]  ;;  %v4867_v35 = vor.u32 %v6503_v12, %v4864_v14  ;;  %v7649_v49 = vadd.f32 %v3396_v33, %v3384_v36 }
  0xef   : > { %3637 = vmatpush.bf16.msrb.mxu1 %v5027_v59  ;;  %v6567_v28 = vld [vmem:[%s7209_s29 + $0x644] sm:$0xf]  ;;  %v5120_v29 = vld [vmem:[%s7209_s29 + $0x650] sm:$0xf0]  ;;  %v4995_v39 = vor.u32 %v6535_v15, %v4992_v25 }
  0xf0   : > { %3650 = vmatpush.bf16.msrb.mxu2 %v5155_v60  ;;  %v6599_v30 = vld [vmem:[%s7209_s29 + $0x744] sm:$0xf]  ;;  %v5248_v31 = vld [vmem:[%s7209_s29 + $0x750] sm:$0xf0]  ;;  %v5123_v41 = vor.u32 %v6567_v28, %v5120_v29 }
  0xf1   : > { %3663 = vmatpush.bf16.msrb.mxu3 %v5283_v1  ;;  %v6499_v42 = vld [vmem:[%s7209_s29 + $0x424] sm:$0xf]  ;;  %v4848_v43 = vld [vmem:[%s7209_s29 + $0x430] sm:$0xf0]  ;;  %v5251_v45 = vor.u32 %v6599_v30, %v5248_v31  ;;  %v3372_v56 = vpop.f32.mrf.mxu0 }
  0xf2   : > { %3625 = vmatpush.bf16.msrb.mxu0 %v4883_v7  ;;  %v6531_v44 = vld [vmem:[%s7209_s29 + $0x524] sm:$0xf]  ;;  %v4976_v46 = vld [vmem:[%s7209_s29 + $0x530] sm:$0xf0]  ;;  %v4851_v53 = vor.u32 %v6499_v42, %v4848_v43 }
  0xf3   : > { %3638 = vmatpush.bf16.msrb.mxu1 %v5011_v10  ;;  %v6563_v47 = vld [vmem:[%s7209_s29 + $0x624] sm:$0xf]  ;;  %v5104_v48 = vld [vmem:[%s7209_s29 + $0x630] sm:$0xf0]  ;;  %v4979_v57 = vor.u32 %v6531_v44, %v4976_v46  ;;  %v3398_v7 = vpop.f32.mrf.mxu2 }
  0xf4   : > { %3651 = vmatpush.bf16.msrb.mxu2 %v5139_v11  ;;  %v6595_v50 = vld [vmem:[%s7209_s29 + $0x724] sm:$0xf]  ;;  %v5232_v51 = vld [vmem:[%s7209_s29 + $0x730] sm:$0xf0]  ;;  %v5107_v58 = vor.u32 %v6563_v47, %v5104_v48 }
  0xf5   : > { %3664 = vmatpush.bf16.msrb.mxu3 %v5267_v22  ;;  %v6495_v54 = vld [vmem:[%s7209_s29 + $0x404] sm:$0xf]  ;;  %v4832_v55 = vld [vmem:[%s7209_s29 + $0x410] sm:$0xf0]  ;;  %v5235_v62 = vor.u32 %v6595_v50, %v5232_v51 }
  0xf6   : > { %3626 = vmatpush.bf16.msrb.mxu0 %v4867_v35  ;;  %v6527_v59 = vld [vmem:[%s7209_s29 + $0x504] sm:$0xf]  ;;  %v4960_v60 = vld [vmem:[%s7209_s29 + $0x510] sm:$0xf0]  ;;  %v4835_v8 = vor.u32 %v6495_v54, %v4832_v55  ;;  %v3411_v35 = vpop.f32.mrf.mxu3 }
  0xf7   : > { %3639 = vmatpush.bf16.msrb.mxu1 %v4995_v39  ;;  %v6559_v61 = vld [vmem:[%s7209_s29 + $0x604] sm:$0xf]  ;;  %v5088_v0 = vld [vmem:[%s7209_s29 + $0x610] sm:$0xf0]  ;;  %v4963_v14 = vor.u32 %v6527_v59, %v4960_v60 }
  0xf8   : > { %3652 = vmatpush.bf16.msrb.mxu2 %v5123_v41  ;;  %v6591_v1 = vld [vmem:[%s7209_s29 + $0x704] sm:$0xf]  ;;  %v5216_v2 = vld [vmem:[%s7209_s29 + $0x710] sm:$0xf0]  ;;  %v5091_v15 = vor.u32 %v6559_v61, %v5088_v0 }
  0xf9   : > { %3665 = vmatpush.bf16.msrb.mxu3 %v5251_v45  ;;  %v6651_v3 = vld [vmem:[%s7209_s29 + $0x8e4] sm:$0xf]  ;;  %v5456_v4 = vld [vmem:[%s7209_s29 + $0x8f0] sm:$0xf0]  ;;  %v5219_v25 = vor.u32 %v6591_v1, %v5216_v2 }
  0xfa   : > { %v6683_v5 = vld [vmem:[%s7209_s29 + $0x9e4] sm:$0xf]  ;;  %3627 = vmatpush.bf16.msrb.mxu0 %v4851_v53  ;;  %v5584_v10 = vld [vmem:[%s7209_s29 + $0x9f0] sm:$0xf0]  ;;  %v5459_v28 = vor.u32 %v6651_v3, %v5456_v4 }
  0xfb   : > { %v6715_v11 = vld [vmem:[%s7209_s29 + $0xae4] sm:$0xf]  ;;  %v5712_v12 = vld [vmem:[%s7209_s29 + $0xaf0] sm:$0xf0]  ;;  %3640 = vmatpush.bf16.msrb.mxu1 %v4979_v57  ;;  %v5587_v29 = vor.u32 %v6683_v5, %v5584_v10 }
  0xfc   : > { %3653 = vmatpush.bf16.msrb.mxu2 %v5107_v58  ;;  %v6747_v18 = vld [vmem:[%s7209_s29 + $0xbe4] sm:$0xf]  ;;  %v5840_v22 = vld [vmem:[%s7209_s29 + $0xbf0] sm:$0xf0]  ;;  %v5715_v30 = vor.u32 %v6715_v11, %v5712_v12 }
  0xfd   : > { %3666 = vmatpush.bf16.msrb.mxu3 %v5235_v62  ;;  %v6647_v31 = vld [vmem:[%s7209_s29 + $0x8c4] sm:$0xf]  ;;  %v5440_v32 = vld [vmem:[%s7209_s29 + $0x8d0] sm:$0xf0]  ;;  %v5843_v36 = vor.u32 %v6747_v18, %v5840_v22  ;;  %v7704_v22 = vpop.f32.mrf.mxu1 }
  0xfe   : > { %v6679_v33 = vld [vmem:[%s7209_s29 + $0x9c4] sm:$0xf]  ;;  %3628 = vmatpush.bf16.msrb.mxu0 %v4835_v8  ;;  %v5568_v39 = vld [vmem:[%s7209_s29 + $0x9d0] sm:$0xf0]  ;;  %v5443_v45 = vor.u32 %v6647_v31, %v5440_v32 }
  0xff   : > { %v6711_v41 = vld [vmem:[%s7209_s29 + $0xac4] sm:$0xf]  ;;  %v5696_v42 = vld [vmem:[%s7209_s29 + $0xad0] sm:$0xf0]  ;;  %3641 = vmatpush.bf16.msrb.mxu1 %v4963_v14  ;;  %v5571_v46 = vor.u32 %v6679_v33, %v5568_v39 }
 0x100   : > { %3654 = vmatpush.bf16.msrb.mxu2 %v5091_v15  ;;  %v6743_v43 = vld [vmem:[%s7209_s29 + $0xbc4] sm:$0xf]  ;;  %v5824_v44 = vld [vmem:[%s7209_s29 + $0xbd0] sm:$0xf0]  ;;  %v5699_v47 = vor.u32 %v6711_v41, %v5696_v42 }
 0x101   : > { %3667 = vmatpush.bf16.msrb.mxu3 %v5219_v25  ;;  %v6643_v48 = vld [vmem:[%s7209_s29 + $0x8a4] sm:$0xf]  ;;  %v5424_v50 = vld [vmem:[%s7209_s29 + $0x8b0] sm:$0xf0]  ;;  %v5827_v53 = vor.u32 %v6743_v43, %v5824_v44  ;;  %3629 = vmatmul.bf16.vlgmr.msrb.gmra.mxu0 %v7373_v37 }
 0x102   : > { %3673 = vmatpush.bf16.msra.mxu0 %v5459_v28  ;;  %v6675_v51 = vld [vmem:[%s7209_s29 + $0x9a4] sm:$0xf]  ;;  %v5552_v54 = vld [vmem:[%s7209_s29 + $0x9b0] sm:$0xf0]  ;;  %v5427_v59 = vor.u32 %v6643_v48, %v5424_v50  ;;  %3642 = vmatmul.bf16.vlgmr.msrb.gmra.mxu1 %v7377_v40  ;;  %v7699_v10 = vpop.f32.mrf.mxu0 }
 0x103   : > { %3686 = vmatpush.bf16.msra.mxu1 %v5587_v29  ;;  %3655 = vmatmul.bf16.vlgmr.msrb.gmra.mxu2 %v7369_v34  ;;  %v6707_v55 = vld [vmem:[%s7209_s29 + $0xaa4] sm:$0xf]  ;;  %v5680_v56 = vld [vmem:[%s7209_s29 + $0xab0] sm:$0xf0]  ;;  %v5555_v60 = vor.u32 %v6675_v51, %v5552_v54 }
 0x104   : > { %3699 = vmatpush.bf16.msra.mxu2 %v5715_v30  ;;  %3668 = vmatmul.bf16.vlgmr.msrb.gmra.mxu3 %v7375_v38  ;;  %v6739_v57 = vld [vmem:[%s7209_s29 + $0xba4] sm:$0xf]  ;;  %v5808_v58 = vld [vmem:[%s7209_s29 + $0xbb0] sm:$0xf0]  ;;  %v5683_v61 = vor.u32 %v6707_v55, %v5680_v56 }
 0x105   : > { %3712 = vmatpush.bf16.msra.mxu3 %v5843_v36  ;;  %v6639_v62 = vld [vmem:[%s7209_s29 + $0x884] sm:$0xf]  ;;  %v5408_v0 = vld [vmem:[%s7209_s29 + $0x890] sm:$0xf0]  ;;  %v5811_v2 = vor.u32 %v6739_v57, %v5808_v58  ;;  %v7719_v48 = vpop.f32.mrf.mxu3 }
 0x106   : > { %3674 = vmatpush.bf16.msra.mxu0 %v5443_v45  ;;  %v6671_v1 = vld [vmem:[%s7209_s29 + $0x984] sm:$0xf]  ;;  %v5536_v3 = vld [vmem:[%s7209_s29 + $0x990] sm:$0xf0]  ;;  %v5411_v8 = vor.u32 %v6639_v62, %v5408_v0 }
 0x107   : > { %3687 = vmatpush.bf16.msra.mxu1 %v5571_v46  ;;  %v6703_v4 = vld [vmem:[%s7209_s29 + $0xa84] sm:$0xf]  ;;  %v5664_v5 = vld [vmem:[%s7209_s29 + $0xa90] sm:$0xf0]  ;;  %v5539_v11 = vor.u32 %v6671_v1, %v5536_v3  ;;  %v7714_v43 = vpop.f32.mrf.mxu2 }
 0x108   : > { %3700 = vmatpush.bf16.msra.mxu2 %v5699_v47  ;;  %v6735_v6 = vld [vmem:[%s7209_s29 + $0xb84] sm:$0xf]  ;;  %v5792_v7 = vld [vmem:[%s7209_s29 + $0xb90] sm:$0xf0]  ;;  %v5667_v12 = vor.u32 %v6703_v4, %v5664_v5 }
 0x109   : > { %3713 = vmatpush.bf16.msra.mxu3 %v5827_v53  ;;  %v6635_v14 = vld [vmem:[%s7209_s29 + $0x864] sm:$0xf]  ;;  %v5392_v15 = vld [vmem:[%s7209_s29 + $0x870] sm:$0xf0]  ;;  %v5795_v25 = vor.u32 %v6735_v6, %v5792_v7 }
 0x10a   : > { %3675 = vmatpush.bf16.msra.mxu0 %v5427_v59  ;;  %v6667_v18 = vld [vmem:[%s7209_s29 + $0x964] sm:$0xf]  ;;  %v5520_v28 = vld [vmem:[%s7209_s29 + $0x970] sm:$0xf0]  ;;  %v5395_v33 = vor.u32 %v6635_v14, %v5392_v15  ;;  %v3424_v54 = vpop.f32.mrf.mxu0 }
 0x10b   : > { %3688 = vmatpush.bf16.msra.mxu1 %v5555_v60  ;;  %v6699_v29 = vld [vmem:[%s7209_s29 + $0xa64] sm:$0xf]  ;;  %v5648_v30 = vld [vmem:[%s7209_s29 + $0xa70] sm:$0xf0]  ;;  %v5523_v35 = vor.u32 %v6667_v18, %v5520_v28  ;;  %v3437_v60 = vpop.f32.mrf.mxu1 }
 0x10c   : > { %3701 = vmatpush.bf16.msra.mxu2 %v5683_v61  ;;  %v6731_v31 = vld [vmem:[%s7209_s29 + $0xb64] sm:$0xf]  ;;  %v5776_v32 = vld [vmem:[%s7209_s29 + $0xb70] sm:$0xf0]  ;;  %v5651_v36 = vor.u32 %v6699_v29, %v5648_v30 }
 0x10d   : > { %3714 = vmatpush.bf16.msra.mxu3 %v5811_v2  ;;  %v6631_v39 = vld [vmem:[%s7209_s29 + $0x844] sm:$0xf]  ;;  %v5376_v41 = vld [vmem:[%s7209_s29 + $0x850] sm:$0xf0]  ;;  %v5779_v44 = vor.u32 %v6731_v31, %v5776_v32  ;;  %v3463_v30 = vpop.f32.mrf.mxu3 }
 0x10e   : > { %3676 = vmatpush.bf16.msra.mxu0 %v5411_v8  ;;  %v6663_v42 = vld [vmem:[%s7209_s29 + $0x944] sm:$0xf]  ;;  %v5504_v45 = vld [vmem:[%s7209_s29 + $0x950] sm:$0xf0]  ;;  %v5379_v53 = vor.u32 %v6631_v39, %v5376_v41 }
 0x10f   : > { %3689 = vmatpush.bf16.msra.mxu1 %v5539_v11  ;;  %v6695_v46 = vld [vmem:[%s7209_s29 + $0xa44] sm:$0xf]  ;;  %v5632_v47 = vld [vmem:[%s7209_s29 + $0xa50] sm:$0xf0]  ;;  %v5507_v55 = vor.u32 %v6663_v42, %v5504_v45  ;;  %v3450_v15 = vpop.f32.mrf.mxu2 }
 0x110   : > { %3702 = vmatpush.bf16.msra.mxu2 %v5667_v12  ;;  %v6727_v50 = vld [vmem:[%s7209_s29 + $0xb44] sm:$0xf]  ;;  %v5760_v51 = vld [vmem:[%s7209_s29 + $0xb50] sm:$0xf0]  ;;  %v5635_v56 = vor.u32 %v6695_v46, %v5632_v47 }
 0x111   : > { %3715 = vmatpush.bf16.msra.mxu3 %v5795_v25  ;;  %v6627_v57 = vld [vmem:[%s7209_s29 + $0x824] sm:$0xf]  ;;  %v5360_v58 = vld [vmem:[%s7209_s29 + $0x830] sm:$0xf0]  ;;  %v5763_v61 = vor.u32 %v6727_v50, %v5760_v51 }
 0x112   : > { %3677 = vmatpush.bf16.msra.mxu0 %v5395_v33  ;;  %v6659_v59 = vld [vmem:[%s7209_s29 + $0x924] sm:$0xf]  ;;  %v5488_v62 = vld [vmem:[%s7209_s29 + $0x930] sm:$0xf0]  ;;  %v5363_v4 = vor.u32 %v6627_v57, %v5360_v58 }
 0x113   : > { %3690 = vmatpush.bf16.msra.mxu1 %v5523_v35  ;;  %v6691_v0 = vld [vmem:[%s7209_s29 + $0xa24] sm:$0xf]  ;;  %v5616_v1 = vld [vmem:[%s7209_s29 + $0xa30] sm:$0xf0]  ;;  %v5491_v7 = vor.u32 %v6659_v59, %v5488_v62 }
 0x114   : > { %3703 = vmatpush.bf16.msra.mxu2 %v5651_v36  ;;  %v6723_v2 = vld [vmem:[%s7209_s29 + $0xb24] sm:$0xf]  ;;  %v5744_v3 = vld [vmem:[%s7209_s29 + $0xb30] sm:$0xf0]  ;;  %v5619_v8 = vor.u32 %v6691_v0, %v5616_v1 }
 0x115   : > { %3716 = vmatpush.bf16.msra.mxu3 %v5779_v44  ;;  %v6623_v5 = vld [vmem:[%s7209_s29 + $0x804] sm:$0xf]  ;;  %v5344_v6 = vld [vmem:[%s7209_s29 + $0x810] sm:$0xf0]  ;;  %v5747_v18 = vor.u32 %v6723_v2, %v5744_v3 }
 0x116   : > { %3678 = vmatpush.bf16.msra.mxu0 %v5379_v53  ;;  %v6655_v11 = vld [vmem:[%s7209_s29 + $0x904] sm:$0xf]  ;;  %v5472_v12 = vld [vmem:[%s7209_s29 + $0x910] sm:$0xf0]  ;;  %v5347_v35 = vor.u32 %v6623_v5, %v5344_v6 }
 0x117   : > { %3691 = vmatpush.bf16.msra.mxu1 %v5507_v55  ;;  %v6687_v14 = vld [vmem:[%s7209_s29 + $0xa04] sm:$0xf]  ;;  %v5600_v25 = vld [vmem:[%s7209_s29 + $0xa10] sm:$0xf0]  ;;  %v5475_v42 = vor.u32 %v6655_v11, %v5472_v12 }
 0x118   : > { %3704 = vmatpush.bf16.msra.mxu2 %v5635_v56  ;;  %v6719_v28 = vld [vmem:[%s7209_s29 + $0xb04] sm:$0xf]  ;;  %v5728_v29 = vld [vmem:[%s7209_s29 + $0xb10] sm:$0xf0]  ;;  %v5603_v44 = vor.u32 %v6687_v14, %v5600_v25 }
 0x119   : > { %3717 = vmatpush.bf16.msra.mxu3 %v5763_v61  ;;  %v6779_v31 = vld [vmem:[%s7209_s29 + $0xce4] sm:$0xf]  ;;  %v5968_v32 = vld [vmem:[%s7209_s29 + $0xcf0] sm:$0xf0]  ;;  %v5731_v47 = vor.u32 %v6719_v28, %v5728_v29 }
 0x11a   : > { %v6811_v33 = vld [vmem:[%s7209_s29 + $0xde4] sm:$0xf]  ;;  %3679 = vmatpush.bf16.msra.mxu0 %v5363_v4  ;;  %v6096_v36 = vld [vmem:[%s7209_s29 + $0xdf0] sm:$0xf0]  ;;  %v5971_v50 = vor.u32 %v6779_v31, %v5968_v32 }
 0x11b   : > { %v6843_v39 = vld [vmem:[%s7209_s29 + $0xee4] sm:$0xf]  ;;  %v6224_v41 = vld [vmem:[%s7209_s29 + $0xef0] sm:$0xf0]  ;;  %3692 = vmatpush.bf16.msra.mxu1 %v5491_v7  ;;  %v6099_v51 = vor.u32 %v6811_v33, %v6096_v36 }
 0x11c   : > { %3705 = vmatpush.bf16.msra.mxu2 %v5619_v8  ;;  %v6875_v45 = vld [vmem:[%s7209_s29 + $0xfe4] sm:$0xf]  ;;  %v6352_v46 = vld [vmem:[%s7209_s29 + $0xff0] sm:$0xf0]  ;;  %v6227_v53 = vor.u32 %v6843_v39, %v6224_v41 }
 0x11d   : > { %3718 = vmatpush.bf16.msra.mxu3 %v5747_v18  ;;  %v6775_v54 = vld [vmem:[%s7209_s29 + $0xcc4] sm:$0xf]  ;;  %v5952_v55 = vld [vmem:[%s7209_s29 + $0xcd0] sm:$0xf0]  ;;  %v6355_v57 = vor.u32 %v6875_v45, %v6352_v46  ;;  %v3410_v45 = vadd.f32 %v7653_v52, %v7649_v49 }
 0x11e   : > { %v6807_v56 = vld [vmem:[%s7209_s29 + $0xdc4] sm:$0xf]  ;;  %3680 = vmatpush.bf16.msra.mxu0 %v5347_v35  ;;  %v6080_v58 = vld [vmem:[%s7209_s29 + $0xdd0] sm:$0xf0]  ;;  %v5955_v0 = vor.u32 %v6775_v54, %v5952_v55 }
 0x11f   : > { %v6839_v59 = vld [vmem:[%s7209_s29 + $0xec4] sm:$0xf]  ;;  %v6208_v60 = vld [vmem:[%s7209_s29 + $0xed0] sm:$0xf0]  ;;  %3693 = vmatpush.bf16.msra.mxu1 %v5475_v42  ;;  %v6083_v1 = vor.u32 %v6807_v56, %v6080_v58  ;;  %v3423_v52 = vadd.f32 %v7699_v10, %v3410_v45 }
 0x120   : > { %3706 = vmatpush.bf16.msra.mxu2 %v5603_v44  ;;  %v6871_v61 = vld [vmem:[%s7209_s29 + $0xfc4] sm:$0xf]  ;;  %v6336_v62 = vld [vmem:[%s7209_s29 + $0xfd0] sm:$0xf0]  ;;  %v6211_v2 = vor.u32 %v6839_v59, %v6208_v60  ;;  %v7777_v44 = vpop.f32.mrf.mxu1 }
 0x121   : > { %3719 = vmatpush.bf16.msra.mxu3 %v5731_v47  ;;  %v6771_v3 = vld [vmem:[%s7209_s29 + $0xca4] sm:$0xf]  ;;  %v5936_v4 = vld [vmem:[%s7209_s29 + $0xcb0] sm:$0xf0]  ;;  %3681 = vmatmul.bf16.vlgmr.msra.gmra.mxu0 %v7442_v19  ;;  %v6339_v6 = vor.u32 %v6871_v61, %v6336_v62 }
 0x122   : > { %3725 = vmatpush.bf16.msrb.mxu0 %v5971_v50  ;;  %v6803_v5 = vld [vmem:[%s7209_s29 + $0xda4] sm:$0xf]  ;;  %v6064_v7 = vld [vmem:[%s7209_s29 + $0xdb0] sm:$0xf0]  ;;  %3694 = vmatmul.bf16.vlgmr.msra.gmra.mxu1 %v7449_v24  ;;  %v5939_v15 = vor.u32 %v6771_v3, %v5936_v4  ;;  %v7773_v36 = vpop.f32.mrf.mxu0 }
 0x123   : > { %3738 = vmatpush.bf16.msrb.mxu1 %v6099_v51  ;;  %v6835_v8 = vld [vmem:[%s7209_s29 + $0xea4] sm:$0xf]  ;;  %v6192_v11 = vld [vmem:[%s7209_s29 + $0xeb0] sm:$0xf0]  ;;  %3707 = vmatmul.bf16.vlgmr.msra.gmra.mxu2 %v7447_v23  ;;  %v6067_v18 = vor.u32 %v6803_v5, %v6064_v7 }
 0x124   : > { %3751 = vmatpush.bf16.msrb.mxu2 %v6227_v53  ;;  %v6867_v12 = vld [vmem:[%s7209_s29 + $0xfa4] sm:$0xf]  ;;  %v6320_v14 = vld [vmem:[%s7209_s29 + $0xfb0] sm:$0xf0]  ;;  %3720 = vmatmul.bf16.vlgmr.msra.gmra.mxu3 %v7453_v27  ;;  %v6195_v25 = vor.u32 %v6835_v8, %v6192_v11 }
 0x125   : > { %3764 = vmatpush.bf16.msrb.mxu3 %v6355_v57  ;;  %v6767_v28 = vld [vmem:[%s7209_s29 + $0xc84] sm:$0xf]  ;;  %v5920_v29 = vld [vmem:[%s7209_s29 + $0xc90] sm:$0xf0]  ;;  %v6323_v31 = vor.u32 %v6867_v12, %v6320_v14 }
 0x126   : > { %3726 = vmatpush.bf16.msrb.mxu0 %v5955_v0  ;;  %v6799_v30 = vld [vmem:[%s7209_s29 + $0xd84] sm:$0xf]  ;;  %v6048_v32 = vld [vmem:[%s7209_s29 + $0xd90] sm:$0xf0]  ;;  %v5923_v42 = vor.u32 %v6767_v28, %v5920_v29  ;;  %v7798_v7 = vpop.f32.mrf.mxu3 }
 0x127   : > { %3739 = vmatpush.bf16.msrb.mxu1 %v6083_v1  ;;  %v6831_v33 = vld [vmem:[%s7209_s29 + $0xe84] sm:$0xf]  ;;  %v6176_v35 = vld [vmem:[%s7209_s29 + $0xe90] sm:$0xf0]  ;;  %v6051_v46 = vor.u32 %v6799_v30, %v6048_v32 }
 0x128   : > { %3752 = vmatpush.bf16.msrb.mxu2 %v6211_v2  ;;  %v6863_v39 = vld [vmem:[%s7209_s29 + $0xf84] sm:$0xf]  ;;  %v6304_v41 = vld [vmem:[%s7209_s29 + $0xf90] sm:$0xf0]  ;;  %v6179_v47 = vor.u32 %v6831_v33, %v6176_v35  ;;  %v7793_v3 = vpop.f32.mrf.mxu2  ;;  %v3489_v14 = vpop.f32.mrf.mxu1 }
 0x129   : > { %3765 = vmatpush.bf16.msrb.mxu3 %v6339_v6  ;;  %v6763_v50 = vld [vmem:[%s7209_s29 + $0xc64] sm:$0xf]  ;;  %v5904_v51 = vld [vmem:[%s7209_s29 + $0xc70] sm:$0xf0]  ;;  %v6307_v54 = vor.u32 %v6863_v39, %v6304_v41 }
 0x12a   : > { %3727 = vmatpush.bf16.msrb.mxu0 %v5939_v15  ;;  %v6795_v53 = vld [vmem:[%s7209_s29 + $0xd64] sm:$0xf]  ;;  %v6032_v55 = vld [vmem:[%s7209_s29 + $0xd70] sm:$0xf0]  ;;  %v5907_v49 = vor.u32 %v6763_v50, %v5904_v51  ;;  %v3476_v11 = vpop.f32.mrf.mxu0  ;;  %v3436_v15 = vadd.f32 %v7704_v22, %v3423_v52  ;;  %v4566_v52 = vld [vmem:[%s7209_s29 + $0x1e8] sm:$0xf] }
 0x12b   : > { %3740 = vmatpush.bf16.msrb.mxu1 %v6067_v18  ;;  %v6827_v56 = vld [vmem:[%s7209_s29 + $0xe64] sm:$0xf]  ;;  %v6160_v57 = vld [vmem:[%s7209_s29 + $0xe70] sm:$0xf0]  ;;  %v6035_v60 = vor.u32 %v6795_v53, %v6032_v55 }
 0x12c   : > { %3753 = vmatpush.bf16.msrb.mxu2 %v6195_v25  ;;  %v6859_v58 = vld [vmem:[%s7209_s29 + $0xf64] sm:$0xf]  ;;  %v6288_v59 = vld [vmem:[%s7209_s29 + $0xf70] sm:$0xf0]  ;;  %v6163_v61 = vor.u32 %v6827_v56, %v6160_v57 }
 0x12d   : > { %3766 = vmatpush.bf16.msrb.mxu3 %v6323_v31  ;;  %v6759_v62 = vld [vmem:[%s7209_s29 + $0xc44] sm:$0xf]  ;;  %v5888_v0 = vld [vmem:[%s7209_s29 + $0xc50] sm:$0xf0]  ;;  %v6291_v2 = vor.u32 %v6859_v58, %v6288_v59 }
 0x12e   : > { %3728 = vmatpush.bf16.msrb.mxu0 %v5923_v42  ;;  %v6791_v1 = vld [vmem:[%s7209_s29 + $0xd44] sm:$0xf]  ;;  %v6016_v4 = vld [vmem:[%s7209_s29 + $0xd50] sm:$0xf0]  ;;  %v5891_v12 = vor.u32 %v6759_v62, %v5888_v0  ;;  %v6430_v62 = vld [vmem:[%s7209_s29 + $0x1f4] sm:$0xf0] }
 0x12f   : > { %3741 = vmatpush.bf16.msrb.mxu1 %v6051_v46  ;;  %v6823_v5 = vld [vmem:[%s7209_s29 + $0xe44] sm:$0xf]  ;;  %v6144_v6 = vld [vmem:[%s7209_s29 + $0xe50] sm:$0xf0]  ;;  %v6019_v18 = vor.u32 %v6791_v1, %v6016_v4  ;;  %v3449_v46 = vadd.f32 %v7714_v43, %v3436_v15  ;;  %v4438_v43 = vld [vmem:[%s7209_s29 + $0xe8] sm:$0xf]  ;;  %v4567_v14 = vor.u32 %v6430_v62, %v4566_v52 }
 0x130   : > { %3754 = vmatpush.bf16.msrb.mxu2 %v6179_v47  ;;  %v6855_v10 = vld [vmem:[%s7209_s29 + $0xf44] sm:$0xf]  ;;  %v6272_v8 = vld [vmem:[%s7209_s29 + $0xf50] sm:$0xf0]  ;;  %v6147_v25 = vor.u32 %v6823_v5, %v6144_v6  ;;  %v3502_v59 = vpop.f32.mrf.mxu2  ;;  %v4694_v0 = vld [vmem:[%s7209_s29 + $0x2e8] sm:$0xf] }
 0x131   : > { %3767 = vmatpush.bf16.msrb.mxu3 %v6307_v54  ;;  %v6755_v28 = vld [vmem:[%s7209_s29 + $0xc24] sm:$0xf]  ;;  %v5872_v29 = vld [vmem:[%s7209_s29 + $0xc30] sm:$0xf0]  ;;  %v6275_v31 = vor.u32 %v6855_v10, %v6272_v8  ;;  %v6462_v1 = vld [vmem:[%s7209_s29 + $0x2f4] sm:$0xf0] }
 0x132   : > { %3729 = vmatpush.bf16.msrb.mxu0 %v5907_v49  ;;  %v6787_v30 = vld [vmem:[%s7209_s29 + $0xd24] sm:$0xf]  ;;  %v6000_v32 = vld [vmem:[%s7209_s29 + $0xd30] sm:$0xf0]  ;;  %v5875_v41 = vor.u32 %v6755_v28, %v5872_v29  ;;  %v6398_v49 = vld [vmem:[%s7209_s29 + $0xf4] sm:$0xf0]  ;;  %v4695_v15 = vor.u32 %v6462_v1, %v4694_v0 }
 0x133   : > { %3742 = vmatpush.bf16.msrb.mxu1 %v6035_v60  ;;  %v6819_v33 = vld [vmem:[%s7209_s29 + $0xe24] sm:$0xf]  ;;  %v6128_v35 = vld [vmem:[%s7209_s29 + $0xe30] sm:$0xf0]  ;;  %v6003_v47 = vor.u32 %v6787_v30, %v6000_v32  ;;  %v3515_v60 = vpop.f32.mrf.mxu3  ;;  %v4822_v6 = vld [vmem:[%s7209_s29 + $0x3e8] sm:$0xf]  ;;  %v4439_v11 = vor.u32 %v6398_v49, %v4438_v43 }
 0x134   : > { %3755 = vmatpush.bf16.msrb.mxu2 %v6163_v61  ;;  %v6851_v39 = vld [vmem:[%s7209_s29 + $0xf24] sm:$0xf]  ;;  %v6256_v22 = vld [vmem:[%s7209_s29 + $0xf30] sm:$0xf0]  ;;  %v6131_v50 = vor.u32 %v6819_v33, %v6128_v35  ;;  %v6494_v10 = vld [vmem:[%s7209_s29 + $0x3f4] sm:$0xf0] }
 0x135   : > { %3768 = vmatpush.bf16.msrb.mxu3 %v6291_v2  ;;  %v6751_v42 = vld [vmem:[%s7209_s29 + $0xc04] sm:$0xf]  ;;  %v5856_v45 = vld [vmem:[%s7209_s29 + $0xc10] sm:$0xf0]  ;;  %v6259_v55 = vor.u32 %v6851_v39, %v6256_v22  ;;  %v3462_v2 = vadd.f32 %v7719_v48, %v3449_v46  ;;  %v6394_v48 = vld [vmem:[%s7209_s29 + $0xd4] sm:$0xf0]  ;;  %v4823_v28 = vor.u32 %v6494_v10, %v4822_v6 }
 0x136   : > { %3730 = vmatpush.bf16.msrb.mxu0 %v5891_v12  ;;  %v6783_v51 = vld [vmem:[%s7209_s29 + $0xd04] sm:$0xf]  ;;  %v5984_v53 = vld [vmem:[%s7209_s29 + $0xd10] sm:$0xf0]  ;;  %v5859_v61 = vor.u32 %v6751_v42, %v5856_v45  ;;  %v6426_v29 = vld [vmem:[%s7209_s29 + $0x1d4] sm:$0xf0] }
 0x137   : > { %3743 = vmatpush.bf16.msrb.mxu1 %v6019_v18  ;;  %v6815_v54 = vld [vmem:[%s7209_s29 + $0xe04] sm:$0xf]  ;;  %v6112_v56 = vld [vmem:[%s7209_s29 + $0xe10] sm:$0xf0]  ;;  %v5987_v4 = vor.u32 %v6783_v51, %v5984_v53  ;;  %v3475_v12 = vadd.f32 %v7773_v36, %v3462_v2  ;;  %v4422_v18 = vld [vmem:[%s7209_s29 + $0xc8] sm:$0xf] }
 0x138   : > { %3756 = vmatpush.bf16.msrb.mxu2 %v6147_v25  ;;  %v6847_v57 = vld [vmem:[%s7209_s29 + $0xf04] sm:$0xf]  ;;  %v6240_v58 = vld [vmem:[%s7209_s29 + $0xf10] sm:$0xf0]  ;;  %v6115_v5 = vor.u32 %v6815_v54, %v6112_v56  ;;  %v4550_v25 = vld [vmem:[%s7209_s29 + $0x1c8] sm:$0xf]  ;;  %v4423_v36 = vor.u32 %v6394_v48, %v4422_v18 }
 0x139   : > { %3769 = vmatpush.bf16.msrb.mxu3 %v6275_v31  ;;  %v6243_v8 = vor.u32 %v6847_v57, %v6240_v58  ;;  %v4678_v30 = vld [vmem:[%s7209_s29 + $0x2c8] sm:$0xf]  ;;  %v6458_v31 = vld [vmem:[%s7209_s29 + $0x2d4] sm:$0xf0]  ;;  %v3488_v35 = vadd.f32 %v7777_v44, %v3475_v12  ;;  %v4551_v39 = vor.u32 %v6426_v29, %v4550_v25 }
 0x13a   : > { %3731 = vmatpush.bf16.msrb.mxu0 %v5875_v41  ;;  %v4806_v32 = vld [vmem:[%s7209_s29 + $0x3c8] sm:$0xf]  ;;  %v6490_v33 = vld [vmem:[%s7209_s29 + $0x3d4] sm:$0xf0]  ;;  %v4679_v22 = vor.u32 %v6458_v31, %v4678_v30 }
 0x13b   : > { %3744 = vmatpush.bf16.msrb.mxu1 %v6003_v47  ;;  %v4406_v41 = vld [vmem:[%s7209_s29 + $0xa8] sm:$0xf]  ;;  %v6390_v42 = vld [vmem:[%s7209_s29 + $0xb4] sm:$0xf0]  ;;  %v4807_v46 = vor.u32 %v6490_v33, %v4806_v32  ;;  %v3501_v44 = vadd.f32 %v7793_v3, %v3488_v35 }
 0x13c   : > { %3757 = vmatpush.bf16.msrb.mxu2 %v6131_v50  ;;  %v4534_v45 = vld [vmem:[%s7209_s29 + $0x1a8] sm:$0xf]  ;;  %v6422_v47 = vld [vmem:[%s7209_s29 + $0x1b4] sm:$0xf0] }
 0x13d   : > { %3770 = vmatpush.bf16.msrb.mxu3 %v6259_v55  ;;  %v4662_v50 = vld [vmem:[%s7209_s29 + $0x2a8] sm:$0xf]  ;;  %v6454_v51 = vld [vmem:[%s7209_s29 + $0x2b4] sm:$0xf0]  ;;  %v4407_v55 = vor.u32 %v6390_v42, %v4406_v41  ;;  %v4535_v3 = vor.u32 %v6422_v47, %v4534_v45 }
 0x13e   : > { %3732 = vmatpush.bf16.msrb.mxu0 %v5859_v61  ;;  %v4790_v53 = vld [vmem:[%s7209_s29 + $0x3a8] sm:$0xf]  ;;  %v6486_v54 = vld [vmem:[%s7209_s29 + $0x3b4] sm:$0xf0]  ;;  %v4663_v56 = vor.u32 %v6454_v51, %v4662_v50  ;;  %v3514_v61 = vadd.f32 %v7798_v7, %v3501_v44 }
 0x13f   : > { %3745 = vmatpush.bf16.msrb.mxu1 %v5987_v4  ;;  %v4390_v57 = vld [vmem:[%s7209_s29 + $0x88] sm:$0xf]  ;;  %v6386_v58 = vld [vmem:[%s7209_s29 + $0x94] sm:$0xf0]  ;;  %v4791_v43 = vor.u32 %v6486_v54, %v4790_v53  ;;  %v3539_v4 = vpop.f32.mrf.mxu1 }
 0x140   : > { %3758 = vmatpush.bf16.msrb.mxu2 %v6115_v5  ;;  %v4518_v59 = vld [vmem:[%s7209_s29 + $0x188] sm:$0xf]  ;;  %v6418_v49 = vld [vmem:[%s7209_s29 + $0x194] sm:$0xf0]  ;;  %v3526_v62 = vpop.f32.mrf.mxu0  ;;  %v4391_v2 = vor.u32 %v6386_v58, %v4390_v57 }
 0x141   : > { %3771 = vmatpush.bf16.msrb.mxu3 %v6243_v8  ;;  %3733 = vmatmul.bf16.vlgmr.msrb.gmra.mxu0 %v7518_v13  ;;  %v4646_v52 = vld [vmem:[%s7209_s29 + $0x288] sm:$0xf]  ;;  %v6450_v60 = vld [vmem:[%s7209_s29 + $0x294] sm:$0xf0]  ;;  %v3527_v7 = vadd.f32 %v3526_v62, %v3514_v61  ;;  %v4519_v5 = vor.u32 %v6418_v49, %v4518_v59 }
 0x142   : > { %3777 = vmatpush.bf16.msra.mxu0 %v4439_v11  ;;  %3746 = vmatmul.bf16.vlgmr.msrb.gmra.mxu1 %v7525_v21  ;;  %v4774_v0 = vld [vmem:[%s7209_s29 + $0x388] sm:$0xf]  ;;  %v6482_v1 = vld [vmem:[%s7209_s29 + $0x394] sm:$0xf0]  ;;  %v4647_v6 = vor.u32 %v6450_v60, %v4646_v52 }
 0x143   : > { %3790 = vmatpush.bf16.msra.mxu1 %v4567_v14  ;;  %3759 = vmatmul.bf16.vlgmr.msrb.gmra.mxu2 %v7523_v20  ;;  %v4374_v10 = vld [vmem:[%s7209_s29 + $0x68] sm:$0xf]  ;;  %v6382_v8 = vld [vmem:[%s7209_s29 + $0x74] sm:$0xf0]  ;;  %v4775_v12 = vor.u32 %v6482_v1, %v4774_v0  ;;  %v3540_v29 = vadd.f32 %v3539_v4, %v3527_v7 }
 0x144   : > { %3803 = vmatpush.bf16.msra.mxu2 %v4695_v15  ;;  %3772 = vmatmul.bf16.vlgmr.msrb.gmra.mxu3 %v7529_v26  ;;  %v4502_v11 = vld [vmem:[%s7209_s29 + $0x168] sm:$0xf]  ;;  %v6414_v14 = vld [vmem:[%s7209_s29 + $0x174] sm:$0xf0] }
 0x145   : > { %3816 = vmatpush.bf16.msra.mxu3 %v4823_v28  ;;  %v4630_v15 = vld [vmem:[%s7209_s29 + $0x268] sm:$0xf]  ;;  %v6446_v18 = vld [vmem:[%s7209_s29 + $0x274] sm:$0xf0]  ;;  %v4375_v28 = vor.u32 %v6382_v8, %v4374_v10  ;;  %v4503_v30 = vor.u32 %v6414_v14, %v4502_v11 }
 0x146   : > { %3778 = vmatpush.bf16.msra.mxu0 %v4423_v36  ;;  %v4758_v48 = vld [vmem:[%s7209_s29 + $0x368] sm:$0xf]  ;;  %v6478_v25 = vld [vmem:[%s7209_s29 + $0x374] sm:$0xf0]  ;;  %v4631_v31 = vor.u32 %v6446_v18, %v4630_v15 }
 0x147   : > { %3791 = vmatpush.bf16.msra.mxu1 %v4551_v39  ;;  %v4358_v32 = vld [vmem:[%s7209_s29 + $0x48] sm:$0xf]  ;;  %v6378_v33 = vld [vmem:[%s7209_s29 + $0x54] sm:$0xf0]  ;;  %v4759_v35 = vor.u32 %v6478_v25, %v4758_v48  ;;  %v3541_v53 = vpop.f32.mrf.mxu1 }
 0x148   : > { %3804 = vmatpush.bf16.msra.mxu2 %v4679_v22  ;;  %v4486_v36 = vld [vmem:[%s7209_s29 + $0x148] sm:$0xf]  ;;  %v3552_v39 = vpop.f32.mrf.mxu2  ;;  %v6410_v22 = vld [vmem:[%s7209_s29 + $0x154] sm:$0xf0]  ;;  %v3528_v51 = vpop.f32.mrf.mxu0  ;;  %v4359_v44 = vor.u32 %v6378_v33, %v4358_v32 }
 0x149   : > { %3817 = vmatpush.bf16.msra.mxu3 %v4807_v46  ;;  %v4614_v41 = vld [vmem:[%s7209_s29 + $0x248] sm:$0xf]  ;;  %v6442_v42 = vld [vmem:[%s7209_s29 + $0x254] sm:$0xf0]  ;;  %v3553_v45 = vadd.f32 %v3552_v39, %v3540_v29  ;;  %v3565_v46 = vpop.f32.mrf.mxu3 }
 0x14a   : > { %3779 = vmatpush.bf16.msra.mxu0 %v4407_v55  ;;  %v4742_v47 = vld [vmem:[%s7209_s29 + $0x348] sm:$0xf]  ;;  %v6474_v50 = vld [vmem:[%s7209_s29 + $0x354] sm:$0xf0]  ;;  %v4487_v55 = vor.u32 %v6410_v22, %v4486_v36 }
 0x14b   : > { %3792 = vmatpush.bf16.msra.mxu1 %v4535_v3  ;;  %v3566_v54 = vadd.f32 %v3565_v46, %v3553_v45  ;;  %v4615_v3 = vor.u32 %v6442_v42, %v4614_v41  ;;  %v6374_v57 = vld [vmem:[%s7209_s29 + $0x34] sm:$0xf0]  ;;  %v4470_v58 = vld [vmem:[%s7209_s29 + $0x128] sm:$0xf]  ;;  %v4743_v59 = vor.u32 %v6474_v50, %v4742_v47 }
 0x14c   : > { %3805 = vmatpush.bf16.msra.mxu2 %v4663_v56  ;;  %v4342_v56 = vld [vmem:[%s7209_s29 + $0x28] sm:$0xf]  ;;  %v6438_v52 = vld [vmem:[%s7209_s29 + $0x234] sm:$0xf0] }
 0x14d   : > { %3818 = vmatpush.bf16.msra.mxu3 %v4791_v43  ;;  %v6406_v43 = vld [vmem:[%s7209_s29 + $0x134] sm:$0xf0]  ;;  %v4598_v49 = vld [vmem:[%s7209_s29 + $0x228] sm:$0xf]  ;;  %v4193_v60 = vmax.f32 %v3566_v54, 0.0  ;;  %v4343_v0 = vor.u32 %v6374_v57, %v4342_v56 }
 0x14e   : > { %3780 = vmatpush.bf16.msra.mxu0 %v4391_v2  ;;  %v4726_v61 = vld [vmem:[%s7209_s29 + $0x328] sm:$0xf]  ;;  %v6470_v62 = vld [vmem:[%s7209_s29 + $0x334] sm:$0xf0]  ;;  %v4471_v4 = vor.u32 %v6406_v43, %v4470_v58  ;;  %v4599_v7 = vor.u32 %v6438_v52, %v4598_v49 }
 0x14f   : > { %3793 = vmatpush.bf16.msra.mxu1 %v4519_v5  ;;  %v4326_v1 = vld [vmem:[%s7209_s29 + $0x8] sm:$0xf]  ;;  %v6370_v2 = vld [vmem:[%s7209_s29 + $0x14] sm:$0xf0]  ;;  %4197 = vst [vmem:[%s7897_s8] sm:$0xff] %v4193_v60  ;;  %v4727_v8 = vor.u32 %v6470_v62, %v4726_v61 }
 0x150   : > { %3806 = vmatpush.bf16.msra.mxu2 %v4647_v6  ;;  %v4454_v5 = vld [vmem:[%s7209_s29 + $0x108] sm:$0xf]  ;;  %v6402_v6 = vld [vmem:[%s7209_s29 + $0x114] sm:$0xf0]  ;;  %v3554_v15 = vpop.f32.mrf.mxu2  ;;  %v4327_v29 = vor.u32 %v6370_v2, %v4326_v1 }
 0x151   : > { %3819 = vmatpush.bf16.msra.mxu3 %v4775_v12  ;;  %v4582_v10 = vld [vmem:[%s7209_s29 + $0x208] sm:$0xf]  ;;  %v6434_v11 = vld [vmem:[%s7209_s29 + $0x214] sm:$0xf0]  ;;  %v4455_v33 = vor.u32 %v6402_v6, %v4454_v5 }
 0x152   : > { %3781 = vmatpush.bf16.msra.mxu0 %v4375_v28  ;;  %v4710_v12 = vld [vmem:[%s7209_s29 + $0x308] sm:$0xf]  ;;  %v6466_v14 = vld [vmem:[%s7209_s29 + $0x314] sm:$0xf0]  ;;  %v3567_v28 = vpop.f32.mrf.mxu3  ;;  %v4583_v36 = vor.u32 %v6434_v11, %v4582_v10 }
 0x153   : > { %3794 = vmatpush.bf16.msra.mxu1 %v4503_v30  ;;  %v4950_v18 = vld [vmem:[%s7209_s29 + $0x4e8] sm:$0xf]  ;;  %v6526_v48 = vld [vmem:[%s7209_s29 + $0x4f4] sm:$0xf0]  ;;  %v4711_v22 = vor.u32 %v6466_v14, %v4710_v12 }
 0x154   : > { %3807 = vmatpush.bf16.msra.mxu2 %v4631_v31  ;;  %v5078_v25 = vld [vmem:[%s7209_s29 + $0x5e8] sm:$0xf]  ;;  %v6558_v30 = vld [vmem:[%s7209_s29 + $0x5f4] sm:$0xf0]  ;;  %v4951_v41 = vor.u32 %v6526_v48, %v4950_v18 }
 0x155   : > { %3820 = vmatpush.bf16.msra.mxu3 %v4759_v35  ;;  %v5206_v31 = vld [vmem:[%s7209_s29 + $0x6e8] sm:$0xf]  ;;  %v6590_v32 = vld [vmem:[%s7209_s29 + $0x6f4] sm:$0xf0]  ;;  %v5079_v42 = vor.u32 %v6558_v30, %v5078_v25 }
 0x156   : > { %3782 = vmatpush.bf16.msra.mxu0 %v4359_v44  ;;  %v5334_v35 = vld [vmem:[%s7209_s29 + $0x7e8] sm:$0xf]  ;;  %v6622_v39 = vld [vmem:[%s7209_s29 + $0x7f4] sm:$0xf0]  ;;  %v5207_v45 = vor.u32 %v6590_v32, %v5206_v31 }
 0x157   : > { %3795 = vmatpush.bf16.msra.mxu1 %v4487_v55  ;;  %v4934_v46 = vld [vmem:[%s7209_s29 + $0x4c8] sm:$0xf]  ;;  %v6522_v47 = vld [vmem:[%s7209_s29 + $0x4d4] sm:$0xf0]  ;;  %v5335_v51 = vor.u32 %v6622_v39, %v5334_v35 }
 0x158   : > { %3808 = vmatpush.bf16.msra.mxu2 %v4615_v3  ;;  %v5062_v50 = vld [vmem:[%s7209_s29 + $0x5c8] sm:$0xf]  ;;  %v6554_v44 = vld [vmem:[%s7209_s29 + $0x5d4] sm:$0xf0]  ;;  %v4935_v56 = vor.u32 %v6522_v47, %v4934_v46 }
 0x159   : > { %3821 = vmatpush.bf16.msra.mxu3 %v4743_v59  ;;  %v5190_v53 = vld [vmem:[%s7209_s29 + $0x6c8] sm:$0xf]  ;;  %v6586_v54 = vld [vmem:[%s7209_s29 + $0x6d4] sm:$0xf0]  ;;  %v5063_v57 = vor.u32 %v6554_v44, %v5062_v50 }
 0x15a   : > { %3783 = vmatpush.bf16.msra.mxu0 %v4343_v0  ;;  %v5318_v55 = vld [vmem:[%s7209_s29 + $0x7c8] sm:$0xf]  ;;  %v6618_v3 = vld [vmem:[%s7209_s29 + $0x7d4] sm:$0xf0]  ;;  %v5191_v58 = vor.u32 %v6586_v54, %v5190_v53 }
 0x15b   : > { %3796 = vmatpush.bf16.msra.mxu1 %v4471_v4  ;;  %v4918_v59 = vld [vmem:[%s7209_s29 + $0x4a8] sm:$0xf]  ;;  %v6518_v43 = vld [vmem:[%s7209_s29 + $0x4b4] sm:$0xf0]  ;;  %v5319_v52 = vor.u32 %v6618_v3, %v5318_v55 }
 0x15c   : > { %3809 = vmatpush.bf16.msra.mxu2 %v4599_v7  ;;  %v5046_v49 = vld [vmem:[%s7209_s29 + $0x5a8] sm:$0xf]  ;;  %v6550_v60 = vld [vmem:[%s7209_s29 + $0x5b4] sm:$0xf0]  ;;  %v4919_v2 = vor.u32 %v6518_v43, %v4918_v59 }
 0x15d   : > { %3822 = vmatpush.bf16.msra.mxu3 %v4727_v8  ;;  %v5174_v61 = vld [vmem:[%s7209_s29 + $0x6a8] sm:$0xf]  ;;  %v6582_v62 = vld [vmem:[%s7209_s29 + $0x6b4] sm:$0xf0]  ;;  %v5047_v7 = vor.u32 %v6550_v60, %v5046_v49  ;;  %v6937_v8 = vld [vmem:[%s7622_s23] sm:$0xf] }
 0x15e   : > { %3784 = vmatpush.bf16.msra.mxu0 %v4327_v29  ;;  %v5302_v0 = vld [vmem:[%s7209_s29 + $0x7a8] sm:$0xf]  ;;  %v6614_v1 = vld [vmem:[%s7209_s29 + $0x7b4] sm:$0xf0]  ;;  %v5175_v5 = vor.u32 %v6582_v62, %v5174_v61  ;;  %v794_v11 = vperm.slane %v6937_v8, 1  ;;  %v3578_v29 = vpop.f32.mrf.mxu0 }
 0x15f   : > { %3797 = vmatpush.bf16.msra.mxu1 %v4455_v33  ;;  %v4902_v4 = vld [vmem:[%s7209_s29 + $0x488] sm:$0xf]  ;;  %v6514_v6 = vld [vmem:[%s7209_s29 + $0x494] sm:$0xf0]  ;;  %v5303_v12 = vor.u32 %v6614_v1, %v5302_v0  ;;  %v3591_v39 = vpop.f32.mrf.mxu1 }
 0x160   : > { %3810 = vmatpush.bf16.msra.mxu2 %v4583_v36  ;;  %v5030_v10 = vld [vmem:[%s7209_s29 + $0x588] sm:$0xf]  ;;  %v6546_v14 = vld [vmem:[%s7209_s29 + $0x594] sm:$0xf0]  ;;  %v4903_v28 = vor.u32 %v6514_v6, %v4902_v4  ;;  %v3579_v35 = vadd.f32 %v3578_v29, %v794_v11 }
 0x161   : > { %3823 = vmatpush.bf16.msra.mxu3 %v4711_v22  ;;  %3785 = vmatmul.bf16.vlgmr.msra.gmra.mxu0 %v7309_v9  ;;  %v5158_v15 = vld [vmem:[%s7209_s29 + $0x688] sm:$0xf]  ;;  %v6578_v18 = vld [vmem:[%s7209_s29 + $0x694] sm:$0xf0]  ;;  %v5031_v30 = vor.u32 %v6546_v14, %v5030_v10 }
 0x162   : > { %3829 = vmatpush.bf16.msrb.mxu0 %v4951_v41  ;;  %3798 = vmatmul.bf16.vlgmr.msra.gmra.mxu1 %v7316_v17  ;;  %v5286_v48 = vld [vmem:[%s7209_s29 + $0x788] sm:$0xf]  ;;  %v6610_v25 = vld [vmem:[%s7209_s29 + $0x794] sm:$0xf0]  ;;  %v5159_v31 = vor.u32 %v6578_v18, %v5158_v15  ;;  %v3592_v50 = vadd.f32 %v3591_v39, %v3579_v35 }
 0x163   : > { %3842 = vmatpush.bf16.msrb.mxu1 %v5079_v42  ;;  %3811 = vmatmul.bf16.vlgmr.msra.gmra.mxu2 %v7301_v63  ;;  %v4886_v32 = vld [vmem:[%s7209_s29 + $0x468] sm:$0xf]  ;;  %v6510_v33 = vld [vmem:[%s7209_s29 + $0x474] sm:$0xf0]  ;;  %v5287_v22 = vor.u32 %v6610_v25, %v5286_v48 }
 0x164   : > { %3855 = vmatpush.bf16.msrb.mxu2 %v5207_v45  ;;  %3824 = vmatmul.bf16.vlgmr.msra.gmra.mxu3 %v7314_v16  ;;  %v5014_v36 = vld [vmem:[%s7209_s29 + $0x568] sm:$0xf]  ;;  %v6542_v41 = vld [vmem:[%s7209_s29 + $0x574] sm:$0xf0] }
 0x165   : > { %3868 = vmatpush.bf16.msrb.mxu3 %v5335_v51  ;;  %v5142_v42 = vld [vmem:[%s7209_s29 + $0x668] sm:$0xf]  ;;  %v6574_v45 = vld [vmem:[%s7209_s29 + $0x674] sm:$0xf0]  ;;  %v4887_v51 = vor.u32 %v6510_v33, %v4886_v32  ;;  %v5015_v44 = vor.u32 %v6542_v41, %v5014_v36 }
 0x166   : > { %3830 = vmatpush.bf16.msrb.mxu0 %v4935_v56  ;;  %v5270_v46 = vld [vmem:[%s7209_s29 + $0x768] sm:$0xf]  ;;  %v6606_v47 = vld [vmem:[%s7209_s29 + $0x774] sm:$0xf0]  ;;  %v5143_v53 = vor.u32 %v6574_v45, %v5142_v42  ;;  %v3604_v56 = vpop.f32.mrf.mxu2  ;;  %v3580_v1 = vpop.f32.mrf.mxu0 }
 0x167   : > { %3843 = vmatpush.bf16.msrb.mxu1 %v5063_v57  ;;  %v4870_v54 = vld [vmem:[%s7209_s29 + $0x448] sm:$0xf]  ;;  %v6506_v55 = vld [vmem:[%s7209_s29 + $0x454] sm:$0xf0]  ;;  %v5271_v57 = vor.u32 %v6606_v47, %v5270_v46  ;;  %v3605_v49 = vadd.f32 %v3604_v56, %v3592_v50  ;;  %v3593_v10 = vpop.f32.mrf.mxu1 }
 0x168   : > { %3856 = vmatpush.bf16.msrb.mxu2 %v5191_v58  ;;  %v4998_v3 = vld [vmem:[%s7209_s29 + $0x548] sm:$0xf]  ;;  %v6538_v58 = vld [vmem:[%s7209_s29 + $0x554] sm:$0xf0]  ;;  %v4871_v62 = vor.u32 %v6506_v55, %v4870_v54 }
 0x169   : > { %3869 = vmatpush.bf16.msrb.mxu3 %v5319_v52  ;;  %v5126_v59 = vld [vmem:[%s7209_s29 + $0x648] sm:$0xf]  ;;  %v6570_v43 = vld [vmem:[%s7209_s29 + $0x654] sm:$0xf0]  ;;  %v3617_v52 = vpop.f32.mrf.mxu3 }
 0x16a   : > { %3831 = vmatpush.bf16.msrb.mxu0 %v4919_v2  ;;  %v5254_v60 = vld [vmem:[%s7209_s29 + $0x748] sm:$0xf]  ;;  %v6602_v61 = vld [vmem:[%s7209_s29 + $0x754] sm:$0xf0]  ;;  %v7966_v0 = vadd.f32 %v3617_v52, %v3605_v49  ;;  %v4999_v2 = vor.u32 %v6538_v58, %v4998_v3  ;;  %v5127_v4 = vor.u32 %v6570_v43, %v5126_v59 }
 0x16b   : > { %3844 = vmatpush.bf16.msrb.mxu1 %v5047_v7  ;;  %v4854_v7 = vld [vmem:[%s7209_s29 + $0x428] sm:$0xf]  ;;  %v5255_v8 = vor.u32 %v6602_v61, %v5254_v60  ;;  %v6534_v11 = vld [vmem:[%s7209_s29 + $0x534] sm:$0xf0] }
 0x16c   : > { %3857 = vmatpush.bf16.msrb.mxu2 %v5175_v5  ;;  %v6502_v5 = vld [vmem:[%s7209_s29 + $0x434] sm:$0xf0]  ;;  %v4982_v6 = vld [vmem:[%s7209_s29 + $0x528] sm:$0xf] }
 0x16d   : > { %3870 = vmatpush.bf16.msrb.mxu3 %v5303_v12  ;;  %v5110_v12 = vld [vmem:[%s7209_s29 + $0x628] sm:$0xf]  ;;  %v6566_v14 = vld [vmem:[%s7209_s29 + $0x634] sm:$0xf0]  ;;  %v4855_v48 = vor.u32 %v6502_v5, %v4854_v7  ;;  %v4983_v29 = vor.u32 %v6534_v11, %v4982_v6 }
 0x16e   : > { %3832 = vmatpush.bf16.msrb.mxu0 %v4903_v28  ;;  %v5238_v15 = vld [vmem:[%s7209_s29 + $0x728] sm:$0xf]  ;;  %v6598_v18 = vld [vmem:[%s7209_s29 + $0x734] sm:$0xf0]  ;;  %v3606_v36 = vpop.f32.mrf.mxu2 }
 0x16f   : > { %3845 = vmatpush.bf16.msrb.mxu1 %v5031_v30  ;;  %v4838_v25 = vld [vmem:[%s7209_s29 + $0x408] sm:$0xf]  ;;  %v6498_v28 = vld [vmem:[%s7209_s29 + $0x414] sm:$0xf0]  ;;  %v5111_v30 = vor.u32 %v6566_v14, %v5110_v12  ;;  %v5239_v35 = vor.u32 %v6598_v18, %v5238_v15 }
 0x170   : > { %3858 = vmatpush.bf16.msrb.mxu2 %v5159_v31  ;;  %v4966_v31 = vld [vmem:[%s7209_s29 + $0x508] sm:$0xf]  ;;  %v6530_v32 = vld [vmem:[%s7209_s29 + $0x514] sm:$0xf0]  ;;  %v4839_v50 = vor.u32 %v6498_v28, %v4838_v25 }
 0x171   : > { %3871 = vmatpush.bf16.msrb.mxu3 %v5287_v22  ;;  %v5094_v33 = vld [vmem:[%s7209_s29 + $0x608] sm:$0xf]  ;;  %v6562_v39 = vld [vmem:[%s7209_s29 + $0x614] sm:$0xf0]  ;;  %v3619_v42 = vpop.f32.mrf.mxu3  ;;  %v4967_v54 = vor.u32 %v6530_v32, %v4966_v31 }
 0x172   : > { %3833 = vmatpush.bf16.msrb.mxu0 %v4887_v51  ;;  %v5222_v22 = vld [vmem:[%s7209_s29 + $0x708] sm:$0xf]  ;;  %v6594_v41 = vld [vmem:[%s7209_s29 + $0x714] sm:$0xf0]  ;;  %v5095_v55 = vor.u32 %v6562_v39, %v5094_v33 }
 0x173   : > { %3846 = vmatpush.bf16.msrb.mxu1 %v5015_v44  ;;  %v5462_v45 = vld [vmem:[%s7209_s29 + $0x8e8] sm:$0xf]  ;;  %v6654_v46 = vld [vmem:[%s7209_s29 + $0x8f4] sm:$0xf0] }
 0x174   : > { %3859 = vmatpush.bf16.msrb.mxu2 %v5143_v53  ;;  %v5590_v47 = vld [vmem:[%s7209_s29 + $0x9e8] sm:$0xf]  ;;  %v6686_v51 = vld [vmem:[%s7209_s29 + $0x9f4] sm:$0xf0]  ;;  %v5463_v58 = vor.u32 %v6654_v46, %v5462_v45 }
 0x175   : > { %3872 = vmatpush.bf16.msrb.mxu3 %v5271_v57  ;;  %v5718_v44 = vld [vmem:[%s7209_s29 + $0xae8] sm:$0xf]  ;;  %v6718_v53 = vld [vmem:[%s7209_s29 + $0xaf4] sm:$0xf0]  ;;  %v5223_v57 = vor.u32 %v6594_v41, %v5222_v22  ;;  %v5591_v59 = vor.u32 %v6686_v51, %v5590_v47 }
 0x176   : > { %3834 = vmatpush.bf16.msrb.mxu0 %v4871_v62  ;;  %v5846_v3 = vld [vmem:[%s7209_s29 + $0xbe8] sm:$0xf]  ;;  %v6750_v56 = vld [vmem:[%s7209_s29 + $0xbf4] sm:$0xf0]  ;;  %v5719_v43 = vor.u32 %v6718_v53, %v5718_v44 }
 0x177   : > { %3847 = vmatpush.bf16.msrb.mxu1 %v4999_v2  ;;  %v5446_v49 = vld [vmem:[%s7209_s29 + $0x8c8] sm:$0xf]  ;;  %v6650_v52 = vld [vmem:[%s7209_s29 + $0x8d4] sm:$0xf0]  ;;  %v5847_v61 = vor.u32 %v6750_v56, %v5846_v3 }
 0x178   : > { %3860 = vmatpush.bf16.msrb.mxu2 %v5127_v4  ;;  %v5574_v60 = vld [vmem:[%s7209_s29 + $0x9c8] sm:$0xf]  ;;  %v6682_v62 = vld [vmem:[%s7209_s29 + $0x9d4] sm:$0xf0]  ;;  %v5447_v5 = vor.u32 %v6650_v52, %v5446_v49 }
 0x179   : > { %3873 = vmatpush.bf16.msrb.mxu3 %v5255_v8  ;;  %v5702_v1 = vld [vmem:[%s7209_s29 + $0xac8] sm:$0xf]  ;;  %v6714_v2 = vld [vmem:[%s7209_s29 + $0xad4] sm:$0xf0]  ;;  %v5575_v6 = vor.u32 %v6682_v62, %v5574_v60 }
 0x17a   : > { %3835 = vmatpush.bf16.msrb.mxu0 %v4855_v48  ;;  %v5830_v4 = vld [vmem:[%s7209_s29 + $0xbc8] sm:$0xf]  ;;  %v6746_v7 = vld [vmem:[%s7209_s29 + $0xbd4] sm:$0xf0]  ;;  %v5703_v10 = vor.u32 %v6714_v2, %v5702_v1 }
 0x17b   : > { %3848 = vmatpush.bf16.msrb.mxu1 %v4983_v29  ;;  %v5430_v8 = vld [vmem:[%s7209_s29 + $0x8a8] sm:$0xf]  ;;  %v6646_v11 = vld [vmem:[%s7209_s29 + $0x8b4] sm:$0xf0]  ;;  %v5831_v14 = vor.u32 %v6746_v7, %v5830_v4 }
 0x17c   : > { %3861 = vmatpush.bf16.msrb.mxu2 %v5111_v30  ;;  %v5558_v12 = vld [vmem:[%s7209_s29 + $0x9a8] sm:$0xf]  ;;  %v6678_v15 = vld [vmem:[%s7209_s29 + $0x9b4] sm:$0xf0]  ;;  %v5431_v29 = vor.u32 %v6646_v11, %v5430_v8 }
 0x17d   : > { %3874 = vmatpush.bf16.msrb.mxu3 %v5239_v35  ;;  %v5686_v18 = vld [vmem:[%s7209_s29 + $0xaa8] sm:$0xf]  ;;  %v6710_v48 = vld [vmem:[%s7209_s29 + $0xab4] sm:$0xf0]  ;;  %v5559_v30 = vor.u32 %v6678_v15, %v5558_v12 }
 0x17e   : > { %3836 = vmatpush.bf16.msrb.mxu0 %v4839_v50  ;;  %v5814_v25 = vld [vmem:[%s7209_s29 + $0xba8] sm:$0xf]  ;;  %v6742_v28 = vld [vmem:[%s7209_s29 + $0xbb4] sm:$0xf0]  ;;  %v5687_v31 = vor.u32 %v6710_v48, %v5686_v18  ;;  %v8020_v47 = vpop.f32.mrf.mxu0 }
 0x17f   : > { %3849 = vmatpush.bf16.msrb.mxu1 %v4967_v54  ;;  %v5414_v32 = vld [vmem:[%s7209_s29 + $0x888] sm:$0xf]  ;;  %v6642_v33 = vld [vmem:[%s7209_s29 + $0x894] sm:$0xf0]  ;;  %v5815_v35 = vor.u32 %v6742_v28, %v5814_v25 }
 0x180   : > { %3862 = vmatpush.bf16.msrb.mxu2 %v5095_v55  ;;  %v5542_v36 = vld [vmem:[%s7209_s29 + $0x988] sm:$0xf]  ;;  %v6674_v39 = vld [vmem:[%s7209_s29 + $0x994] sm:$0xf0]  ;;  %v5415_v46 = vor.u32 %v6642_v33, %v5414_v32  ;;  %v8025_v55 = vpop.f32.mrf.mxu1 }
 0x181   : > { %3875 = vmatpush.bf16.msrb.mxu3 %v5223_v57  ;;  %3837 = vmatmul.bf16.vlgmr.msrb.gmra.mxu0 %v7373_v37  ;;  %v5670_v22 = vld [vmem:[%s7209_s29 + $0xa88] sm:$0xf]  ;;  %v6706_v41 = vld [vmem:[%s7209_s29 + $0xa94] sm:$0xf0]  ;;  %v5543_v50 = vor.u32 %v6674_v39, %v5542_v36 }
 0x182   : > { %3881 = vmatpush.bf16.msra.mxu0 %v5463_v58  ;;  %3850 = vmatmul.bf16.vlgmr.msrb.gmra.mxu1 %v7377_v40  ;;  %v5798_v42 = vld [vmem:[%s7209_s29 + $0xb88] sm:$0xf]  ;;  %v6738_v45 = vld [vmem:[%s7209_s29 + $0xb94] sm:$0xf0]  ;;  %v5671_v51 = vor.u32 %v6706_v41, %v5670_v22 }
 0x183   : > { %3894 = vmatpush.bf16.msra.mxu1 %v5591_v59  ;;  %3863 = vmatmul.bf16.vlgmr.msrb.gmra.mxu2 %v7369_v34  ;;  %v5398_v44 = vld [vmem:[%s7209_s29 + $0x868] sm:$0xf]  ;;  %v6638_v53 = vld [vmem:[%s7209_s29 + $0x874] sm:$0xf0]  ;;  %v5799_v3 = vor.u32 %v6738_v45, %v5798_v42 }
 0x184   : > { %3907 = vmatpush.bf16.msra.mxu2 %v5719_v43  ;;  %3876 = vmatmul.bf16.vlgmr.msrb.gmra.mxu3 %v7375_v38  ;;  %v5526_v54 = vld [vmem:[%s7209_s29 + $0x968] sm:$0xf]  ;;  %v6670_v56 = vld [vmem:[%s7209_s29 + $0x974] sm:$0xf0]  ;;  %v5399_v49 = vor.u32 %v6638_v53, %v5398_v44 }
 0x185   : > { %3920 = vmatpush.bf16.msra.mxu3 %v5847_v61  ;;  %v5654_v57 = vld [vmem:[%s7209_s29 + $0xa68] sm:$0xf]  ;;  %v6702_v58 = vld [vmem:[%s7209_s29 + $0xa74] sm:$0xf0]  ;;  %v5527_v52 = vor.u32 %v6670_v56, %v5526_v54 }
 0x186   : > { %3882 = vmatpush.bf16.msra.mxu0 %v5447_v5  ;;  %v5782_v59 = vld [vmem:[%s7209_s29 + $0xb68] sm:$0xf]  ;;  %v6734_v43 = vld [vmem:[%s7209_s29 + $0xb74] sm:$0xf0]  ;;  %v5655_v60 = vor.u32 %v6702_v58, %v5654_v57  ;;  %v8035_v2 = vpop.f32.mrf.mxu2 }
 0x187   : > { %3895 = vmatpush.bf16.msra.mxu1 %v5575_v6  ;;  %v5382_v61 = vld [vmem:[%s7209_s29 + $0x848] sm:$0xf]  ;;  %v6634_v62 = vld [vmem:[%s7209_s29 + $0x854] sm:$0xf0]  ;;  %v5783_v4 = vor.u32 %v6734_v43, %v5782_v59 }
 0x188   : > { %3908 = vmatpush.bf16.msra.mxu2 %v5703_v10  ;;  %v5510_v1 = vld [vmem:[%s7209_s29 + $0x948] sm:$0xf]  ;;  %v6666_v7 = vld [vmem:[%s7209_s29 + $0x954] sm:$0xf0]  ;;  %v8040_v10 = vpop.f32.mrf.mxu3  ;;  %v5383_v12 = vor.u32 %v6634_v62, %v5382_v61 }
 0x189   : > { %3921 = vmatpush.bf16.msra.mxu3 %v5831_v14  ;;  %v5638_v5 = vld [vmem:[%s7209_s29 + $0xa48] sm:$0xf]  ;;  %v6698_v6 = vld [vmem:[%s7209_s29 + $0xa54] sm:$0xf0]  ;;  %v3632_v14 = vpop.f32.mrf.mxu0  ;;  %v5511_v15 = vor.u32 %v6666_v7, %v5510_v1 }
 0x18a   : > { %3883 = vmatpush.bf16.msra.mxu0 %v5431_v29  ;;  %v5766_v8 = vld [vmem:[%s7209_s29 + $0xb48] sm:$0xf]  ;;  %v6730_v11 = vld [vmem:[%s7209_s29 + $0xb54] sm:$0xf0]  ;;  %v5639_v18 = vor.u32 %v6698_v6, %v5638_v5  ;;  %v3645_v29 = vpop.f32.mrf.mxu1 }
 0x18b   : > { %3896 = vmatpush.bf16.msra.mxu1 %v5559_v30  ;;  %v5366_v48 = vld [vmem:[%s7209_s29 + $0x828] sm:$0xf]  ;;  %v6630_v25 = vld [vmem:[%s7209_s29 + $0x834] sm:$0xf0]  ;;  %v5767_v30 = vor.u32 %v6730_v11, %v5766_v8 }
 0x18c   : > { %3909 = vmatpush.bf16.msra.mxu2 %v5687_v31  ;;  %v5494_v28 = vld [vmem:[%s7209_s29 + $0x928] sm:$0xf]  ;;  %v6662_v31 = vld [vmem:[%s7209_s29 + $0x934] sm:$0xf0]  ;;  %v5367_v39 = vor.u32 %v6630_v25, %v5366_v48 }
 0x18d   : > { %3922 = vmatpush.bf16.msra.mxu3 %v5815_v35  ;;  %v5622_v32 = vld [vmem:[%s7209_s29 + $0xa28] sm:$0xf]  ;;  %v6694_v33 = vld [vmem:[%s7209_s29 + $0xa34] sm:$0xf0]  ;;  %v5495_v42 = vor.u32 %v6662_v31, %v5494_v28 }
 0x18e   : > { %3884 = vmatpush.bf16.msra.mxu0 %v5415_v46  ;;  %v5750_v36 = vld [vmem:[%s7209_s29 + $0xb28] sm:$0xf]  ;;  %v6726_v35 = vld [vmem:[%s7209_s29 + $0xb34] sm:$0xf0]  ;;  %v5623_v45 = vor.u32 %v6694_v33, %v5622_v32  ;;  %v3658_v44 = vpop.f32.mrf.mxu2 }
 0x18f   : > { %3897 = vmatpush.bf16.msra.mxu1 %v5543_v50  ;;  %v5350_v22 = vld [vmem:[%s7209_s29 + $0x808] sm:$0xf]  ;;  %v6626_v41 = vld [vmem:[%s7209_s29 + $0x814] sm:$0xf0]  ;;  %v5751_v53 = vor.u32 %v6726_v35, %v5750_v36 }
 0x190   : > { %3910 = vmatpush.bf16.msra.mxu2 %v5671_v51  ;;  %v5478_v46 = vld [vmem:[%s7209_s29 + $0x908] sm:$0xf]  ;;  %v6658_v50 = vld [vmem:[%s7209_s29 + $0x914] sm:$0xf0]  ;;  %v3671_v57 = vpop.f32.mrf.mxu3 }
 0x191   : > { %3923 = vmatpush.bf16.msra.mxu3 %v5799_v3  ;;  %v5606_v51 = vld [vmem:[%s7209_s29 + $0xa08] sm:$0xf]  ;;  %v6690_v54 = vld [vmem:[%s7209_s29 + $0xa14] sm:$0xf0]  ;;  %v5479_v62 = vor.u32 %v6658_v50, %v5478_v46 }
 0x192   : > { %3885 = vmatpush.bf16.msra.mxu0 %v5399_v49  ;;  %v5734_v3 = vld [vmem:[%s7209_s29 + $0xb08] sm:$0xf]  ;;  %v6722_v56 = vld [vmem:[%s7209_s29 + $0xb14] sm:$0xf0]  ;;  %v5351_v49 = vor.u32 %v6626_v41, %v5350_v22  ;;  %v5607_v1 = vor.u32 %v6690_v54, %v5606_v51 }
 0x193   : > { %3898 = vmatpush.bf16.msra.mxu1 %v5527_v52  ;;  %v5974_v58 = vld [vmem:[%s7209_s29 + $0xce8] sm:$0xf]  ;;  %v6782_v59 = vld [vmem:[%s7209_s29 + $0xcf4] sm:$0xf0]  ;;  %v5735_v5 = vor.u32 %v6722_v56, %v5734_v3 }
 0x194   : > { %3911 = vmatpush.bf16.msra.mxu2 %v5655_v60  ;;  %v6102_v43 = vld [vmem:[%s7209_s29 + $0xde8] sm:$0xf]  ;;  %v6814_v52 = vld [vmem:[%s7209_s29 + $0xdf4] sm:$0xf0]  ;;  %v5975_v6 = vor.u32 %v6782_v59, %v5974_v58 }
 0x195   : > { %3924 = vmatpush.bf16.msra.mxu3 %v5783_v4  ;;  %v6230_v60 = vld [vmem:[%s7209_s29 + $0xee8] sm:$0xf]  ;;  %v6846_v61 = vld [vmem:[%s7209_s29 + $0xef4] sm:$0xf0]  ;;  %v6103_v8 = vor.u32 %v6814_v52, %v6102_v43 }
 0x196   : > { %3886 = vmatpush.bf16.msra.mxu0 %v5383_v12  ;;  %v6358_v4 = vld [vmem:[%s7209_s29 + $0xfe8] sm:$0xf]  ;;  %v6878_v7 = vld [vmem:[%s7209_s29 + $0xff4] sm:$0xf0]  ;;  %v6231_v11 = vor.u32 %v6846_v61, %v6230_v60 }
 0x197   : > { %3899 = vmatpush.bf16.msra.mxu1 %v5511_v15  ;;  %v5958_v12 = vld [vmem:[%s7209_s29 + $0xcc8] sm:$0xf]  ;;  %v6778_v14 = vld [vmem:[%s7209_s29 + $0xcd4] sm:$0xf0] }
 0x198   : > { %3912 = vmatpush.bf16.msra.mxu2 %v5639_v18  ;;  %v6086_v15 = vld [vmem:[%s7209_s29 + $0xdc8] sm:$0xf]  ;;  %v6359_v18 = vor.u32 %v6878_v7, %v6358_v4  ;;  %v6810_v48 = vld [vmem:[%s7209_s29 + $0xdd4] sm:$0xf0]  ;;  %v5959_v31 = vor.u32 %v6778_v14, %v5958_v12 }
 0x199   : > { %3925 = vmatpush.bf16.msra.mxu3 %v5767_v30  ;;  %v6214_v25 = vld [vmem:[%s7209_s29 + $0xec8] sm:$0xf]  ;;  %v6842_v28 = vld [vmem:[%s7209_s29 + $0xed4] sm:$0xf0]  ;;  %v6087_v32 = vor.u32 %v6810_v48, %v6086_v15 }
 0x19a   : > { %3887 = vmatpush.bf16.msra.mxu0 %v5367_v39  ;;  %v6342_v29 = vld [vmem:[%s7209_s29 + $0xfc8] sm:$0xf]  ;;  %v6874_v30 = vld [vmem:[%s7209_s29 + $0xfd4] sm:$0xf0]  ;;  %v6215_v33 = vor.u32 %v6842_v28, %v6214_v25  ;;  %v3631_v25 = vadd.f32 %v8020_v47, %v7966_v0 }
 0x19b   : > { %3900 = vmatpush.bf16.msra.mxu1 %v5495_v42  ;;  %v5942_v36 = vld [vmem:[%s7209_s29 + $0xca8] sm:$0xf]  ;;  %v6774_v35 = vld [vmem:[%s7209_s29 + $0xcb4] sm:$0xf0]  ;;  %v6343_v22 = vor.u32 %v6874_v30, %v6342_v29 }
 0x19c   : > { %3913 = vmatpush.bf16.msra.mxu2 %v5623_v45  ;;  %v6070_v39 = vld [vmem:[%s7209_s29 + $0xda8] sm:$0xf]  ;;  %v6806_v41 = vld [vmem:[%s7209_s29 + $0xdb4] sm:$0xf0]  ;;  %v5943_v51 = vor.u32 %v6774_v35, %v5942_v36 }
 0x19d   : > { %3926 = vmatpush.bf16.msra.mxu3 %v5751_v53  ;;  %v6198_v42 = vld [vmem:[%s7209_s29 + $0xea8] sm:$0xf]  ;;  %v6838_v45 = vld [vmem:[%s7209_s29 + $0xeb4] sm:$0xf0]  ;;  %v6071_v44 = vor.u32 %v6806_v41, %v6070_v39 }
 0x19e   : > { %3888 = vmatpush.bf16.msra.mxu0 %v5351_v49  ;;  %v6326_v46 = vld [vmem:[%s7209_s29 + $0xfa8] sm:$0xf]  ;;  %v6870_v50 = vld [vmem:[%s7209_s29 + $0xfb4] sm:$0xf0]  ;;  %v6199_v53 = vor.u32 %v6838_v45, %v6198_v42  ;;  %v8094_v49 = vpop.f32.mrf.mxu0 }
 0x19f   : > { %3901 = vmatpush.bf16.msra.mxu1 %v5479_v62  ;;  %v5926_v54 = vld [vmem:[%s7209_s29 + $0xc88] sm:$0xf]  ;;  %v6770_v3 = vld [vmem:[%s7209_s29 + $0xc94] sm:$0xf0]  ;;  %v6327_v57 = vor.u32 %v6870_v50, %v6326_v46  ;;  %v8098_v62 = vpop.f32.mrf.mxu1  ;;  %v3644_v50 = vadd.f32 %v8025_v55, %v3631_v25  ;;  %v6428_v25 = vld [vmem:[%s7209_s29 + $0x1ec] sm:$0xf] }
 0x1a0   : > { %3914 = vmatpush.bf16.msra.mxu2 %v5607_v1  ;;  %v6054_v56 = vld [vmem:[%s7209_s29 + $0xd88] sm:$0xf]  ;;  %v6802_v58 = vld [vmem:[%s7209_s29 + $0xd94] sm:$0xf0]  ;;  %v5927_v61 = vor.u32 %v6770_v3, %v5926_v54 }
 0x1a1   : > { %3927 = vmatpush.bf16.msra.mxu3 %v5735_v5  ;;  %3889 = vmatmul.bf16.vlgmr.msra.gmra.mxu0 %v7442_v19  ;;  %v6182_v59 = vld [vmem:[%s7209_s29 + $0xe88] sm:$0xf]  ;;  %v6834_v43 = vld [vmem:[%s7209_s29 + $0xe94] sm:$0xf0]  ;;  %v6055_v1 = vor.u32 %v6802_v58, %v6054_v56 }
 0x1a2   : > { %3933 = vmatpush.bf16.msrb.mxu0 %v5975_v6  ;;  %3902 = vmatmul.bf16.vlgmr.msra.gmra.mxu1 %v7449_v24  ;;  %v6310_v52 = vld [vmem:[%s7209_s29 + $0xf88] sm:$0xf]  ;;  %v6866_v60 = vld [vmem:[%s7209_s29 + $0xf94] sm:$0xf0]  ;;  %v6183_v4 = vor.u32 %v6834_v43, %v6182_v59 }
 0x1a3   : > { %3946 = vmatpush.bf16.msrb.mxu1 %v6103_v8  ;;  %3915 = vmatmul.bf16.vlgmr.msra.gmra.mxu2 %v7447_v23  ;;  %v5910_v7 = vld [vmem:[%s7209_s29 + $0xc68] sm:$0xf]  ;;  %v6766_v5 = vld [vmem:[%s7209_s29 + $0xc74] sm:$0xf0]  ;;  %v6311_v8 = vor.u32 %v6866_v60, %v6310_v52 }
 0x1a4   : > { %3959 = vmatpush.bf16.msrb.mxu2 %v6231_v11  ;;  %3928 = vmatmul.bf16.vlgmr.msra.gmra.mxu3 %v7453_v27  ;;  %v6038_v6 = vld [vmem:[%s7209_s29 + $0xd68] sm:$0xf]  ;;  %v6798_v11 = vld [vmem:[%s7209_s29 + $0xd74] sm:$0xf0]  ;;  %v5911_v48 = vor.u32 %v6766_v5, %v5910_v7 }
 0x1a5   : > { %3972 = vmatpush.bf16.msrb.mxu3 %v6359_v18  ;;  %v6166_v12 = vld [vmem:[%s7209_s29 + $0xe68] sm:$0xf]  ;;  %v6830_v14 = vld [vmem:[%s7209_s29 + $0xe74] sm:$0xf0]  ;;  %v6039_v28 = vor.u32 %v6798_v11, %v6038_v6 }
 0x1a6   : > { %3934 = vmatpush.bf16.msrb.mxu0 %v5959_v31  ;;  %v6294_v15 = vld [vmem:[%s7209_s29 + $0xf68] sm:$0xf]  ;;  %v6862_v18 = vld [vmem:[%s7209_s29 + $0xf74] sm:$0xf0]  ;;  %v6167_v29 = vor.u32 %v6830_v14, %v6166_v12  ;;  %v8113_v36 = vpop.f32.mrf.mxu2  ;;  %v3684_v42 = vpop.f32.mrf.mxu0 }
 0x1a7   : > { %3947 = vmatpush.bf16.msrb.mxu1 %v6087_v32  ;;  %v5894_v30 = vld [vmem:[%s7209_s29 + $0xc48] sm:$0xf]  ;;  %v6762_v31 = vld [vmem:[%s7209_s29 + $0xc54] sm:$0xf0]  ;;  %v8118_v41 = vpop.f32.mrf.mxu3  ;;  %v3697_v46 = vpop.f32.mrf.mxu1 }
 0x1a8   : > { %3960 = vmatpush.bf16.msrb.mxu2 %v6215_v33  ;;  %v6022_v32 = vld [vmem:[%s7209_s29 + $0xd48] sm:$0xf]  ;;  %v6295_v33 = vor.u32 %v6862_v18, %v6294_v15  ;;  %v6794_v35 = vld [vmem:[%s7209_s29 + $0xd54] sm:$0xf0]  ;;  %v5895_v45 = vor.u32 %v6762_v31, %v5894_v30  ;;  %v4568_v30 = vld [vmem:[%s7209_s29 + $0x1f8] sm:$0xf0] }
 0x1a9   : > { %3973 = vmatpush.bf16.msrb.mxu3 %v6343_v22  ;;  %v6150_v39 = vld [vmem:[%s7209_s29 + $0xe48] sm:$0xf]  ;;  %v6826_v22 = vld [vmem:[%s7209_s29 + $0xe54] sm:$0xf0]  ;;  %v6460_v31 = vld [vmem:[%s7209_s29 + $0x2ec] sm:$0xf]  ;;  %v4571_v46 = vor.u32 %v6428_v25, %v4568_v30 }
 0x1aa   : > { %3935 = vmatpush.bf16.msrb.mxu0 %v5943_v51  ;;  %v6278_v0 = vld [vmem:[%s7209_s29 + $0xf48] sm:$0xf]  ;;  %v6858_v47 = vld [vmem:[%s7209_s29 + $0xf54] sm:$0xf0]  ;;  %v6023_v51 = vor.u32 %v6794_v35, %v6022_v32  ;;  %v4696_v32 = vld [vmem:[%s7209_s29 + $0x2f8] sm:$0xf0] }
 0x1ab   : > { %3948 = vmatpush.bf16.msrb.mxu1 %v6071_v44  ;;  %v6151_v44 = vor.u32 %v6826_v22, %v6150_v39  ;;  %v6758_v54 = vld [vmem:[%s7209_s29 + $0xc34] sm:$0xf0]  ;;  %v6006_v3 = vld [vmem:[%s7209_s29 + $0xd28] sm:$0xf]  ;;  %v6279_v56 = vor.u32 %v6858_v47, %v6278_v0  ;;  %v6492_v22 = vld [vmem:[%s7209_s29 + $0x3ec] sm:$0xf] }
 0x1ac   : > { %3961 = vmatpush.bf16.msrb.mxu2 %v6199_v53  ;;  %v5878_v53 = vld [vmem:[%s7209_s29 + $0xc28] sm:$0xf]  ;;  %v6822_v59 = vld [vmem:[%s7209_s29 + $0xe34] sm:$0xf0]  ;;  %v4824_v0 = vld [vmem:[%s7209_s29 + $0x3f8] sm:$0xf0] }
 0x1ad   : > { %3974 = vmatpush.bf16.msrb.mxu3 %v6327_v57  ;;  %v6790_v57 = vld [vmem:[%s7209_s29 + $0xd34] sm:$0xf0]  ;;  %v6134_v58 = vld [vmem:[%s7209_s29 + $0xe28] sm:$0xf]  ;;  %v5879_v52 = vor.u32 %v6758_v54, %v5878_v53  ;;  %v4827_v53 = vor.u32 %v6492_v22, %v4824_v0  ;;  %v4552_v54 = vld [vmem:[%s7209_s29 + $0x1d8] sm:$0xf0] }
 0x1ae   : > { %3936 = vmatpush.bf16.msrb.mxu0 %v5927_v61  ;;  %v6262_v43 = vld [vmem:[%s7209_s29 + $0xf28] sm:$0xf]  ;;  %v6854_v55 = vld [vmem:[%s7209_s29 + $0xf34] sm:$0xf0]  ;;  %v6135_v7 = vor.u32 %v6822_v59, %v6134_v58  ;;  %v3710_v18 = vpop.f32.mrf.mxu2  ;;  %v4808_v58 = vld [vmem:[%s7209_s29 + $0x3d8] sm:$0xf0] }
 0x1af   : > { %3949 = vmatpush.bf16.msrb.mxu1 %v6055_v1  ;;  %v5862_v60 = vld [vmem:[%s7209_s29 + $0xc08] sm:$0xf]  ;;  %v6754_v61 = vld [vmem:[%s7209_s29 + $0xc14] sm:$0xf0]  ;;  %v3657_v1 = vadd.f32 %v8035_v2, %v3644_v50  ;;  %v6263_v11 = vor.u32 %v6854_v55, %v6262_v43  ;;  %v6396_v2 = vld [vmem:[%s7209_s29 + $0xec] sm:$0xf]  ;;  %v4699_v50 = vor.u32 %v6460_v31, %v4696_v32 }
 0x1b0   : > { %3962 = vmatpush.bf16.msrb.mxu2 %v6183_v4  ;;  %v6007_v4 = vor.u32 %v6790_v57, %v6006_v3  ;;  %v5990_v5 = vld [vmem:[%s7209_s29 + $0xd08] sm:$0xf]  ;;  %v6786_v6 = vld [vmem:[%s7209_s29 + $0xd14] sm:$0xf0]  ;;  %v6456_v3 = vld [vmem:[%s7209_s29 + $0x2cc] sm:$0xf] }
 0x1b1   : > { %3975 = vmatpush.bf16.msrb.mxu3 %v6311_v8  ;;  %v6118_v8 = vld [vmem:[%s7209_s29 + $0xe08] sm:$0xf]  ;;  %v6818_v12 = vld [vmem:[%s7209_s29 + $0xe14] sm:$0xf0]  ;;  %v5991_v35 = vor.u32 %v6786_v6, %v5990_v5  ;;  %v6488_v57 = vld [vmem:[%s7209_s29 + $0x3cc] sm:$0xf] }
 0x1b2   : > { %3937 = vmatpush.bf16.msrb.mxu0 %v5911_v48  ;;  %v6246_v14 = vld [vmem:[%s7209_s29 + $0xf08] sm:$0xf]  ;;  %v6850_v15 = vld [vmem:[%s7209_s29 + $0xf14] sm:$0xf0]  ;;  %v4440_v48 = vld [vmem:[%s7209_s29 + $0xf8] sm:$0xf0]  ;;  %v6119_v39 = vor.u32 %v6818_v12, %v6118_v8 }
 0x1b3   : > { %3950 = vmatpush.bf16.msrb.mxu1 %v6039_v28  ;;  %v3723_v28 = vpop.f32.mrf.mxu3  ;;  %v6247_v47 = vor.u32 %v6850_v15, %v6246_v14  ;;  %v4443_v42 = vor.u32 %v6396_v2, %v4440_v48  ;;  %v4664_v5 = vld [vmem:[%s7209_s29 + $0x2b8] sm:$0xf0]  ;;  %v6484_v6 = vld [vmem:[%s7209_s29 + $0x3ac] sm:$0xf] }
 0x1b4   : > { %3963 = vmatpush.bf16.msrb.mxu2 %v6167_v29  ;;  %v5863_v29 = vor.u32 %v6754_v61, %v5862_v60  ;;  %v4408_v60 = vld [vmem:[%s7209_s29 + $0xb8] sm:$0xf0]  ;;  %v6420_v61 = vld [vmem:[%s7209_s29 + $0x1ac] sm:$0xf] }
 0x1b5   : > { %3976 = vmatpush.bf16.msrb.mxu3 %v6295_v33  ;;  %v3670_v33 = vadd.f32 %v8040_v10, %v3657_v1  ;;  %v4424_v10 = vld [vmem:[%s7209_s29 + $0xd8] sm:$0xf0]  ;;  %v4811_v1 = vor.u32 %v6488_v57, %v4808_v58  ;;  %v6416_v18 = vld [vmem:[%s7209_s29 + $0x18c] sm:$0xf] }
 0x1b6   : > { %3938 = vmatpush.bf16.msrb.mxu0 %v5895_v45  ;;  %v4792_v8 = vld [vmem:[%s7209_s29 + $0x3b8] sm:$0xf0]  ;;  %v6448_v25 = vld [vmem:[%s7209_s29 + $0x28c] sm:$0xf] }
 0x1b7   : > { %3951 = vmatpush.bf16.msrb.mxu1 %v6023_v51  ;;  %v3683_v45 = vadd.f32 %v8094_v49, %v3670_v33  ;;  %v6392_v51 = vld [vmem:[%s7209_s29 + $0xcc] sm:$0xf]  ;;  %v4392_v15 = vld [vmem:[%s7209_s29 + $0x98] sm:$0xf0]  ;;  %v4795_v2 = vor.u32 %v6484_v6, %v4792_v8 }
 0x1b8   : > { %3964 = vmatpush.bf16.msrb.mxu2 %v6151_v44  ;;  %v6424_v44 = vld [vmem:[%s7209_s29 + $0x1cc] sm:$0xf]  ;;  %v4427_v49 = vor.u32 %v6392_v51, %v4424_v10  ;;  %v4520_v48 = vld [vmem:[%s7209_s29 + $0x198] sm:$0xf0] }
 0x1b9   : > { %3977 = vmatpush.bf16.msrb.mxu3 %v6279_v56  ;;  %v4680_v56 = vld [vmem:[%s7209_s29 + $0x2d8] sm:$0xf0]  ;;  %v3696_v59 = vadd.f32 %v8098_v62, %v3683_v45  ;;  %v4555_v43 = vor.u32 %v6424_v44, %v4552_v54  ;;  %v6480_v31 = vld [vmem:[%s7209_s29 + $0x38c] sm:$0xf]  ;;  %v4523_v22 = vor.u32 %v6416_v18, %v4520_v48 }
 0x1ba   : > { %3939 = vmatpush.bf16.msrb.mxu0 %v5879_v52  ;;  %v4683_v55 = vor.u32 %v6456_v3, %v4680_v56  ;;  %v6388_v52 = vld [vmem:[%s7209_s29 + $0xac] sm:$0xf]  ;;  %v4648_v28 = vld [vmem:[%s7209_s29 + $0x298] sm:$0xf0] }
 0x1bb   : > { %3952 = vmatpush.bf16.msrb.mxu1 %v6007_v4  ;;  %v4536_v4 = vld [vmem:[%s7209_s29 + $0x1b8] sm:$0xf0]  ;;  %v3709_v62 = vadd.f32 %v8113_v36, %v3696_v59  ;;  %v6384_v36 = vld [vmem:[%s7209_s29 + $0x8c] sm:$0xf]  ;;  %v4651_v0 = vor.u32 %v6448_v25, %v4648_v28 }
 0x1bc   : > { %3965 = vmatpush.bf16.msrb.mxu2 %v6135_v7  ;;  %v6452_v7 = vld [vmem:[%s7209_s29 + $0x2ac] sm:$0xf]  ;;  %v4539_v12 = vor.u32 %v6420_v61, %v4536_v4  ;;  %v4776_v32 = vld [vmem:[%s7209_s29 + $0x398] sm:$0xf0]  ;;  %v4395_v33 = vor.u32 %v6384_v36, %v4392_v15 }
 0x1bd   : > { %3978 = vmatpush.bf16.msrb.mxu3 %v6263_v11  ;;  %v4411_v11 = vor.u32 %v6388_v52, %v4408_v60  ;;  %v4667_v14 = vor.u32 %v6452_v7, %v4664_v5  ;;  %v4779_v45 = vor.u32 %v6480_v31, %v4776_v32  ;;  %v4632_v51 = vld [vmem:[%s7209_s29 + $0x278] sm:$0xf0]  ;;  %v6476_v10 = vld [vmem:[%s7209_s29 + $0x36c] sm:$0xf] }
 0x1be   : > { %3940 = vmatpush.bf16.msrb.mxu0 %v5863_v29  ;;  %v3722_v29 = vadd.f32 %v8118_v41, %v3709_v62  ;;  %v3734_v30 = vpop.f32.mrf.mxu0  ;;  %v6412_v41 = vld [vmem:[%s7209_s29 + $0x16c] sm:$0xf]  ;;  %v4760_v44 = vld [vmem:[%s7209_s29 + $0x378] sm:$0xf0] }
 0x1bf   : > { %3953 = vmatpush.bf16.msrb.mxu1 %v5991_v35  ;;  %v3747_v35 = vpop.f32.mrf.mxu1  ;;  %v6376_v57 = vld [vmem:[%s7209_s29 + $0x4c] sm:$0xf]  ;;  %v4360_v58 = vld [vmem:[%s7209_s29 + $0x58] sm:$0xf0]  ;;  %v4763_v59 = vor.u32 %v6476_v10, %v4760_v44 }
 0x1c0   : > { %3966 = vmatpush.bf16.msrb.mxu2 %v6119_v39  ;;  %v3735_v39 = vadd.f32 %v3734_v30, %v3722_v29  ;;  %v6440_v52 = vld [vmem:[%s7209_s29 + $0x24c] sm:$0xf]  ;;  %v4616_v60 = vld [vmem:[%s7209_s29 + $0x258] sm:$0xf0]  ;;  %v4363_v62 = vor.u32 %v6376_v57, %v4360_v58 }
 0x1c1   : > { %3979 = vmatpush.bf16.msrb.mxu3 %v6247_v47  ;;  %3941 = vmatmul.bf16.vlgmr.msrb.gmra.mxu0 %v7518_v13  ;;  %v6380_v47 = vld [vmem:[%s7209_s29 + $0x6c] sm:$0xf]  ;;  %v4744_v7 = vld [vmem:[%s7209_s29 + $0x358] sm:$0xf0] }
 0x1c2   : > { %3985 = vmatpush.bf16.msra.mxu0 %v4443_v42  ;;  %3954 = vmatmul.bf16.vlgmr.msrb.gmra.mxu1 %v7525_v21  ;;  %v4376_v42 = vld [vmem:[%s7209_s29 + $0x78] sm:$0xf0]  ;;  %v3748_v54 = vadd.f32 %v3747_v35, %v3735_v39  ;;  %v6472_v4 = vld [vmem:[%s7209_s29 + $0x34c] sm:$0xf] }
 0x1c3   : > { %3998 = vmatpush.bf16.msra.mxu1 %v4571_v46  ;;  %3967 = vmatmul.bf16.vlgmr.msrb.gmra.mxu2 %v7523_v20  ;;  %v4504_v46 = vld [vmem:[%s7209_s29 + $0x178] sm:$0xf0]  ;;  %v6404_v15 = vld [vmem:[%s7209_s29 + $0x12c] sm:$0xf]  ;;  %v4747_v18 = vor.u32 %v6472_v4, %v4744_v7 }
 0x1c4   : > { %4011 = vmatpush.bf16.msra.mxu2 %v4699_v50  ;;  %3980 = vmatmul.bf16.vlgmr.msrb.gmra.mxu3 %v7529_v26  ;;  %v6444_v50 = vld [vmem:[%s7209_s29 + $0x26c] sm:$0xf]  ;;  %v4507_v3 = vor.u32 %v6412_v41, %v4504_v46  ;;  %v4344_v36 = vld [vmem:[%s7209_s29 + $0x38] sm:$0xf0] }
 0x1c5   : > { %4024 = vmatpush.bf16.msra.mxu3 %v4827_v53  ;;  %v4379_v53 = vor.u32 %v6380_v47, %v4376_v42  ;;  %v4635_v56 = vor.u32 %v6444_v50, %v4632_v51  ;;  %v6436_v48 = vld [vmem:[%s7209_s29 + $0x22c] sm:$0xf]  ;;  %v4600_v25 = vld [vmem:[%s7209_s29 + $0x238] sm:$0xf0] }
 0x1c6   : > { %3986 = vmatpush.bf16.msra.mxu0 %v4427_v49  ;;  %v6408_v49 = vld [vmem:[%s7209_s29 + $0x14c] sm:$0xf]  ;;  %v3736_v5 = vpop.f32.mrf.mxu0  ;;  %v4728_v30 = vld [vmem:[%s7209_s29 + $0x338] sm:$0xf0] }
 0x1c7   : > { %3999 = vmatpush.bf16.msra.mxu1 %v4555_v43  ;;  %v3760_v43 = vpop.f32.mrf.mxu2  ;;  %v3749_v6 = vpop.f32.mrf.mxu1  ;;  %v6468_v29 = vld [vmem:[%s7209_s29 + $0x32c] sm:$0xf]  ;;  %v4584_v41 = vld [vmem:[%s7209_s29 + $0x218] sm:$0xf0] }
 0x1c8   : > { %4012 = vmatpush.bf16.msra.mxu2 %v4683_v55  ;;  %v4488_v55 = vld [vmem:[%s7209_s29 + $0x158] sm:$0xf0]  ;;  %v3761_v61 = vadd.f32 %v3760_v43, %v3748_v54  ;;  %v6368_v32 = vld [vmem:[%s7209_s29 + $0xc] sm:$0xf]  ;;  %v4731_v42 = vor.u32 %v6468_v29, %v4728_v30 }
 0x1c9   : > { %4025 = vmatpush.bf16.msra.mxu3 %v4811_v1  ;;  %v3773_v1 = vpop.f32.mrf.mxu3  ;;  %v6400_v35 = vld [vmem:[%s7209_s29 + $0x10c] sm:$0xf]  ;;  %v4712_v46 = vld [vmem:[%s7209_s29 + $0x318] sm:$0xf0] }
 0x1ca   : > { %3987 = vmatpush.bf16.msra.mxu0 %v4411_v11  ;;  %v3774_v8 = vadd.f32 %v3773_v1, %v3761_v61  ;;  %v4491_v11 = vor.u32 %v6408_v49, %v4488_v55  ;;  %v6432_v47 = vld [vmem:[%s7209_s29 + $0x20c] sm:$0xf]  ;;  %v4952_v10 = vld [vmem:[%s7209_s29 + $0x4f8] sm:$0xf0] }
 0x1cb   : > { %4000 = vmatpush.bf16.msra.mxu1 %v4539_v12  ;;  %v4619_v12 = vor.u32 %v6440_v52, %v4616_v60  ;;  %v6524_v51 = vld [vmem:[%s7209_s29 + $0x4ec] sm:$0xf]  ;;  %v5208_v57 = vld [vmem:[%s7209_s29 + $0x6f8] sm:$0xf0]  ;;  %v4587_v49 = vor.u32 %v6432_v47, %v4584_v41  ;;  %v8246_v47 = vld [vmem:[%s7622_s23] sm:$0xf] }
 0x1cc   : > { %4013 = vmatpush.bf16.msra.mxu2 %v4667_v14  ;;  %v6372_v14 = vld [vmem:[%s7209_s29 + $0x2c] sm:$0xf]  ;;  %v4194_v28 = vmax.f32 %v3774_v8, 0.0  ;;  %v5336_v43 = vld [vmem:[%s7209_s29 + $0x7f8] sm:$0xf0]  ;;  %v4955_v52 = vor.u32 %v6524_v51, %v4952_v10 }
 0x1cd   : > { %4026 = vmatpush.bf16.msra.mxu3 %v4795_v2  ;;  %v4472_v2 = vld [vmem:[%s7209_s29 + $0x138] sm:$0xf0]  ;;  %v4347_v31 = vor.u32 %v6372_v14, %v4344_v36  ;;  %v6556_v44 = vld [vmem:[%s7209_s29 + $0x5ec] sm:$0xf] }
 0x1ce   : > { %3988 = vmatpush.bf16.msra.mxu0 %v4395_v33  ;;  %v4328_v33 = vld [vmem:[%s7209_s29 + $0x18] sm:$0xf0]  ;;  %4198 = vst [vmem:[%s7897_s8 + $0x8] sm:$0xff] %v4194_v28  ;;  %v4475_v39 = vor.u32 %v6404_v15, %v4472_v2  ;;  %v6520_v1 = vld [vmem:[%s7209_s29 + $0x4cc] sm:$0xf] }
 0x1cf   : > { %4001 = vmatpush.bf16.msra.mxu1 %v4523_v22  ;;  %v4603_v22 = vor.u32 %v6436_v48, %v4600_v25  ;;  %v3762_v50 = vpop.f32.mrf.mxu2  ;;  %v4331_v54 = vor.u32 %v6368_v32, %v4328_v33  ;;  %v4936_v4 = vld [vmem:[%s7209_s29 + $0x4d8] sm:$0xf0]  ;;  %v6552_v7 = vld [vmem:[%s7209_s29 + $0x5cc] sm:$0xf] }
 0x1d0   : > { %4014 = vmatpush.bf16.msra.mxu2 %v4651_v0  ;;  %v4456_v0 = vld [vmem:[%s7209_s29 + $0x118] sm:$0xf0]  ;;  %v6584_v6 = vld [vmem:[%s7209_s29 + $0x6cc] sm:$0xf]  ;;  %v4939_v14 = vor.u32 %v6520_v1, %v4936_v4 }
 0x1d1   : > { %4027 = vmatpush.bf16.msra.mxu3 %v4779_v45  ;;  %v6464_v45 = vld [vmem:[%s7209_s29 + $0x30c] sm:$0xf]  ;;  %v4459_v58 = vor.u32 %v6400_v35, %v4456_v0  ;;  %v5192_v8 = vld [vmem:[%s7209_s29 + $0x6d8] sm:$0xf0] }
 0x1d2   : > { %3989 = vmatpush.bf16.msra.mxu0 %v4379_v53  ;;  %v3775_v53 = vpop.f32.mrf.mxu3  ;;  %v4715_v55 = vor.u32 %v6464_v45, %v4712_v46  ;;  %v5195_v15 = vor.u32 %v6584_v6, %v5192_v8  ;;  %v4920_v2 = vld [vmem:[%s7209_s29 + $0x4b8] sm:$0xf0]  ;;  %v6548_v48 = vld [vmem:[%s7209_s29 + $0x5ac] sm:$0xf] }
 0x1d3   : > { %4002 = vmatpush.bf16.msra.mxu1 %v4507_v3  ;;  %v5080_v3 = vld [vmem:[%s7209_s29 + $0x5f8] sm:$0xf0]  ;;  %v6580_v29 = vld [vmem:[%s7209_s29 + $0x6ac] sm:$0xf] }
 0x1d4   : > { %4015 = vmatpush.bf16.msra.mxu2 %v4635_v56  ;;  %v6588_v56 = vld [vmem:[%s7209_s29 + $0x6ec] sm:$0xf]  ;;  %v5083_v60 = vor.u32 %v6556_v44, %v5080_v3  ;;  %v5048_v28 = vld [vmem:[%s7209_s29 + $0x5b8] sm:$0xf0] }
 0x1d5   : > { %4028 = vmatpush.bf16.msra.mxu3 %v4763_v59  ;;  %v6620_v59 = vld [vmem:[%s7209_s29 + $0x7ec] sm:$0xf]  ;;  %v5211_v61 = vor.u32 %v6588_v56, %v5208_v57  ;;  %v5176_v30 = vld [vmem:[%s7209_s29 + $0x6b8] sm:$0xf0] }
 0x1d6   : > { %3990 = vmatpush.bf16.msra.mxu0 %v4363_v62  ;;  %v5339_v5 = vor.u32 %v6620_v59, %v5336_v43  ;;  %v5064_v62 = vld [vmem:[%s7209_s29 + $0x5d8] sm:$0xf0]  ;;  %v6512_v35 = vld [vmem:[%s7209_s29 + $0x48c] sm:$0xf] }
 0x1d7   : > { %4003 = vmatpush.bf16.msra.mxu1 %v4491_v11  ;;  %v6616_v11 = vld [vmem:[%s7209_s29 + $0x7cc] sm:$0xf]  ;;  %v5067_v36 = vor.u32 %v6552_v7, %v5064_v62  ;;  %v5304_v32 = vld [vmem:[%s7209_s29 + $0x7b8] sm:$0xf0] }
 0x1d8   : > { %4016 = vmatpush.bf16.msra.mxu2 %v4619_v12  ;;  %v5320_v12 = vld [vmem:[%s7209_s29 + $0x7d8] sm:$0xf0]  ;;  %v6544_v0 = vld [vmem:[%s7209_s29 + $0x58c] sm:$0xf] }
 0x1d9   : > { %4029 = vmatpush.bf16.msra.mxu3 %v4747_v18  ;;  %v6516_v18 = vld [vmem:[%s7209_s29 + $0x4ac] sm:$0xf]  ;;  %v5323_v25 = vor.u32 %v6616_v11, %v5320_v12  ;;  %v5160_v45 = vld [vmem:[%s7209_s29 + $0x698] sm:$0xf0] }
 0x1da   : > { %3991 = vmatpush.bf16.msra.mxu0 %v4347_v31  ;;  %v6612_v31 = vld [vmem:[%s7209_s29 + $0x7ac] sm:$0xf]  ;;  %v4923_v33 = vor.u32 %v6516_v18, %v4920_v2  ;;  %v5144_v43 = vld [vmem:[%s7209_s29 + $0x678] sm:$0xf0] }
 0x1db   : > { %4004 = vmatpush.bf16.msra.mxu1 %v4475_v39  ;;  %v5051_v39 = vor.u32 %v6548_v48, %v5048_v28  ;;  %v6576_v41 = vld [vmem:[%s7209_s29 + $0x68c] sm:$0xf]  ;;  %v5000_v11 = vld [vmem:[%s7209_s29 + $0x558] sm:$0xf0] }
 0x1dc   : > { %4017 = vmatpush.bf16.msra.mxu2 %v4603_v22  ;;  %v4904_v22 = vld [vmem:[%s7209_s29 + $0x498] sm:$0xf0]  ;;  %v6608_v46 = vld [vmem:[%s7209_s29 + $0x78c] sm:$0xf]  ;;  %v5163_v44 = vor.u32 %v6576_v41, %v5160_v45 }
 0x1dd   : > { %4030 = vmatpush.bf16.msra.mxu3 %v4731_v42  ;;  %v5032_v42 = vld [vmem:[%s7209_s29 + $0x598] sm:$0xf0]  ;;  %v4907_v50 = vor.u32 %v6512_v35, %v4904_v22  ;;  %v6508_v53 = vld [vmem:[%s7209_s29 + $0x46c] sm:$0xf] }
 0x1de   : > { %3992 = vmatpush.bf16.msra.mxu0 %v4331_v54  ;;  %v3786_v51 = vpop.f32.mrf.mxu0  ;;  %v5035_v10 = vor.u32 %v6544_v0, %v5032_v42  ;;  %v4888_v54 = vld [vmem:[%s7209_s29 + $0x478] sm:$0xf0]  ;;  %v6540_v3 = vld [vmem:[%s7209_s29 + $0x56c] sm:$0xf] }
 0x1df   : > { %4005 = vmatpush.bf16.msra.mxu1 %v4459_v58  ;;  %v3799_v57 = vpop.f32.mrf.mxu1  ;;  %v6572_v59 = vld [vmem:[%s7209_s29 + $0x66c] sm:$0xf]  ;;  %v5256_v2 = vld [vmem:[%s7209_s29 + $0x758] sm:$0xf0] }
 0x1e0   : > { %4018 = vmatpush.bf16.msra.mxu2 %v4587_v49  ;;  %v5016_v49 = vld [vmem:[%s7209_s29 + $0x578] sm:$0xf0]  ;;  %v5147_v4 = vor.u32 %v6572_v59, %v5144_v43  ;;  %v6504_v7 = vld [vmem:[%s7209_s29 + $0x44c] sm:$0xf] }
 0x1e1   : > { %4031 = vmatpush.bf16.msra.mxu3 %v4715_v55  ;;  %3993 = vmatmul.bf16.vlgmr.msra.gmra.mxu0 %v7309_v9  ;;  %v795_v9 = vperm.slane %v8246_v47, 2  ;;  %v6604_v55 = vld [vmem:[%s7209_s29 + $0x76c] sm:$0xf]  ;;  %v5019_v1 = vor.u32 %v6540_v3, %v5016_v49  ;;  %v5112_v0 = vld [vmem:[%s7209_s29 + $0x638] sm:$0xf0] }
 0x1e2   : > { %4037 = vmatpush.bf16.msrb.mxu0 %v4955_v52  ;;  %4006 = vmatmul.bf16.vlgmr.msra.gmra.mxu1 %v7316_v17  ;;  %v5288_v17 = vld [vmem:[%s7209_s29 + $0x798] sm:$0xf0]  ;;  %v6536_v62 = vld [vmem:[%s7209_s29 + $0x54c] sm:$0xf] }
 0x1e3   : > { %4050 = vmatpush.bf16.msrb.mxu1 %v5083_v60  ;;  %4019 = vmatmul.bf16.vlgmr.msra.gmra.mxu2 %v7301_v63  ;;  %v5179_v63 = vor.u32 %v6580_v29, %v5176_v30  ;;  %v3787_v56 = vadd.f32 %v3786_v51, %v795_v9  ;;  %v5291_v58 = vor.u32 %v6608_v46, %v5288_v17  ;;  %v5272_v52 = vld [vmem:[%s7209_s29 + $0x778] sm:$0xf0]  ;;  %v6568_v12 = vld [vmem:[%s7209_s29 + $0x64c] sm:$0xf] }
 0x1e4   : > { %4063 = vmatpush.bf16.msrb.mxu2 %v5211_v61  ;;  %4032 = vmatmul.bf16.vlgmr.msra.gmra.mxu3 %v7314_v16  ;;  %v5307_v16 = vor.u32 %v6612_v31, %v5304_v32  ;;  %v4891_v61 = vor.u32 %v6508_v53, %v4888_v54  ;;  %v5275_v8 = vor.u32 %v6604_v55, %v5272_v52  ;;  %v6600_v18 = vld [vmem:[%s7209_s29 + $0x74c] sm:$0xf]  ;;  %v4856_v32 = vld [vmem:[%s7209_s29 + $0x438] sm:$0xf0] }
 0x1e5   : > { %4076 = vmatpush.bf16.msrb.mxu3 %v5339_v5  ;;  %v3800_v60 = vadd.f32 %v3799_v57, %v3787_v56  ;;  %v4872_v5 = vld [vmem:[%s7209_s29 + $0x458] sm:$0xf0]  ;;  %v5003_v29 = vor.u32 %v6536_v62, %v5000_v11  ;;  %v6500_v31 = vld [vmem:[%s7209_s29 + $0x42c] sm:$0xf] }
 0x1e6   : > { %4038 = vmatpush.bf16.msrb.mxu0 %v4939_v14  ;;  %v3812_v6 = vpop.f32.mrf.mxu2  ;;  %v5128_v14 = vld [vmem:[%s7209_s29 + $0x658] sm:$0xf0]  ;;  %v4875_v48 = vor.u32 %v6504_v7, %v4872_v5  ;;  %v3788_v28 = vpop.f32.mrf.mxu0  ;;  %v6564_v22 = vld [vmem:[%s7209_s29 + $0x62c] sm:$0xf]  ;;  %v4859_v42 = vor.u32 %v6500_v31, %v4856_v32 }
 0x1e7   : > { %4051 = vmatpush.bf16.msrb.mxu1 %v5067_v36  ;;  %v3813_v36 = vadd.f32 %v3812_v6, %v3800_v60  ;;  %v5131_v30 = vor.u32 %v6568_v12, %v5128_v14  ;;  %v3801_v35 = vpop.f32.mrf.mxu1  ;;  %v6596_v9 = vld [vmem:[%s7209_s29 + $0x72c] sm:$0xf]  ;;  %v4840_v45 = vld [vmem:[%s7209_s29 + $0x418] sm:$0xf0]  ;;  %v5115_v17 = vor.u32 %v6564_v22, %v5112_v0 }
 0x1e8   : > { %4064 = vmatpush.bf16.msrb.mxu2 %v5195_v15  ;;  %v3825_v15 = vpop.f32.mrf.mxu3  ;;  %v6496_v41 = vld [vmem:[%s7209_s29 + $0x40c] sm:$0xf]  ;;  %v4968_v51 = vld [vmem:[%s7209_s29 + $0x518] sm:$0xf0] }
 0x1e9   : > { %4077 = vmatpush.bf16.msrb.mxu3 %v5323_v25  ;;  %v8270_v25 = vadd.f32 %v3825_v15, %v3813_v36  ;;  %v5096_v54 = vld [vmem:[%s7209_s29 + $0x618] sm:$0xf0]  ;;  %v6592_v3 = vld [vmem:[%s7209_s29 + $0x70c] sm:$0xf]  ;;  %v4843_v43 = vor.u32 %v6496_v41, %v4840_v45 }
 0x1ea   : > { %4039 = vmatpush.bf16.msrb.mxu0 %v4923_v33  ;;  %v6532_v33 = vld [vmem:[%s7209_s29 + $0x52c] sm:$0xf]  ;;  %v5224_v56 = vld [vmem:[%s7209_s29 + $0x718] sm:$0xf0] }
 0x1eb   : > { %4052 = vmatpush.bf16.msrb.mxu1 %v5051_v39  ;;  %v5259_v39 = vor.u32 %v6600_v18, %v5256_v2  ;;  %v5464_v49 = vld [vmem:[%s7209_s29 + $0x8f8] sm:$0xf0]  ;;  %v6684_v59 = vld [vmem:[%s7209_s29 + $0x9ec] sm:$0xf]  ;;  %v5227_v5 = vor.u32 %v6592_v3, %v5224_v56 }
 0x1ec   : > { %4065 = vmatpush.bf16.msrb.mxu2 %v5179_v63  ;;  %v4984_v63 = vld [vmem:[%s7209_s29 + $0x538] sm:$0xf0]  ;;  %v6716_v52 = vld [vmem:[%s7209_s29 + $0xaec] sm:$0xf] }
 0x1ed   : > { %4078 = vmatpush.bf16.msrb.mxu3 %v5307_v16  ;;  %v5240_v16 = vld [vmem:[%s7209_s29 + $0x738] sm:$0xf0]  ;;  %v4987_v46 = vor.u32 %v6532_v33, %v4984_v63  ;;  %v6648_v11 = vld [vmem:[%s7209_s29 + $0x8cc] sm:$0xf] }
 0x1ee   : > { %4040 = vmatpush.bf16.msrb.mxu0 %v4907_v50  ;;  %v6528_v50 = vld [vmem:[%s7209_s29 + $0x50c] sm:$0xf]  ;;  %v5243_v53 = vor.u32 %v6596_v9, %v5240_v16  ;;  %v5592_v55 = vld [vmem:[%s7209_s29 + $0x9f8] sm:$0xf0] }
 0x1ef   : > { %4053 = vmatpush.bf16.msrb.mxu1 %v5035_v10  ;;  %v6560_v10 = vld [vmem:[%s7209_s29 + $0x60c] sm:$0xf]  ;;  %v5720_v60 = vld [vmem:[%s7209_s29 + $0xaf8] sm:$0xf0]  ;;  %v5595_v6 = vor.u32 %v6684_v59, %v5592_v55 }
 0x1f0   : > { %4066 = vmatpush.bf16.msrb.mxu2 %v5163_v44  ;;  %v3814_v44 = vpop.f32.mrf.mxu2  ;;  %v3827_v57 = vpop.f32.mrf.mxu3  ;;  %v5848_v7 = vld [vmem:[%s7209_s29 + $0xbf8] sm:$0xf0]  ;;  %v6680_v14 = vld [vmem:[%s7209_s29 + $0x9cc] sm:$0xf] }
 0x1f1   : > { %4079 = vmatpush.bf16.msrb.mxu3 %v5291_v58  ;;  %v6652_v58 = vld [vmem:[%s7209_s29 + $0x8ec] sm:$0xf]  ;;  %v5448_v12 = vld [vmem:[%s7209_s29 + $0x8d8] sm:$0xf0] }
 0x1f2   : > { %4041 = vmatpush.bf16.msrb.mxu0 %v4891_v61  ;;  %v4971_v61 = vor.u32 %v6528_v50, %v4968_v51  ;;  %v5467_v62 = vor.u32 %v6652_v58, %v5464_v49  ;;  %v5576_v15 = vld [vmem:[%s7209_s29 + $0x9d8] sm:$0xf0]  ;;  %v6712_v18 = vld [vmem:[%s7209_s29 + $0xacc] sm:$0xf] }
 0x1f3   : > { %4054 = vmatpush.bf16.msrb.mxu1 %v5019_v1  ;;  %v5099_v1 = vor.u32 %v6560_v10, %v5096_v54  ;;  %v5704_v2 = vld [vmem:[%s7209_s29 + $0xad8] sm:$0xf0]  ;;  %v6644_v32 = vld [vmem:[%s7209_s29 + $0x8ac] sm:$0xf] }
 0x1f4   : > { %4067 = vmatpush.bf16.msrb.mxu2 %v5147_v4  ;;  %v6748_v4 = vld [vmem:[%s7209_s29 + $0xbec] sm:$0xf]  ;;  %v5832_v28 = vld [vmem:[%s7209_s29 + $0xbd8] sm:$0xf0]  ;;  %v5707_v31 = vor.u32 %v6712_v18, %v5704_v2 }
 0x1f5   : > { %4080 = vmatpush.bf16.msrb.mxu3 %v5275_v8  ;;  %v5723_v8 = vor.u32 %v6716_v52, %v5720_v60  ;;  %v5851_v36 = vor.u32 %v6748_v4, %v5848_v7  ;;  %v5432_v33 = vld [vmem:[%s7209_s29 + $0x8b8] sm:$0xf0]  ;;  %v6676_v35 = vld [vmem:[%s7209_s29 + $0x9ac] sm:$0xf] }
 0x1f6   : > { %4042 = vmatpush.bf16.msrb.mxu0 %v4875_v48  ;;  %v6744_v48 = vld [vmem:[%s7209_s29 + $0xbcc] sm:$0xf]  ;;  %v5560_v63 = vld [vmem:[%s7209_s29 + $0x9b8] sm:$0xf0] }
 0x1f7   : > { %4055 = vmatpush.bf16.msrb.mxu1 %v5003_v29  ;;  %v5451_v29 = vor.u32 %v6648_v11, %v5448_v12  ;;  %v6708_v22 = vld [vmem:[%s7209_s29 + $0xaac] sm:$0xf]  ;;  %v5688_v0 = vld [vmem:[%s7209_s29 + $0xab8] sm:$0xf0] }
 0x1f8   : > { %4068 = vmatpush.bf16.msrb.mxu2 %v5131_v30  ;;  %v5579_v30 = vor.u32 %v6680_v14, %v5576_v15  ;;  %v6740_v9 = vld [vmem:[%s7209_s29 + $0xbac] sm:$0xf]  ;;  %v5816_v16 = vld [vmem:[%s7209_s29 + $0xbb8] sm:$0xf0]  ;;  %v5691_v41 = vor.u32 %v6708_v22, %v5688_v0 }
 0x1f9   : > { %4081 = vmatpush.bf16.msrb.mxu3 %v5259_v39  ;;  %v5835_v39 = vor.u32 %v6744_v48, %v5832_v28  ;;  %v6640_v45 = vld [vmem:[%s7209_s29 + $0x88c] sm:$0xf]  ;;  %v5672_v51 = vld [vmem:[%s7209_s29 + $0xa98] sm:$0xf0] }
 0x1fa   : > { %4043 = vmatpush.bf16.msrb.mxu0 %v4859_v42  ;;  %v5435_v42 = vor.u32 %v6644_v32, %v5432_v33  ;;  %v6704_v50 = vld [vmem:[%s7209_s29 + $0xa8c] sm:$0xf]  ;;  %v5800_v44 = vld [vmem:[%s7209_s29 + $0xb98] sm:$0xf0] }
 0x1fb   : > { %4056 = vmatpush.bf16.msrb.mxu1 %v4987_v46  ;;  %v5416_v46 = vld [vmem:[%s7209_s29 + $0x898] sm:$0xf0]  ;;  %v6736_v10 = vld [vmem:[%s7209_s29 + $0xb8c] sm:$0xf]  ;;  %v5675_v3 = vor.u32 %v6704_v50, %v5672_v51 }
 0x1fc   : > { %4069 = vmatpush.bf16.msrb.mxu2 %v5115_v17  ;;  %v5544_v17 = vld [vmem:[%s7209_s29 + $0x998] sm:$0xf0]  ;;  %v6636_v56 = vld [vmem:[%s7209_s29 + $0x86c] sm:$0xf]  ;;  %v5803_v59 = vor.u32 %v6736_v10, %v5800_v44 }
 0x1fd   : > { %4082 = vmatpush.bf16.msrb.mxu3 %v5243_v53  ;;  %v5400_v57 = vld [vmem:[%s7209_s29 + $0x878] sm:$0xf0]  ;;  %v6668_v58 = vld [vmem:[%s7209_s29 + $0x96c] sm:$0xf] }
 0x1fe   : > { %4044 = vmatpush.bf16.msrb.mxu0 %v4843_v43  ;;  %v8324_v53 = vpop.f32.mrf.mxu0  ;;  %v5528_v43 = vld [vmem:[%s7209_s29 + $0x978] sm:$0xf0]  ;;  %v6700_v55 = vld [vmem:[%s7209_s29 + $0xa6c] sm:$0xf] }
 0x1ff   : > { %4057 = vmatpush.bf16.msrb.mxu1 %v4971_v61  ;;  %v8329_v49 = vpop.f32.mrf.mxu1  ;;  %v5656_v52 = vld [vmem:[%s7209_s29 + $0xa78] sm:$0xf0]  ;;  %v6732_v60 = vld [vmem:[%s7209_s29 + $0xb6c] sm:$0xf]  ;;  %v5531_v4 = vor.u32 %v6668_v58, %v5528_v43 }
 0x200   : > { %4070 = vmatpush.bf16.msrb.mxu2 %v5099_v1  ;;  %v5784_v61 = vld [vmem:[%s7209_s29 + $0xb78] sm:$0xf0]  ;;  %v5403_v1 = vor.u32 %v6636_v56, %v5400_v57  ;;  %v5659_v7 = vor.u32 %v6700_v55, %v5656_v52  ;;  %v6696_v14 = vld [vmem:[%s7209_s29 + $0xa4c] sm:$0xf] }
 0x201   : > { %4083 = vmatpush.bf16.msrb.mxu3 %v5227_v5  ;;  %4045 = vmatmul.bf16.vlgmr.msrb.gmra.mxu0 %v7373_v37  ;;  %v6672_v37 = vld [vmem:[%s7209_s29 + $0x98c] sm:$0xf]  ;;  %v5787_v11 = vor.u32 %v6732_v60, %v5784_v61  ;;  %v5512_v12 = vld [vmem:[%s7209_s29 + $0x958] sm:$0xf0] }
 0x202   : > { %4089 = vmatpush.bf16.msra.mxu0 %v5467_v62  ;;  %4058 = vmatmul.bf16.vlgmr.msrb.gmra.mxu1 %v7377_v40  ;;  %v5419_v40 = vor.u32 %v6640_v45, %v5416_v46  ;;  %v5547_v54 = vor.u32 %v6672_v37, %v5544_v17  ;;  %v6632_v5 = vld [vmem:[%s7209_s29 + $0x84c] sm:$0xf]  ;;  %v5384_v62 = vld [vmem:[%s7209_s29 + $0x858] sm:$0xf0] }
 0x203   : > { %4102 = vmatpush.bf16.msra.mxu1 %v5595_v6  ;;  %4071 = vmatmul.bf16.vlgmr.msrb.gmra.mxu2 %v7369_v34  ;;  %v5563_v34 = vor.u32 %v6676_v35, %v5560_v63  ;;  %v6664_v6 = vld [vmem:[%s7209_s29 + $0x94c] sm:$0xf]  ;;  %v5768_v2 = vld [vmem:[%s7209_s29 + $0xb58] sm:$0xf0]  ;;  %v5387_v48 = vor.u32 %v6632_v5, %v5384_v62 }
 0x204   : > { %4115 = vmatpush.bf16.msra.mxu2 %v5723_v8  ;;  %4084 = vmatmul.bf16.vlgmr.msrb.gmra.mxu3 %v7375_v38  ;;  %v5819_v38 = vor.u32 %v6740_v9, %v5816_v16  ;;  %v6728_v18 = vld [vmem:[%s7209_s29 + $0xb4c] sm:$0xf]  ;;  %v5368_v32 = vld [vmem:[%s7209_s29 + $0x838] sm:$0xf0] }
 0x205   : > { %4128 = vmatpush.bf16.msra.mxu3 %v5851_v36  ;;  %v5640_v36 = vld [vmem:[%s7209_s29 + $0xa58] sm:$0xf0]  ;;  %v6660_v33 = vld [vmem:[%s7209_s29 + $0x92c] sm:$0xf] }
 0x206   : > { %4090 = vmatpush.bf16.msra.mxu0 %v5451_v29  ;;  %v8339_v8 = vpop.f32.mrf.mxu2  ;;  %v3840_v28 = vpop.f32.mrf.mxu0  ;;  %v5515_v29 = vor.u32 %v6664_v6, %v5512_v12  ;;  %v5496_v63 = vld [vmem:[%s7209_s29 + $0x938] sm:$0xf0]  ;;  %v6692_v22 = vld [vmem:[%s7209_s29 + $0xa2c] sm:$0xf] }
 0x207   : > { %4103 = vmatpush.bf16.msra.mxu1 %v5579_v30  ;;  %v8344_v15 = vpop.f32.mrf.mxu3  ;;  %v5643_v30 = vor.u32 %v6696_v14, %v5640_v36  ;;  %v3853_v35 = vpop.f32.mrf.mxu1  ;;  %v5624_v0 = vld [vmem:[%s7209_s29 + $0xa38] sm:$0xf0]  ;;  %v6724_v9 = vld [vmem:[%s7209_s29 + $0xb2c] sm:$0xf]  ;;  %v5499_v45 = vor.u32 %v6660_v33, %v5496_v63 }
 0x208   : > { %4116 = vmatpush.bf16.msra.mxu2 %v5707_v31  ;;  %v6628_v31 = vld [vmem:[%s7209_s29 + $0x82c] sm:$0xf]  ;;  %v5752_v16 = vld [vmem:[%s7209_s29 + $0xb38] sm:$0xf0]  ;;  %v5627_v46 = vor.u32 %v6692_v22, %v5624_v0 }
 0x209   : > { %4129 = vmatpush.bf16.msra.mxu3 %v5835_v39  ;;  %v5771_v39 = vor.u32 %v6728_v18, %v5768_v2  ;;  %v6656_v37 = vld [vmem:[%s7209_s29 + $0x90c] sm:$0xf]  ;;  %v5755_v51 = vor.u32 %v6724_v9, %v5752_v16  ;;  %v5608_v10 = vld [vmem:[%s7209_s29 + $0xa18] sm:$0xf0] }
 0x20a   : > { %4091 = vmatpush.bf16.msra.mxu0 %v5435_v42  ;;  %v5371_v42 = vor.u32 %v6628_v31, %v5368_v32  ;;  %v6688_v17 = vld [vmem:[%s7209_s29 + $0xa0c] sm:$0xf]  ;;  %v5976_v56 = vld [vmem:[%s7209_s29 + $0xcf8] sm:$0xf0] }
 0x20b   : > { %4104 = vmatpush.bf16.msra.mxu1 %v5563_v34  ;;  %v6624_v34 = vld [vmem:[%s7209_s29 + $0x80c] sm:$0xf]  ;;  %v6232_v55 = vld [vmem:[%s7209_s29 + $0xef8] sm:$0xf0]  ;;  %v5611_v60 = vor.u32 %v6688_v17, %v5608_v10 }
 0x20c   : > { %4117 = vmatpush.bf16.msra.mxu2 %v5691_v41  ;;  %v5352_v41 = vld [vmem:[%s7209_s29 + $0x818] sm:$0xf0]  ;;  %v6720_v44 = vld [vmem:[%s7209_s29 + $0xb0c] sm:$0xf] }
 0x20d   : > { %4130 = vmatpush.bf16.msra.mxu3 %v5819_v38  ;;  %v5480_v38 = vld [vmem:[%s7209_s29 + $0x918] sm:$0xf0]  ;;  %v6812_v57 = vld [vmem:[%s7209_s29 + $0xdec] sm:$0xf]  ;;  %v5355_v58 = vor.u32 %v6624_v34, %v5352_v41 }
 0x20e   : > { %4092 = vmatpush.bf16.msra.mxu0 %v5419_v40  ;;  %v3866_v50 = vpop.f32.mrf.mxu2  ;;  %v5736_v40 = vld [vmem:[%s7209_s29 + $0xb18] sm:$0xf0]  ;;  %v6844_v43 = vld [vmem:[%s7209_s29 + $0xeec] sm:$0xf]  ;;  %v5483_v52 = vor.u32 %v6656_v37, %v5480_v38 }
 0x20f   : > { %4105 = vmatpush.bf16.msra.mxu1 %v5547_v54  ;;  %v3879_v54 = vpop.f32.mrf.mxu3  ;;  %v6876_v61 = vld [vmem:[%s7209_s29 + $0xfec] sm:$0xf]  ;;  %v6235_v62 = vor.u32 %v6844_v43, %v6232_v55  ;;  %v6088_v36 = vld [vmem:[%s7209_s29 + $0xdd8] sm:$0xf0] }
 0x210   : > { %4118 = vmatpush.bf16.msra.mxu2 %v5675_v3  ;;  %v6780_v3 = vld [vmem:[%s7209_s29 + $0xcec] sm:$0xf]  ;;  %v6216_v2 = vld [vmem:[%s7209_s29 + $0xed8] sm:$0xf0] }
 0x211   : > { %4131 = vmatpush.bf16.msra.mxu3 %v5803_v59  ;;  %v6104_v59 = vld [vmem:[%s7209_s29 + $0xdf8] sm:$0xf0]  ;;  %v6776_v6 = vld [vmem:[%s7209_s29 + $0xccc] sm:$0xf] }
 0x212   : > { %4093 = vmatpush.bf16.msra.mxu0 %v5403_v1  ;;  %v6360_v1 = vld [vmem:[%s7209_s29 + $0xff8] sm:$0xf0]  ;;  %v6107_v5 = vor.u32 %v6812_v57, %v6104_v59  ;;  %v6808_v12 = vld [vmem:[%s7209_s29 + $0xdcc] sm:$0xf] }
 0x213   : > { %4106 = vmatpush.bf16.msra.mxu1 %v5531_v4  ;;  %v5739_v4 = vor.u32 %v6720_v44, %v5736_v40  ;;  %v6363_v14 = vor.u32 %v6876_v61, %v6360_v1  ;;  %v6840_v18 = vld [vmem:[%s7209_s29 + $0xecc] sm:$0xf]  ;;  %v6344_v28 = vld [vmem:[%s7209_s29 + $0xfd8] sm:$0xf0]  ;;  %v3839_v61 = vadd.f32 %v8324_v53, %v8270_v25 }
 0x214   : > { %4119 = vmatpush.bf16.msra.mxu2 %v5659_v7  ;;  %v5979_v7 = vor.u32 %v6780_v3, %v5976_v56  ;;  %v6219_v31 = vor.u32 %v6840_v18, %v6216_v2  ;;  %v6772_v32 = vld [vmem:[%s7209_s29 + $0xcac] sm:$0xf]  ;;  %v5944_v33 = vld [vmem:[%s7209_s29 + $0xcb8] sm:$0xf0] }
 0x215   : > { %4132 = vmatpush.bf16.msra.mxu3 %v5787_v11  ;;  %v5960_v11 = vld [vmem:[%s7209_s29 + $0xcd8] sm:$0xf0]  ;;  %v6804_v35 = vld [vmem:[%s7209_s29 + $0xdac] sm:$0xf] }
 0x216   : > { %4094 = vmatpush.bf16.msra.mxu0 %v5387_v48  ;;  %v6872_v48 = vld [vmem:[%s7209_s29 + $0xfcc] sm:$0xf]  ;;  %v6072_v63 = vld [vmem:[%s7209_s29 + $0xdb8] sm:$0xf0] }
 0x217   : > { %4107 = vmatpush.bf16.msra.mxu1 %v5515_v29  ;;  %v5963_v29 = vor.u32 %v6776_v6, %v5960_v11  ;;  %v6836_v22 = vld [vmem:[%s7209_s29 + $0xeac] sm:$0xf]  ;;  %v6200_v0 = vld [vmem:[%s7209_s29 + $0xeb8] sm:$0xf0] }
 0x218   : > { %4120 = vmatpush.bf16.msra.mxu2 %v5643_v30  ;;  %v6091_v30 = vor.u32 %v6808_v12, %v6088_v36  ;;  %v6868_v9 = vld [vmem:[%s7209_s29 + $0xfac] sm:$0xf]  ;;  %v6328_v16 = vld [vmem:[%s7209_s29 + $0xfb8] sm:$0xf0]  ;;  %v6203_v34 = vor.u32 %v6836_v22, %v6200_v0 }
 0x219   : > { %4133 = vmatpush.bf16.msra.mxu3 %v5771_v39  ;;  %v6347_v39 = vor.u32 %v6872_v48, %v6344_v28  ;;  %v6768_v41 = vld [vmem:[%s7209_s29 + $0xc8c] sm:$0xf]  ;;  %v6184_v38 = vld [vmem:[%s7209_s29 + $0xe98] sm:$0xf0] }
 0x21a   : > { %4095 = vmatpush.bf16.msra.mxu0 %v5371_v42  ;;  %v6075_v42 = vor.u32 %v6804_v35, %v6072_v63  ;;  %v6832_v37 = vld [vmem:[%s7209_s29 + $0xe8c] sm:$0xf]  ;;  %v6312_v50 = vld [vmem:[%s7209_s29 + $0xf98] sm:$0xf0] }
 0x21b   : > { %4108 = vmatpush.bf16.msra.mxu1 %v5499_v45  ;;  %v5928_v45 = vld [vmem:[%s7209_s29 + $0xc98] sm:$0xf0]  ;;  %v6864_v17 = vld [vmem:[%s7209_s29 + $0xf8c] sm:$0xf]  ;;  %v6187_v40 = vor.u32 %v6832_v37, %v6184_v38 }
 0x21c   : > { %4121 = vmatpush.bf16.msra.mxu2 %v5627_v46  ;;  %v6056_v46 = vld [vmem:[%s7209_s29 + $0xd98] sm:$0xf0]  ;;  %v6764_v54 = vld [vmem:[%s7209_s29 + $0xc6c] sm:$0xf]  ;;  %v6315_v57 = vor.u32 %v6864_v17, %v6312_v50 }
 0x21d   : > { %4134 = vmatpush.bf16.msra.mxu3 %v5755_v51  ;;  %v5931_v51 = vor.u32 %v6768_v41, %v5928_v45  ;;  %v5912_v3 = vld [vmem:[%s7209_s29 + $0xc78] sm:$0xf0]  ;;  %v6796_v56 = vld [vmem:[%s7209_s29 + $0xd6c] sm:$0xf] }
 0x21e   : > { %4096 = vmatpush.bf16.msra.mxu0 %v5355_v58  ;;  %v6040_v58 = vld [vmem:[%s7209_s29 + $0xd78] sm:$0xf0]  ;;  %v6828_v59 = vld [vmem:[%s7209_s29 + $0xe6c] sm:$0xf] }
 0x21f   : > { %4109 = vmatpush.bf16.msra.mxu1 %v5483_v52  ;;  %v8402_v10 = vpop.f32.mrf.mxu1  ;;  %v6168_v43 = vld [vmem:[%s7209_s29 + $0xe78] sm:$0xf0]  ;;  %v6860_v55 = vld [vmem:[%s7209_s29 + $0xf6c] sm:$0xf]  ;;  %v6043_v1 = vor.u32 %v6796_v56, %v6040_v58 }
 0x220   : > { %4122 = vmatpush.bf16.msra.mxu2 %v5611_v60  ;;  %v6296_v52 = vld [vmem:[%s7209_s29 + $0xf78] sm:$0xf0]  ;;  %v5915_v60 = vor.u32 %v6764_v54, %v5912_v3  ;;  %v6856_v25 = vld [vmem:[%s7209_s29 + $0xf4c] sm:$0xf] }
 0x221   : > { %4135 = vmatpush.bf16.msra.mxu3 %v5739_v4  ;;  %4097 = vmatmul.bf16.vlgmr.msra.gmra.mxu0 %v7442_v19  ;;  %v5947_v19 = vor.u32 %v6772_v32, %v5944_v33  ;;  %v6171_v4 = vor.u32 %v6828_v59, %v6168_v43  ;;  %v6299_v6 = vor.u32 %v6860_v55, %v6296_v52  ;;  %v6024_v12 = vld [vmem:[%s7209_s29 + $0xd58] sm:$0xf0]  ;;  %v6756_v32 = vld [vmem:[%s7209_s29 + $0xc2c] sm:$0xf] }
 0x222   : > { %4141 = vmatpush.bf16.msrb.mxu0 %v5979_v7  ;;  %4110 = vmatmul.bf16.vlgmr.msra.gmra.mxu1 %v7449_v24  ;;  %v6331_v24 = vor.u32 %v6868_v9, %v6328_v16  ;;  %v6760_v7 = vld [vmem:[%s7209_s29 + $0xc4c] sm:$0xf]  ;;  %v6152_v36 = vld [vmem:[%s7209_s29 + $0xe58] sm:$0xf0] }
 0x223   : > { %4154 = vmatpush.bf16.msrb.mxu1 %v6107_v5  ;;  %4123 = vmatmul.bf16.vlgmr.msra.gmra.mxu2 %v7447_v23  ;;  %v6800_v23 = vld [vmem:[%s7209_s29 + $0xd8c] sm:$0xf]  ;;  %v5896_v5 = vld [vmem:[%s7209_s29 + $0xc58] sm:$0xf0] }
 0x224   : > { %4167 = vmatpush.bf16.msrb.mxu2 %v6235_v62  ;;  %4136 = vmatmul.bf16.vlgmr.msra.gmra.mxu3 %v7453_v27  ;;  %v8398_v27 = vpop.f32.mrf.mxu0  ;;  %v6059_v44 = vor.u32 %v6800_v23, %v6056_v46  ;;  %v6792_v62 = vld [vmem:[%s7209_s29 + $0xd4c] sm:$0xf]  ;;  %v6280_v53 = vld [vmem:[%s7209_s29 + $0xf58] sm:$0xf0]  ;;  %v5899_v48 = vor.u32 %v6760_v7, %v5896_v5 }
 0x225   : > { %4180 = vmatpush.bf16.msrb.mxu3 %v6363_v14  ;;  %v6824_v14 = vld [vmem:[%s7209_s29 + $0xe4c] sm:$0xf]  ;;  %v5880_v33 = vld [vmem:[%s7209_s29 + $0xc38] sm:$0xf0] }
 0x226   : > { %4142 = vmatpush.bf16.msrb.mxu0 %v5963_v29  ;;  %v8417_v11 = vpop.f32.mrf.mxu2  ;;  %v3852_v29 = vadd.f32 %v8329_v49, %v3839_v61  ;;  %v6788_v35 = vld [vmem:[%s7209_s29 + $0xd2c] sm:$0xf]  ;;  %v6008_v63 = vld [vmem:[%s7209_s29 + $0xd38] sm:$0xf0]  ;;  %v5883_v16 = vor.u32 %v6756_v32, %v5880_v33 }
 0x227   : > { %4155 = vmatpush.bf16.msrb.mxu1 %v6091_v30  ;;  %v3929_v18 = vpop.f32.mrf.mxu3  ;;  %v3905_v28 = vpop.f32.mrf.mxu1  ;;  %v6027_v30 = vor.u32 %v6792_v62, %v6024_v12  ;;  %v6820_v22 = vld [vmem:[%s7209_s29 + $0xe2c] sm:$0xf]  ;;  %v6136_v0 = vld [vmem:[%s7209_s29 + $0xe38] sm:$0xf0] }
 0x228   : > { %4168 = vmatpush.bf16.msrb.mxu2 %v6219_v31  ;;  %v6155_v31 = vor.u32 %v6824_v14, %v6152_v36  ;;  %v6852_v9 = vld [vmem:[%s7209_s29 + $0xf2c] sm:$0xf]  ;;  %v6264_v49 = vld [vmem:[%s7209_s29 + $0xf38] sm:$0xf0] }
 0x229   : > { %4181 = vmatpush.bf16.msrb.mxu3 %v6347_v39  ;;  %v6283_v39 = vor.u32 %v6856_v25, %v6280_v53  ;;  %v6752_v41 = vld [vmem:[%s7209_s29 + $0xc0c] sm:$0xf]  ;;  %v5864_v45 = vld [vmem:[%s7209_s29 + $0xc18] sm:$0xf0] }
 0x22a   : > { %4143 = vmatpush.bf16.msrb.mxu0 %v5947_v19  ;;  %v3865_v19 = vadd.f32 %v8339_v8, %v3852_v29  ;;  %v6784_v23 = vld [vmem:[%s7209_s29 + $0xd0c] sm:$0xf]  ;;  %v5992_v46 = vld [vmem:[%s7209_s29 + $0xd18] sm:$0xf0] }
 0x22b   : > { %4156 = vmatpush.bf16.msrb.mxu1 %v6075_v42  ;;  %v6011_v42 = vor.u32 %v6788_v35, %v6008_v63  ;;  %v6816_v37 = vld [vmem:[%s7209_s29 + $0xe0c] sm:$0xf]  ;;  %v6120_v38 = vld [vmem:[%s7209_s29 + $0xe18] sm:$0xf0]  ;;  %v5995_v54 = vor.u32 %v6784_v23, %v5992_v46 }
 0x22c   : > { %4169 = vmatpush.bf16.msrb.mxu2 %v6203_v34  ;;  %v3892_v2 = vpop.f32.mrf.mxu0  ;;  %v6139_v34 = vor.u32 %v6820_v22, %v6136_v0  ;;  %v6848_v50 = vld [vmem:[%s7209_s29 + $0xf0c] sm:$0xf]  ;;  %v3878_v8 = vadd.f32 %v8344_v15, %v3865_v19  ;;  %v6123_v3 = vor.u32 %v6816_v37, %v6120_v38 }
 0x22d   : > { %4182 = vmatpush.bf16.msrb.mxu3 %v6331_v24  ;;  %v6267_v24 = vor.u32 %v6852_v9, %v6264_v49 }
 0x22e   : > { %4144 = vmatpush.bf16.msrb.mxu0 %v5931_v51  ;;  %v3918_v17 = vpop.f32.mrf.mxu2  ;;  %v6248_v51 = vld [vmem:[%s7209_s29 + $0xf18] sm:$0xf0] }
 0x22f   : > { %4157 = vmatpush.bf16.msrb.mxu1 %v6059_v44  ;;  %v3931_v44 = vpop.f32.mrf.mxu3  ;;  %v6251_v56 = vor.u32 %v6848_v50, %v6248_v51 }
 0x230   : > { %4170 = vmatpush.bf16.msrb.mxu2 %v6187_v40  ;;  %v5867_v40 = vor.u32 %v6752_v41, %v5864_v45 }
 0x231   : > { %4183 = vmatpush.bf16.msrb.mxu3 %v6315_v57  ;;  %v3891_v57 = vadd.f32 %v8398_v27, %v3878_v8 }
 0x232   : > { %4145 = vmatpush.bf16.msrb.mxu0 %v5915_v60 }
 0x233   : > { %4158 = vmatpush.bf16.msrb.mxu1 %v6043_v1  ;;  %v3904_v58 = vadd.f32 %v8402_v10, %v3891_v57 }
 0x234   : > { %4171 = vmatpush.bf16.msrb.mxu2 %v6171_v4 }
 0x235   : > { %4184 = vmatpush.bf16.msrb.mxu3 %v6299_v6  ;;  %v3917_v15 = vadd.f32 %v8417_v11, %v3904_v58 }
 0x236   : > { %4146 = vmatpush.bf16.msrb.mxu0 %v5899_v48 }
 0x237   : > { %4159 = vmatpush.bf16.msrb.mxu1 %v6027_v30  ;;  %v3930_v59 = vadd.f32 %v3929_v18, %v3917_v15 }
 0x238   : > { %4172 = vmatpush.bf16.msrb.mxu2 %v6155_v31 }
 0x239   : > { %4185 = vmatpush.bf16.msrb.mxu3 %v6283_v39 }
 0x23a   : > { %4147 = vmatpush.bf16.msrb.mxu0 %v5883_v16 }
 0x23b   : > { %4160 = vmatpush.bf16.msrb.mxu1 %v6011_v42 }
 0x23c   : > { %4173 = vmatpush.bf16.msrb.mxu2 %v6139_v34 }
 0x23d   : > { %4186 = vmatpush.bf16.msrb.mxu3 %v6267_v24 }
 0x23e   : > { %4148 = vmatpush.bf16.msrb.mxu0 %v5867_v40  ;;  %v3942_v43 = vpop.f32.mrf.mxu0 }
 0x23f   : > { %4161 = vmatpush.bf16.msrb.mxu1 %v5995_v54  ;;  %v3955_v27 = vpop.f32.mrf.mxu1  ;;  %v3943_v55 = vadd.f32 %v3942_v43, %v3930_v59 }
 0x240   : > { %4174 = vmatpush.bf16.msrb.mxu2 %v6123_v3 }
 0x241   : > { %4187 = vmatpush.bf16.msrb.mxu3 %v6251_v56  ;;  %4149 = vmatmul.bf16.vlgmr.msrb.gmra.mxu0 %v7518_v13  ;;  %v3956_v52 = vadd.f32 %v3955_v27, %v3943_v55 }
 0x242   : > { %4162 = vmatmul.bf16.vlgmr.msrb.gmra.mxu1 %v7525_v21 }
 0x243   : > { %4175 = vmatmul.bf16.vlgmr.msrb.gmra.mxu2 %v7523_v20  ;;  %v796_v20 = vperm.slane %v8246_v47, 3 }
 0x244   : > { %4188 = vmatmul.bf16.vlgmr.msrb.gmra.mxu3 %v7529_v26 }
 0x246   : > { %v3968_v60 = vpop.f32.mrf.mxu2  ;;  %v3944_v10 = vpop.f32.mrf.mxu0 }
 0x247   : > { %v3969_v61 = vadd.f32 %v3968_v60, %v3956_v52  ;;  %v3981_v1 = vpop.f32.mrf.mxu3  ;;  %v3957_v4 = vpop.f32.mrf.mxu1 }
 0x249   : > { %v3982_v13 = vadd.f32 %v3981_v1, %v3969_v61 }
 0x24b   : > { %v4195_v7 = vmax.f32 %v3982_v13, 0.0 }
 0x24d   : > { %4199 = vst [vmem:[%s7897_s8 + $0x10] sm:$0xff] %v4195_v7 }
 0x24e   : > { %v3970_v21 = vpop.f32.mrf.mxu2 }
 0x24f   : > { %v3983_v5 = vpop.f32.mrf.mxu3 }
 0x25e   : > { %v3994_v62 = vpop.f32.mrf.mxu0 }
 0x25f   : > { %v3995_v6 = vadd.f32 %v3994_v62, %v796_v20  ;;  %v4007_v26 = vpop.f32.mrf.mxu1 }
 0x261   : > { %v4008_v11 = vadd.f32 %v4007_v26, %v3995_v6 }
 0x266   : > { %v4020_v12 = vpop.f32.mrf.mxu2  ;;  %v3996_v25 = vpop.f32.mrf.mxu0 }
 0x267   : > { %v4021_v14 = vadd.f32 %v4020_v12, %v4008_v11  ;;  %v4033_v36 = vpop.f32.mrf.mxu3  ;;  %v4009_v53 = vpop.f32.mrf.mxu1 }
 0x269   : > { %v4034_v18 = vadd.f32 %v4033_v36, %v4021_v14 }
 0x26e   : > { %v4022_v2 = vpop.f32.mrf.mxu2 }
 0x26f   : > { %v4035_v48 = vpop.f32.mrf.mxu3 }
 0x27e   : > { %v4046_v28 = vpop.f32.mrf.mxu0 }
 0x27f   : > { %v4059_v29 = vpop.f32.mrf.mxu1  ;;  %v4047_v22 = vadd.f32 %v4046_v28, %v4034_v18 }
 0x281   : > { %v4060_v16 = vadd.f32 %v4059_v29, %v4047_v22 }
 0x286   : > { %v4072_v30 = vpop.f32.mrf.mxu2  ;;  %v4048_v32 = vpop.f32.mrf.mxu0 }
 0x287   : > { %v4085_v31 = vpop.f32.mrf.mxu3  ;;  %v4061_v33 = vpop.f32.mrf.mxu1  ;;  %v4073_v42 = vadd.f32 %v4072_v30, %v4060_v16 }
 0x289   : > { %v4086_v45 = vadd.f32 %v4085_v31, %v4073_v42 }
 0x28e   : > { %v4074_v35 = vpop.f32.mrf.mxu2 }
 0x28f   : > { %v4087_v47 = vpop.f32.mrf.mxu3 }
 0x29e   : > { %v4098_v39 = vpop.f32.mrf.mxu0 }
 0x29f   : > { %v4111_v63 = vpop.f32.mrf.mxu1  ;;  %v4099_v23 = vadd.f32 %v4098_v39, %v4086_v45 }
 0x2a1   : > { %v4112_v24 = vadd.f32 %v4111_v63, %v4099_v23 }
 0x2a6   : > { %v4124_v0 = vpop.f32.mrf.mxu2  ;;  %v4100_v49 = vpop.f32.mrf.mxu0 }
 0x2a7   : > { %v4137_v9 = vpop.f32.mrf.mxu3  ;;  %v4113_v19 = vpop.f32.mrf.mxu1  ;;  %v4125_v46 = vadd.f32 %v4124_v0, %v4112_v24 }
 0x2a9   : > { %v4138_v37 = vadd.f32 %v4137_v9, %v4125_v46 }
 0x2ae   : > { %v4126_v34 = vpop.f32.mrf.mxu2 }
 0x2af   : > { %v4139_v41 = vpop.f32.mrf.mxu3 }
 0x2be   : > { %v4150_v38 = vpop.f32.mrf.mxu0 }
 0x2bf   : > { %v4163_v17 = vpop.f32.mrf.mxu1  ;;  %v4151_v50 = vadd.f32 %v4150_v38, %v4138_v37 }
 0x2c1   : > { %v4164_v51 = vadd.f32 %v4163_v17, %v4151_v50 }
 0x2c6   : > { %v4176_v44 = vpop.f32.mrf.mxu2  ;;  %v4152_v54 = vpop.f32.mrf.mxu0 }
 0x2c7   : > { %v4177_v40 = vadd.f32 %v4176_v44, %v4164_v51  ;;  %v4189_v8 = vpop.f32.mrf.mxu3  ;;  %v4165_v3 = vpop.f32.mrf.mxu1 }
 0x2c9   : > { %v4190_v56 = vadd.f32 %v4189_v8, %v4177_v40 }
 0x2cb   : > { %v4196_v57 = vmax.f32 %v4190_v56, 0.0 }
 0x2cd   : > { %4200 = vst [vmem:[%s7897_s8 + $0x18] sm:$0xff] %v4196_v57 }
 0x2ce   : > { %v4178_v58 = vpop.f32.mrf.mxu2 }
 0x2cf   : > { %v4191_v15 = vpop.f32.mrf.mxu3 }
 0x2d0 PF: > { %p14_p7 = scmp.ge.s32.totalorder %s7114_s16, 6   ;;  %s8474_s12 = smov %s7059_s13 }
 0x2d1   : > { %s8475_s13 = smov %s7063_s14  ;;  %s8476_s14 = smov %s7124_s19 }
 0x2d2   : > { %s8477_s15 = smov %s7114_s16  ;;  %16 = sbr.rel (!%p14_p7) target bundleno = 4 (0x4), region = 88 }
 0x2d7   :  { %4223 = vsyncpa [#allocation3], 1 }
 0x2d8   :  { %4225 = vsyncpa [#allocation3 + $0x1], 1 }
 0x2d9   :  { %4226 = vsyncpa [#allocation5], 1 }
 0x2da   :  { %4228 = vsyncpa [#allocation5 + $0x1], 1 }

// kernel: net_forward.5
= control target key start
LH: loop header
LB: loop body
LE: loop exit
PB: predicated region body
PF: predicated region fallthrough
CT: control target
= control target key end

     0   :  { %8 = vsyncpa [#allocation3], 0  ;;  %s8426_s0 = inlined_call_operand.vmem [shape: f32[8,2048], index: 0, kind: input, shape index: {}]   ;;  %s8427_s1 = inlined_call_operand.hbm [shape: bf16[2048,2048], index: 1, kind: input, shape index: {}]   ;;  %s8428_s2 = inlined_call_operand.hbm [shape: f32[1,2048], index: 2, kind: input, shape index: {}]   ;;  %s8429_s3 = inlined_call_operand.vmem [shape: f32[8,2048], index: 3, kind: output, shape index: {}]  }
   0x1   :  { %10 = vsyncpa [#allocation3 + $0x1], 0 }
   0x2   :  { %11 = vsyncpa [#allocation5], 0 }
   0x3   :  { %13 = vsyncpa [#allocation5 + $0x1], 0  ;;  %s7028_s12 = smov 0   ;;  %s7030_s13 = smov 0  }
   0x4   :  { %s7032_s14 = smov 0   ;;  %s7034_s15 = smov 0  }
   0x5 LB: > { %s4279_s16 = sadd.s32 4294967295, %s7003_s15   ;;  %s7048_s17 = sadd.s32 1, %s7003_s15   ;;  %s7003_s15 = sphi %s7034_s15, %s8437_s15   ;;  %s6999_s14 = sphi %s7032_s14, %s8436_s14   ;;  %s6995_s13 = sphi %s7030_s13, %s8435_s13   ;;  %s6991_s12 = sphi %s7028_s12, %s8434_s12  }
   0x6   : > { %s44_s18 = ssub.s32 %s7003_s15, %s7048_s17  ;;  %s47_s19 = sadd.s32 1, %s6999_s14 }
   0x7   : > { %p45_p0 = scmp.eq.s32.totalorder %s44_s18, 0  ;;  %p54_p1 = scmp.ne.s32.totalorder %s6999_s14, %s6995_s13 }
   0x8   : > { %p55_p2 = scmp.eq.s32.totalorder %s7003_s15, 0  ;;  %p60_p3 = scmp.ne.s32.totalorder %s6995_s13, %s6991_s12 }
   0x9   : > { %s7058_s20 = scalar_select %p45_p0, %s6999_s14, %s47_s19  }
   0xa   : > { %p7060_p4 = por %p55_p2, %p54_p1  ;;  %p61_p5 = scmp.eq.s32.totalorder %s4279_s16, 0 }
   0xb   : > { %p6867_p6 = scmp.lt.s32.totalorder %s7003_s15, 4  ;;  %s7072_s23 = sand.u32 1, %s6999_s14  }
   0xc   : > { %p7067_p7 = por %p61_p5, %p60_p3  ;;  %s4283_s24 = sshll.u32 %s7072_s23, 12 }
   0xd   : > { %s6343_s25 = sshll.u32 %s7003_s15, 4  ;;  %s143_s29 = scalar_lea.vmem [#allocation2], %s4283_s24 }
   0xe   : > { %s148_s28 = scalar_lea.hbm %s8427_s1, %s6343_s25  ;;  %s151_s30 = sshll.u32 %s143_s29, 4  ;;  %s152_s30 = int_to_ptr.vmem [resolvable:$true] %s151_s30 }
   0xf   : > { %s149_s4 = sshll.u32 %s148_s28, 4  ;;  %p7081_p8 = pnand %p6867_p6, %p7060_p4  ;;  %s150_s4 = int_to_ptr.hbm [resolvable:$true] %s149_s4 }
  0x10   : > { %s140_s6 = scalar_lea.sflag [#allocation3], %s7072_s23  ;;  %s6905_s7 = sshra.s32 %s150_s4, 4  ;;  %s6906_s7 = int_to_ptr.hbm [resolvable:$true] %s6905_s7 }
  0x11   : > { %s6907_s8 = scalar_lea.hbm %s6906_s7, 4096  ;;  %p6909_p10 = pneg %p7081_p8 }
  0x12   : > { %p6908_p9 = scmp.ne.s32.totalorder %s6906_s7, %s6907_s8  ;;  %s6912_s11 = scalar_lea.hbm %s8427_s1, 16384 }
  0x13   : > { %p6913_p13 = scmp.lt.s32.totalorder %s6906_s7, %s8427_s1  ;;  %p6914_p0 = scmp.lt.s32.totalorder %s6912_s11, %s6907_s8 }
  0x14   : > { %p6910_p11 = pnand %p6909_p10, %p6908_p9 }
  0x15   : > { %p6915_p1 = por %p6914_p0, %p6913_p13 }
  0x16   : > { %p6911_p12 = pneg %p6910_p11 }
  0x18   : > { %p6916_p2 = pnand %p6915_p1, %p6911_p12 }
  0x1a   : > { %6919 = shalt.err (!%p6916_p2)
}
  0x1b   : > { %s7005_s19 = smov 1024   ;;  %s7006_s21 = smov 256  }
  0x1c   : > { %s7007_s24 = smov 16   ;;  %p4288_p3 = scmp.ge.s32.totalorder %s7003_s15, 1 }
  0x1d   : > { %6863 = dma.hbm_to_vmem [thread:$0]  (!%p7081_p8), %s150_s4, 65536, %s152_s30, %s140_s6, %s7005_s19, %s7006_s21, %s7007_s24  }
  0x1e   : > { %p178_p4 = scmp.lt.s32.totalorder %s7003_s15, 5  ;;  %s4286_s25 = sshll.u32 %s7072_s23, 2 }
  0x1f   : > { %s4287_s27 = sshll.u32 %s7003_s15, 2  ;;  %s165_s28 = scalar_lea.vmem [#allocation4], %s4286_s25 }
  0x20   : > { %p7102_p5 = pnand %p4288_p3, %p178_p4  ;;  %s173_s29 = sshll.u32 %s165_s28, 4  ;;  %s174_s29 = int_to_ptr.vmem [resolvable:$true] %s173_s29 }
  0x21   : > { %s169_s9 = scalar_lea.hbm %s8428_s2, %s4287_s27  ;;  %s162_s11 = scalar_lea.sflag [#allocation5], %s7072_s23 }
  0x22   : > { %s171_s10 = sshll.u32 %s169_s9, 4  ;;  %s6942_s18 = scalar_lea.hbm %s8428_s2, 16  ;;  %s172_s10 = int_to_ptr.hbm [resolvable:$true] %s171_s10 }
  0x23   : > { %s6935_s30 = sshra.s32 %s172_s10, 4  ;;  %s6936_s30 = int_to_ptr.hbm [resolvable:$true] %s6935_s30 }
  0x24   : > { %s6937_s4 = scalar_lea.hbm %s6936_s30, 4  ;;  %p6943_p12 = scmp.lt.s32.totalorder %s6936_s30, %s8428_s2 }
  0x25   : > { %p6938_p6 = scmp.ne.s32.totalorder %s6936_s30, %s6937_s4  ;;  %p6944_p13 = scmp.lt.s32.totalorder %s6942_s18, %s6937_s4 }
  0x27   : > { %p6940_p9 = pnand %p6938_p6, %p6909_p10  ;;  %p6945_p0 = por %p6944_p13, %p6943_p12 }
  0x29   : > { %p6941_p11 = pneg %p6940_p9 }
  0x2b   : > { %p6946_p1 = pnand %p6945_p0, %p6941_p11 }
  0x2d   : > { %6949 = shalt.err (!%p6946_p1)
}
  0x2e   : > { %6866 = dma.hbm_to_vmem [thread:$0]  (!%p7081_p8), %s172_s10, 64, %s174_s29, %s162_s11  }
  0x2f   : > { %182 = sbr.rel (%p7102_p5) target bundleno = 716 (0x2cc), region = 32  ;;  %s184_s23 = sand.u32 (!%p7102_p5), 1, %s6995_s13  }
  0x30   : > { %s4289_s24 = sshll.u32 (!%p7102_p5), %s184_s23, 12  ;;  %s185_s25 = scalar_lea.sflag (!%p7102_p5), [#allocation3], %s184_s23 }
  0x31   : > { %s7125_s27 = scalar_lea.vmem (!%p7102_p5), [#allocation2], %s4289_s24 }
  0x34   : > { %6982 = dma.done.wait (%p7067_p7), %s185_s25, 65536  }
  0x35   : > { %6984 = vsyncadd (%p7067_p7), %s185_s25, 4294901760  ;;  %s4290_s28 = sshll.u32 %s184_s23, 2  ;;  %s195_s7 = scalar_lea.sflag [#allocation5], %s184_s23 }
  0x36   : > { %s7131_s5 = scalar_lea.vmem [#allocation4], %s4290_s28 }
  0x37   : > { %6986 = dma.done.wait (%p7067_p7), %s195_s7, 64  }
  0x38   : > { %6988 = vsyncadd (%p7067_p7), %s195_s7, 4294967232  ;;  %v4407_v0 = vld [vmem:[%s7125_s27 + $0xe0] sm:$0xf]  ;;  %v6374_v1 = vld [vmem:[%s7125_s27 + $0xec] sm:$0xf0]  ;;  %s7817_s21 = sshll.u32 %s4279_s16, 2 }
  0x39   : > { %v4535_v2 = vld [vmem:[%s7125_s27 + $0x1e0] sm:$0xf]  ;;  %v4408_v3 = vor.u32 %v6374_v1, %v4407_v0  ;;  %v6406_v4 = vld [vmem:[%s7125_s27 + $0x1ec] sm:$0xf0]  ;;  %p230_p7 = scmp.lt.s32.totalorder %s7817_s21, 15 }
  0x3a   : > { %v4663_v5 = vld [vmem:[%s7125_s27 + $0x2e0] sm:$0xf]  ;;  %v6438_v6 = vld [vmem:[%s7125_s27 + $0x2ec] sm:$0xf0]  ;;  %v4536_v7 = vor.u32 %v6406_v4, %v4535_v2 }
  0x3b   : > { %v4664_v8 = vor.u32 %v6438_v6, %v4663_v5  ;;  %v4791_v9 = vld [vmem:[%s7125_s27 + $0x3e0] sm:$0xf]  ;;  %v6470_v10 = vld [vmem:[%s7125_s27 + $0x3ec] sm:$0xf0]  ;;  %3349 = vmatpush.bf16.msra.mxu0 %v4408_v3  ;;  %s8439_s21 = smov (!%p230_p7, %s7817_s21), 15 }
  0x3c   : > { %v4391_v11 = vld [vmem:[%s7125_s27 + $0xc0] sm:$0xf]  ;;  %v4792_v12 = vor.u32 %v6470_v10, %v4791_v9  ;;  %v6370_v13 = vld [vmem:[%s7125_s27 + $0xcc] sm:$0xf0]  ;;  %3362 = vmatpush.bf16.msra.mxu1 %v4536_v7  ;;  %s4292_s15 = sshll.u32 %s8439_s21, 3 }
  0x3d   : > { %v4519_v14 = vld [vmem:[%s7125_s27 + $0x1c0] sm:$0xf]  ;;  %v6402_v15 = vld [vmem:[%s7125_s27 + $0x1cc] sm:$0xf0]  ;;  %3375 = vmatpush.bf16.msra.mxu2 %v4664_v8  ;;  %v4392_v16 = vor.u32 %v6370_v13, %v4391_v11  ;;  %s7857_s24 = scalar_lea.vmem %s8429_s3, %s4292_s15 }
  0x3e   : > { %v4520_v17 = vor.u32 %v6402_v15, %v4519_v14  ;;  %v4647_v18 = vld [vmem:[%s7125_s27 + $0x2c0] sm:$0xf]  ;;  %v6434_v19 = vld [vmem:[%s7125_s27 + $0x2cc] sm:$0xf0]  ;;  %3388 = vmatpush.bf16.msra.mxu3 %v4792_v12 }
  0x3f   : > { %v4775_v20 = vld [vmem:[%s7125_s27 + $0x3c0] sm:$0xf]  ;;  %v4648_v21 = vor.u32 %v6434_v19, %v4647_v18  ;;  %v6466_v22 = vld [vmem:[%s7125_s27 + $0x3cc] sm:$0xf0]  ;;  %3350 = vmatpush.bf16.msra.mxu0 %v4392_v16 }
  0x40   : > { %v4375_v23 = vld [vmem:[%s7125_s27 + $0xa0] sm:$0xf]  ;;  %v6366_v24 = vld [vmem:[%s7125_s27 + $0xac] sm:$0xf0]  ;;  %v4776_v25 = vor.u32 %v6466_v22, %v4775_v20  ;;  %3363 = vmatpush.bf16.msra.mxu1 %v4520_v17 }
  0x41   : > { %v4503_v26 = vld [vmem:[%s7125_s27 + $0x1a0] sm:$0xf]  ;;  %v6398_v27 = vld [vmem:[%s7125_s27 + $0x1ac] sm:$0xf0]  ;;  %v4376_v29 = vor.u32 %v6366_v24, %v4375_v23  ;;  %3376 = vmatpush.bf16.msra.mxu2 %v4648_v21 }
  0x42   : > { %v4631_v28 = vld [vmem:[%s7125_s27 + $0x2a0] sm:$0xf]  ;;  %v6430_v30 = vld [vmem:[%s7125_s27 + $0x2ac] sm:$0xf0]  ;;  %v4504_v33 = vor.u32 %v6398_v27, %v4503_v26  ;;  %3389 = vmatpush.bf16.msra.mxu3 %v4776_v25 }
  0x43   : > { %v4759_v31 = vld [vmem:[%s7125_s27 + $0x3a0] sm:$0xf]  ;;  %v6462_v32 = vld [vmem:[%s7125_s27 + $0x3ac] sm:$0xf0]  ;;  %v4632_v34 = vor.u32 %v6430_v30, %v4631_v28  ;;  %3351 = vmatpush.bf16.msra.mxu0 %v4376_v29 }
  0x44   : > { %v4359_v35 = vld [vmem:[%s7125_s27 + $0x80] sm:$0xf]  ;;  %v6362_v36 = vld [vmem:[%s7125_s27 + $0x8c] sm:$0xf0]  ;;  %v4760_v38 = vor.u32 %v6462_v32, %v4759_v31  ;;  %3364 = vmatpush.bf16.msra.mxu1 %v4504_v33 }
  0x45   : > { %v4487_v37 = vld [vmem:[%s7125_s27 + $0x180] sm:$0xf]  ;;  %v6394_v39 = vld [vmem:[%s7125_s27 + $0x18c] sm:$0xf0]  ;;  %v4360_v44 = vor.u32 %v6362_v36, %v4359_v35  ;;  %3377 = vmatpush.bf16.msra.mxu2 %v4632_v34 }
  0x46   : > { %v4615_v40 = vld [vmem:[%s7125_s27 + $0x280] sm:$0xf]  ;;  %v6426_v41 = vld [vmem:[%s7125_s27 + $0x28c] sm:$0xf0]  ;;  %v4488_v45 = vor.u32 %v6394_v39, %v4487_v37  ;;  %3390 = vmatpush.bf16.msra.mxu3 %v4760_v38 }
  0x47   : > { %v4743_v42 = vld [vmem:[%s7125_s27 + $0x380] sm:$0xf]  ;;  %v6458_v43 = vld [vmem:[%s7125_s27 + $0x38c] sm:$0xf0]  ;;  %v4616_v46 = vor.u32 %v6426_v41, %v4615_v40  ;;  %3352 = vmatpush.bf16.msra.mxu0 %v4360_v44 }
  0x48   : > { %v4343_v47 = vld [vmem:[%s7125_s27 + $0x60] sm:$0xf]  ;;  %v6358_v48 = vld [vmem:[%s7125_s27 + $0x6c] sm:$0xf0]  ;;  %v4744_v50 = vor.u32 %v6458_v43, %v4743_v42  ;;  %3365 = vmatpush.bf16.msra.mxu1 %v4488_v45 }
  0x49   : > { %v4471_v49 = vld [vmem:[%s7125_s27 + $0x160] sm:$0xf]  ;;  %v6390_v51 = vld [vmem:[%s7125_s27 + $0x16c] sm:$0xf0]  ;;  %v4344_v56 = vor.u32 %v6358_v48, %v4343_v47  ;;  %3378 = vmatpush.bf16.msra.mxu2 %v4616_v46 }
  0x4a   : > { %v4599_v52 = vld [vmem:[%s7125_s27 + $0x260] sm:$0xf]  ;;  %v6422_v53 = vld [vmem:[%s7125_s27 + $0x26c] sm:$0xf0]  ;;  %v4472_v57 = vor.u32 %v6390_v51, %v4471_v49  ;;  %3391 = vmatpush.bf16.msra.mxu3 %v4744_v50 }
  0x4b   : > { %v4727_v54 = vld [vmem:[%s7125_s27 + $0x360] sm:$0xf]  ;;  %v6454_v55 = vld [vmem:[%s7125_s27 + $0x36c] sm:$0xf0]  ;;  %v4600_v58 = vor.u32 %v6422_v53, %v4599_v52  ;;  %3353 = vmatpush.bf16.msra.mxu0 %v4344_v56 }
  0x4c   : > { %v4327_v59 = vld [vmem:[%s7125_s27 + $0x40] sm:$0xf]  ;;  %v6354_v60 = vld [vmem:[%s7125_s27 + $0x4c] sm:$0xf0]  ;;  %v4728_v62 = vor.u32 %v6454_v55, %v4727_v54  ;;  %3366 = vmatpush.bf16.msra.mxu1 %v4472_v57 }
  0x4d   : > { %v4455_v61 = vld [vmem:[%s7125_s27 + $0x140] sm:$0xf]  ;;  %v6386_v63 = vld [vmem:[%s7125_s27 + $0x14c] sm:$0xf0]  ;;  %v4328_v4 = vor.u32 %v6354_v60, %v4327_v59  ;;  %3379 = vmatpush.bf16.msra.mxu2 %v4600_v58 }
  0x4e   : > { %v4583_v0 = vld [vmem:[%s7125_s27 + $0x240] sm:$0xf]  ;;  %v6418_v1 = vld [vmem:[%s7125_s27 + $0x24c] sm:$0xf0]  ;;  %v4456_v5 = vor.u32 %v6386_v63, %v4455_v61  ;;  %3392 = vmatpush.bf16.msra.mxu3 %v4728_v62 }
  0x4f   : > { %v4711_v2 = vld [vmem:[%s7125_s27 + $0x340] sm:$0xf]  ;;  %v6450_v3 = vld [vmem:[%s7125_s27 + $0x34c] sm:$0xf0]  ;;  %v4584_v6 = vor.u32 %v6418_v1, %v4583_v0  ;;  %3354 = vmatpush.bf16.msra.mxu0 %v4328_v4 }
  0x50   : > { %v4311_v7 = vld [vmem:[%s7125_s27 + $0x20] sm:$0xf]  ;;  %v6350_v8 = vld [vmem:[%s7125_s27 + $0x2c] sm:$0xf0]  ;;  %v4712_v10 = vor.u32 %v6450_v3, %v4711_v2  ;;  %3367 = vmatpush.bf16.msra.mxu1 %v4456_v5 }
  0x51   : > { %v4439_v9 = vld [vmem:[%s7125_s27 + $0x120] sm:$0xf]  ;;  %v6382_v11 = vld [vmem:[%s7125_s27 + $0x12c] sm:$0xf0]  ;;  %v4312_v16 = vor.u32 %v6350_v8, %v4311_v7  ;;  %3380 = vmatpush.bf16.msra.mxu2 %v4584_v6 }
  0x52   : > { %v4567_v12 = vld [vmem:[%s7125_s27 + $0x220] sm:$0xf]  ;;  %v6414_v13 = vld [vmem:[%s7125_s27 + $0x22c] sm:$0xf0]  ;;  %v4440_v19 = vor.u32 %v6382_v11, %v4439_v9  ;;  %3393 = vmatpush.bf16.msra.mxu3 %v4712_v10  ;;  %v238_v10 = vld [vmem:[%s8426_s0 + $0x18] sm:$0xff] }
  0x53   : > { %v4695_v14 = vld [vmem:[%s7125_s27 + $0x320] sm:$0xf]  ;;  %v6446_v15 = vld [vmem:[%s7125_s27 + $0x32c] sm:$0xf0]  ;;  %v4568_v20 = vor.u32 %v6414_v13, %v4567_v12  ;;  %3355 = vmatpush.bf16.msra.mxu0 %v4312_v16  ;;  %v236_v11 = vld [vmem:[%s8426_s0 + $0x8] sm:$0xff]  ;;  %v7248_v16 = vpack.c.bf16 %v238_v10, %v238_v10 }
  0x54   : > { %v4295_v17 = vld [vmem:[%s7125_s27] sm:$0xf]  ;;  %v6346_v18 = vld [vmem:[%s7125_s27 + $0xc] sm:$0xf0]  ;;  %v4696_v24 = vor.u32 %v6446_v15, %v4695_v14  ;;  %3368 = vmatpush.bf16.msra.mxu1 %v4440_v19 }
  0x55   : > { %v4423_v21 = vld [vmem:[%s7125_s27 + $0x100] sm:$0xf]  ;;  %v6378_v22 = vld [vmem:[%s7125_s27 + $0x10c] sm:$0xf0]  ;;  %v4296_v31 = vor.u32 %v6346_v18, %v4295_v17  ;;  %3381 = vmatpush.bf16.msra.mxu2 %v4568_v20  ;;  %v7250_v17 = vpack.c.bf16 %v236_v11, %v236_v11 }
  0x56   : > { %v4551_v23 = vld [vmem:[%s7125_s27 + $0x200] sm:$0xf]  ;;  %v6410_v25 = vld [vmem:[%s7125_s27 + $0x20c] sm:$0xf0]  ;;  %v4424_v35 = vor.u32 %v6378_v22, %v4423_v21  ;;  %3394 = vmatpush.bf16.msra.mxu3 %v4696_v24 }
  0x57   : > { %v4679_v26 = vld [vmem:[%s7125_s27 + $0x300] sm:$0xf]  ;;  %v6442_v27 = vld [vmem:[%s7125_s27 + $0x30c] sm:$0xf0]  ;;  %v4552_v36 = vor.u32 %v6410_v25, %v4551_v23  ;;  %3356 = vmatpush.bf16.msra.mxu0 %v4296_v31 }
  0x58   : > { %v4919_v28 = vld [vmem:[%s7125_s27 + $0x4e0] sm:$0xf]  ;;  %v6502_v29 = vld [vmem:[%s7125_s27 + $0x4ec] sm:$0xf0]  ;;  %v4680_v39 = vor.u32 %v6442_v27, %v4679_v26  ;;  %3369 = vmatpush.bf16.msra.mxu1 %v4424_v35 }
  0x59   : > { %v5047_v30 = vld [vmem:[%s7125_s27 + $0x5e0] sm:$0xf]  ;;  %v6534_v32 = vld [vmem:[%s7125_s27 + $0x5ec] sm:$0xf0]  ;;  %v4920_v40 = vor.u32 %v6502_v29, %v4919_v28  ;;  %3382 = vmatpush.bf16.msra.mxu2 %v4552_v36 }
  0x5a   : > { %v5175_v33 = vld [vmem:[%s7125_s27 + $0x6e0] sm:$0xf]  ;;  %v6566_v34 = vld [vmem:[%s7125_s27 + $0x6ec] sm:$0xf0]  ;;  %v5048_v41 = vor.u32 %v6534_v32, %v5047_v30  ;;  %3395 = vmatpush.bf16.msra.mxu3 %v4680_v39 }
  0x5b   : > { %v5303_v37 = vld [vmem:[%s7125_s27 + $0x7e0] sm:$0xf]  ;;  %v6598_v38 = vld [vmem:[%s7125_s27 + $0x7ec] sm:$0xf0]  ;;  %v5176_v42 = vor.u32 %v6566_v34, %v5175_v33  ;;  %3401 = vmatpush.bf16.msrb.mxu0 %v4920_v40  ;;  %3370 = vmatmul.bf16.vlgmr.msra.gmra.mxu1 %v7250_v17 }
  0x5c   : > { %v4903_v43 = vld [vmem:[%s7125_s27 + $0x4c0] sm:$0xf]  ;;  %v6498_v44 = vld [vmem:[%s7125_s27 + $0x4cc] sm:$0xf0]  ;;  %v5304_v46 = vor.u32 %v6598_v38, %v5303_v37  ;;  %3414 = vmatpush.bf16.msrb.mxu1 %v5048_v41 }
  0x5d   : > { %v5031_v45 = vld [vmem:[%s7125_s27 + $0x5c0] sm:$0xf]  ;;  %v6530_v47 = vld [vmem:[%s7125_s27 + $0x5cc] sm:$0xf0]  ;;  %v4904_v52 = vor.u32 %v6498_v44, %v4903_v43  ;;  %3427 = vmatpush.bf16.msrb.mxu2 %v5176_v42  ;;  %3396 = vmatmul.bf16.vlgmr.msra.gmra.mxu3 %v7248_v16 }
  0x5e   : > { %v5159_v48 = vld [vmem:[%s7125_s27 + $0x6c0] sm:$0xf]  ;;  %v6562_v49 = vld [vmem:[%s7125_s27 + $0x6cc] sm:$0xf0]  ;;  %v5032_v54 = vor.u32 %v6530_v47, %v5031_v45  ;;  %3440 = vmatpush.bf16.msrb.mxu3 %v5304_v46 }
  0x5f   : > { %v5287_v50 = vld [vmem:[%s7125_s27 + $0x7c0] sm:$0xf]  ;;  %v6594_v51 = vld [vmem:[%s7125_s27 + $0x7cc] sm:$0xf0]  ;;  %v5160_v55 = vor.u32 %v6562_v49, %v5159_v48  ;;  %3402 = vmatpush.bf16.msrb.mxu0 %v4904_v52 }
  0x60   : > { %v4887_v53 = vld [vmem:[%s7125_s27 + $0x4a0] sm:$0xf]  ;;  %v6494_v56 = vld [vmem:[%s7125_s27 + $0x4ac] sm:$0xf0]  ;;  %v5288_v59 = vor.u32 %v6594_v51, %v5287_v50  ;;  %3415 = vmatpush.bf16.msrb.mxu1 %v5032_v54 }
  0x61   : > { %v5015_v57 = vld [vmem:[%s7125_s27 + $0x5a0] sm:$0xf]  ;;  %v237_v58 = vld [vmem:[%s8426_s0 + $0x10] sm:$0xff]  ;;  %v4888_v2 = vor.u32 %v6494_v56, %v4887_v53  ;;  %3428 = vmatpush.bf16.msrb.mxu2 %v5160_v55 }
  0x62   : > { %v6526_v60 = vld [vmem:[%s7125_s27 + $0x5ac] sm:$0xf0]  ;;  %v5143_v61 = vld [vmem:[%s7125_s27 + $0x6a0] sm:$0xf]  ;;  %v7226_v63 = vpack.c.bf16 %v237_v58, %v237_v58  ;;  %3441 = vmatpush.bf16.msrb.mxu3 %v5288_v59 }
  0x63   : > { %v6558_v62 = vld [vmem:[%s7125_s27 + $0x6ac] sm:$0xf0]  ;;  %v5271_v0 = vld [vmem:[%s7125_s27 + $0x7a0] sm:$0xf]  ;;  %v5016_v6 = vor.u32 %v6526_v60, %v5015_v57  ;;  %3403 = vmatpush.bf16.msrb.mxu0 %v4888_v2 }
  0x64   : > { %v6590_v1 = vld [vmem:[%s7125_s27 + $0x7ac] sm:$0xf0]  ;;  %v4871_v3 = vld [vmem:[%s7125_s27 + $0x480] sm:$0xf]  ;;  %3383 = vmatmul.bf16.vlgmr.msra.gmra.mxu2 %v7226_v63  ;;  %v5144_v7 = vor.u32 %v6558_v62, %v5143_v61 }
  0x65   : > { %v6490_v4 = vld [vmem:[%s7125_s27 + $0x48c] sm:$0xf0]  ;;  %v235_v5 = vld [vmem:[%s8426_s0] sm:$0xff]  ;;  %v5272_v12 = vor.u32 %v6590_v1, %v5271_v0  ;;  %3416 = vmatpush.bf16.msrb.mxu1 %v5016_v6 }
  0x66   : > { %v4999_v8 = vld [vmem:[%s7125_s27 + $0x580] sm:$0xf]  ;;  %v7237_v9 = vpack.c.bf16 %v235_v5, %v235_v5  ;;  %v6522_v13 = vld [vmem:[%s7125_s27 + $0x58c] sm:$0xf0]  ;;  %v4872_v20 = vor.u32 %v6490_v4, %v4871_v3  ;;  %3429 = vmatpush.bf16.msrb.mxu2 %v5144_v7 }
  0x67   : > { %v5127_v14 = vld [vmem:[%s7125_s27 + $0x680] sm:$0xf]  ;;  %v6554_v15 = vld [vmem:[%s7125_s27 + $0x68c] sm:$0xf0]  ;;  %v5000_v21 = vor.u32 %v6522_v13, %v4999_v8  ;;  %3442 = vmatpush.bf16.msrb.mxu3 %v5272_v12 }
  0x68   : > { %v5255_v18 = vld [vmem:[%s7125_s27 + $0x780] sm:$0xf]  ;;  %v6586_v19 = vld [vmem:[%s7125_s27 + $0x78c] sm:$0xf0]  ;;  %3357 = vmatmul.bf16.vlgmr.msra.gmra.mxu0 %v7237_v9  ;;  %v5128_v22 = vor.u32 %v6554_v15, %v5127_v14 }
  0x69   : > { %v4855_v23 = vld [vmem:[%s7125_s27 + $0x460] sm:$0xf]  ;;  %v6486_v24 = vld [vmem:[%s7125_s27 + $0x46c] sm:$0xf0]  ;;  %v5256_v26 = vor.u32 %v6586_v19, %v5255_v18  ;;  %3404 = vmatpush.bf16.msrb.mxu0 %v4872_v20  ;;  %3417 = vmatpush.bf16.msrb.mxu1 %v5000_v21 }
  0x6a   : > { %v4983_v25 = vld [vmem:[%s7125_s27 + $0x560] sm:$0xf]  ;;  %v6518_v27 = vld [vmem:[%s7125_s27 + $0x56c] sm:$0xf0]  ;;  %v4856_v32 = vor.u32 %v6486_v24, %v4855_v23  ;;  %3430 = vmatpush.bf16.msrb.mxu2 %v5128_v22  ;;  %v242_v24 = vld [vmem:[%s8426_s0 + $0x38] sm:$0xff] }
  0x6b   : > { %v5111_v28 = vld [vmem:[%s7125_s27 + $0x660] sm:$0xf]  ;;  %v6550_v29 = vld [vmem:[%s7125_s27 + $0x66c] sm:$0xf0]  ;;  %v4984_v33 = vor.u32 %v6518_v27, %v4983_v25  ;;  %3443 = vmatpush.bf16.msrb.mxu3 %v5256_v26 }
  0x6c   : > { %v5239_v30 = vld [vmem:[%s7125_s27 + $0x760] sm:$0xf]  ;;  %v6582_v31 = vld [vmem:[%s7125_s27 + $0x76c] sm:$0xf0]  ;;  %v5112_v34 = vor.u32 %v6550_v29, %v5111_v28  ;;  %v240_v29 = vld [vmem:[%s8426_s0 + $0x28] sm:$0xff] }
  0x6d   : > { %v4839_v35 = vld [vmem:[%s7125_s27 + $0x440] sm:$0xf]  ;;  %v6482_v36 = vld [vmem:[%s7125_s27 + $0x44c] sm:$0xf0]  ;;  %v5240_v38 = vor.u32 %v6582_v31, %v5239_v30  ;;  %3405 = vmatpush.bf16.msrb.mxu0 %v4856_v32  ;;  %3418 = vmatpush.bf16.msrb.mxu1 %v4984_v33 }
  0x6e   : > { %v4967_v37 = vld [vmem:[%s7125_s27 + $0x540] sm:$0xf]  ;;  %v6514_v39 = vld [vmem:[%s7125_s27 + $0x54c] sm:$0xf0]  ;;  %v4840_v44 = vor.u32 %v6482_v36, %v4839_v35  ;;  %3431 = vmatpush.bf16.msrb.mxu2 %v5112_v34 }
  0x6f   : > { %v5095_v40 = vld [vmem:[%s7125_s27 + $0x640] sm:$0xf]  ;;  %v6546_v41 = vld [vmem:[%s7125_s27 + $0x64c] sm:$0xf0]  ;;  %v4968_v45 = vor.u32 %v6514_v39, %v4967_v37  ;;  %3444 = vmatpush.bf16.msrb.mxu3 %v5240_v38  ;;  %v7321_v38 = vpack.c.bf16 %v242_v24, %v242_v24 }
  0x70   : > { %v5223_v42 = vld [vmem:[%s7125_s27 + $0x740] sm:$0xf]  ;;  %v6578_v43 = vld [vmem:[%s7125_s27 + $0x74c] sm:$0xf0]  ;;  %v5096_v46 = vor.u32 %v6546_v41, %v5095_v40  ;;  %v7323_v40 = vpack.c.bf16 %v240_v29, %v240_v29 }
  0x71   : > { %v4823_v47 = vld [vmem:[%s7125_s27 + $0x420] sm:$0xf]  ;;  %v6478_v48 = vld [vmem:[%s7125_s27 + $0x42c] sm:$0xf0]  ;;  %v5224_v50 = vor.u32 %v6578_v43, %v5223_v42  ;;  %3406 = vmatpush.bf16.msrb.mxu0 %v4840_v44  ;;  %3419 = vmatpush.bf16.msrb.mxu1 %v4968_v45 }
  0x72   : > { %v4951_v49 = vld [vmem:[%s7125_s27 + $0x520] sm:$0xf]  ;;  %v6510_v51 = vld [vmem:[%s7125_s27 + $0x52c] sm:$0xf0]  ;;  %v4824_v56 = vor.u32 %v6478_v48, %v4823_v47  ;;  %3432 = vmatpush.bf16.msrb.mxu2 %v5096_v46 }
  0x73   : > { %v5079_v52 = vld [vmem:[%s7125_s27 + $0x620] sm:$0xf]  ;;  %v6542_v53 = vld [vmem:[%s7125_s27 + $0x62c] sm:$0xf0]  ;;  %v4952_v59 = vor.u32 %v6510_v51, %v4951_v49  ;;  %3445 = vmatpush.bf16.msrb.mxu3 %v5224_v50 }
  0x74   : > { %v5207_v54 = vld [vmem:[%s7125_s27 + $0x720] sm:$0xf]  ;;  %v6574_v55 = vld [vmem:[%s7125_s27 + $0x72c] sm:$0xf0]  ;;  %v5080_v60 = vor.u32 %v6542_v53, %v5079_v52 }
  0x75   : > { %v4807_v57 = vld [vmem:[%s7125_s27 + $0x400] sm:$0xf]  ;;  %v6474_v58 = vld [vmem:[%s7125_s27 + $0x40c] sm:$0xf0]  ;;  %v5208_v1 = vor.u32 %v6574_v55, %v5207_v54  ;;  %3407 = vmatpush.bf16.msrb.mxu0 %v4824_v56  ;;  %3420 = vmatpush.bf16.msrb.mxu1 %v4952_v59 }
  0x76   : > { %v4935_v61 = vld [vmem:[%s7125_s27 + $0x500] sm:$0xf]  ;;  %v6506_v62 = vld [vmem:[%s7125_s27 + $0x50c] sm:$0xf0]  ;;  %v4808_v8 = vor.u32 %v6474_v58, %v4807_v57  ;;  %3433 = vmatpush.bf16.msrb.mxu2 %v5080_v60 }
  0x77   : > { %v5063_v0 = vld [vmem:[%s7125_s27 + $0x600] sm:$0xf]  ;;  %v6538_v2 = vld [vmem:[%s7125_s27 + $0x60c] sm:$0xf0]  ;;  %v4936_v13 = vor.u32 %v6506_v62, %v4935_v61  ;;  %3446 = vmatpush.bf16.msrb.mxu3 %v5208_v1 }
  0x78   : > { %v5191_v3 = vld [vmem:[%s7125_s27 + $0x700] sm:$0xf]  ;;  %v6570_v4 = vld [vmem:[%s7125_s27 + $0x70c] sm:$0xf0]  ;;  %v5064_v14 = vor.u32 %v6538_v2, %v5063_v0 }
  0x79   : > { %v5431_v5 = vld [vmem:[%s7125_s27 + $0x8e0] sm:$0xf]  ;;  %v6630_v6 = vld [vmem:[%s7125_s27 + $0x8ec] sm:$0xf0]  ;;  %v5192_v20 = vor.u32 %v6570_v4, %v5191_v3  ;;  %3408 = vmatpush.bf16.msrb.mxu0 %v4808_v8  ;;  %3421 = vmatpush.bf16.msrb.mxu1 %v4936_v13 }
  0x7a   : > { %v5559_v7 = vld [vmem:[%s7125_s27 + $0x9e0] sm:$0xf]  ;;  %v6662_v10 = vld [vmem:[%s7125_s27 + $0x9ec] sm:$0xf0]  ;;  %v5432_v21 = vor.u32 %v6630_v6, %v5431_v5  ;;  %3434 = vmatpush.bf16.msrb.mxu2 %v5064_v14 }
  0x7b   : > { %v5687_v11 = vld [vmem:[%s7125_s27 + $0xae0] sm:$0xf]  ;;  %v6694_v12 = vld [vmem:[%s7125_s27 + $0xaec] sm:$0xf0]  ;;  %v5560_v25 = vor.u32 %v6662_v10, %v5559_v7  ;;  %3447 = vmatpush.bf16.msrb.mxu3 %v5192_v20 }
  0x7c   : > { %v5815_v15 = vld [vmem:[%s7125_s27 + $0xbe0] sm:$0xf]  ;;  %v6726_v18 = vld [vmem:[%s7125_s27 + $0xbec] sm:$0xf0]  ;;  %v5688_v26 = vor.u32 %v6694_v12, %v5687_v11  ;;  %3422 = vmatmul.bf16.vlgmr.msrb.gmra.mxu1 %v7323_v40 }
  0x7d   : > { %v241_v19 = vld [vmem:[%s8426_s0 + $0x30] sm:$0xff]  ;;  %v5415_v22 = vld [vmem:[%s7125_s27 + $0x8c0] sm:$0xf]  ;;  %v5816_v30 = vor.u32 %v6726_v18, %v5815_v15  ;;  %3453 = vmatpush.bf16.msra.mxu0 %v5432_v21  ;;  %3466 = vmatpush.bf16.msra.mxu1 %v5560_v25 }
  0x7e   : > { %v239_v23 = vld [vmem:[%s8426_s0 + $0x20] sm:$0xff]  ;;  %v6626_v27 = vld [vmem:[%s7125_s27 + $0x8cc] sm:$0xf0]  ;;  %v7315_v34 = vpack.c.bf16 %v241_v19, %v241_v19  ;;  %3479 = vmatpush.bf16.msra.mxu2 %v5688_v26  ;;  %3448 = vmatmul.bf16.vlgmr.msrb.gmra.mxu3 %v7321_v38 }
  0x7f   : > { %v5543_v28 = vld [vmem:[%s7125_s27 + $0x9c0] sm:$0xf]  ;;  %v6658_v31 = vld [vmem:[%s7125_s27 + $0x9cc] sm:$0xf0]  ;;  %v7319_v37 = vpack.c.bf16 %v239_v23, %v239_v23  ;;  %v5416_v39 = vor.u32 %v6626_v27, %v5415_v22  ;;  %3492 = vmatpush.bf16.msra.mxu3 %v5816_v30 }
  0x80   : > { %v5671_v32 = vld [vmem:[%s7125_s27 + $0xac0] sm:$0xf]  ;;  %v6690_v33 = vld [vmem:[%s7125_s27 + $0xacc] sm:$0xf0]  ;;  %v5544_v41 = vor.u32 %v6658_v31, %v5543_v28  ;;  %3435 = vmatmul.bf16.vlgmr.msrb.gmra.mxu2 %v7315_v34 }
  0x81   : > { %v5799_v35 = vld [vmem:[%s7125_s27 + $0xbc0] sm:$0xf]  ;;  %v6722_v36 = vld [vmem:[%s7125_s27 + $0xbcc] sm:$0xf0]  ;;  %v5672_v42 = vor.u32 %v6690_v33, %v5671_v32  ;;  %3409 = vmatmul.bf16.vlgmr.msrb.gmra.mxu0 %v7319_v37 }
  0x82   : > { %v5399_v43 = vld [vmem:[%s7125_s27 + $0x8a0] sm:$0xf]  ;;  %v6622_v44 = vld [vmem:[%s7125_s27 + $0x8ac] sm:$0xf0]  ;;  %v5800_v46 = vor.u32 %v6722_v36, %v5799_v35  ;;  %3454 = vmatpush.bf16.msra.mxu0 %v5416_v39  ;;  %3467 = vmatpush.bf16.msra.mxu1 %v5544_v41 }
  0x83   : > { %v5527_v45 = vld [vmem:[%s7125_s27 + $0x9a0] sm:$0xf]  ;;  %v6654_v47 = vld [vmem:[%s7125_s27 + $0x9ac] sm:$0xf0]  ;;  %v5400_v52 = vor.u32 %v6622_v44, %v5399_v43  ;;  %3480 = vmatpush.bf16.msra.mxu2 %v5672_v42 }
  0x84   : > { %v5655_v48 = vld [vmem:[%s7125_s27 + $0xaa0] sm:$0xf]  ;;  %v6686_v49 = vld [vmem:[%s7125_s27 + $0xaac] sm:$0xf0]  ;;  %v5528_v53 = vor.u32 %v6654_v47, %v5527_v45  ;;  %3493 = vmatpush.bf16.msra.mxu3 %v5800_v46 }
  0x85   : > { %v5783_v50 = vld [vmem:[%s7125_s27 + $0xba0] sm:$0xf]  ;;  %v6718_v51 = vld [vmem:[%s7125_s27 + $0xbac] sm:$0xf0]  ;;  %v5656_v54 = vor.u32 %v6686_v49, %v5655_v48 }
  0x86   : > { %v5383_v55 = vld [vmem:[%s7125_s27 + $0x880] sm:$0xf]  ;;  %v6618_v56 = vld [vmem:[%s7125_s27 + $0x88c] sm:$0xf0]  ;;  %v5784_v58 = vor.u32 %v6718_v51, %v5783_v50  ;;  %3455 = vmatpush.bf16.msra.mxu0 %v5400_v52  ;;  %3468 = vmatpush.bf16.msra.mxu1 %v5528_v53 }
  0x87   : > { %v5511_v57 = vld [vmem:[%s7125_s27 + $0x980] sm:$0xf]  ;;  %v6650_v59 = vld [vmem:[%s7125_s27 + $0x98c] sm:$0xf0]  ;;  %v5384_v1 = vor.u32 %v6618_v56, %v5383_v55  ;;  %3481 = vmatpush.bf16.msra.mxu2 %v5656_v54 }
  0x88   : > { %v5639_v60 = vld [vmem:[%s7125_s27 + $0xa80] sm:$0xf]  ;;  %v6682_v61 = vld [vmem:[%s7125_s27 + $0xa8c] sm:$0xf0]  ;;  %v5512_v2 = vor.u32 %v6650_v59, %v5511_v57  ;;  %3494 = vmatpush.bf16.msra.mxu3 %v5784_v58 }
  0x89   : > { %v5767_v62 = vld [vmem:[%s7125_s27 + $0xb80] sm:$0xf]  ;;  %v6714_v0 = vld [vmem:[%s7125_s27 + $0xb8c] sm:$0xf0]  ;;  %v5640_v3 = vor.u32 %v6682_v61, %v5639_v60 }
  0x8a   : > { %v5367_v4 = vld [vmem:[%s7125_s27 + $0x860] sm:$0xf]  ;;  %v6614_v5 = vld [vmem:[%s7125_s27 + $0x86c] sm:$0xf0]  ;;  %v5768_v7 = vor.u32 %v6714_v0, %v5767_v62  ;;  %3456 = vmatpush.bf16.msra.mxu0 %v5384_v1  ;;  %3469 = vmatpush.bf16.msra.mxu1 %v5512_v2 }
  0x8b   : > { %v5495_v6 = vld [vmem:[%s7125_s27 + $0x960] sm:$0xf]  ;;  %v6646_v8 = vld [vmem:[%s7125_s27 + $0x96c] sm:$0xf0]  ;;  %v5368_v14 = vor.u32 %v6614_v5, %v5367_v4  ;;  %3482 = vmatpush.bf16.msra.mxu2 %v5640_v3 }
  0x8c   : > { %v5623_v10 = vld [vmem:[%s7125_s27 + $0xa60] sm:$0xf]  ;;  %v6678_v11 = vld [vmem:[%s7125_s27 + $0xa6c] sm:$0xf0]  ;;  %v5496_v15 = vor.u32 %v6646_v8, %v5495_v6  ;;  %3495 = vmatpush.bf16.msra.mxu3 %v5768_v7  ;;  %v244_v8 = vld [vmem:[%s8426_s0 + $0x48] sm:$0xff] }
  0x8d   : > { %v5751_v12 = vld [vmem:[%s7125_s27 + $0xb60] sm:$0xf]  ;;  %v6710_v13 = vld [vmem:[%s7125_s27 + $0xb6c] sm:$0xf0]  ;;  %v5624_v18 = vor.u32 %v6678_v11, %v5623_v10  ;;  %v246_v10 = vld [vmem:[%s8426_s0 + $0x58] sm:$0xff] }
  0x8e   : > { %v5351_v19 = vld [vmem:[%s7125_s27 + $0x840] sm:$0xf]  ;;  %v6610_v20 = vld [vmem:[%s7125_s27 + $0x84c] sm:$0xf0]  ;;  %v5752_v22 = vor.u32 %v6710_v13, %v5751_v12  ;;  %3457 = vmatpush.bf16.msra.mxu0 %v5368_v14  ;;  %3470 = vmatpush.bf16.msra.mxu1 %v5496_v15 }
  0x8f   : > { %v5479_v21 = vld [vmem:[%s7125_s27 + $0x940] sm:$0xf]  ;;  %v6642_v23 = vld [vmem:[%s7125_s27 + $0x94c] sm:$0xf0]  ;;  %v5352_v28 = vor.u32 %v6610_v20, %v5351_v19  ;;  %3483 = vmatpush.bf16.msra.mxu2 %v5624_v18 }
  0x90   : > { %v5607_v24 = vld [vmem:[%s7125_s27 + $0xa40] sm:$0xf]  ;;  %v6674_v25 = vld [vmem:[%s7125_s27 + $0xa4c] sm:$0xf0]  ;;  %v5480_v29 = vor.u32 %v6642_v23, %v5479_v21  ;;  %3496 = vmatpush.bf16.msra.mxu3 %v5752_v22 }
  0x91   : > { %v5735_v26 = vld [vmem:[%s7125_s27 + $0xb40] sm:$0xf]  ;;  %v6706_v27 = vld [vmem:[%s7125_s27 + $0xb4c] sm:$0xf0]  ;;  %v5608_v30 = vor.u32 %v6674_v25, %v5607_v24  ;;  %v7407_v24 = vpack.c.bf16 %v244_v8, %v244_v8 }
  0x92   : > { %v5335_v31 = vld [vmem:[%s7125_s27 + $0x820] sm:$0xf]  ;;  %v6606_v32 = vld [vmem:[%s7125_s27 + $0x82c] sm:$0xf0]  ;;  %v5736_v35 = vor.u32 %v6706_v27, %v5735_v26  ;;  %3458 = vmatpush.bf16.msra.mxu0 %v5352_v28  ;;  %3471 = vmatpush.bf16.msra.mxu1 %v5480_v29  ;;  %v7411_v27 = vpack.c.bf16 %v246_v10, %v246_v10 }
  0x93   : > { %v5463_v33 = vld [vmem:[%s7125_s27 + $0x920] sm:$0xf]  ;;  %v6638_v36 = vld [vmem:[%s7125_s27 + $0x92c] sm:$0xf0]  ;;  %v5336_v44 = vor.u32 %v6606_v32, %v5335_v31  ;;  %3484 = vmatpush.bf16.msra.mxu2 %v5608_v30 }
  0x94   : > { %v5591_v39 = vld [vmem:[%s7125_s27 + $0xa20] sm:$0xf]  ;;  %v6670_v41 = vld [vmem:[%s7125_s27 + $0xa2c] sm:$0xf0]  ;;  %v5464_v47 = vor.u32 %v6638_v36, %v5463_v33  ;;  %3497 = vmatpush.bf16.msra.mxu3 %v5736_v35 }
  0x95   : > { %v5719_v42 = vld [vmem:[%s7125_s27 + $0xb20] sm:$0xf]  ;;  %v6702_v43 = vld [vmem:[%s7125_s27 + $0xb2c] sm:$0xf0]  ;;  %v5592_v48 = vor.u32 %v6670_v41, %v5591_v39 }
  0x96   : > { %v5319_v45 = vld [vmem:[%s7125_s27 + $0x800] sm:$0xf]  ;;  %v6602_v46 = vld [vmem:[%s7125_s27 + $0x80c] sm:$0xf0]  ;;  %v5720_v52 = vor.u32 %v6702_v43, %v5719_v42  ;;  %3459 = vmatpush.bf16.msra.mxu0 %v5336_v44  ;;  %3472 = vmatpush.bf16.msra.mxu1 %v5464_v47 }
  0x97   : > { %v5447_v49 = vld [vmem:[%s7125_s27 + $0x900] sm:$0xf]  ;;  %v6634_v50 = vld [vmem:[%s7125_s27 + $0x90c] sm:$0xf0]  ;;  %v5320_v59 = vor.u32 %v6602_v46, %v5319_v45  ;;  %3485 = vmatpush.bf16.msra.mxu2 %v5592_v48 }
  0x98   : > { %v5575_v51 = vld [vmem:[%s7125_s27 + $0xa00] sm:$0xf]  ;;  %v6666_v53 = vld [vmem:[%s7125_s27 + $0xa0c] sm:$0xf0]  ;;  %v5448_v0 = vor.u32 %v6634_v50, %v5447_v49  ;;  %3498 = vmatpush.bf16.msra.mxu3 %v5720_v52 }
  0x99   : > { %v5703_v54 = vld [vmem:[%s7125_s27 + $0xb00] sm:$0xf]  ;;  %v6698_v55 = vld [vmem:[%s7125_s27 + $0xb0c] sm:$0xf0]  ;;  %v5576_v1 = vor.u32 %v6666_v53, %v5575_v51 }
  0x9a   : > { %v5943_v56 = vld [vmem:[%s7125_s27 + $0xce0] sm:$0xf]  ;;  %v6758_v57 = vld [vmem:[%s7125_s27 + $0xcec] sm:$0xf0]  ;;  %v5704_v5 = vor.u32 %v6698_v55, %v5703_v54  ;;  %3460 = vmatpush.bf16.msra.mxu0 %v5320_v59  ;;  %3473 = vmatpush.bf16.msra.mxu1 %v5448_v0 }
  0x9b   : > { %v6071_v58 = vld [vmem:[%s7125_s27 + $0xde0] sm:$0xf]  ;;  %v6790_v60 = vld [vmem:[%s7125_s27 + $0xdec] sm:$0xf0]  ;;  %v5944_v6 = vor.u32 %v6758_v57, %v5943_v56  ;;  %3486 = vmatpush.bf16.msra.mxu2 %v5576_v1 }
  0x9c   : > { %v6199_v61 = vld [vmem:[%s7125_s27 + $0xee0] sm:$0xf]  ;;  %v6822_v62 = vld [vmem:[%s7125_s27 + $0xeec] sm:$0xf0]  ;;  %v6072_v11 = vor.u32 %v6790_v60, %v6071_v58  ;;  %3499 = vmatpush.bf16.msra.mxu3 %v5704_v5 }
  0x9d   : > { %v6327_v2 = vld [vmem:[%s7125_s27 + $0xfe0] sm:$0xf]  ;;  %v6854_v3 = vld [vmem:[%s7125_s27 + $0xfec] sm:$0xf0]  ;;  %v6200_v12 = vor.u32 %v6822_v62, %v6199_v61  ;;  %3474 = vmatmul.bf16.vlgmr.msra.gmra.mxu1 %v7407_v24 }
  0x9e   : > { %v243_v4 = vld [vmem:[%s8426_s0 + $0x40] sm:$0xff]  ;;  %v245_v7 = vld [vmem:[%s8426_s0 + $0x50] sm:$0xff]  ;;  %v6328_v18 = vor.u32 %v6854_v3, %v6327_v2  ;;  %3505 = vmatpush.bf16.msrb.mxu0 %v5944_v6  ;;  %3518 = vmatpush.bf16.msrb.mxu1 %v6072_v11 }
  0x9f   : > { %v5927_v13 = vld [vmem:[%s7125_s27 + $0xcc0] sm:$0xf]  ;;  %v6754_v14 = vld [vmem:[%s7125_s27 + $0xccc] sm:$0xf0]  ;;  %v7400_v19 = vpack.c.bf16 %v243_v4, %v243_v4  ;;  %v7405_v23 = vpack.c.bf16 %v245_v7, %v245_v7  ;;  %3531 = vmatpush.bf16.msrb.mxu2 %v6200_v12  ;;  %3500 = vmatmul.bf16.vlgmr.msra.gmra.mxu3 %v7411_v27 }
  0xa0   : > { %v6055_v15 = vld [vmem:[%s7125_s27 + $0xdc0] sm:$0xf]  ;;  %v6786_v20 = vld [vmem:[%s7125_s27 + $0xdcc] sm:$0xf0]  ;;  %v5928_v28 = vor.u32 %v6754_v14, %v5927_v13  ;;  %3544 = vmatpush.bf16.msrb.mxu3 %v6328_v18 }
  0xa1   : > { %v6183_v21 = vld [vmem:[%s7125_s27 + $0xec0] sm:$0xf]  ;;  %v6818_v22 = vld [vmem:[%s7125_s27 + $0xecc] sm:$0xf0]  ;;  %v6056_v29 = vor.u32 %v6786_v20, %v6055_v15  ;;  %3461 = vmatmul.bf16.vlgmr.msra.gmra.mxu0 %v7400_v19  ;;  %3487 = vmatmul.bf16.vlgmr.msra.gmra.mxu2 %v7405_v23 }
  0xa2   : > { %v6311_v25 = vld [vmem:[%s7125_s27 + $0xfc0] sm:$0xf]  ;;  %v6850_v26 = vld [vmem:[%s7125_s27 + $0xfcc] sm:$0xf0]  ;;  %v6184_v30 = vor.u32 %v6818_v22, %v6183_v21  ;;  %3506 = vmatpush.bf16.msrb.mxu0 %v5928_v28 }
  0xa3   : > { %v5911_v31 = vld [vmem:[%s7125_s27 + $0xca0] sm:$0xf]  ;;  %v6750_v32 = vld [vmem:[%s7125_s27 + $0xcac] sm:$0xf0]  ;;  %v6312_v35 = vor.u32 %v6850_v26, %v6311_v25  ;;  %3519 = vmatpush.bf16.msrb.mxu1 %v6056_v29 }
  0xa4   : > { %v6039_v33 = vld [vmem:[%s7125_s27 + $0xda0] sm:$0xf]  ;;  %v6782_v36 = vld [vmem:[%s7125_s27 + $0xdac] sm:$0xf0]  ;;  %v5912_v44 = vor.u32 %v6750_v32, %v5911_v31  ;;  %3532 = vmatpush.bf16.msrb.mxu2 %v6184_v30 }
  0xa5   : > { %v6167_v39 = vld [vmem:[%s7125_s27 + $0xea0] sm:$0xf]  ;;  %v6814_v41 = vld [vmem:[%s7125_s27 + $0xeac] sm:$0xf0]  ;;  %v6040_v45 = vor.u32 %v6782_v36, %v6039_v33  ;;  %3545 = vmatpush.bf16.msrb.mxu3 %v6312_v35 }
  0xa6   : > { %v6295_v42 = vld [vmem:[%s7125_s27 + $0xfa0] sm:$0xf]  ;;  %v6846_v43 = vld [vmem:[%s7125_s27 + $0xfac] sm:$0xf0]  ;;  %v6168_v46 = vor.u32 %v6814_v41, %v6167_v39  ;;  %3507 = vmatpush.bf16.msrb.mxu0 %v5912_v44 }
  0xa7   : > { %v5895_v47 = vld [vmem:[%s7125_s27 + $0xc80] sm:$0xf]  ;;  %v6746_v48 = vld [vmem:[%s7125_s27 + $0xc8c] sm:$0xf0]  ;;  %v6296_v50 = vor.u32 %v6846_v43, %v6295_v42  ;;  %3520 = vmatpush.bf16.msrb.mxu1 %v6040_v45 }
  0xa8   : > { %v6023_v49 = vld [vmem:[%s7125_s27 + $0xd80] sm:$0xf]  ;;  %v6778_v51 = vld [vmem:[%s7125_s27 + $0xd8c] sm:$0xf0]  ;;  %v5896_v56 = vor.u32 %v6746_v48, %v5895_v47  ;;  %3533 = vmatpush.bf16.msrb.mxu2 %v6168_v46 }
  0xa9   : > { %v6151_v52 = vld [vmem:[%s7125_s27 + $0xe80] sm:$0xf]  ;;  %v6810_v53 = vld [vmem:[%s7125_s27 + $0xe8c] sm:$0xf0]  ;;  %v6024_v57 = vor.u32 %v6778_v51, %v6023_v49  ;;  %3546 = vmatpush.bf16.msrb.mxu3 %v6296_v50 }
  0xaa   : > { %v6279_v54 = vld [vmem:[%s7125_s27 + $0xf80] sm:$0xf]  ;;  %v6842_v55 = vld [vmem:[%s7125_s27 + $0xf8c] sm:$0xf0]  ;;  %v6152_v58 = vor.u32 %v6810_v53, %v6151_v52  ;;  %3508 = vmatpush.bf16.msrb.mxu0 %v5896_v56  ;;  %v6372_v52 = vld [vmem:[%s7125_s27 + $0xe4] sm:$0xf] }
  0xab   : > { %v5879_v59 = vld [vmem:[%s7125_s27 + $0xc60] sm:$0xf]  ;;  %v6742_v60 = vld [vmem:[%s7125_s27 + $0xc6c] sm:$0xf0]  ;;  %v6280_v62 = vor.u32 %v6842_v55, %v6279_v54  ;;  %3521 = vmatpush.bf16.msrb.mxu1 %v6024_v57  ;;  %v4409_v53 = vld [vmem:[%s7125_s27 + $0xf0] sm:$0xf0] }
  0xac   : > { %v6007_v61 = vld [vmem:[%s7125_s27 + $0xd60] sm:$0xf]  ;;  %v6774_v0 = vld [vmem:[%s7125_s27 + $0xd6c] sm:$0xf0]  ;;  %v5880_v5 = vor.u32 %v6742_v60, %v5879_v59  ;;  %3534 = vmatpush.bf16.msrb.mxu2 %v6152_v58  ;;  %v6404_v54 = vld [vmem:[%s7125_s27 + $0x1e4] sm:$0xf] }
  0xad   : > { %v6135_v1 = vld [vmem:[%s7125_s27 + $0xe60] sm:$0xf]  ;;  %v6806_v2 = vld [vmem:[%s7125_s27 + $0xe6c] sm:$0xf0]  ;;  %v6008_v6 = vor.u32 %v6774_v0, %v6007_v61  ;;  %3547 = vmatpush.bf16.msrb.mxu3 %v6280_v62  ;;  %v4537_v56 = vld [vmem:[%s7125_s27 + $0x1f0] sm:$0xf0] }
  0xae   : > { %v6263_v3 = vld [vmem:[%s7125_s27 + $0xf60] sm:$0xf]  ;;  %v6838_v4 = vld [vmem:[%s7125_s27 + $0xf6c] sm:$0xf0]  ;;  %v6136_v7 = vor.u32 %v6806_v2, %v6135_v1  ;;  %3509 = vmatpush.bf16.msrb.mxu0 %v5880_v5  ;;  %v6436_v57 = vld [vmem:[%s7125_s27 + $0x2e4] sm:$0xf]  ;;  %v4412_v2 = vor.u32 %v6372_v52, %v4409_v53 }
  0xaf   : > { %v5863_v8 = vld [vmem:[%s7125_s27 + $0xc40] sm:$0xf]  ;;  %v6738_v10 = vld [vmem:[%s7125_s27 + $0xc4c] sm:$0xf0]  ;;  %v6264_v12 = vor.u32 %v6838_v4, %v6263_v3  ;;  %3522 = vmatpush.bf16.msrb.mxu1 %v6008_v6  ;;  %v4665_v58 = vld [vmem:[%s7125_s27 + $0x2f0] sm:$0xf0]  ;;  %v4540_v6 = vor.u32 %v6404_v54, %v4537_v56 }
  0xb0   : > { %v5991_v11 = vld [vmem:[%s7125_s27 + $0xd40] sm:$0xf]  ;;  %v6770_v13 = vld [vmem:[%s7125_s27 + $0xd4c] sm:$0xf0]  ;;  %v5864_v21 = vor.u32 %v6738_v10, %v5863_v8  ;;  %3535 = vmatpush.bf16.msrb.mxu2 %v6136_v7  ;;  %v6468_v61 = vld [vmem:[%s7125_s27 + $0x3e4] sm:$0xf]  ;;  %v4668_v7 = vor.u32 %v6436_v57, %v4665_v58 }
  0xb1   : > { %v6119_v14 = vld [vmem:[%s7125_s27 + $0xe40] sm:$0xf]  ;;  %v6802_v15 = vld [vmem:[%s7125_s27 + $0xe4c] sm:$0xf0]  ;;  %v5992_v22 = vor.u32 %v6770_v13, %v5991_v11  ;;  %3548 = vmatpush.bf16.msrb.mxu3 %v6264_v12  ;;  %v4793_v62 = vld [vmem:[%s7125_s27 + $0x3f0] sm:$0xf0] }
  0xb2   : > { %v6247_v18 = vld [vmem:[%s7125_s27 + $0xf40] sm:$0xf]  ;;  %v6834_v20 = vld [vmem:[%s7125_s27 + $0xf4c] sm:$0xf0]  ;;  %v6120_v25 = vor.u32 %v6802_v15, %v6119_v14  ;;  %3510 = vmatpush.bf16.msrb.mxu0 %v5864_v21  ;;  %v248_v4 = vld [vmem:[%s8426_s0 + $0x68] sm:$0xff]  ;;  %v4796_v12 = vor.u32 %v6468_v61, %v4793_v62 }
  0xb3   : > { %v5847_v26 = vld [vmem:[%s7125_s27 + $0xc20] sm:$0xf]  ;;  %v6734_v28 = vld [vmem:[%s7125_s27 + $0xc2c] sm:$0xf0]  ;;  %v6248_v30 = vor.u32 %v6834_v20, %v6247_v18  ;;  %3523 = vmatpush.bf16.msrb.mxu1 %v5992_v22  ;;  %v250_v5 = vld [vmem:[%s8426_s0 + $0x78] sm:$0xff]  ;;  %v7495_v21 = vpack.c.bf16 %v248_v4, %v248_v4 }
  0xb4   : > { %v5975_v29 = vld [vmem:[%s7125_s27 + $0xd20] sm:$0xf]  ;;  %v6766_v31 = vld [vmem:[%s7125_s27 + $0xd2c] sm:$0xf0]  ;;  %v5848_v39 = vor.u32 %v6734_v28, %v5847_v26  ;;  %3536 = vmatpush.bf16.msrb.mxu2 %v6120_v25  ;;  %v6368_v8 = vld [vmem:[%s7125_s27 + $0xc4] sm:$0xf]  ;;  %v7499_v26 = vpack.c.bf16 %v250_v5, %v250_v5 }
  0xb5   : > { %v6103_v32 = vld [vmem:[%s7125_s27 + $0xe20] sm:$0xf]  ;;  %v6798_v33 = vld [vmem:[%s7125_s27 + $0xe2c] sm:$0xf0]  ;;  %v5976_v43 = vor.u32 %v6766_v31, %v5975_v29  ;;  %3549 = vmatpush.bf16.msrb.mxu3 %v6248_v30  ;;  %v4393_v10 = vld [vmem:[%s7125_s27 + $0xd0] sm:$0xf0] }
  0xb6   : > { %v6231_v35 = vld [vmem:[%s7125_s27 + $0xf20] sm:$0xf]  ;;  %v6830_v36 = vld [vmem:[%s7125_s27 + $0xf2c] sm:$0xf0]  ;;  %v6104_v44 = vor.u32 %v6798_v33, %v6103_v32  ;;  %3511 = vmatpush.bf16.msrb.mxu0 %v5848_v39  ;;  %v6400_v11 = vld [vmem:[%s7125_s27 + $0x1c4] sm:$0xf]  ;;  %v4396_v28 = vor.u32 %v6368_v8, %v4393_v10 }
  0xb7   : > { %v5831_v41 = vld [vmem:[%s7125_s27 + $0xc00] sm:$0xf]  ;;  %v6730_v42 = vld [vmem:[%s7125_s27 + $0xc0c] sm:$0xf0]  ;;  %v6232_v48 = vor.u32 %v6830_v36, %v6231_v35  ;;  %3524 = vmatpush.bf16.msrb.mxu1 %v5976_v43  ;;  %v4521_v14 = vld [vmem:[%s7125_s27 + $0x1d0] sm:$0xf0] }
  0xb8   : > { %v5959_v45 = vld [vmem:[%s7125_s27 + $0xd00] sm:$0xf]  ;;  %v6762_v46 = vld [vmem:[%s7125_s27 + $0xd0c] sm:$0xf0]  ;;  %v5832_v55 = vor.u32 %v6730_v42, %v5831_v41  ;;  %3537 = vmatpush.bf16.msrb.mxu2 %v6104_v44  ;;  %v6432_v15 = vld [vmem:[%s7125_s27 + $0x2c4] sm:$0xf]  ;;  %v4524_v29 = vor.u32 %v6400_v11, %v4521_v14 }
  0xb9   : > { %v6087_v47 = vld [vmem:[%s7125_s27 + $0xe00] sm:$0xf]  ;;  %v6794_v49 = vld [vmem:[%s7125_s27 + $0xe0c] sm:$0xf0]  ;;  %v5960_v59 = vor.u32 %v6762_v46, %v5959_v45  ;;  %3550 = vmatpush.bf16.msrb.mxu3 %v6232_v48  ;;  %v4649_v18 = vld [vmem:[%s7125_s27 + $0x2d0] sm:$0xf0] }
  0xba   : > { %v6215_v50 = vld [vmem:[%s7125_s27 + $0xf00] sm:$0xf]  ;;  %v6826_v51 = vld [vmem:[%s7125_s27 + $0xf0c] sm:$0xf0]  ;;  %v6088_v60 = vor.u32 %v6794_v49, %v6087_v47  ;;  %3512 = vmatpush.bf16.msrb.mxu0 %v5832_v55  ;;  %v6464_v22 = vld [vmem:[%s7125_s27 + $0x3c4] sm:$0xf]  ;;  %v4652_v30 = vor.u32 %v6432_v15, %v4649_v18 }
  0xbb   : > { %v247_v0 = vld [vmem:[%s8426_s0 + $0x60] sm:$0xff]  ;;  %v6216_v1 = vor.u32 %v6826_v51, %v6215_v50  ;;  %v249_v3 = vld [vmem:[%s8426_s0 + $0x70] sm:$0xff]  ;;  %3525 = vmatpush.bf16.msrb.mxu1 %v5960_v59 }
  0xbc   : > { %v7488_v13 = vpack.c.bf16 %v247_v0, %v247_v0  ;;  %3538 = vmatpush.bf16.msrb.mxu2 %v6088_v60  ;;  %v7493_v20 = vpack.c.bf16 %v249_v3, %v249_v3  ;;  %v4777_v25 = vld [vmem:[%s7125_s27 + $0x3d0] sm:$0xf0]  ;;  %v6364_v31 = vld [vmem:[%s7125_s27 + $0xa4] sm:$0xf] }
  0xbd   : > { %3551 = vmatpush.bf16.msrb.mxu3 %v6216_v1  ;;  %v4377_v32 = vld [vmem:[%s7125_s27 + $0xb0] sm:$0xf0]  ;;  %v6396_v33 = vld [vmem:[%s7125_s27 + $0x1a4] sm:$0xf]  ;;  %v4780_v35 = vor.u32 %v6464_v22, %v4777_v25 }
  0xbe   : > { %3557 = vmatpush.bf16.msra.mxu0 %v4412_v2  ;;  %v4505_v36 = vld [vmem:[%s7125_s27 + $0x1b0] sm:$0xf0]  ;;  %v6428_v39 = vld [vmem:[%s7125_s27 + $0x2a4] sm:$0xf]  ;;  %3526 = vmatmul.bf16.vlgmr.msrb.gmra.mxu1 %v7495_v21  ;;  %v4380_v44 = vor.u32 %v6364_v31, %v4377_v32 }
  0xbf   : > { %3570 = vmatpush.bf16.msra.mxu1 %v4540_v6  ;;  %3513 = vmatmul.bf16.vlgmr.msrb.gmra.mxu0 %v7488_v13  ;;  %v4633_v41 = vld [vmem:[%s7125_s27 + $0x2b0] sm:$0xf0]  ;;  %v6460_v42 = vld [vmem:[%s7125_s27 + $0x3a4] sm:$0xf]  ;;  %v4508_v45 = vor.u32 %v6396_v33, %v4505_v36 }
  0xc0   : > { %3583 = vmatpush.bf16.msra.mxu2 %v4668_v7  ;;  %v4761_v43 = vld [vmem:[%s7125_s27 + $0x3b0] sm:$0xf0]  ;;  %3552 = vmatmul.bf16.vlgmr.msrb.gmra.mxu3 %v7499_v26  ;;  %v4636_v46 = vor.u32 %v6428_v39, %v4633_v41  ;;  %v6360_v47 = vld [vmem:[%s7125_s27 + $0x84] sm:$0xf] }
  0xc1   : > { %3596 = vmatpush.bf16.msra.mxu3 %v4796_v12  ;;  %3539 = vmatmul.bf16.vlgmr.msrb.gmra.mxu2 %v7493_v20  ;;  %v4361_v48 = vld [vmem:[%s7125_s27 + $0x90] sm:$0xf0]  ;;  %v6392_v49 = vld [vmem:[%s7125_s27 + $0x184] sm:$0xf]  ;;  %v4764_v50 = vor.u32 %v6460_v42, %v4761_v43 }
  0xc2   : > { %3558 = vmatpush.bf16.msra.mxu0 %v4396_v28  ;;  %v4489_v51 = vld [vmem:[%s7125_s27 + $0x190] sm:$0xf0]  ;;  %v6424_v52 = vld [vmem:[%s7125_s27 + $0x284] sm:$0xf]  ;;  %v4364_v56 = vor.u32 %v6360_v47, %v4361_v48 }
  0xc3   : > { %3571 = vmatpush.bf16.msra.mxu1 %v4524_v29  ;;  %v4617_v53 = vld [vmem:[%s7125_s27 + $0x290] sm:$0xf0]  ;;  %v6456_v54 = vld [vmem:[%s7125_s27 + $0x384] sm:$0xf]  ;;  %v4492_v57 = vor.u32 %v6392_v49, %v4489_v51 }
  0xc4   : > { %3584 = vmatpush.bf16.msra.mxu2 %v4652_v30  ;;  %v4745_v55 = vld [vmem:[%s7125_s27 + $0x390] sm:$0xf0]  ;;  %v4620_v58 = vor.u32 %v6424_v52, %v4617_v53  ;;  %v6356_v59 = vld [vmem:[%s7125_s27 + $0x64] sm:$0xf] }
  0xc5   : > { %3597 = vmatpush.bf16.msra.mxu3 %v4780_v35  ;;  %v4345_v60 = vld [vmem:[%s7125_s27 + $0x70] sm:$0xf0]  ;;  %v6388_v61 = vld [vmem:[%s7125_s27 + $0x164] sm:$0xf]  ;;  %v4748_v62 = vor.u32 %v6456_v54, %v4745_v55 }
  0xc6   : > { %3559 = vmatpush.bf16.msra.mxu0 %v4380_v44  ;;  %v4473_v0 = vld [vmem:[%s7125_s27 + $0x170] sm:$0xf0]  ;;  %v6420_v1 = vld [vmem:[%s7125_s27 + $0x264] sm:$0xf]  ;;  %v4348_v5 = vor.u32 %v6356_v59, %v4345_v60 }
  0xc7   : > { %3572 = vmatpush.bf16.msra.mxu1 %v4508_v45  ;;  %v4601_v2 = vld [vmem:[%s7125_s27 + $0x270] sm:$0xf0]  ;;  %v6452_v3 = vld [vmem:[%s7125_s27 + $0x364] sm:$0xf]  ;;  %v4476_v6 = vor.u32 %v6388_v61, %v4473_v0 }
  0xc8   : > { %3585 = vmatpush.bf16.msra.mxu2 %v4636_v46  ;;  %v4729_v4 = vld [vmem:[%s7125_s27 + $0x370] sm:$0xf0]  ;;  %v4604_v7 = vor.u32 %v6420_v1, %v4601_v2  ;;  %v6352_v8 = vld [vmem:[%s7125_s27 + $0x44] sm:$0xf] }
  0xc9   : > { %3598 = vmatpush.bf16.msra.mxu3 %v4764_v50  ;;  %v4329_v10 = vld [vmem:[%s7125_s27 + $0x50] sm:$0xf0]  ;;  %v6384_v11 = vld [vmem:[%s7125_s27 + $0x144] sm:$0xf]  ;;  %v4732_v12 = vor.u32 %v6452_v3, %v4729_v4 }
  0xca   : > { %3560 = vmatpush.bf16.msra.mxu0 %v4364_v56  ;;  %v4457_v14 = vld [vmem:[%s7125_s27 + $0x150] sm:$0xf0]  ;;  %v6416_v15 = vld [vmem:[%s7125_s27 + $0x244] sm:$0xf]  ;;  %v4332_v28 = vor.u32 %v6352_v8, %v4329_v10 }
  0xcb   : > { %3573 = vmatpush.bf16.msra.mxu1 %v4492_v57  ;;  %v4585_v18 = vld [vmem:[%s7125_s27 + $0x250] sm:$0xf0]  ;;  %v6448_v22 = vld [vmem:[%s7125_s27 + $0x344] sm:$0xf]  ;;  %v4460_v29 = vor.u32 %v6384_v11, %v4457_v14 }
  0xcc   : > { %3586 = vmatpush.bf16.msra.mxu2 %v4620_v58  ;;  %v4713_v25 = vld [vmem:[%s7125_s27 + $0x350] sm:$0xf0]  ;;  %v4588_v30 = vor.u32 %v6416_v15, %v4585_v18  ;;  %v6348_v31 = vld [vmem:[%s7125_s27 + $0x24] sm:$0xf] }
  0xcd   : > { %3599 = vmatpush.bf16.msra.mxu3 %v4748_v62  ;;  %v4313_v32 = vld [vmem:[%s7125_s27 + $0x30] sm:$0xf0]  ;;  %v6380_v33 = vld [vmem:[%s7125_s27 + $0x124] sm:$0xf]  ;;  %v4716_v35 = vor.u32 %v6448_v22, %v4713_v25 }
  0xce   : > { %3561 = vmatpush.bf16.msra.mxu0 %v4348_v5  ;;  %v4441_v36 = vld [vmem:[%s7125_s27 + $0x130] sm:$0xf0]  ;;  %v6412_v39 = vld [vmem:[%s7125_s27 + $0x224] sm:$0xf]  ;;  %v4316_v44 = vor.u32 %v6348_v31, %v4313_v32 }
  0xcf   : > { %3574 = vmatpush.bf16.msra.mxu1 %v4476_v6  ;;  %v4569_v41 = vld [vmem:[%s7125_s27 + $0x230] sm:$0xf0]  ;;  %v6444_v42 = vld [vmem:[%s7125_s27 + $0x324] sm:$0xf]  ;;  %v4444_v47 = vor.u32 %v6380_v33, %v4441_v36 }
  0xd0   : > { %3587 = vmatpush.bf16.msra.mxu2 %v4604_v7  ;;  %v4697_v43 = vld [vmem:[%s7125_s27 + $0x330] sm:$0xf0]  ;;  %v6344_v45 = vld [vmem:[%s7125_s27 + $0x4] sm:$0xf]  ;;  %v4572_v48 = vor.u32 %v6412_v39, %v4569_v41 }
  0xd1   : > { %3600 = vmatpush.bf16.msra.mxu3 %v4732_v12  ;;  %v4297_v46 = vld [vmem:[%s7125_s27 + $0x10] sm:$0xf0]  ;;  %v6376_v49 = vld [vmem:[%s7125_s27 + $0x104] sm:$0xf]  ;;  %v4700_v52 = vor.u32 %v6444_v42, %v4697_v43 }
  0xd2   : > { %3562 = vmatpush.bf16.msra.mxu0 %v4332_v28  ;;  %v4425_v50 = vld [vmem:[%s7125_s27 + $0x110] sm:$0xf0]  ;;  %v6408_v51 = vld [vmem:[%s7125_s27 + $0x204] sm:$0xf]  ;;  %v4300_v59 = vor.u32 %v6344_v45, %v4297_v46 }
  0xd3   : > { %3575 = vmatpush.bf16.msra.mxu1 %v4460_v29  ;;  %v4553_v53 = vld [vmem:[%s7125_s27 + $0x210] sm:$0xf0]  ;;  %v6440_v54 = vld [vmem:[%s7125_s27 + $0x304] sm:$0xf]  ;;  %v4428_v0 = vor.u32 %v6376_v49, %v4425_v50 }
  0xd4   : > { %3588 = vmatpush.bf16.msra.mxu2 %v4588_v30  ;;  %v4681_v55 = vld [vmem:[%s7125_s27 + $0x310] sm:$0xf0]  ;;  %v6500_v56 = vld [vmem:[%s7125_s27 + $0x4e4] sm:$0xf]  ;;  %v4556_v1 = vor.u32 %v6408_v51, %v4553_v53 }
  0xd5   : > { %3601 = vmatpush.bf16.msra.mxu3 %v4716_v35  ;;  %v4921_v57 = vld [vmem:[%s7125_s27 + $0x4f0] sm:$0xf0]  ;;  %v6532_v58 = vld [vmem:[%s7125_s27 + $0x5e4] sm:$0xf]  ;;  %v4684_v4 = vor.u32 %v6440_v54, %v4681_v55 }
  0xd6   : > { %3563 = vmatpush.bf16.msra.mxu0 %v4316_v44  ;;  %v5049_v60 = vld [vmem:[%s7125_s27 + $0x5f0] sm:$0xf0]  ;;  %v6564_v61 = vld [vmem:[%s7125_s27 + $0x6e4] sm:$0xf]  ;;  %v4924_v5 = vor.u32 %v6500_v56, %v4921_v57 }
  0xd7   : > { %v5177_v62 = vld [vmem:[%s7125_s27 + $0x6f0] sm:$0xf0]  ;;  %3576 = vmatpush.bf16.msra.mxu1 %v4444_v47  ;;  %v6596_v2 = vld [vmem:[%s7125_s27 + $0x7e4] sm:$0xf]  ;;  %v5052_v6 = vor.u32 %v6532_v58, %v5049_v60 }
  0xd8   : > { %3589 = vmatpush.bf16.msra.mxu2 %v4572_v48  ;;  %v5305_v3 = vld [vmem:[%s7125_s27 + $0x7f0] sm:$0xf0]  ;;  %v5180_v7 = vor.u32 %v6564_v61, %v5177_v62  ;;  %v6496_v8 = vld [vmem:[%s7125_s27 + $0x4c4] sm:$0xf] }
  0xd9   : > { %3602 = vmatpush.bf16.msra.mxu3 %v4700_v52  ;;  %v4905_v10 = vld [vmem:[%s7125_s27 + $0x4d0] sm:$0xf0]  ;;  %v6528_v11 = vld [vmem:[%s7125_s27 + $0x5c4] sm:$0xf]  ;;  %v5308_v12 = vor.u32 %v6596_v2, %v5305_v3 }
  0xda   : > { %3564 = vmatpush.bf16.msra.mxu0 %v4300_v59  ;;  %v5033_v14 = vld [vmem:[%s7125_s27 + $0x5d0] sm:$0xf0]  ;;  %v6560_v15 = vld [vmem:[%s7125_s27 + $0x6c4] sm:$0xf]  ;;  %v4908_v28 = vor.u32 %v6496_v8, %v4905_v10 }
  0xdb   : > { %v5161_v18 = vld [vmem:[%s7125_s27 + $0x6d0] sm:$0xf0]  ;;  %3577 = vmatpush.bf16.msra.mxu1 %v4428_v0  ;;  %v6592_v22 = vld [vmem:[%s7125_s27 + $0x7c4] sm:$0xf]  ;;  %v5036_v29 = vor.u32 %v6528_v11, %v5033_v14 }
  0xdc   : > { %3590 = vmatpush.bf16.msra.mxu2 %v4556_v1  ;;  %v5289_v25 = vld [vmem:[%s7125_s27 + $0x7d0] sm:$0xf0]  ;;  %v5164_v30 = vor.u32 %v6560_v15, %v5161_v18  ;;  %v6492_v31 = vld [vmem:[%s7125_s27 + $0x4a4] sm:$0xf] }
  0xdd   : > { %3603 = vmatpush.bf16.msra.mxu3 %v4684_v4  ;;  %v4889_v32 = vld [vmem:[%s7125_s27 + $0x4b0] sm:$0xf0]  ;;  %v6524_v33 = vld [vmem:[%s7125_s27 + $0x5a4] sm:$0xf]  ;;  %v5292_v35 = vor.u32 %v6592_v22, %v5289_v25  ;;  %3565 = vmatmul.bf16.vlgmr.msra.gmra.mxu0 %v7237_v9 }
  0xde   : > { %3609 = vmatpush.bf16.msrb.mxu0 %v4924_v5  ;;  %v5017_v36 = vld [vmem:[%s7125_s27 + $0x5b0] sm:$0xf0]  ;;  %v6556_v39 = vld [vmem:[%s7125_s27 + $0x6a4] sm:$0xf]  ;;  %v4892_v44 = vor.u32 %v6492_v31, %v4889_v32  ;;  %3578 = vmatmul.bf16.vlgmr.msra.gmra.mxu1 %v7250_v17  ;;  %v3371_v32 = vpop.f32.mrf.mxu1 }
  0xdf   : > { %3622 = vmatpush.bf16.msrb.mxu1 %v5052_v6  ;;  %v5145_v41 = vld [vmem:[%s7125_s27 + $0x6b0] sm:$0xf0]  ;;  %3591 = vmatmul.bf16.vlgmr.msra.gmra.mxu2 %v7226_v63  ;;  %v6588_v42 = vld [vmem:[%s7125_s27 + $0x7a4] sm:$0xf]  ;;  %v5020_v46 = vor.u32 %v6524_v33, %v5017_v36 }
  0xe0   : > { %3635 = vmatpush.bf16.msrb.mxu2 %v5180_v7  ;;  %v5273_v43 = vld [vmem:[%s7125_s27 + $0x7b0] sm:$0xf0]  ;;  %3604 = vmatmul.bf16.vlgmr.msra.gmra.mxu3 %v7248_v16  ;;  %v6488_v45 = vld [vmem:[%s7125_s27 + $0x484] sm:$0xf]  ;;  %v5148_v47 = vor.u32 %v6556_v39, %v5145_v41 }
  0xe1   : > { %3648 = vmatpush.bf16.msrb.mxu3 %v5308_v12  ;;  %v4873_v48 = vld [vmem:[%s7125_s27 + $0x490] sm:$0xf0]  ;;  %v6520_v49 = vld [vmem:[%s7125_s27 + $0x584] sm:$0xf]  ;;  %v5276_v51 = vor.u32 %v6588_v42, %v5273_v43 }
  0xe2   : > { %3610 = vmatpush.bf16.msrb.mxu0 %v4908_v28  ;;  %v5001_v50 = vld [vmem:[%s7125_s27 + $0x590] sm:$0xf0]  ;;  %v6552_v52 = vld [vmem:[%s7125_s27 + $0x684] sm:$0xf]  ;;  %v4876_v57 = vor.u32 %v6488_v45, %v4873_v48 }
  0xe3   : > { %3623 = vmatpush.bf16.msrb.mxu1 %v5036_v29  ;;  %v5129_v53 = vld [vmem:[%s7125_s27 + $0x690] sm:$0xf0]  ;;  %v779_v54 = vld [vmem:[%s7131_s5] sm:$0xf]  ;;  %v5004_v59 = vor.u32 %v6520_v49, %v5001_v50 }
  0xe4   : > { %3636 = vmatpush.bf16.msrb.mxu2 %v5164_v30  ;;  %v6584_v55 = vld [vmem:[%s7125_s27 + $0x784] sm:$0xf]  ;;  %v5257_v56 = vld [vmem:[%s7125_s27 + $0x790] sm:$0xf0]  ;;  %v5132_v60 = vor.u32 %v6552_v52, %v5129_v53  ;;  %v781_v0 = vperm.slane %v779_v54, 0  ;;  %v7616_v52 = vpop.f32.mrf.mxu3 }
  0xe5   : > { %3649 = vmatpush.bf16.msrb.mxu3 %v5292_v35  ;;  %v6484_v58 = vld [vmem:[%s7125_s27 + $0x464] sm:$0xf]  ;;  %v4857_v61 = vld [vmem:[%s7125_s27 + $0x470] sm:$0xf0]  ;;  %v5260_v1 = vor.u32 %v6584_v55, %v5257_v56  ;;  %v3358_v8 = vpop.f32.mrf.mxu0 }
  0xe6   : > { %3611 = vmatpush.bf16.msrb.mxu0 %v4892_v44  ;;  %v6516_v62 = vld [vmem:[%s7125_s27 + $0x564] sm:$0xf]  ;;  %v4985_v2 = vld [vmem:[%s7125_s27 + $0x570] sm:$0xf0]  ;;  %v4860_v7 = vor.u32 %v6484_v58, %v4857_v61  ;;  %v3359_v18 = vadd.f32 %v3358_v8, %v781_v0 }
  0xe7   : > { %3624 = vmatpush.bf16.msrb.mxu1 %v5020_v46  ;;  %v6548_v3 = vld [vmem:[%s7125_s27 + $0x664] sm:$0xf]  ;;  %v5113_v4 = vld [vmem:[%s7125_s27 + $0x670] sm:$0xf0]  ;;  %v4988_v10 = vor.u32 %v6516_v62, %v4985_v2  ;;  %v3384_v33 = vpop.f32.mrf.mxu2 }
  0xe8   : > { %3637 = vmatpush.bf16.msrb.mxu2 %v5148_v47  ;;  %v6580_v5 = vld [vmem:[%s7125_s27 + $0x764] sm:$0xf]  ;;  %v5241_v6 = vld [vmem:[%s7125_s27 + $0x770] sm:$0xf0]  ;;  %v5116_v11 = vor.u32 %v6548_v3, %v5113_v4  ;;  %v3372_v36 = vadd.f32 %v3371_v32, %v3359_v18 }
  0xe9   : > { %3650 = vmatpush.bf16.msrb.mxu3 %v5276_v51  ;;  %v6480_v12 = vld [vmem:[%s7125_s27 + $0x444] sm:$0xf]  ;;  %v4841_v14 = vld [vmem:[%s7125_s27 + $0x450] sm:$0xf0]  ;;  %v5244_v22 = vor.u32 %v6580_v5, %v5241_v6  ;;  %v3373_v6 = vpop.f32.mrf.mxu1 }
  0xea   : > { %3612 = vmatpush.bf16.msrb.mxu0 %v4876_v57  ;;  %v6512_v15 = vld [vmem:[%s7125_s27 + $0x544] sm:$0xf]  ;;  %v4969_v25 = vld [vmem:[%s7125_s27 + $0x550] sm:$0xf0]  ;;  %v4844_v35 = vor.u32 %v6480_v12, %v4841_v14  ;;  %v7612_v49 = vadd.f32 %v3384_v33, %v3372_v36 }
  0xeb   : > { %3625 = vmatpush.bf16.msrb.mxu1 %v5004_v59  ;;  %v6544_v28 = vld [vmem:[%s7125_s27 + $0x644] sm:$0xf]  ;;  %v5097_v29 = vld [vmem:[%s7125_s27 + $0x650] sm:$0xf0]  ;;  %v4972_v39 = vor.u32 %v6512_v15, %v4969_v25 }
  0xec   : > { %3638 = vmatpush.bf16.msrb.mxu2 %v5132_v60  ;;  %v6576_v30 = vld [vmem:[%s7125_s27 + $0x744] sm:$0xf]  ;;  %v5225_v31 = vld [vmem:[%s7125_s27 + $0x750] sm:$0xf0]  ;;  %v5100_v41 = vor.u32 %v6544_v28, %v5097_v29 }
  0xed   : > { %3651 = vmatpush.bf16.msrb.mxu3 %v5260_v1  ;;  %v6476_v42 = vld [vmem:[%s7125_s27 + $0x424] sm:$0xf]  ;;  %v4825_v43 = vld [vmem:[%s7125_s27 + $0x430] sm:$0xf0]  ;;  %v5228_v45 = vor.u32 %v6576_v30, %v5225_v31  ;;  %v3360_v56 = vpop.f32.mrf.mxu0 }
  0xee   : > { %3613 = vmatpush.bf16.msrb.mxu0 %v4860_v7  ;;  %v6508_v44 = vld [vmem:[%s7125_s27 + $0x524] sm:$0xf]  ;;  %v4953_v46 = vld [vmem:[%s7125_s27 + $0x530] sm:$0xf0]  ;;  %v4828_v53 = vor.u32 %v6476_v42, %v4825_v43 }
  0xef   : > { %3626 = vmatpush.bf16.msrb.mxu1 %v4988_v10  ;;  %v6540_v47 = vld [vmem:[%s7125_s27 + $0x624] sm:$0xf]  ;;  %v5081_v48 = vld [vmem:[%s7125_s27 + $0x630] sm:$0xf0]  ;;  %v4956_v57 = vor.u32 %v6508_v44, %v4953_v46  ;;  %v3386_v7 = vpop.f32.mrf.mxu2 }
  0xf0   : > { %3639 = vmatpush.bf16.msrb.mxu2 %v5116_v11  ;;  %v6572_v50 = vld [vmem:[%s7125_s27 + $0x724] sm:$0xf]  ;;  %v5209_v51 = vld [vmem:[%s7125_s27 + $0x730] sm:$0xf0]  ;;  %v5084_v58 = vor.u32 %v6540_v47, %v5081_v48 }
  0xf1   : > { %3652 = vmatpush.bf16.msrb.mxu3 %v5244_v22  ;;  %v6472_v54 = vld [vmem:[%s7125_s27 + $0x404] sm:$0xf]  ;;  %v4809_v55 = vld [vmem:[%s7125_s27 + $0x410] sm:$0xf0]  ;;  %v5212_v62 = vor.u32 %v6572_v50, %v5209_v51 }
  0xf2   : > { %3614 = vmatpush.bf16.msrb.mxu0 %v4844_v35  ;;  %v6504_v59 = vld [vmem:[%s7125_s27 + $0x504] sm:$0xf]  ;;  %v4937_v60 = vld [vmem:[%s7125_s27 + $0x510] sm:$0xf0]  ;;  %v4812_v8 = vor.u32 %v6472_v54, %v4809_v55  ;;  %v3399_v35 = vpop.f32.mrf.mxu3 }
  0xf3   : > { %3627 = vmatpush.bf16.msrb.mxu1 %v4972_v39  ;;  %v6536_v61 = vld [vmem:[%s7125_s27 + $0x604] sm:$0xf]  ;;  %v5065_v0 = vld [vmem:[%s7125_s27 + $0x610] sm:$0xf0]  ;;  %v4940_v14 = vor.u32 %v6504_v59, %v4937_v60 }
  0xf4   : > { %3640 = vmatpush.bf16.msrb.mxu2 %v5100_v41  ;;  %v6568_v1 = vld [vmem:[%s7125_s27 + $0x704] sm:$0xf]  ;;  %v5193_v2 = vld [vmem:[%s7125_s27 + $0x710] sm:$0xf0]  ;;  %v5068_v15 = vor.u32 %v6536_v61, %v5065_v0 }
  0xf5   : > { %3653 = vmatpush.bf16.msrb.mxu3 %v5228_v45  ;;  %v6628_v3 = vld [vmem:[%s7125_s27 + $0x8e4] sm:$0xf]  ;;  %v5433_v4 = vld [vmem:[%s7125_s27 + $0x8f0] sm:$0xf0]  ;;  %v5196_v25 = vor.u32 %v6568_v1, %v5193_v2 }
  0xf6   : > { %v6660_v5 = vld [vmem:[%s7125_s27 + $0x9e4] sm:$0xf]  ;;  %3615 = vmatpush.bf16.msrb.mxu0 %v4828_v53  ;;  %v5561_v10 = vld [vmem:[%s7125_s27 + $0x9f0] sm:$0xf0]  ;;  %v5436_v28 = vor.u32 %v6628_v3, %v5433_v4 }
  0xf7   : > { %v6692_v11 = vld [vmem:[%s7125_s27 + $0xae4] sm:$0xf]  ;;  %v5689_v12 = vld [vmem:[%s7125_s27 + $0xaf0] sm:$0xf0]  ;;  %3628 = vmatpush.bf16.msrb.mxu1 %v4956_v57  ;;  %v5564_v29 = vor.u32 %v6660_v5, %v5561_v10 }
  0xf8   : > { %3641 = vmatpush.bf16.msrb.mxu2 %v5084_v58  ;;  %v6724_v18 = vld [vmem:[%s7125_s27 + $0xbe4] sm:$0xf]  ;;  %v5817_v22 = vld [vmem:[%s7125_s27 + $0xbf0] sm:$0xf0]  ;;  %v5692_v30 = vor.u32 %v6692_v11, %v5689_v12 }
  0xf9   : > { %3654 = vmatpush.bf16.msrb.mxu3 %v5212_v62  ;;  %v6624_v31 = vld [vmem:[%s7125_s27 + $0x8c4] sm:$0xf]  ;;  %v5417_v32 = vld [vmem:[%s7125_s27 + $0x8d0] sm:$0xf0]  ;;  %v5820_v36 = vor.u32 %v6724_v18, %v5817_v22  ;;  %v7667_v22 = vpop.f32.mrf.mxu1 }
  0xfa   : > { %v6656_v33 = vld [vmem:[%s7125_s27 + $0x9c4] sm:$0xf]  ;;  %3616 = vmatpush.bf16.msrb.mxu0 %v4812_v8  ;;  %v5545_v39 = vld [vmem:[%s7125_s27 + $0x9d0] sm:$0xf0]  ;;  %v5420_v45 = vor.u32 %v6624_v31, %v5417_v32 }
  0xfb   : > { %v6688_v41 = vld [vmem:[%s7125_s27 + $0xac4] sm:$0xf]  ;;  %v5673_v42 = vld [vmem:[%s7125_s27 + $0xad0] sm:$0xf0]  ;;  %3629 = vmatpush.bf16.msrb.mxu1 %v4940_v14  ;;  %v5548_v46 = vor.u32 %v6656_v33, %v5545_v39 }
  0xfc   : > { %3642 = vmatpush.bf16.msrb.mxu2 %v5068_v15  ;;  %v6720_v43 = vld [vmem:[%s7125_s27 + $0xbc4] sm:$0xf]  ;;  %v5801_v44 = vld [vmem:[%s7125_s27 + $0xbd0] sm:$0xf0]  ;;  %v5676_v47 = vor.u32 %v6688_v41, %v5673_v42 }
  0xfd   : > { %3655 = vmatpush.bf16.msrb.mxu3 %v5196_v25  ;;  %v6620_v48 = vld [vmem:[%s7125_s27 + $0x8a4] sm:$0xf]  ;;  %v5401_v50 = vld [vmem:[%s7125_s27 + $0x8b0] sm:$0xf0]  ;;  %v5804_v53 = vor.u32 %v6720_v43, %v5801_v44  ;;  %3617 = vmatmul.bf16.vlgmr.msrb.gmra.mxu0 %v7319_v37 }
  0xfe   : > { %3661 = vmatpush.bf16.msra.mxu0 %v5436_v28  ;;  %v6652_v51 = vld [vmem:[%s7125_s27 + $0x9a4] sm:$0xf]  ;;  %v5529_v54 = vld [vmem:[%s7125_s27 + $0x9b0] sm:$0xf0]  ;;  %v5404_v59 = vor.u32 %v6620_v48, %v5401_v50  ;;  %3630 = vmatmul.bf16.vlgmr.msrb.gmra.mxu1 %v7323_v40  ;;  %v7662_v10 = vpop.f32.mrf.mxu0 }
  0xff   : > { %3674 = vmatpush.bf16.msra.mxu1 %v5564_v29  ;;  %3643 = vmatmul.bf16.vlgmr.msrb.gmra.mxu2 %v7315_v34  ;;  %v6684_v55 = vld [vmem:[%s7125_s27 + $0xaa4] sm:$0xf]  ;;  %v5657_v56 = vld [vmem:[%s7125_s27 + $0xab0] sm:$0xf0]  ;;  %v5532_v60 = vor.u32 %v6652_v51, %v5529_v54 }
 0x100   : > { %3687 = vmatpush.bf16.msra.mxu2 %v5692_v30  ;;  %3656 = vmatmul.bf16.vlgmr.msrb.gmra.mxu3 %v7321_v38  ;;  %v6716_v57 = vld [vmem:[%s7125_s27 + $0xba4] sm:$0xf]  ;;  %v5785_v58 = vld [vmem:[%s7125_s27 + $0xbb0] sm:$0xf0]  ;;  %v5660_v61 = vor.u32 %v6684_v55, %v5657_v56 }
 0x101   : > { %3700 = vmatpush.bf16.msra.mxu3 %v5820_v36  ;;  %v6616_v62 = vld [vmem:[%s7125_s27 + $0x884] sm:$0xf]  ;;  %v5385_v0 = vld [vmem:[%s7125_s27 + $0x890] sm:$0xf0]  ;;  %v5788_v2 = vor.u32 %v6716_v57, %v5785_v58  ;;  %v7682_v48 = vpop.f32.mrf.mxu3 }
 0x102   : > { %3662 = vmatpush.bf16.msra.mxu0 %v5420_v45  ;;  %v6648_v1 = vld [vmem:[%s7125_s27 + $0x984] sm:$0xf]  ;;  %v5513_v3 = vld [vmem:[%s7125_s27 + $0x990] sm:$0xf0]  ;;  %v5388_v8 = vor.u32 %v6616_v62, %v5385_v0 }
 0x103   : > { %3675 = vmatpush.bf16.msra.mxu1 %v5548_v46  ;;  %v6680_v4 = vld [vmem:[%s7125_s27 + $0xa84] sm:$0xf]  ;;  %v5641_v5 = vld [vmem:[%s7125_s27 + $0xa90] sm:$0xf0]  ;;  %v5516_v11 = vor.u32 %v6648_v1, %v5513_v3  ;;  %v7677_v43 = vpop.f32.mrf.mxu2 }
 0x104   : > { %3688 = vmatpush.bf16.msra.mxu2 %v5676_v47  ;;  %v6712_v6 = vld [vmem:[%s7125_s27 + $0xb84] sm:$0xf]  ;;  %v5769_v7 = vld [vmem:[%s7125_s27 + $0xb90] sm:$0xf0]  ;;  %v5644_v12 = vor.u32 %v6680_v4, %v5641_v5 }
 0x105   : > { %3701 = vmatpush.bf16.msra.mxu3 %v5804_v53  ;;  %v6612_v14 = vld [vmem:[%s7125_s27 + $0x864] sm:$0xf]  ;;  %v5369_v15 = vld [vmem:[%s7125_s27 + $0x870] sm:$0xf0]  ;;  %v5772_v25 = vor.u32 %v6712_v6, %v5769_v7 }
 0x106   : > { %3663 = vmatpush.bf16.msra.mxu0 %v5404_v59  ;;  %v6644_v18 = vld [vmem:[%s7125_s27 + $0x964] sm:$0xf]  ;;  %v5497_v28 = vld [vmem:[%s7125_s27 + $0x970] sm:$0xf0]  ;;  %v5372_v33 = vor.u32 %v6612_v14, %v5369_v15  ;;  %v3412_v54 = vpop.f32.mrf.mxu0 }
 0x107   : > { %3676 = vmatpush.bf16.msra.mxu1 %v5532_v60  ;;  %v6676_v29 = vld [vmem:[%s7125_s27 + $0xa64] sm:$0xf]  ;;  %v5625_v30 = vld [vmem:[%s7125_s27 + $0xa70] sm:$0xf0]  ;;  %v5500_v35 = vor.u32 %v6644_v18, %v5497_v28  ;;  %v3425_v60 = vpop.f32.mrf.mxu1 }
 0x108   : > { %3689 = vmatpush.bf16.msra.mxu2 %v5660_v61  ;;  %v6708_v31 = vld [vmem:[%s7125_s27 + $0xb64] sm:$0xf]  ;;  %v5753_v32 = vld [vmem:[%s7125_s27 + $0xb70] sm:$0xf0]  ;;  %v5628_v36 = vor.u32 %v6676_v29, %v5625_v30 }
 0x109   : > { %3702 = vmatpush.bf16.msra.mxu3 %v5788_v2  ;;  %v6608_v39 = vld [vmem:[%s7125_s27 + $0x844] sm:$0xf]  ;;  %v5353_v41 = vld [vmem:[%s7125_s27 + $0x850] sm:$0xf0]  ;;  %v5756_v44 = vor.u32 %v6708_v31, %v5753_v32  ;;  %v3451_v30 = vpop.f32.mrf.mxu3 }
 0x10a   : > { %3664 = vmatpush.bf16.msra.mxu0 %v5388_v8  ;;  %v6640_v42 = vld [vmem:[%s7125_s27 + $0x944] sm:$0xf]  ;;  %v5481_v45 = vld [vmem:[%s7125_s27 + $0x950] sm:$0xf0]  ;;  %v5356_v53 = vor.u32 %v6608_v39, %v5353_v41 }
 0x10b   : > { %3677 = vmatpush.bf16.msra.mxu1 %v5516_v11  ;;  %v6672_v46 = vld [vmem:[%s7125_s27 + $0xa44] sm:$0xf]  ;;  %v5609_v47 = vld [vmem:[%s7125_s27 + $0xa50] sm:$0xf0]  ;;  %v5484_v55 = vor.u32 %v6640_v42, %v5481_v45  ;;  %v3438_v15 = vpop.f32.mrf.mxu2 }
 0x10c   : > { %3690 = vmatpush.bf16.msra.mxu2 %v5644_v12  ;;  %v6704_v50 = vld [vmem:[%s7125_s27 + $0xb44] sm:$0xf]  ;;  %v5737_v51 = vld [vmem:[%s7125_s27 + $0xb50] sm:$0xf0]  ;;  %v5612_v56 = vor.u32 %v6672_v46, %v5609_v47 }
 0x10d   : > { %3703 = vmatpush.bf16.msra.mxu3 %v5772_v25  ;;  %v6604_v57 = vld [vmem:[%s7125_s27 + $0x824] sm:$0xf]  ;;  %v5337_v58 = vld [vmem:[%s7125_s27 + $0x830] sm:$0xf0]  ;;  %v5740_v61 = vor.u32 %v6704_v50, %v5737_v51 }
 0x10e   : > { %3665 = vmatpush.bf16.msra.mxu0 %v5372_v33  ;;  %v6636_v59 = vld [vmem:[%s7125_s27 + $0x924] sm:$0xf]  ;;  %v5465_v62 = vld [vmem:[%s7125_s27 + $0x930] sm:$0xf0]  ;;  %v5340_v4 = vor.u32 %v6604_v57, %v5337_v58 }
 0x10f   : > { %3678 = vmatpush.bf16.msra.mxu1 %v5500_v35  ;;  %v6668_v0 = vld [vmem:[%s7125_s27 + $0xa24] sm:$0xf]  ;;  %v5593_v1 = vld [vmem:[%s7125_s27 + $0xa30] sm:$0xf0]  ;;  %v5468_v7 = vor.u32 %v6636_v59, %v5465_v62 }
 0x110   : > { %3691 = vmatpush.bf16.msra.mxu2 %v5628_v36  ;;  %v6700_v2 = vld [vmem:[%s7125_s27 + $0xb24] sm:$0xf]  ;;  %v5721_v3 = vld [vmem:[%s7125_s27 + $0xb30] sm:$0xf0]  ;;  %v5596_v8 = vor.u32 %v6668_v0, %v5593_v1 }
 0x111   : > { %3704 = vmatpush.bf16.msra.mxu3 %v5756_v44  ;;  %v6600_v5 = vld [vmem:[%s7125_s27 + $0x804] sm:$0xf]  ;;  %v5321_v6 = vld [vmem:[%s7125_s27 + $0x810] sm:$0xf0]  ;;  %v5724_v18 = vor.u32 %v6700_v2, %v5721_v3 }
 0x112   : > { %3666 = vmatpush.bf16.msra.mxu0 %v5356_v53  ;;  %v6632_v11 = vld [vmem:[%s7125_s27 + $0x904] sm:$0xf]  ;;  %v5449_v12 = vld [vmem:[%s7125_s27 + $0x910] sm:$0xf0]  ;;  %v5324_v35 = vor.u32 %v6600_v5, %v5321_v6 }
 0x113   : > { %3679 = vmatpush.bf16.msra.mxu1 %v5484_v55  ;;  %v6664_v14 = vld [vmem:[%s7125_s27 + $0xa04] sm:$0xf]  ;;  %v5577_v25 = vld [vmem:[%s7125_s27 + $0xa10] sm:$0xf0]  ;;  %v5452_v42 = vor.u32 %v6632_v11, %v5449_v12 }
 0x114   : > { %3692 = vmatpush.bf16.msra.mxu2 %v5612_v56  ;;  %v6696_v28 = vld [vmem:[%s7125_s27 + $0xb04] sm:$0xf]  ;;  %v5705_v29 = vld [vmem:[%s7125_s27 + $0xb10] sm:$0xf0]  ;;  %v5580_v44 = vor.u32 %v6664_v14, %v5577_v25 }
 0x115   : > { %3705 = vmatpush.bf16.msra.mxu3 %v5740_v61  ;;  %v6756_v31 = vld [vmem:[%s7125_s27 + $0xce4] sm:$0xf]  ;;  %v5945_v32 = vld [vmem:[%s7125_s27 + $0xcf0] sm:$0xf0]  ;;  %v5708_v47 = vor.u32 %v6696_v28, %v5705_v29 }
 0x116   : > { %v6788_v33 = vld [vmem:[%s7125_s27 + $0xde4] sm:$0xf]  ;;  %3667 = vmatpush.bf16.msra.mxu0 %v5340_v4  ;;  %v6073_v36 = vld [vmem:[%s7125_s27 + $0xdf0] sm:$0xf0]  ;;  %v5948_v50 = vor.u32 %v6756_v31, %v5945_v32 }
 0x117   : > { %v6820_v39 = vld [vmem:[%s7125_s27 + $0xee4] sm:$0xf]  ;;  %v6201_v41 = vld [vmem:[%s7125_s27 + $0xef0] sm:$0xf0]  ;;  %3680 = vmatpush.bf16.msra.mxu1 %v5468_v7  ;;  %v6076_v51 = vor.u32 %v6788_v33, %v6073_v36 }
 0x118   : > { %3693 = vmatpush.bf16.msra.mxu2 %v5596_v8  ;;  %v6852_v45 = vld [vmem:[%s7125_s27 + $0xfe4] sm:$0xf]  ;;  %v6329_v46 = vld [vmem:[%s7125_s27 + $0xff0] sm:$0xf0]  ;;  %v6204_v53 = vor.u32 %v6820_v39, %v6201_v41 }
 0x119   : > { %3706 = vmatpush.bf16.msra.mxu3 %v5724_v18  ;;  %v6752_v54 = vld [vmem:[%s7125_s27 + $0xcc4] sm:$0xf]  ;;  %v5929_v55 = vld [vmem:[%s7125_s27 + $0xcd0] sm:$0xf0]  ;;  %v6332_v57 = vor.u32 %v6852_v45, %v6329_v46  ;;  %v3398_v45 = vadd.f32 %v7616_v52, %v7612_v49 }
 0x11a   : > { %v6784_v56 = vld [vmem:[%s7125_s27 + $0xdc4] sm:$0xf]  ;;  %3668 = vmatpush.bf16.msra.mxu0 %v5324_v35  ;;  %v6057_v58 = vld [vmem:[%s7125_s27 + $0xdd0] sm:$0xf0]  ;;  %v5932_v0 = vor.u32 %v6752_v54, %v5929_v55 }
 0x11b   : > { %v6816_v59 = vld [vmem:[%s7125_s27 + $0xec4] sm:$0xf]  ;;  %v6185_v60 = vld [vmem:[%s7125_s27 + $0xed0] sm:$0xf0]  ;;  %3681 = vmatpush.bf16.msra.mxu1 %v5452_v42  ;;  %v6060_v1 = vor.u32 %v6784_v56, %v6057_v58  ;;  %v3411_v52 = vadd.f32 %v7662_v10, %v3398_v45 }
 0x11c   : > { %3694 = vmatpush.bf16.msra.mxu2 %v5580_v44  ;;  %v6848_v61 = vld [vmem:[%s7125_s27 + $0xfc4] sm:$0xf]  ;;  %v6313_v62 = vld [vmem:[%s7125_s27 + $0xfd0] sm:$0xf0]  ;;  %v6188_v2 = vor.u32 %v6816_v59, %v6185_v60  ;;  %v7740_v44 = vpop.f32.mrf.mxu1 }
 0x11d   : > { %3707 = vmatpush.bf16.msra.mxu3 %v5708_v47  ;;  %v6748_v3 = vld [vmem:[%s7125_s27 + $0xca4] sm:$0xf]  ;;  %v5913_v4 = vld [vmem:[%s7125_s27 + $0xcb0] sm:$0xf0]  ;;  %3669 = vmatmul.bf16.vlgmr.msra.gmra.mxu0 %v7400_v19  ;;  %v6316_v6 = vor.u32 %v6848_v61, %v6313_v62 }
 0x11e   : > { %3713 = vmatpush.bf16.msrb.mxu0 %v5948_v50  ;;  %v6780_v5 = vld [vmem:[%s7125_s27 + $0xda4] sm:$0xf]  ;;  %v6041_v7 = vld [vmem:[%s7125_s27 + $0xdb0] sm:$0xf0]  ;;  %3682 = vmatmul.bf16.vlgmr.msra.gmra.mxu1 %v7407_v24  ;;  %v5916_v15 = vor.u32 %v6748_v3, %v5913_v4  ;;  %v7736_v36 = vpop.f32.mrf.mxu0 }
 0x11f   : > { %3726 = vmatpush.bf16.msrb.mxu1 %v6076_v51  ;;  %v6812_v8 = vld [vmem:[%s7125_s27 + $0xea4] sm:$0xf]  ;;  %v6169_v11 = vld [vmem:[%s7125_s27 + $0xeb0] sm:$0xf0]  ;;  %3695 = vmatmul.bf16.vlgmr.msra.gmra.mxu2 %v7405_v23  ;;  %v6044_v18 = vor.u32 %v6780_v5, %v6041_v7 }
 0x120   : > { %3739 = vmatpush.bf16.msrb.mxu2 %v6204_v53  ;;  %v6844_v12 = vld [vmem:[%s7125_s27 + $0xfa4] sm:$0xf]  ;;  %v6297_v14 = vld [vmem:[%s7125_s27 + $0xfb0] sm:$0xf0]  ;;  %3708 = vmatmul.bf16.vlgmr.msra.gmra.mxu3 %v7411_v27  ;;  %v6172_v25 = vor.u32 %v6812_v8, %v6169_v11 }
 0x121   : > { %3752 = vmatpush.bf16.msrb.mxu3 %v6332_v57  ;;  %v6744_v28 = vld [vmem:[%s7125_s27 + $0xc84] sm:$0xf]  ;;  %v5897_v29 = vld [vmem:[%s7125_s27 + $0xc90] sm:$0xf0]  ;;  %v6300_v31 = vor.u32 %v6844_v12, %v6297_v14 }
 0x122   : > { %3714 = vmatpush.bf16.msrb.mxu0 %v5932_v0  ;;  %v6776_v30 = vld [vmem:[%s7125_s27 + $0xd84] sm:$0xf]  ;;  %v6025_v32 = vld [vmem:[%s7125_s27 + $0xd90] sm:$0xf0]  ;;  %v5900_v42 = vor.u32 %v6744_v28, %v5897_v29  ;;  %v7761_v7 = vpop.f32.mrf.mxu3 }
 0x123   : > { %3727 = vmatpush.bf16.msrb.mxu1 %v6060_v1  ;;  %v6808_v33 = vld [vmem:[%s7125_s27 + $0xe84] sm:$0xf]  ;;  %v6153_v35 = vld [vmem:[%s7125_s27 + $0xe90] sm:$0xf0]  ;;  %v6028_v46 = vor.u32 %v6776_v30, %v6025_v32 }
 0x124   : > { %3740 = vmatpush.bf16.msrb.mxu2 %v6188_v2  ;;  %v6840_v39 = vld [vmem:[%s7125_s27 + $0xf84] sm:$0xf]  ;;  %v6281_v41 = vld [vmem:[%s7125_s27 + $0xf90] sm:$0xf0]  ;;  %v6156_v47 = vor.u32 %v6808_v33, %v6153_v35  ;;  %v7756_v3 = vpop.f32.mrf.mxu2  ;;  %v3477_v14 = vpop.f32.mrf.mxu1 }
 0x125   : > { %3753 = vmatpush.bf16.msrb.mxu3 %v6316_v6  ;;  %v6740_v50 = vld [vmem:[%s7125_s27 + $0xc64] sm:$0xf]  ;;  %v5881_v51 = vld [vmem:[%s7125_s27 + $0xc70] sm:$0xf0]  ;;  %v6284_v54 = vor.u32 %v6840_v39, %v6281_v41 }
 0x126   : > { %3715 = vmatpush.bf16.msrb.mxu0 %v5916_v15  ;;  %v6772_v53 = vld [vmem:[%s7125_s27 + $0xd64] sm:$0xf]  ;;  %v6009_v55 = vld [vmem:[%s7125_s27 + $0xd70] sm:$0xf0]  ;;  %v5884_v49 = vor.u32 %v6740_v50, %v5881_v51  ;;  %v3464_v11 = vpop.f32.mrf.mxu0  ;;  %v3424_v15 = vadd.f32 %v7667_v22, %v3411_v52  ;;  %v4543_v52 = vld [vmem:[%s7125_s27 + $0x1e8] sm:$0xf] }
 0x127   : > { %3728 = vmatpush.bf16.msrb.mxu1 %v6044_v18  ;;  %v6804_v56 = vld [vmem:[%s7125_s27 + $0xe64] sm:$0xf]  ;;  %v6137_v57 = vld [vmem:[%s7125_s27 + $0xe70] sm:$0xf0]  ;;  %v6012_v60 = vor.u32 %v6772_v53, %v6009_v55 }
 0x128   : > { %3741 = vmatpush.bf16.msrb.mxu2 %v6172_v25  ;;  %v6836_v58 = vld [vmem:[%s7125_s27 + $0xf64] sm:$0xf]  ;;  %v6265_v59 = vld [vmem:[%s7125_s27 + $0xf70] sm:$0xf0]  ;;  %v6140_v61 = vor.u32 %v6804_v56, %v6137_v57 }
 0x129   : > { %3754 = vmatpush.bf16.msrb.mxu3 %v6300_v31  ;;  %v6736_v62 = vld [vmem:[%s7125_s27 + $0xc44] sm:$0xf]  ;;  %v5865_v0 = vld [vmem:[%s7125_s27 + $0xc50] sm:$0xf0]  ;;  %v6268_v2 = vor.u32 %v6836_v58, %v6265_v59 }
 0x12a   : > { %3716 = vmatpush.bf16.msrb.mxu0 %v5900_v42  ;;  %v6768_v1 = vld [vmem:[%s7125_s27 + $0xd44] sm:$0xf]  ;;  %v5993_v4 = vld [vmem:[%s7125_s27 + $0xd50] sm:$0xf0]  ;;  %v5868_v12 = vor.u32 %v6736_v62, %v5865_v0  ;;  %v6407_v62 = vld [vmem:[%s7125_s27 + $0x1f4] sm:$0xf0] }
 0x12b   : > { %3729 = vmatpush.bf16.msrb.mxu1 %v6028_v46  ;;  %v6800_v5 = vld [vmem:[%s7125_s27 + $0xe44] sm:$0xf]  ;;  %v6121_v6 = vld [vmem:[%s7125_s27 + $0xe50] sm:$0xf0]  ;;  %v5996_v18 = vor.u32 %v6768_v1, %v5993_v4  ;;  %v3437_v46 = vadd.f32 %v7677_v43, %v3424_v15  ;;  %v4415_v43 = vld [vmem:[%s7125_s27 + $0xe8] sm:$0xf]  ;;  %v4544_v14 = vor.u32 %v6407_v62, %v4543_v52 }
 0x12c   : > { %3742 = vmatpush.bf16.msrb.mxu2 %v6156_v47  ;;  %v6832_v10 = vld [vmem:[%s7125_s27 + $0xf44] sm:$0xf]  ;;  %v6249_v8 = vld [vmem:[%s7125_s27 + $0xf50] sm:$0xf0]  ;;  %v6124_v25 = vor.u32 %v6800_v5, %v6121_v6  ;;  %v3490_v59 = vpop.f32.mrf.mxu2  ;;  %v4671_v0 = vld [vmem:[%s7125_s27 + $0x2e8] sm:$0xf] }
 0x12d   : > { %3755 = vmatpush.bf16.msrb.mxu3 %v6284_v54  ;;  %v6732_v28 = vld [vmem:[%s7125_s27 + $0xc24] sm:$0xf]  ;;  %v5849_v29 = vld [vmem:[%s7125_s27 + $0xc30] sm:$0xf0]  ;;  %v6252_v31 = vor.u32 %v6832_v10, %v6249_v8  ;;  %v6439_v1 = vld [vmem:[%s7125_s27 + $0x2f4] sm:$0xf0] }
 0x12e   : > { %3717 = vmatpush.bf16.msrb.mxu0 %v5884_v49  ;;  %v6764_v30 = vld [vmem:[%s7125_s27 + $0xd24] sm:$0xf]  ;;  %v5977_v32 = vld [vmem:[%s7125_s27 + $0xd30] sm:$0xf0]  ;;  %v5852_v41 = vor.u32 %v6732_v28, %v5849_v29  ;;  %v6375_v49 = vld [vmem:[%s7125_s27 + $0xf4] sm:$0xf0]  ;;  %v4672_v15 = vor.u32 %v6439_v1, %v4671_v0 }
 0x12f   : > { %3730 = vmatpush.bf16.msrb.mxu1 %v6012_v60  ;;  %v6796_v33 = vld [vmem:[%s7125_s27 + $0xe24] sm:$0xf]  ;;  %v6105_v35 = vld [vmem:[%s7125_s27 + $0xe30] sm:$0xf0]  ;;  %v5980_v47 = vor.u32 %v6764_v30, %v5977_v32  ;;  %v3503_v60 = vpop.f32.mrf.mxu3  ;;  %v4799_v6 = vld [vmem:[%s7125_s27 + $0x3e8] sm:$0xf]  ;;  %v4416_v11 = vor.u32 %v6375_v49, %v4415_v43 }
 0x130   : > { %3743 = vmatpush.bf16.msrb.mxu2 %v6140_v61  ;;  %v6828_v39 = vld [vmem:[%s7125_s27 + $0xf24] sm:$0xf]  ;;  %v6233_v22 = vld [vmem:[%s7125_s27 + $0xf30] sm:$0xf0]  ;;  %v6108_v50 = vor.u32 %v6796_v33, %v6105_v35  ;;  %v6471_v10 = vld [vmem:[%s7125_s27 + $0x3f4] sm:$0xf0] }
 0x131   : > { %3756 = vmatpush.bf16.msrb.mxu3 %v6268_v2  ;;  %v6728_v42 = vld [vmem:[%s7125_s27 + $0xc04] sm:$0xf]  ;;  %v5833_v45 = vld [vmem:[%s7125_s27 + $0xc10] sm:$0xf0]  ;;  %v6236_v55 = vor.u32 %v6828_v39, %v6233_v22  ;;  %v3450_v2 = vadd.f32 %v7682_v48, %v3437_v46  ;;  %v6371_v48 = vld [vmem:[%s7125_s27 + $0xd4] sm:$0xf0]  ;;  %v4800_v28 = vor.u32 %v6471_v10, %v4799_v6 }
 0x132   : > { %3718 = vmatpush.bf16.msrb.mxu0 %v5868_v12  ;;  %v6760_v51 = vld [vmem:[%s7125_s27 + $0xd04] sm:$0xf]  ;;  %v5961_v53 = vld [vmem:[%s7125_s27 + $0xd10] sm:$0xf0]  ;;  %v5836_v61 = vor.u32 %v6728_v42, %v5833_v45  ;;  %v6403_v29 = vld [vmem:[%s7125_s27 + $0x1d4] sm:$0xf0] }
 0x133   : > { %3731 = vmatpush.bf16.msrb.mxu1 %v5996_v18  ;;  %v6792_v54 = vld [vmem:[%s7125_s27 + $0xe04] sm:$0xf]  ;;  %v6089_v56 = vld [vmem:[%s7125_s27 + $0xe10] sm:$0xf0]  ;;  %v5964_v4 = vor.u32 %v6760_v51, %v5961_v53  ;;  %v3463_v12 = vadd.f32 %v7736_v36, %v3450_v2  ;;  %v4399_v18 = vld [vmem:[%s7125_s27 + $0xc8] sm:$0xf] }
 0x134   : > { %3744 = vmatpush.bf16.msrb.mxu2 %v6124_v25  ;;  %v6824_v57 = vld [vmem:[%s7125_s27 + $0xf04] sm:$0xf]  ;;  %v6217_v58 = vld [vmem:[%s7125_s27 + $0xf10] sm:$0xf0]  ;;  %v6092_v5 = vor.u32 %v6792_v54, %v6089_v56  ;;  %v4527_v25 = vld [vmem:[%s7125_s27 + $0x1c8] sm:$0xf]  ;;  %v4400_v36 = vor.u32 %v6371_v48, %v4399_v18 }
 0x135   : > { %3757 = vmatpush.bf16.msrb.mxu3 %v6252_v31  ;;  %v6220_v8 = vor.u32 %v6824_v57, %v6217_v58  ;;  %v4655_v30 = vld [vmem:[%s7125_s27 + $0x2c8] sm:$0xf]  ;;  %v6435_v31 = vld [vmem:[%s7125_s27 + $0x2d4] sm:$0xf0]  ;;  %v3476_v35 = vadd.f32 %v7740_v44, %v3463_v12  ;;  %v4528_v39 = vor.u32 %v6403_v29, %v4527_v25 }
 0x136   : > { %3719 = vmatpush.bf16.msrb.mxu0 %v5852_v41  ;;  %v4783_v32 = vld [vmem:[%s7125_s27 + $0x3c8] sm:$0xf]  ;;  %v6467_v33 = vld [vmem:[%s7125_s27 + $0x3d4] sm:$0xf0]  ;;  %v4656_v22 = vor.u32 %v6435_v31, %v4655_v30 }
 0x137   : > { %3732 = vmatpush.bf16.msrb.mxu1 %v5980_v47  ;;  %v4383_v41 = vld [vmem:[%s7125_s27 + $0xa8] sm:$0xf]  ;;  %v6367_v42 = vld [vmem:[%s7125_s27 + $0xb4] sm:$0xf0]  ;;  %v4784_v46 = vor.u32 %v6467_v33, %v4783_v32  ;;  %v3489_v44 = vadd.f32 %v7756_v3, %v3476_v35 }
 0x138   : > { %3745 = vmatpush.bf16.msrb.mxu2 %v6108_v50  ;;  %v4511_v45 = vld [vmem:[%s7125_s27 + $0x1a8] sm:$0xf]  ;;  %v6399_v47 = vld [vmem:[%s7125_s27 + $0x1b4] sm:$0xf0] }
 0x139   : > { %3758 = vmatpush.bf16.msrb.mxu3 %v6236_v55  ;;  %v4639_v50 = vld [vmem:[%s7125_s27 + $0x2a8] sm:$0xf]  ;;  %v6431_v51 = vld [vmem:[%s7125_s27 + $0x2b4] sm:$0xf0]  ;;  %v4384_v55 = vor.u32 %v6367_v42, %v4383_v41  ;;  %v4512_v3 = vor.u32 %v6399_v47, %v4511_v45 }
 0x13a   : > { %3720 = vmatpush.bf16.msrb.mxu0 %v5836_v61  ;;  %v4767_v53 = vld [vmem:[%s7125_s27 + $0x3a8] sm:$0xf]  ;;  %v6463_v54 = vld [vmem:[%s7125_s27 + $0x3b4] sm:$0xf0]  ;;  %v4640_v56 = vor.u32 %v6431_v51, %v4639_v50  ;;  %v3502_v61 = vadd.f32 %v7761_v7, %v3489_v44 }
 0x13b   : > { %3733 = vmatpush.bf16.msrb.mxu1 %v5964_v4  ;;  %v4367_v57 = vld [vmem:[%s7125_s27 + $0x88] sm:$0xf]  ;;  %v6363_v58 = vld [vmem:[%s7125_s27 + $0x94] sm:$0xf0]  ;;  %v4768_v43 = vor.u32 %v6463_v54, %v4767_v53  ;;  %v3527_v4 = vpop.f32.mrf.mxu1 }
 0x13c   : > { %3746 = vmatpush.bf16.msrb.mxu2 %v6092_v5  ;;  %v4495_v59 = vld [vmem:[%s7125_s27 + $0x188] sm:$0xf]  ;;  %v6395_v49 = vld [vmem:[%s7125_s27 + $0x194] sm:$0xf0]  ;;  %v3514_v62 = vpop.f32.mrf.mxu0  ;;  %v4368_v2 = vor.u32 %v6363_v58, %v4367_v57 }
 0x13d   : > { %3759 = vmatpush.bf16.msrb.mxu3 %v6220_v8  ;;  %3721 = vmatmul.bf16.vlgmr.msrb.gmra.mxu0 %v7488_v13  ;;  %v4623_v52 = vld [vmem:[%s7125_s27 + $0x288] sm:$0xf]  ;;  %v6427_v60 = vld [vmem:[%s7125_s27 + $0x294] sm:$0xf0]  ;;  %v3515_v5 = vadd.f32 %v3514_v62, %v3502_v61  ;;  %v4496_v6 = vor.u32 %v6395_v49, %v4495_v59 }
 0x13e   : > { %3765 = vmatpush.bf16.msra.mxu0 %v4416_v11  ;;  %3734 = vmatmul.bf16.vlgmr.msrb.gmra.mxu1 %v7495_v21  ;;  %v4751_v0 = vld [vmem:[%s7125_s27 + $0x388] sm:$0xf]  ;;  %v6459_v1 = vld [vmem:[%s7125_s27 + $0x394] sm:$0xf0]  ;;  %v4624_v10 = vor.u32 %v6427_v60, %v4623_v52 }
 0x13f   : > { %3778 = vmatpush.bf16.msra.mxu1 %v4544_v14  ;;  %3747 = vmatmul.bf16.vlgmr.msrb.gmra.mxu2 %v7493_v20  ;;  %v4351_v7 = vld [vmem:[%s7125_s27 + $0x68] sm:$0xf]  ;;  %v6359_v8 = vld [vmem:[%s7125_s27 + $0x74] sm:$0xf0]  ;;  %v4752_v12 = vor.u32 %v6459_v1, %v4751_v0  ;;  %v3528_v29 = vadd.f32 %v3527_v4, %v3515_v5 }
 0x140   : > { %3791 = vmatpush.bf16.msra.mxu2 %v4672_v15  ;;  %3760 = vmatmul.bf16.vlgmr.msrb.gmra.mxu3 %v7499_v26  ;;  %v4479_v11 = vld [vmem:[%s7125_s27 + $0x168] sm:$0xf]  ;;  %v6391_v14 = vld [vmem:[%s7125_s27 + $0x174] sm:$0xf0] }
 0x141   : > { %3804 = vmatpush.bf16.msra.mxu3 %v4800_v28  ;;  %v4607_v15 = vld [vmem:[%s7125_s27 + $0x268] sm:$0xf]  ;;  %v6423_v18 = vld [vmem:[%s7125_s27 + $0x274] sm:$0xf0]  ;;  %v4352_v28 = vor.u32 %v6359_v8, %v4351_v7  ;;  %v4480_v30 = vor.u32 %v6391_v14, %v4479_v11 }
 0x142   : > { %3766 = vmatpush.bf16.msra.mxu0 %v4400_v36  ;;  %v4735_v48 = vld [vmem:[%s7125_s27 + $0x368] sm:$0xf]  ;;  %v6455_v25 = vld [vmem:[%s7125_s27 + $0x374] sm:$0xf0]  ;;  %v4608_v31 = vor.u32 %v6423_v18, %v4607_v15 }
 0x143   : > { %3779 = vmatpush.bf16.msra.mxu1 %v4528_v39  ;;  %v4335_v32 = vld [vmem:[%s7125_s27 + $0x48] sm:$0xf]  ;;  %v6355_v33 = vld [vmem:[%s7125_s27 + $0x54] sm:$0xf0]  ;;  %v4736_v35 = vor.u32 %v6455_v25, %v4735_v48  ;;  %v3529_v53 = vpop.f32.mrf.mxu1 }
 0x144   : > { %3792 = vmatpush.bf16.msra.mxu2 %v4656_v22  ;;  %v4463_v36 = vld [vmem:[%s7125_s27 + $0x148] sm:$0xf]  ;;  %v3540_v39 = vpop.f32.mrf.mxu2  ;;  %v6387_v22 = vld [vmem:[%s7125_s27 + $0x154] sm:$0xf0]  ;;  %v3516_v51 = vpop.f32.mrf.mxu0  ;;  %v4336_v44 = vor.u32 %v6355_v33, %v4335_v32 }
 0x145   : > { %3805 = vmatpush.bf16.msra.mxu3 %v4784_v46  ;;  %v4591_v41 = vld [vmem:[%s7125_s27 + $0x248] sm:$0xf]  ;;  %v6419_v42 = vld [vmem:[%s7125_s27 + $0x254] sm:$0xf0]  ;;  %v3541_v45 = vadd.f32 %v3540_v39, %v3528_v29  ;;  %v3553_v46 = vpop.f32.mrf.mxu3 }
 0x146   : > { %3767 = vmatpush.bf16.msra.mxu0 %v4384_v55  ;;  %v4719_v47 = vld [vmem:[%s7125_s27 + $0x348] sm:$0xf]  ;;  %v6451_v50 = vld [vmem:[%s7125_s27 + $0x354] sm:$0xf0]  ;;  %v4464_v55 = vor.u32 %v6387_v22, %v4463_v36 }
 0x147   : > { %3780 = vmatpush.bf16.msra.mxu1 %v4512_v3  ;;  %v3554_v54 = vadd.f32 %v3553_v46, %v3541_v45  ;;  %v4592_v3 = vor.u32 %v6419_v42, %v4591_v41  ;;  %v6351_v57 = vld [vmem:[%s7125_s27 + $0x34] sm:$0xf0]  ;;  %v4447_v58 = vld [vmem:[%s7125_s27 + $0x128] sm:$0xf]  ;;  %v4720_v59 = vor.u32 %v6451_v50, %v4719_v47 }
 0x148   : > { %3793 = vmatpush.bf16.msra.mxu2 %v4640_v56  ;;  %v4319_v56 = vld [vmem:[%s7125_s27 + $0x28] sm:$0xf]  ;;  %v6415_v52 = vld [vmem:[%s7125_s27 + $0x234] sm:$0xf0] }
 0x149   : > { %3806 = vmatpush.bf16.msra.mxu3 %v4768_v43  ;;  %v6383_v43 = vld [vmem:[%s7125_s27 + $0x134] sm:$0xf0]  ;;  %v4575_v49 = vld [vmem:[%s7125_s27 + $0x228] sm:$0xf]  ;;  %v4181_v60 = vmax.f32 %v3554_v54, 0.0  ;;  %v4320_v0 = vor.u32 %v6351_v57, %v4319_v56 }
 0x14a   : > { %3768 = vmatpush.bf16.msra.mxu0 %v4368_v2  ;;  %v4703_v61 = vld [vmem:[%s7125_s27 + $0x328] sm:$0xf]  ;;  %v6447_v62 = vld [vmem:[%s7125_s27 + $0x334] sm:$0xf0]  ;;  %v4448_v4 = vor.u32 %v6383_v43, %v4447_v58  ;;  %v4576_v5 = vor.u32 %v6415_v52, %v4575_v49 }
 0x14b   : > { %3781 = vmatpush.bf16.msra.mxu1 %v4496_v6  ;;  %v4303_v1 = vld [vmem:[%s7125_s27 + $0x8] sm:$0xf]  ;;  %v6347_v2 = vld [vmem:[%s7125_s27 + $0x14] sm:$0xf0]  ;;  %4185 = vst [vmem:[%s7857_s24] sm:$0xff] %v4181_v60  ;;  %v4704_v8 = vor.u32 %v6447_v62, %v4703_v61 }
 0x14c   : > { %3794 = vmatpush.bf16.msra.mxu2 %v4624_v10  ;;  %v4431_v6 = vld [vmem:[%s7125_s27 + $0x108] sm:$0xf]  ;;  %v6379_v10 = vld [vmem:[%s7125_s27 + $0x114] sm:$0xf0]  ;;  %v3542_v15 = vpop.f32.mrf.mxu2  ;;  %v4304_v29 = vor.u32 %v6347_v2, %v4303_v1 }
 0x14d   : > { %3807 = vmatpush.bf16.msra.mxu3 %v4752_v12  ;;  %v4559_v7 = vld [vmem:[%s7125_s27 + $0x208] sm:$0xf]  ;;  %v6411_v11 = vld [vmem:[%s7125_s27 + $0x214] sm:$0xf0]  ;;  %v4432_v33 = vor.u32 %v6379_v10, %v4431_v6 }
 0x14e   : > { %3769 = vmatpush.bf16.msra.mxu0 %v4352_v28  ;;  %v4687_v12 = vld [vmem:[%s7125_s27 + $0x308] sm:$0xf]  ;;  %v6443_v14 = vld [vmem:[%s7125_s27 + $0x314] sm:$0xf0]  ;;  %v3555_v28 = vpop.f32.mrf.mxu3  ;;  %v4560_v36 = vor.u32 %v6411_v11, %v4559_v7 }
 0x14f   : > { %3782 = vmatpush.bf16.msra.mxu1 %v4480_v30  ;;  %v4927_v18 = vld [vmem:[%s7125_s27 + $0x4e8] sm:$0xf]  ;;  %v6503_v48 = vld [vmem:[%s7125_s27 + $0x4f4] sm:$0xf0]  ;;  %v4688_v22 = vor.u32 %v6443_v14, %v4687_v12 }
 0x150   : > { %3795 = vmatpush.bf16.msra.mxu2 %v4608_v31  ;;  %v5055_v25 = vld [vmem:[%s7125_s27 + $0x5e8] sm:$0xf]  ;;  %v6535_v30 = vld [vmem:[%s7125_s27 + $0x5f4] sm:$0xf0]  ;;  %v4928_v41 = vor.u32 %v6503_v48, %v4927_v18 }
 0x151   : > { %3808 = vmatpush.bf16.msra.mxu3 %v4736_v35  ;;  %v5183_v31 = vld [vmem:[%s7125_s27 + $0x6e8] sm:$0xf]  ;;  %v6567_v32 = vld [vmem:[%s7125_s27 + $0x6f4] sm:$0xf0]  ;;  %v5056_v42 = vor.u32 %v6535_v30, %v5055_v25 }
 0x152   : > { %3770 = vmatpush.bf16.msra.mxu0 %v4336_v44  ;;  %v5311_v35 = vld [vmem:[%s7125_s27 + $0x7e8] sm:$0xf]  ;;  %v6599_v39 = vld [vmem:[%s7125_s27 + $0x7f4] sm:$0xf0]  ;;  %v5184_v45 = vor.u32 %v6567_v32, %v5183_v31 }
 0x153   : > { %3783 = vmatpush.bf16.msra.mxu1 %v4464_v55  ;;  %v4911_v46 = vld [vmem:[%s7125_s27 + $0x4c8] sm:$0xf]  ;;  %v6499_v47 = vld [vmem:[%s7125_s27 + $0x4d4] sm:$0xf0]  ;;  %v5312_v51 = vor.u32 %v6599_v39, %v5311_v35 }
 0x154   : > { %3796 = vmatpush.bf16.msra.mxu2 %v4592_v3  ;;  %v5039_v50 = vld [vmem:[%s7125_s27 + $0x5c8] sm:$0xf]  ;;  %v6531_v44 = vld [vmem:[%s7125_s27 + $0x5d4] sm:$0xf0]  ;;  %v4912_v56 = vor.u32 %v6499_v47, %v4911_v46 }
 0x155   : > { %3809 = vmatpush.bf16.msra.mxu3 %v4720_v59  ;;  %v5167_v53 = vld [vmem:[%s7125_s27 + $0x6c8] sm:$0xf]  ;;  %v6563_v54 = vld [vmem:[%s7125_s27 + $0x6d4] sm:$0xf0]  ;;  %v5040_v57 = vor.u32 %v6531_v44, %v5039_v50 }
 0x156   : > { %3771 = vmatpush.bf16.msra.mxu0 %v4320_v0  ;;  %v5295_v55 = vld [vmem:[%s7125_s27 + $0x7c8] sm:$0xf]  ;;  %v6595_v3 = vld [vmem:[%s7125_s27 + $0x7d4] sm:$0xf0]  ;;  %v5168_v58 = vor.u32 %v6563_v54, %v5167_v53 }
 0x157   : > { %3784 = vmatpush.bf16.msra.mxu1 %v4448_v4  ;;  %v4895_v59 = vld [vmem:[%s7125_s27 + $0x4a8] sm:$0xf]  ;;  %v6495_v43 = vld [vmem:[%s7125_s27 + $0x4b4] sm:$0xf0]  ;;  %v5296_v52 = vor.u32 %v6595_v3, %v5295_v55 }
 0x158   : > { %3797 = vmatpush.bf16.msra.mxu2 %v4576_v5  ;;  %v5023_v49 = vld [vmem:[%s7125_s27 + $0x5a8] sm:$0xf]  ;;  %v6527_v60 = vld [vmem:[%s7125_s27 + $0x5b4] sm:$0xf0]  ;;  %v4896_v2 = vor.u32 %v6495_v43, %v4895_v59 }
 0x159   : > { %3810 = vmatpush.bf16.msra.mxu3 %v4704_v8  ;;  %v5151_v61 = vld [vmem:[%s7125_s27 + $0x6a8] sm:$0xf]  ;;  %v6559_v62 = vld [vmem:[%s7125_s27 + $0x6b4] sm:$0xf0]  ;;  %v5024_v5 = vor.u32 %v6527_v60, %v5023_v49  ;;  %v6903_v8 = vld [vmem:[%s7131_s5] sm:$0xf] }
 0x15a   : > { %3772 = vmatpush.bf16.msra.mxu0 %v4304_v29  ;;  %v5279_v0 = vld [vmem:[%s7125_s27 + $0x7a8] sm:$0xf]  ;;  %v6591_v1 = vld [vmem:[%s7125_s27 + $0x7b4] sm:$0xf0]  ;;  %v5152_v6 = vor.u32 %v6559_v62, %v5151_v61  ;;  %v782_v11 = vperm.slane %v6903_v8, 1  ;;  %v3566_v29 = vpop.f32.mrf.mxu0 }
 0x15b   : > { %3785 = vmatpush.bf16.msra.mxu1 %v4432_v33  ;;  %v4879_v4 = vld [vmem:[%s7125_s27 + $0x488] sm:$0xf]  ;;  %v6491_v10 = vld [vmem:[%s7125_s27 + $0x494] sm:$0xf0]  ;;  %v5280_v12 = vor.u32 %v6591_v1, %v5279_v0  ;;  %v3579_v39 = vpop.f32.mrf.mxu1 }
 0x15c   : > { %3798 = vmatpush.bf16.msra.mxu2 %v4560_v36  ;;  %v5007_v7 = vld [vmem:[%s7125_s27 + $0x588] sm:$0xf]  ;;  %v6523_v14 = vld [vmem:[%s7125_s27 + $0x594] sm:$0xf0]  ;;  %v4880_v28 = vor.u32 %v6491_v10, %v4879_v4  ;;  %v3567_v35 = vadd.f32 %v3566_v29, %v782_v11 }
 0x15d   : > { %3811 = vmatpush.bf16.msra.mxu3 %v4688_v22  ;;  %3773 = vmatmul.bf16.vlgmr.msra.gmra.mxu0 %v7237_v9  ;;  %v5135_v15 = vld [vmem:[%s7125_s27 + $0x688] sm:$0xf]  ;;  %v6555_v18 = vld [vmem:[%s7125_s27 + $0x694] sm:$0xf0]  ;;  %v5008_v30 = vor.u32 %v6523_v14, %v5007_v7 }
 0x15e   : > { %3817 = vmatpush.bf16.msrb.mxu0 %v4928_v41  ;;  %3786 = vmatmul.bf16.vlgmr.msra.gmra.mxu1 %v7250_v17  ;;  %v5263_v48 = vld [vmem:[%s7125_s27 + $0x788] sm:$0xf]  ;;  %v6587_v25 = vld [vmem:[%s7125_s27 + $0x794] sm:$0xf0]  ;;  %v5136_v31 = vor.u32 %v6555_v18, %v5135_v15  ;;  %v3580_v50 = vadd.f32 %v3579_v39, %v3567_v35 }
 0x15f   : > { %3830 = vmatpush.bf16.msrb.mxu1 %v5056_v42  ;;  %3799 = vmatmul.bf16.vlgmr.msra.gmra.mxu2 %v7226_v63  ;;  %v4863_v32 = vld [vmem:[%s7125_s27 + $0x468] sm:$0xf]  ;;  %v6487_v33 = vld [vmem:[%s7125_s27 + $0x474] sm:$0xf0]  ;;  %v5264_v22 = vor.u32 %v6587_v25, %v5263_v48 }
 0x160   : > { %3843 = vmatpush.bf16.msrb.mxu2 %v5184_v45  ;;  %3812 = vmatmul.bf16.vlgmr.msra.gmra.mxu3 %v7248_v16  ;;  %v4991_v36 = vld [vmem:[%s7125_s27 + $0x568] sm:$0xf]  ;;  %v6519_v41 = vld [vmem:[%s7125_s27 + $0x574] sm:$0xf0] }
 0x161   : > { %3856 = vmatpush.bf16.msrb.mxu3 %v5312_v51  ;;  %v5119_v42 = vld [vmem:[%s7125_s27 + $0x668] sm:$0xf]  ;;  %v6551_v45 = vld [vmem:[%s7125_s27 + $0x674] sm:$0xf0]  ;;  %v4864_v51 = vor.u32 %v6487_v33, %v4863_v32  ;;  %v4992_v44 = vor.u32 %v6519_v41, %v4991_v36 }
 0x162   : > { %3818 = vmatpush.bf16.msrb.mxu0 %v4912_v56  ;;  %v5247_v46 = vld [vmem:[%s7125_s27 + $0x768] sm:$0xf]  ;;  %v6583_v47 = vld [vmem:[%s7125_s27 + $0x774] sm:$0xf0]  ;;  %v5120_v53 = vor.u32 %v6551_v45, %v5119_v42  ;;  %v3592_v56 = vpop.f32.mrf.mxu2  ;;  %v3568_v1 = vpop.f32.mrf.mxu0 }
 0x163   : > { %3831 = vmatpush.bf16.msrb.mxu1 %v5040_v57  ;;  %v4847_v54 = vld [vmem:[%s7125_s27 + $0x448] sm:$0xf]  ;;  %v6483_v55 = vld [vmem:[%s7125_s27 + $0x454] sm:$0xf0]  ;;  %v5248_v57 = vor.u32 %v6583_v47, %v5247_v46  ;;  %v3593_v49 = vadd.f32 %v3592_v56, %v3580_v50  ;;  %v3581_v7 = vpop.f32.mrf.mxu1 }
 0x164   : > { %3844 = vmatpush.bf16.msrb.mxu2 %v5168_v58  ;;  %v4975_v3 = vld [vmem:[%s7125_s27 + $0x548] sm:$0xf]  ;;  %v6515_v58 = vld [vmem:[%s7125_s27 + $0x554] sm:$0xf0]  ;;  %v4848_v62 = vor.u32 %v6483_v55, %v4847_v54 }
 0x165   : > { %3857 = vmatpush.bf16.msrb.mxu3 %v5296_v52  ;;  %v5103_v59 = vld [vmem:[%s7125_s27 + $0x648] sm:$0xf]  ;;  %v6547_v43 = vld [vmem:[%s7125_s27 + $0x654] sm:$0xf0]  ;;  %v3605_v52 = vpop.f32.mrf.mxu3 }
 0x166   : > { %3819 = vmatpush.bf16.msrb.mxu0 %v4896_v2  ;;  %v5231_v60 = vld [vmem:[%s7125_s27 + $0x748] sm:$0xf]  ;;  %v6579_v61 = vld [vmem:[%s7125_s27 + $0x754] sm:$0xf0]  ;;  %v7926_v0 = vadd.f32 %v3605_v52, %v3593_v49  ;;  %v4976_v2 = vor.u32 %v6515_v58, %v4975_v3  ;;  %v5104_v4 = vor.u32 %v6547_v43, %v5103_v59 }
 0x167   : > { %3832 = vmatpush.bf16.msrb.mxu1 %v5024_v5  ;;  %v4831_v5 = vld [vmem:[%s7125_s27 + $0x428] sm:$0xf]  ;;  %v5232_v8 = vor.u32 %v6579_v61, %v5231_v60  ;;  %v6511_v11 = vld [vmem:[%s7125_s27 + $0x534] sm:$0xf0] }
 0x168   : > { %3845 = vmatpush.bf16.msrb.mxu2 %v5152_v6  ;;  %v6479_v6 = vld [vmem:[%s7125_s27 + $0x434] sm:$0xf0]  ;;  %v4959_v10 = vld [vmem:[%s7125_s27 + $0x528] sm:$0xf] }
 0x169   : > { %3858 = vmatpush.bf16.msrb.mxu3 %v5280_v12  ;;  %v5087_v12 = vld [vmem:[%s7125_s27 + $0x628] sm:$0xf]  ;;  %v6543_v14 = vld [vmem:[%s7125_s27 + $0x634] sm:$0xf0]  ;;  %v4832_v48 = vor.u32 %v6479_v6, %v4831_v5  ;;  %v4960_v29 = vor.u32 %v6511_v11, %v4959_v10 }
 0x16a   : > { %3820 = vmatpush.bf16.msrb.mxu0 %v4880_v28  ;;  %v5215_v15 = vld [vmem:[%s7125_s27 + $0x728] sm:$0xf]  ;;  %v6575_v18 = vld [vmem:[%s7125_s27 + $0x734] sm:$0xf0]  ;;  %v3594_v36 = vpop.f32.mrf.mxu2 }
 0x16b   : > { %3833 = vmatpush.bf16.msrb.mxu1 %v5008_v30  ;;  %v4815_v25 = vld [vmem:[%s7125_s27 + $0x408] sm:$0xf]  ;;  %v6475_v28 = vld [vmem:[%s7125_s27 + $0x414] sm:$0xf0]  ;;  %v5088_v30 = vor.u32 %v6543_v14, %v5087_v12  ;;  %v5216_v35 = vor.u32 %v6575_v18, %v5215_v15 }
 0x16c   : > { %3846 = vmatpush.bf16.msrb.mxu2 %v5136_v31  ;;  %v4943_v31 = vld [vmem:[%s7125_s27 + $0x508] sm:$0xf]  ;;  %v6507_v32 = vld [vmem:[%s7125_s27 + $0x514] sm:$0xf0]  ;;  %v4816_v50 = vor.u32 %v6475_v28, %v4815_v25 }
 0x16d   : > { %3859 = vmatpush.bf16.msrb.mxu3 %v5264_v22  ;;  %v5071_v33 = vld [vmem:[%s7125_s27 + $0x608] sm:$0xf]  ;;  %v6539_v39 = vld [vmem:[%s7125_s27 + $0x614] sm:$0xf0]  ;;  %v3607_v42 = vpop.f32.mrf.mxu3  ;;  %v4944_v54 = vor.u32 %v6507_v32, %v4943_v31 }
 0x16e   : > { %3821 = vmatpush.bf16.msrb.mxu0 %v4864_v51  ;;  %v5199_v22 = vld [vmem:[%s7125_s27 + $0x708] sm:$0xf]  ;;  %v6571_v41 = vld [vmem:[%s7125_s27 + $0x714] sm:$0xf0]  ;;  %v5072_v55 = vor.u32 %v6539_v39, %v5071_v33 }
 0x16f   : > { %3834 = vmatpush.bf16.msrb.mxu1 %v4992_v44  ;;  %v5439_v45 = vld [vmem:[%s7125_s27 + $0x8e8] sm:$0xf]  ;;  %v6631_v46 = vld [vmem:[%s7125_s27 + $0x8f4] sm:$0xf0] }
 0x170   : > { %3847 = vmatpush.bf16.msrb.mxu2 %v5120_v53  ;;  %v5567_v47 = vld [vmem:[%s7125_s27 + $0x9e8] sm:$0xf]  ;;  %v6663_v51 = vld [vmem:[%s7125_s27 + $0x9f4] sm:$0xf0]  ;;  %v5440_v58 = vor.u32 %v6631_v46, %v5439_v45 }
 0x171   : > { %3860 = vmatpush.bf16.msrb.mxu3 %v5248_v57  ;;  %v5695_v44 = vld [vmem:[%s7125_s27 + $0xae8] sm:$0xf]  ;;  %v6695_v53 = vld [vmem:[%s7125_s27 + $0xaf4] sm:$0xf0]  ;;  %v5200_v57 = vor.u32 %v6571_v41, %v5199_v22  ;;  %v5568_v59 = vor.u32 %v6663_v51, %v5567_v47 }
 0x172   : > { %3822 = vmatpush.bf16.msrb.mxu0 %v4848_v62  ;;  %v5823_v3 = vld [vmem:[%s7125_s27 + $0xbe8] sm:$0xf]  ;;  %v6727_v56 = vld [vmem:[%s7125_s27 + $0xbf4] sm:$0xf0]  ;;  %v5696_v43 = vor.u32 %v6695_v53, %v5695_v44 }
 0x173   : > { %3835 = vmatpush.bf16.msrb.mxu1 %v4976_v2  ;;  %v5423_v49 = vld [vmem:[%s7125_s27 + $0x8c8] sm:$0xf]  ;;  %v6627_v52 = vld [vmem:[%s7125_s27 + $0x8d4] sm:$0xf0]  ;;  %v5824_v61 = vor.u32 %v6727_v56, %v5823_v3 }
 0x174   : > { %3848 = vmatpush.bf16.msrb.mxu2 %v5104_v4  ;;  %v5551_v60 = vld [vmem:[%s7125_s27 + $0x9c8] sm:$0xf]  ;;  %v6659_v62 = vld [vmem:[%s7125_s27 + $0x9d4] sm:$0xf0]  ;;  %v5424_v6 = vor.u32 %v6627_v52, %v5423_v49 }
 0x175   : > { %3861 = vmatpush.bf16.msrb.mxu3 %v5232_v8  ;;  %v5679_v1 = vld [vmem:[%s7125_s27 + $0xac8] sm:$0xf]  ;;  %v6691_v2 = vld [vmem:[%s7125_s27 + $0xad4] sm:$0xf0]  ;;  %v5552_v10 = vor.u32 %v6659_v62, %v5551_v60 }
 0x176   : > { %3823 = vmatpush.bf16.msrb.mxu0 %v4832_v48  ;;  %v5807_v4 = vld [vmem:[%s7125_s27 + $0xbc8] sm:$0xf]  ;;  %v6723_v5 = vld [vmem:[%s7125_s27 + $0xbd4] sm:$0xf0]  ;;  %v5680_v7 = vor.u32 %v6691_v2, %v5679_v1 }
 0x177   : > { %3836 = vmatpush.bf16.msrb.mxu1 %v4960_v29  ;;  %v5407_v8 = vld [vmem:[%s7125_s27 + $0x8a8] sm:$0xf]  ;;  %v6623_v11 = vld [vmem:[%s7125_s27 + $0x8b4] sm:$0xf0]  ;;  %v5808_v14 = vor.u32 %v6723_v5, %v5807_v4 }
 0x178   : > { %3849 = vmatpush.bf16.msrb.mxu2 %v5088_v30  ;;  %v5535_v12 = vld [vmem:[%s7125_s27 + $0x9a8] sm:$0xf]  ;;  %v6655_v15 = vld [vmem:[%s7125_s27 + $0x9b4] sm:$0xf0]  ;;  %v5408_v29 = vor.u32 %v6623_v11, %v5407_v8 }
 0x179   : > { %3862 = vmatpush.bf16.msrb.mxu3 %v5216_v35  ;;  %v5663_v18 = vld [vmem:[%s7125_s27 + $0xaa8] sm:$0xf]  ;;  %v6687_v48 = vld [vmem:[%s7125_s27 + $0xab4] sm:$0xf0]  ;;  %v5536_v30 = vor.u32 %v6655_v15, %v5535_v12 }
 0x17a   : > { %3824 = vmatpush.bf16.msrb.mxu0 %v4816_v50  ;;  %v5791_v25 = vld [vmem:[%s7125_s27 + $0xba8] sm:$0xf]  ;;  %v6719_v28 = vld [vmem:[%s7125_s27 + $0xbb4] sm:$0xf0]  ;;  %v5664_v31 = vor.u32 %v6687_v48, %v5663_v18  ;;  %v7980_v47 = vpop.f32.mrf.mxu0 }
 0x17b   : > { %3837 = vmatpush.bf16.msrb.mxu1 %v4944_v54  ;;  %v5391_v32 = vld [vmem:[%s7125_s27 + $0x888] sm:$0xf]  ;;  %v6619_v33 = vld [vmem:[%s7125_s27 + $0x894] sm:$0xf0]  ;;  %v5792_v35 = vor.u32 %v6719_v28, %v5791_v25 }
 0x17c   : > { %3850 = vmatpush.bf16.msrb.mxu2 %v5072_v55  ;;  %v5519_v36 = vld [vmem:[%s7125_s27 + $0x988] sm:$0xf]  ;;  %v6651_v39 = vld [vmem:[%s7125_s27 + $0x994] sm:$0xf0]  ;;  %v5392_v46 = vor.u32 %v6619_v33, %v5391_v32  ;;  %v7985_v55 = vpop.f32.mrf.mxu1 }
 0x17d   : > { %3863 = vmatpush.bf16.msrb.mxu3 %v5200_v57  ;;  %3825 = vmatmul.bf16.vlgmr.msrb.gmra.mxu0 %v7319_v37  ;;  %v5647_v22 = vld [vmem:[%s7125_s27 + $0xa88] sm:$0xf]  ;;  %v6683_v41 = vld [vmem:[%s7125_s27 + $0xa94] sm:$0xf0]  ;;  %v5520_v50 = vor.u32 %v6651_v39, %v5519_v36 }
 0x17e   : > { %3869 = vmatpush.bf16.msra.mxu0 %v5440_v58  ;;  %3838 = vmatmul.bf16.vlgmr.msrb.gmra.mxu1 %v7323_v40  ;;  %v5775_v42 = vld [vmem:[%s7125_s27 + $0xb88] sm:$0xf]  ;;  %v6715_v45 = vld [vmem:[%s7125_s27 + $0xb94] sm:$0xf0]  ;;  %v5648_v51 = vor.u32 %v6683_v41, %v5647_v22 }
 0x17f   : > { %3882 = vmatpush.bf16.msra.mxu1 %v5568_v59  ;;  %3851 = vmatmul.bf16.vlgmr.msrb.gmra.mxu2 %v7315_v34  ;;  %v5375_v44 = vld [vmem:[%s7125_s27 + $0x868] sm:$0xf]  ;;  %v6615_v53 = vld [vmem:[%s7125_s27 + $0x874] sm:$0xf0]  ;;  %v5776_v3 = vor.u32 %v6715_v45, %v5775_v42 }
 0x180   : > { %3895 = vmatpush.bf16.msra.mxu2 %v5696_v43  ;;  %3864 = vmatmul.bf16.vlgmr.msrb.gmra.mxu3 %v7321_v38  ;;  %v5503_v54 = vld [vmem:[%s7125_s27 + $0x968] sm:$0xf]  ;;  %v6647_v56 = vld [vmem:[%s7125_s27 + $0x974] sm:$0xf0]  ;;  %v5376_v49 = vor.u32 %v6615_v53, %v5375_v44 }
 0x181   : > { %3908 = vmatpush.bf16.msra.mxu3 %v5824_v61  ;;  %v5631_v57 = vld [vmem:[%s7125_s27 + $0xa68] sm:$0xf]  ;;  %v6679_v58 = vld [vmem:[%s7125_s27 + $0xa74] sm:$0xf0]  ;;  %v5504_v52 = vor.u32 %v6647_v56, %v5503_v54 }
 0x182   : > { %3870 = vmatpush.bf16.msra.mxu0 %v5424_v6  ;;  %v5759_v59 = vld [vmem:[%s7125_s27 + $0xb68] sm:$0xf]  ;;  %v6711_v43 = vld [vmem:[%s7125_s27 + $0xb74] sm:$0xf0]  ;;  %v5632_v60 = vor.u32 %v6679_v58, %v5631_v57  ;;  %v7995_v2 = vpop.f32.mrf.mxu2 }
 0x183   : > { %3883 = vmatpush.bf16.msra.mxu1 %v5552_v10  ;;  %v5359_v61 = vld [vmem:[%s7125_s27 + $0x848] sm:$0xf]  ;;  %v6611_v62 = vld [vmem:[%s7125_s27 + $0x854] sm:$0xf0]  ;;  %v5760_v4 = vor.u32 %v6711_v43, %v5759_v59 }
 0x184   : > { %3896 = vmatpush.bf16.msra.mxu2 %v5680_v7  ;;  %v5487_v1 = vld [vmem:[%s7125_s27 + $0x948] sm:$0xf]  ;;  %v6643_v5 = vld [vmem:[%s7125_s27 + $0x954] sm:$0xf0]  ;;  %v8000_v7 = vpop.f32.mrf.mxu3  ;;  %v5360_v12 = vor.u32 %v6611_v62, %v5359_v61 }
 0x185   : > { %3909 = vmatpush.bf16.msra.mxu3 %v5808_v14  ;;  %v5615_v6 = vld [vmem:[%s7125_s27 + $0xa48] sm:$0xf]  ;;  %v6675_v10 = vld [vmem:[%s7125_s27 + $0xa54] sm:$0xf0]  ;;  %v3620_v14 = vpop.f32.mrf.mxu0  ;;  %v5488_v15 = vor.u32 %v6643_v5, %v5487_v1 }
 0x186   : > { %3871 = vmatpush.bf16.msra.mxu0 %v5408_v29  ;;  %v5743_v8 = vld [vmem:[%s7125_s27 + $0xb48] sm:$0xf]  ;;  %v6707_v11 = vld [vmem:[%s7125_s27 + $0xb54] sm:$0xf0]  ;;  %v5616_v18 = vor.u32 %v6675_v10, %v5615_v6  ;;  %v3633_v29 = vpop.f32.mrf.mxu1 }
 0x187   : > { %3884 = vmatpush.bf16.msra.mxu1 %v5536_v30  ;;  %v5343_v48 = vld [vmem:[%s7125_s27 + $0x828] sm:$0xf]  ;;  %v6607_v25 = vld [vmem:[%s7125_s27 + $0x834] sm:$0xf0]  ;;  %v5744_v30 = vor.u32 %v6707_v11, %v5743_v8 }
 0x188   : > { %3897 = vmatpush.bf16.msra.mxu2 %v5664_v31  ;;  %v5471_v28 = vld [vmem:[%s7125_s27 + $0x928] sm:$0xf]  ;;  %v6639_v31 = vld [vmem:[%s7125_s27 + $0x934] sm:$0xf0]  ;;  %v5344_v39 = vor.u32 %v6607_v25, %v5343_v48 }
 0x189   : > { %3910 = vmatpush.bf16.msra.mxu3 %v5792_v35  ;;  %v5599_v32 = vld [vmem:[%s7125_s27 + $0xa28] sm:$0xf]  ;;  %v6671_v33 = vld [vmem:[%s7125_s27 + $0xa34] sm:$0xf0]  ;;  %v5472_v42 = vor.u32 %v6639_v31, %v5471_v28 }
 0x18a   : > { %3872 = vmatpush.bf16.msra.mxu0 %v5392_v46  ;;  %v5727_v36 = vld [vmem:[%s7125_s27 + $0xb28] sm:$0xf]  ;;  %v6703_v35 = vld [vmem:[%s7125_s27 + $0xb34] sm:$0xf0]  ;;  %v5600_v45 = vor.u32 %v6671_v33, %v5599_v32  ;;  %v3646_v44 = vpop.f32.mrf.mxu2 }
 0x18b   : > { %3885 = vmatpush.bf16.msra.mxu1 %v5520_v50  ;;  %v5327_v22 = vld [vmem:[%s7125_s27 + $0x808] sm:$0xf]  ;;  %v6603_v41 = vld [vmem:[%s7125_s27 + $0x814] sm:$0xf0]  ;;  %v5728_v53 = vor.u32 %v6703_v35, %v5727_v36 }
 0x18c   : > { %3898 = vmatpush.bf16.msra.mxu2 %v5648_v51  ;;  %v5455_v46 = vld [vmem:[%s7125_s27 + $0x908] sm:$0xf]  ;;  %v6635_v50 = vld [vmem:[%s7125_s27 + $0x914] sm:$0xf0]  ;;  %v3659_v57 = vpop.f32.mrf.mxu3 }
 0x18d   : > { %3911 = vmatpush.bf16.msra.mxu3 %v5776_v3  ;;  %v5583_v51 = vld [vmem:[%s7125_s27 + $0xa08] sm:$0xf]  ;;  %v6667_v54 = vld [vmem:[%s7125_s27 + $0xa14] sm:$0xf0]  ;;  %v5456_v62 = vor.u32 %v6635_v50, %v5455_v46 }
 0x18e   : > { %3873 = vmatpush.bf16.msra.mxu0 %v5376_v49  ;;  %v5711_v3 = vld [vmem:[%s7125_s27 + $0xb08] sm:$0xf]  ;;  %v6699_v56 = vld [vmem:[%s7125_s27 + $0xb14] sm:$0xf0]  ;;  %v5328_v49 = vor.u32 %v6603_v41, %v5327_v22  ;;  %v5584_v1 = vor.u32 %v6667_v54, %v5583_v51 }
 0x18f   : > { %3886 = vmatpush.bf16.msra.mxu1 %v5504_v52  ;;  %v5951_v58 = vld [vmem:[%s7125_s27 + $0xce8] sm:$0xf]  ;;  %v6759_v59 = vld [vmem:[%s7125_s27 + $0xcf4] sm:$0xf0]  ;;  %v5712_v6 = vor.u32 %v6699_v56, %v5711_v3 }
 0x190   : > { %3899 = vmatpush.bf16.msra.mxu2 %v5632_v60  ;;  %v6079_v43 = vld [vmem:[%s7125_s27 + $0xde8] sm:$0xf]  ;;  %v6791_v52 = vld [vmem:[%s7125_s27 + $0xdf4] sm:$0xf0]  ;;  %v5952_v10 = vor.u32 %v6759_v59, %v5951_v58 }
 0x191   : > { %3912 = vmatpush.bf16.msra.mxu3 %v5760_v4  ;;  %v6207_v60 = vld [vmem:[%s7125_s27 + $0xee8] sm:$0xf]  ;;  %v6823_v61 = vld [vmem:[%s7125_s27 + $0xef4] sm:$0xf0]  ;;  %v6080_v8 = vor.u32 %v6791_v52, %v6079_v43 }
 0x192   : > { %3874 = vmatpush.bf16.msra.mxu0 %v5360_v12  ;;  %v6335_v4 = vld [vmem:[%s7125_s27 + $0xfe8] sm:$0xf]  ;;  %v6855_v5 = vld [vmem:[%s7125_s27 + $0xff4] sm:$0xf0]  ;;  %v6208_v11 = vor.u32 %v6823_v61, %v6207_v60 }
 0x193   : > { %3887 = vmatpush.bf16.msra.mxu1 %v5488_v15  ;;  %v5935_v12 = vld [vmem:[%s7125_s27 + $0xcc8] sm:$0xf]  ;;  %v6755_v14 = vld [vmem:[%s7125_s27 + $0xcd4] sm:$0xf0] }
 0x194   : > { %3900 = vmatpush.bf16.msra.mxu2 %v5616_v18  ;;  %v6063_v15 = vld [vmem:[%s7125_s27 + $0xdc8] sm:$0xf]  ;;  %v6336_v18 = vor.u32 %v6855_v5, %v6335_v4  ;;  %v6787_v48 = vld [vmem:[%s7125_s27 + $0xdd4] sm:$0xf0]  ;;  %v5936_v31 = vor.u32 %v6755_v14, %v5935_v12 }
 0x195   : > { %3913 = vmatpush.bf16.msra.mxu3 %v5744_v30  ;;  %v6191_v25 = vld [vmem:[%s7125_s27 + $0xec8] sm:$0xf]  ;;  %v6819_v28 = vld [vmem:[%s7125_s27 + $0xed4] sm:$0xf0]  ;;  %v6064_v32 = vor.u32 %v6787_v48, %v6063_v15 }
 0x196   : > { %3875 = vmatpush.bf16.msra.mxu0 %v5344_v39  ;;  %v6319_v29 = vld [vmem:[%s7125_s27 + $0xfc8] sm:$0xf]  ;;  %v6851_v30 = vld [vmem:[%s7125_s27 + $0xfd4] sm:$0xf0]  ;;  %v6192_v33 = vor.u32 %v6819_v28, %v6191_v25  ;;  %v3619_v25 = vadd.f32 %v7980_v47, %v7926_v0 }
 0x197   : > { %3888 = vmatpush.bf16.msra.mxu1 %v5472_v42  ;;  %v5919_v36 = vld [vmem:[%s7125_s27 + $0xca8] sm:$0xf]  ;;  %v6751_v35 = vld [vmem:[%s7125_s27 + $0xcb4] sm:$0xf0]  ;;  %v6320_v22 = vor.u32 %v6851_v30, %v6319_v29 }
 0x198   : > { %3901 = vmatpush.bf16.msra.mxu2 %v5600_v45  ;;  %v6047_v39 = vld [vmem:[%s7125_s27 + $0xda8] sm:$0xf]  ;;  %v6783_v41 = vld [vmem:[%s7125_s27 + $0xdb4] sm:$0xf0]  ;;  %v5920_v51 = vor.u32 %v6751_v35, %v5919_v36 }
 0x199   : > { %3914 = vmatpush.bf16.msra.mxu3 %v5728_v53  ;;  %v6175_v42 = vld [vmem:[%s7125_s27 + $0xea8] sm:$0xf]  ;;  %v6815_v45 = vld [vmem:[%s7125_s27 + $0xeb4] sm:$0xf0]  ;;  %v6048_v44 = vor.u32 %v6783_v41, %v6047_v39 }
 0x19a   : > { %3876 = vmatpush.bf16.msra.mxu0 %v5328_v49  ;;  %v6303_v46 = vld [vmem:[%s7125_s27 + $0xfa8] sm:$0xf]  ;;  %v6847_v50 = vld [vmem:[%s7125_s27 + $0xfb4] sm:$0xf0]  ;;  %v6176_v53 = vor.u32 %v6815_v45, %v6175_v42  ;;  %v8054_v49 = vpop.f32.mrf.mxu0 }
 0x19b   : > { %3889 = vmatpush.bf16.msra.mxu1 %v5456_v62  ;;  %v5903_v54 = vld [vmem:[%s7125_s27 + $0xc88] sm:$0xf]  ;;  %v6747_v3 = vld [vmem:[%s7125_s27 + $0xc94] sm:$0xf0]  ;;  %v6304_v57 = vor.u32 %v6847_v50, %v6303_v46  ;;  %v8058_v62 = vpop.f32.mrf.mxu1  ;;  %v3632_v50 = vadd.f32 %v7985_v55, %v3619_v25  ;;  %v6405_v25 = vld [vmem:[%s7125_s27 + $0x1ec] sm:$0xf] }
 0x19c   : > { %3902 = vmatpush.bf16.msra.mxu2 %v5584_v1  ;;  %v6031_v56 = vld [vmem:[%s7125_s27 + $0xd88] sm:$0xf]  ;;  %v6779_v58 = vld [vmem:[%s7125_s27 + $0xd94] sm:$0xf0]  ;;  %v5904_v61 = vor.u32 %v6747_v3, %v5903_v54 }
 0x19d   : > { %3915 = vmatpush.bf16.msra.mxu3 %v5712_v6  ;;  %3877 = vmatmul.bf16.vlgmr.msra.gmra.mxu0 %v7400_v19  ;;  %v6159_v59 = vld [vmem:[%s7125_s27 + $0xe88] sm:$0xf]  ;;  %v6811_v43 = vld [vmem:[%s7125_s27 + $0xe94] sm:$0xf0]  ;;  %v6032_v1 = vor.u32 %v6779_v58, %v6031_v56 }
 0x19e   : > { %3921 = vmatpush.bf16.msrb.mxu0 %v5952_v10  ;;  %3890 = vmatmul.bf16.vlgmr.msra.gmra.mxu1 %v7407_v24  ;;  %v6287_v52 = vld [vmem:[%s7125_s27 + $0xf88] sm:$0xf]  ;;  %v6843_v60 = vld [vmem:[%s7125_s27 + $0xf94] sm:$0xf0]  ;;  %v6160_v4 = vor.u32 %v6811_v43, %v6159_v59 }
 0x19f   : > { %3934 = vmatpush.bf16.msrb.mxu1 %v6080_v8  ;;  %3903 = vmatmul.bf16.vlgmr.msra.gmra.mxu2 %v7405_v23  ;;  %v5887_v5 = vld [vmem:[%s7125_s27 + $0xc68] sm:$0xf]  ;;  %v6743_v6 = vld [vmem:[%s7125_s27 + $0xc74] sm:$0xf0]  ;;  %v6288_v8 = vor.u32 %v6843_v60, %v6287_v52 }
 0x1a0   : > { %3947 = vmatpush.bf16.msrb.mxu2 %v6208_v11  ;;  %3916 = vmatmul.bf16.vlgmr.msra.gmra.mxu3 %v7411_v27  ;;  %v6015_v10 = vld [vmem:[%s7125_s27 + $0xd68] sm:$0xf]  ;;  %v6775_v11 = vld [vmem:[%s7125_s27 + $0xd74] sm:$0xf0]  ;;  %v5888_v48 = vor.u32 %v6743_v6, %v5887_v5 }
 0x1a1   : > { %3960 = vmatpush.bf16.msrb.mxu3 %v6336_v18  ;;  %v6143_v12 = vld [vmem:[%s7125_s27 + $0xe68] sm:$0xf]  ;;  %v6807_v14 = vld [vmem:[%s7125_s27 + $0xe74] sm:$0xf0]  ;;  %v6016_v28 = vor.u32 %v6775_v11, %v6015_v10 }
 0x1a2   : > { %3922 = vmatpush.bf16.msrb.mxu0 %v5936_v31  ;;  %v6271_v15 = vld [vmem:[%s7125_s27 + $0xf68] sm:$0xf]  ;;  %v6839_v18 = vld [vmem:[%s7125_s27 + $0xf74] sm:$0xf0]  ;;  %v6144_v29 = vor.u32 %v6807_v14, %v6143_v12  ;;  %v8073_v36 = vpop.f32.mrf.mxu2  ;;  %v3672_v42 = vpop.f32.mrf.mxu0 }
 0x1a3   : > { %3935 = vmatpush.bf16.msrb.mxu1 %v6064_v32  ;;  %v5871_v30 = vld [vmem:[%s7125_s27 + $0xc48] sm:$0xf]  ;;  %v6739_v31 = vld [vmem:[%s7125_s27 + $0xc54] sm:$0xf0]  ;;  %v8078_v41 = vpop.f32.mrf.mxu3  ;;  %v3685_v46 = vpop.f32.mrf.mxu1 }
 0x1a4   : > { %3948 = vmatpush.bf16.msrb.mxu2 %v6192_v33  ;;  %v5999_v32 = vld [vmem:[%s7125_s27 + $0xd48] sm:$0xf]  ;;  %v6272_v33 = vor.u32 %v6839_v18, %v6271_v15  ;;  %v6771_v35 = vld [vmem:[%s7125_s27 + $0xd54] sm:$0xf0]  ;;  %v5872_v45 = vor.u32 %v6739_v31, %v5871_v30  ;;  %v4545_v30 = vld [vmem:[%s7125_s27 + $0x1f8] sm:$0xf0] }
 0x1a5   : > { %3961 = vmatpush.bf16.msrb.mxu3 %v6320_v22  ;;  %v6127_v39 = vld [vmem:[%s7125_s27 + $0xe48] sm:$0xf]  ;;  %v6803_v22 = vld [vmem:[%s7125_s27 + $0xe54] sm:$0xf0]  ;;  %v6437_v31 = vld [vmem:[%s7125_s27 + $0x2ec] sm:$0xf]  ;;  %v4548_v46 = vor.u32 %v6405_v25, %v4545_v30 }
 0x1a6   : > { %3923 = vmatpush.bf16.msrb.mxu0 %v5920_v51  ;;  %v6255_v0 = vld [vmem:[%s7125_s27 + $0xf48] sm:$0xf]  ;;  %v6835_v47 = vld [vmem:[%s7125_s27 + $0xf54] sm:$0xf0]  ;;  %v6000_v51 = vor.u32 %v6771_v35, %v5999_v32  ;;  %v4673_v32 = vld [vmem:[%s7125_s27 + $0x2f8] sm:$0xf0] }
 0x1a7   : > { %3936 = vmatpush.bf16.msrb.mxu1 %v6048_v44  ;;  %v6128_v44 = vor.u32 %v6803_v22, %v6127_v39  ;;  %v6735_v54 = vld [vmem:[%s7125_s27 + $0xc34] sm:$0xf0]  ;;  %v5983_v3 = vld [vmem:[%s7125_s27 + $0xd28] sm:$0xf]  ;;  %v6256_v56 = vor.u32 %v6835_v47, %v6255_v0  ;;  %v6469_v22 = vld [vmem:[%s7125_s27 + $0x3ec] sm:$0xf] }
 0x1a8   : > { %3949 = vmatpush.bf16.msrb.mxu2 %v6176_v53  ;;  %v5855_v53 = vld [vmem:[%s7125_s27 + $0xc28] sm:$0xf]  ;;  %v6799_v59 = vld [vmem:[%s7125_s27 + $0xe34] sm:$0xf0]  ;;  %v4801_v0 = vld [vmem:[%s7125_s27 + $0x3f8] sm:$0xf0] }
 0x1a9   : > { %3962 = vmatpush.bf16.msrb.mxu3 %v6304_v57  ;;  %v6767_v57 = vld [vmem:[%s7125_s27 + $0xd34] sm:$0xf0]  ;;  %v6111_v58 = vld [vmem:[%s7125_s27 + $0xe28] sm:$0xf]  ;;  %v5856_v52 = vor.u32 %v6735_v54, %v5855_v53  ;;  %v4804_v53 = vor.u32 %v6469_v22, %v4801_v0  ;;  %v4529_v54 = vld [vmem:[%s7125_s27 + $0x1d8] sm:$0xf0] }
 0x1aa   : > { %3924 = vmatpush.bf16.msrb.mxu0 %v5904_v61  ;;  %v6239_v43 = vld [vmem:[%s7125_s27 + $0xf28] sm:$0xf]  ;;  %v6831_v55 = vld [vmem:[%s7125_s27 + $0xf34] sm:$0xf0]  ;;  %v6112_v5 = vor.u32 %v6799_v59, %v6111_v58  ;;  %v3698_v18 = vpop.f32.mrf.mxu2  ;;  %v4785_v58 = vld [vmem:[%s7125_s27 + $0x3d8] sm:$0xf0] }
 0x1ab   : > { %3937 = vmatpush.bf16.msrb.mxu1 %v6032_v1  ;;  %v5839_v60 = vld [vmem:[%s7125_s27 + $0xc08] sm:$0xf]  ;;  %v6731_v61 = vld [vmem:[%s7125_s27 + $0xc14] sm:$0xf0]  ;;  %v3645_v1 = vadd.f32 %v7995_v2, %v3632_v50  ;;  %v6240_v11 = vor.u32 %v6831_v55, %v6239_v43  ;;  %v6373_v2 = vld [vmem:[%s7125_s27 + $0xec] sm:$0xf]  ;;  %v4676_v50 = vor.u32 %v6437_v31, %v4673_v32 }
 0x1ac   : > { %3950 = vmatpush.bf16.msrb.mxu2 %v6160_v4  ;;  %v5984_v4 = vor.u32 %v6767_v57, %v5983_v3  ;;  %v5967_v6 = vld [vmem:[%s7125_s27 + $0xd08] sm:$0xf]  ;;  %v6763_v10 = vld [vmem:[%s7125_s27 + $0xd14] sm:$0xf0]  ;;  %v6433_v3 = vld [vmem:[%s7125_s27 + $0x2cc] sm:$0xf] }
 0x1ad   : > { %3963 = vmatpush.bf16.msrb.mxu3 %v6288_v8  ;;  %v6095_v8 = vld [vmem:[%s7125_s27 + $0xe08] sm:$0xf]  ;;  %v6795_v12 = vld [vmem:[%s7125_s27 + $0xe14] sm:$0xf0]  ;;  %v5968_v35 = vor.u32 %v6763_v10, %v5967_v6  ;;  %v6465_v57 = vld [vmem:[%s7125_s27 + $0x3cc] sm:$0xf] }
 0x1ae   : > { %3925 = vmatpush.bf16.msrb.mxu0 %v5888_v48  ;;  %v6223_v14 = vld [vmem:[%s7125_s27 + $0xf08] sm:$0xf]  ;;  %v6827_v15 = vld [vmem:[%s7125_s27 + $0xf14] sm:$0xf0]  ;;  %v4417_v48 = vld [vmem:[%s7125_s27 + $0xf8] sm:$0xf0]  ;;  %v6096_v39 = vor.u32 %v6795_v12, %v6095_v8 }
 0x1af   : > { %3938 = vmatpush.bf16.msrb.mxu1 %v6016_v28  ;;  %v3711_v28 = vpop.f32.mrf.mxu3  ;;  %v6224_v47 = vor.u32 %v6827_v15, %v6223_v14  ;;  %v4420_v42 = vor.u32 %v6373_v2, %v4417_v48  ;;  %v4641_v6 = vld [vmem:[%s7125_s27 + $0x2b8] sm:$0xf0]  ;;  %v6461_v10 = vld [vmem:[%s7125_s27 + $0x3ac] sm:$0xf] }
 0x1b0   : > { %3951 = vmatpush.bf16.msrb.mxu2 %v6144_v29  ;;  %v5840_v29 = vor.u32 %v6731_v61, %v5839_v60  ;;  %v4385_v60 = vld [vmem:[%s7125_s27 + $0xb8] sm:$0xf0]  ;;  %v6397_v61 = vld [vmem:[%s7125_s27 + $0x1ac] sm:$0xf] }
 0x1b1   : > { %3964 = vmatpush.bf16.msrb.mxu3 %v6272_v33  ;;  %v3658_v33 = vadd.f32 %v8000_v7, %v3645_v1  ;;  %v4401_v7 = vld [vmem:[%s7125_s27 + $0xd8] sm:$0xf0]  ;;  %v4788_v1 = vor.u32 %v6465_v57, %v4785_v58  ;;  %v6393_v18 = vld [vmem:[%s7125_s27 + $0x18c] sm:$0xf] }
 0x1b2   : > { %3926 = vmatpush.bf16.msrb.mxu0 %v5872_v45  ;;  %v4769_v8 = vld [vmem:[%s7125_s27 + $0x3b8] sm:$0xf0]  ;;  %v6425_v25 = vld [vmem:[%s7125_s27 + $0x28c] sm:$0xf] }
 0x1b3   : > { %3939 = vmatpush.bf16.msrb.mxu1 %v6000_v51  ;;  %v3671_v45 = vadd.f32 %v8054_v49, %v3658_v33  ;;  %v6369_v51 = vld [vmem:[%s7125_s27 + $0xcc] sm:$0xf]  ;;  %v4369_v15 = vld [vmem:[%s7125_s27 + $0x98] sm:$0xf0]  ;;  %v4772_v2 = vor.u32 %v6461_v10, %v4769_v8 }
 0x1b4   : > { %3952 = vmatpush.bf16.msrb.mxu2 %v6128_v44  ;;  %v6401_v44 = vld [vmem:[%s7125_s27 + $0x1cc] sm:$0xf]  ;;  %v4404_v49 = vor.u32 %v6369_v51, %v4401_v7  ;;  %v4497_v48 = vld [vmem:[%s7125_s27 + $0x198] sm:$0xf0] }
 0x1b5   : > { %3965 = vmatpush.bf16.msrb.mxu3 %v6256_v56  ;;  %v4657_v56 = vld [vmem:[%s7125_s27 + $0x2d8] sm:$0xf0]  ;;  %v3684_v59 = vadd.f32 %v8058_v62, %v3671_v45  ;;  %v4532_v43 = vor.u32 %v6401_v44, %v4529_v54  ;;  %v6457_v31 = vld [vmem:[%s7125_s27 + $0x38c] sm:$0xf]  ;;  %v4500_v22 = vor.u32 %v6393_v18, %v4497_v48 }
 0x1b6   : > { %3927 = vmatpush.bf16.msrb.mxu0 %v5856_v52  ;;  %v4660_v55 = vor.u32 %v6433_v3, %v4657_v56  ;;  %v6365_v52 = vld [vmem:[%s7125_s27 + $0xac] sm:$0xf]  ;;  %v4625_v28 = vld [vmem:[%s7125_s27 + $0x298] sm:$0xf0] }
 0x1b7   : > { %3940 = vmatpush.bf16.msrb.mxu1 %v5984_v4  ;;  %v4513_v4 = vld [vmem:[%s7125_s27 + $0x1b8] sm:$0xf0]  ;;  %v3697_v62 = vadd.f32 %v8073_v36, %v3684_v59  ;;  %v6361_v36 = vld [vmem:[%s7125_s27 + $0x8c] sm:$0xf]  ;;  %v4628_v0 = vor.u32 %v6425_v25, %v4625_v28 }
 0x1b8   : > { %3953 = vmatpush.bf16.msrb.mxu2 %v6112_v5  ;;  %v6429_v5 = vld [vmem:[%s7125_s27 + $0x2ac] sm:$0xf]  ;;  %v4516_v12 = vor.u32 %v6397_v61, %v4513_v4  ;;  %v4753_v32 = vld [vmem:[%s7125_s27 + $0x398] sm:$0xf0]  ;;  %v4372_v33 = vor.u32 %v6361_v36, %v4369_v15 }
 0x1b9   : > { %3966 = vmatpush.bf16.msrb.mxu3 %v6240_v11  ;;  %v4388_v11 = vor.u32 %v6365_v52, %v4385_v60  ;;  %v4644_v14 = vor.u32 %v6429_v5, %v4641_v6  ;;  %v4756_v45 = vor.u32 %v6457_v31, %v4753_v32  ;;  %v4609_v51 = vld [vmem:[%s7125_s27 + $0x278] sm:$0xf0]  ;;  %v6453_v7 = vld [vmem:[%s7125_s27 + $0x36c] sm:$0xf] }
 0x1ba   : > { %3928 = vmatpush.bf16.msrb.mxu0 %v5840_v29  ;;  %v3710_v29 = vadd.f32 %v8078_v41, %v3697_v62  ;;  %v3722_v30 = vpop.f32.mrf.mxu0  ;;  %v6389_v41 = vld [vmem:[%s7125_s27 + $0x16c] sm:$0xf]  ;;  %v4737_v44 = vld [vmem:[%s7125_s27 + $0x378] sm:$0xf0] }
 0x1bb   : > { %3941 = vmatpush.bf16.msrb.mxu1 %v5968_v35  ;;  %v3735_v35 = vpop.f32.mrf.mxu1  ;;  %v6353_v57 = vld [vmem:[%s7125_s27 + $0x4c] sm:$0xf]  ;;  %v4337_v58 = vld [vmem:[%s7125_s27 + $0x58] sm:$0xf0]  ;;  %v4740_v59 = vor.u32 %v6453_v7, %v4737_v44 }
 0x1bc   : > { %3954 = vmatpush.bf16.msrb.mxu2 %v6096_v39  ;;  %v3723_v39 = vadd.f32 %v3722_v30, %v3710_v29  ;;  %v6417_v52 = vld [vmem:[%s7125_s27 + $0x24c] sm:$0xf]  ;;  %v4593_v60 = vld [vmem:[%s7125_s27 + $0x258] sm:$0xf0]  ;;  %v4340_v62 = vor.u32 %v6353_v57, %v4337_v58 }
 0x1bd   : > { %3967 = vmatpush.bf16.msrb.mxu3 %v6224_v47  ;;  %3929 = vmatmul.bf16.vlgmr.msrb.gmra.mxu0 %v7488_v13  ;;  %v6357_v47 = vld [vmem:[%s7125_s27 + $0x6c] sm:$0xf]  ;;  %v4721_v5 = vld [vmem:[%s7125_s27 + $0x358] sm:$0xf0] }
 0x1be   : > { %3973 = vmatpush.bf16.msra.mxu0 %v4420_v42  ;;  %3942 = vmatmul.bf16.vlgmr.msrb.gmra.mxu1 %v7495_v21  ;;  %v4353_v42 = vld [vmem:[%s7125_s27 + $0x78] sm:$0xf0]  ;;  %v3736_v54 = vadd.f32 %v3735_v35, %v3723_v39  ;;  %v6449_v4 = vld [vmem:[%s7125_s27 + $0x34c] sm:$0xf] }
 0x1bf   : > { %3986 = vmatpush.bf16.msra.mxu1 %v4548_v46  ;;  %3955 = vmatmul.bf16.vlgmr.msrb.gmra.mxu2 %v7493_v20  ;;  %v4481_v46 = vld [vmem:[%s7125_s27 + $0x178] sm:$0xf0]  ;;  %v6381_v15 = vld [vmem:[%s7125_s27 + $0x12c] sm:$0xf]  ;;  %v4724_v18 = vor.u32 %v6449_v4, %v4721_v5 }
 0x1c0   : > { %3999 = vmatpush.bf16.msra.mxu2 %v4676_v50  ;;  %3968 = vmatmul.bf16.vlgmr.msrb.gmra.mxu3 %v7499_v26  ;;  %v6421_v50 = vld [vmem:[%s7125_s27 + $0x26c] sm:$0xf]  ;;  %v4484_v3 = vor.u32 %v6389_v41, %v4481_v46  ;;  %v4321_v36 = vld [vmem:[%s7125_s27 + $0x38] sm:$0xf0] }
 0x1c1   : > { %4012 = vmatpush.bf16.msra.mxu3 %v4804_v53  ;;  %v4356_v53 = vor.u32 %v6357_v47, %v4353_v42  ;;  %v4612_v56 = vor.u32 %v6421_v50, %v4609_v51  ;;  %v6413_v48 = vld [vmem:[%s7125_s27 + $0x22c] sm:$0xf]  ;;  %v4577_v25 = vld [vmem:[%s7125_s27 + $0x238] sm:$0xf0] }
 0x1c2   : > { %3974 = vmatpush.bf16.msra.mxu0 %v4404_v49  ;;  %v6385_v49 = vld [vmem:[%s7125_s27 + $0x14c] sm:$0xf]  ;;  %v3724_v6 = vpop.f32.mrf.mxu0  ;;  %v4705_v30 = vld [vmem:[%s7125_s27 + $0x338] sm:$0xf0] }
 0x1c3   : > { %3987 = vmatpush.bf16.msra.mxu1 %v4532_v43  ;;  %v3748_v43 = vpop.f32.mrf.mxu2  ;;  %v3737_v10 = vpop.f32.mrf.mxu1  ;;  %v6445_v29 = vld [vmem:[%s7125_s27 + $0x32c] sm:$0xf]  ;;  %v4561_v41 = vld [vmem:[%s7125_s27 + $0x218] sm:$0xf0] }
 0x1c4   : > { %4000 = vmatpush.bf16.msra.mxu2 %v4660_v55  ;;  %v4465_v55 = vld [vmem:[%s7125_s27 + $0x158] sm:$0xf0]  ;;  %v3749_v61 = vadd.f32 %v3748_v43, %v3736_v54  ;;  %v6345_v32 = vld [vmem:[%s7125_s27 + $0xc] sm:$0xf]  ;;  %v4708_v42 = vor.u32 %v6445_v29, %v4705_v30 }
 0x1c5   : > { %4013 = vmatpush.bf16.msra.mxu3 %v4788_v1  ;;  %v3761_v1 = vpop.f32.mrf.mxu3  ;;  %v6377_v35 = vld [vmem:[%s7125_s27 + $0x10c] sm:$0xf]  ;;  %v4689_v46 = vld [vmem:[%s7125_s27 + $0x318] sm:$0xf0] }
 0x1c6   : > { %3975 = vmatpush.bf16.msra.mxu0 %v4388_v11  ;;  %v3762_v8 = vadd.f32 %v3761_v1, %v3749_v61  ;;  %v4468_v11 = vor.u32 %v6385_v49, %v4465_v55  ;;  %v6409_v47 = vld [vmem:[%s7125_s27 + $0x20c] sm:$0xf]  ;;  %v4929_v7 = vld [vmem:[%s7125_s27 + $0x4f8] sm:$0xf0] }
 0x1c7   : > { %3988 = vmatpush.bf16.msra.mxu1 %v4516_v12  ;;  %v4596_v12 = vor.u32 %v6417_v52, %v4593_v60  ;;  %v6501_v51 = vld [vmem:[%s7125_s27 + $0x4ec] sm:$0xf]  ;;  %v5185_v57 = vld [vmem:[%s7125_s27 + $0x6f8] sm:$0xf0]  ;;  %v4564_v49 = vor.u32 %v6409_v47, %v4561_v41  ;;  %v8206_v47 = vld [vmem:[%s7131_s5] sm:$0xf] }
 0x1c8   : > { %4001 = vmatpush.bf16.msra.mxu2 %v4644_v14  ;;  %v6349_v14 = vld [vmem:[%s7125_s27 + $0x2c] sm:$0xf]  ;;  %v4182_v28 = vmax.f32 %v3762_v8, 0.0  ;;  %v5313_v43 = vld [vmem:[%s7125_s27 + $0x7f8] sm:$0xf0]  ;;  %v4932_v52 = vor.u32 %v6501_v51, %v4929_v7 }
 0x1c9   : > { %4014 = vmatpush.bf16.msra.mxu3 %v4772_v2  ;;  %v4449_v2 = vld [vmem:[%s7125_s27 + $0x138] sm:$0xf0]  ;;  %v4324_v31 = vor.u32 %v6349_v14, %v4321_v36  ;;  %v6533_v44 = vld [vmem:[%s7125_s27 + $0x5ec] sm:$0xf] }
 0x1ca   : > { %3976 = vmatpush.bf16.msra.mxu0 %v4372_v33  ;;  %v4305_v33 = vld [vmem:[%s7125_s27 + $0x18] sm:$0xf0]  ;;  %4186 = vst [vmem:[%s7857_s24 + $0x8] sm:$0xff] %v4182_v28  ;;  %v4452_v39 = vor.u32 %v6381_v15, %v4449_v2  ;;  %v6497_v1 = vld [vmem:[%s7125_s27 + $0x4cc] sm:$0xf] }
 0x1cb   : > { %3989 = vmatpush.bf16.msra.mxu1 %v4500_v22  ;;  %v4580_v22 = vor.u32 %v6413_v48, %v4577_v25  ;;  %v3750_v50 = vpop.f32.mrf.mxu2  ;;  %v4308_v54 = vor.u32 %v6345_v32, %v4305_v33  ;;  %v4913_v4 = vld [vmem:[%s7125_s27 + $0x4d8] sm:$0xf0]  ;;  %v6529_v5 = vld [vmem:[%s7125_s27 + $0x5cc] sm:$0xf] }
 0x1cc   : > { %4002 = vmatpush.bf16.msra.mxu2 %v4628_v0  ;;  %v4433_v0 = vld [vmem:[%s7125_s27 + $0x118] sm:$0xf0]  ;;  %v6561_v10 = vld [vmem:[%s7125_s27 + $0x6cc] sm:$0xf]  ;;  %v4916_v14 = vor.u32 %v6497_v1, %v4913_v4 }
 0x1cd   : > { %4015 = vmatpush.bf16.msra.mxu3 %v4756_v45  ;;  %v6441_v45 = vld [vmem:[%s7125_s27 + $0x30c] sm:$0xf]  ;;  %v4436_v58 = vor.u32 %v6377_v35, %v4433_v0  ;;  %v5169_v8 = vld [vmem:[%s7125_s27 + $0x6d8] sm:$0xf0] }
 0x1ce   : > { %3977 = vmatpush.bf16.msra.mxu0 %v4356_v53  ;;  %v3763_v53 = vpop.f32.mrf.mxu3  ;;  %v4692_v55 = vor.u32 %v6441_v45, %v4689_v46  ;;  %v5172_v15 = vor.u32 %v6561_v10, %v5169_v8  ;;  %v4897_v2 = vld [vmem:[%s7125_s27 + $0x4b8] sm:$0xf0]  ;;  %v6525_v48 = vld [vmem:[%s7125_s27 + $0x5ac] sm:$0xf] }
 0x1cf   : > { %3990 = vmatpush.bf16.msra.mxu1 %v4484_v3  ;;  %v5057_v3 = vld [vmem:[%s7125_s27 + $0x5f8] sm:$0xf0]  ;;  %v6557_v29 = vld [vmem:[%s7125_s27 + $0x6ac] sm:$0xf] }
 0x1d0   : > { %4003 = vmatpush.bf16.msra.mxu2 %v4612_v56  ;;  %v6565_v56 = vld [vmem:[%s7125_s27 + $0x6ec] sm:$0xf]  ;;  %v5060_v60 = vor.u32 %v6533_v44, %v5057_v3  ;;  %v5025_v28 = vld [vmem:[%s7125_s27 + $0x5b8] sm:$0xf0] }
 0x1d1   : > { %4016 = vmatpush.bf16.msra.mxu3 %v4740_v59  ;;  %v6597_v59 = vld [vmem:[%s7125_s27 + $0x7ec] sm:$0xf]  ;;  %v5188_v61 = vor.u32 %v6565_v56, %v5185_v57  ;;  %v5153_v30 = vld [vmem:[%s7125_s27 + $0x6b8] sm:$0xf0] }
 0x1d2   : > { %3978 = vmatpush.bf16.msra.mxu0 %v4340_v62  ;;  %v5316_v6 = vor.u32 %v6597_v59, %v5313_v43  ;;  %v5041_v62 = vld [vmem:[%s7125_s27 + $0x5d8] sm:$0xf0]  ;;  %v6489_v35 = vld [vmem:[%s7125_s27 + $0x48c] sm:$0xf] }
 0x1d3   : > { %3991 = vmatpush.bf16.msra.mxu1 %v4468_v11  ;;  %v6593_v11 = vld [vmem:[%s7125_s27 + $0x7cc] sm:$0xf]  ;;  %v5044_v36 = vor.u32 %v6529_v5, %v5041_v62  ;;  %v5281_v32 = vld [vmem:[%s7125_s27 + $0x7b8] sm:$0xf0] }
 0x1d4   : > { %4004 = vmatpush.bf16.msra.mxu2 %v4596_v12  ;;  %v5297_v12 = vld [vmem:[%s7125_s27 + $0x7d8] sm:$0xf0]  ;;  %v6521_v0 = vld [vmem:[%s7125_s27 + $0x58c] sm:$0xf] }
 0x1d5   : > { %4017 = vmatpush.bf16.msra.mxu3 %v4724_v18  ;;  %v6493_v18 = vld [vmem:[%s7125_s27 + $0x4ac] sm:$0xf]  ;;  %v5300_v25 = vor.u32 %v6593_v11, %v5297_v12  ;;  %v5137_v45 = vld [vmem:[%s7125_s27 + $0x698] sm:$0xf0] }
 0x1d6   : > { %3979 = vmatpush.bf16.msra.mxu0 %v4324_v31  ;;  %v6589_v31 = vld [vmem:[%s7125_s27 + $0x7ac] sm:$0xf]  ;;  %v4900_v33 = vor.u32 %v6493_v18, %v4897_v2  ;;  %v5121_v43 = vld [vmem:[%s7125_s27 + $0x678] sm:$0xf0] }
 0x1d7   : > { %3992 = vmatpush.bf16.msra.mxu1 %v4452_v39  ;;  %v5028_v39 = vor.u32 %v6525_v48, %v5025_v28  ;;  %v6553_v41 = vld [vmem:[%s7125_s27 + $0x68c] sm:$0xf]  ;;  %v4977_v11 = vld [vmem:[%s7125_s27 + $0x558] sm:$0xf0] }
 0x1d8   : > { %4005 = vmatpush.bf16.msra.mxu2 %v4580_v22  ;;  %v4881_v22 = vld [vmem:[%s7125_s27 + $0x498] sm:$0xf0]  ;;  %v6585_v46 = vld [vmem:[%s7125_s27 + $0x78c] sm:$0xf]  ;;  %v5140_v44 = vor.u32 %v6553_v41, %v5137_v45 }
 0x1d9   : > { %4018 = vmatpush.bf16.msra.mxu3 %v4708_v42  ;;  %v5009_v42 = vld [vmem:[%s7125_s27 + $0x598] sm:$0xf0]  ;;  %v4884_v50 = vor.u32 %v6489_v35, %v4881_v22  ;;  %v6485_v53 = vld [vmem:[%s7125_s27 + $0x46c] sm:$0xf] }
 0x1da   : > { %3980 = vmatpush.bf16.msra.mxu0 %v4308_v54  ;;  %v3774_v51 = vpop.f32.mrf.mxu0  ;;  %v5012_v7 = vor.u32 %v6521_v0, %v5009_v42  ;;  %v4865_v54 = vld [vmem:[%s7125_s27 + $0x478] sm:$0xf0]  ;;  %v6517_v3 = vld [vmem:[%s7125_s27 + $0x56c] sm:$0xf] }
 0x1db   : > { %3993 = vmatpush.bf16.msra.mxu1 %v4436_v58  ;;  %v3787_v57 = vpop.f32.mrf.mxu1  ;;  %v6549_v59 = vld [vmem:[%s7125_s27 + $0x66c] sm:$0xf]  ;;  %v5233_v2 = vld [vmem:[%s7125_s27 + $0x758] sm:$0xf0] }
 0x1dc   : > { %4006 = vmatpush.bf16.msra.mxu2 %v4564_v49  ;;  %v4993_v49 = vld [vmem:[%s7125_s27 + $0x578] sm:$0xf0]  ;;  %v5124_v4 = vor.u32 %v6549_v59, %v5121_v43  ;;  %v6481_v5 = vld [vmem:[%s7125_s27 + $0x44c] sm:$0xf] }
 0x1dd   : > { %4019 = vmatpush.bf16.msra.mxu3 %v4692_v55  ;;  %3981 = vmatmul.bf16.vlgmr.msra.gmra.mxu0 %v7237_v9  ;;  %v783_v9 = vperm.slane %v8206_v47, 2  ;;  %v6581_v55 = vld [vmem:[%s7125_s27 + $0x76c] sm:$0xf]  ;;  %v4996_v1 = vor.u32 %v6517_v3, %v4993_v49  ;;  %v5089_v0 = vld [vmem:[%s7125_s27 + $0x638] sm:$0xf0] }
 0x1de   : > { %4025 = vmatpush.bf16.msrb.mxu0 %v4932_v52  ;;  %3994 = vmatmul.bf16.vlgmr.msra.gmra.mxu1 %v7250_v17  ;;  %v5265_v17 = vld [vmem:[%s7125_s27 + $0x798] sm:$0xf0]  ;;  %v6513_v62 = vld [vmem:[%s7125_s27 + $0x54c] sm:$0xf] }
 0x1df   : > { %4038 = vmatpush.bf16.msrb.mxu1 %v5060_v60  ;;  %4007 = vmatmul.bf16.vlgmr.msra.gmra.mxu2 %v7226_v63  ;;  %v5156_v63 = vor.u32 %v6557_v29, %v5153_v30  ;;  %v3775_v56 = vadd.f32 %v3774_v51, %v783_v9  ;;  %v5268_v58 = vor.u32 %v6585_v46, %v5265_v17  ;;  %v5249_v52 = vld [vmem:[%s7125_s27 + $0x778] sm:$0xf0]  ;;  %v6545_v12 = vld [vmem:[%s7125_s27 + $0x64c] sm:$0xf] }
 0x1e0   : > { %4051 = vmatpush.bf16.msrb.mxu2 %v5188_v61  ;;  %4020 = vmatmul.bf16.vlgmr.msra.gmra.mxu3 %v7248_v16  ;;  %v5284_v16 = vor.u32 %v6589_v31, %v5281_v32  ;;  %v4868_v61 = vor.u32 %v6485_v53, %v4865_v54  ;;  %v5252_v8 = vor.u32 %v6581_v55, %v5249_v52  ;;  %v6577_v18 = vld [vmem:[%s7125_s27 + $0x74c] sm:$0xf]  ;;  %v4833_v32 = vld [vmem:[%s7125_s27 + $0x438] sm:$0xf0] }
 0x1e1   : > { %4064 = vmatpush.bf16.msrb.mxu3 %v5316_v6  ;;  %v3788_v60 = vadd.f32 %v3787_v57, %v3775_v56  ;;  %v4849_v6 = vld [vmem:[%s7125_s27 + $0x458] sm:$0xf0]  ;;  %v4980_v29 = vor.u32 %v6513_v62, %v4977_v11  ;;  %v6477_v31 = vld [vmem:[%s7125_s27 + $0x42c] sm:$0xf] }
 0x1e2   : > { %4026 = vmatpush.bf16.msrb.mxu0 %v4916_v14  ;;  %v3800_v10 = vpop.f32.mrf.mxu2  ;;  %v5105_v14 = vld [vmem:[%s7125_s27 + $0x658] sm:$0xf0]  ;;  %v4852_v48 = vor.u32 %v6481_v5, %v4849_v6  ;;  %v3776_v28 = vpop.f32.mrf.mxu0  ;;  %v6541_v22 = vld [vmem:[%s7125_s27 + $0x62c] sm:$0xf]  ;;  %v4836_v42 = vor.u32 %v6477_v31, %v4833_v32 }
 0x1e3   : > { %4039 = vmatpush.bf16.msrb.mxu1 %v5044_v36  ;;  %v3801_v36 = vadd.f32 %v3800_v10, %v3788_v60  ;;  %v5108_v30 = vor.u32 %v6545_v12, %v5105_v14  ;;  %v3789_v35 = vpop.f32.mrf.mxu1  ;;  %v6573_v9 = vld [vmem:[%s7125_s27 + $0x72c] sm:$0xf]  ;;  %v4817_v45 = vld [vmem:[%s7125_s27 + $0x418] sm:$0xf0]  ;;  %v5092_v17 = vor.u32 %v6541_v22, %v5089_v0 }
 0x1e4   : > { %4052 = vmatpush.bf16.msrb.mxu2 %v5172_v15  ;;  %v3813_v15 = vpop.f32.mrf.mxu3  ;;  %v6473_v41 = vld [vmem:[%s7125_s27 + $0x40c] sm:$0xf]  ;;  %v4945_v51 = vld [vmem:[%s7125_s27 + $0x518] sm:$0xf0] }
 0x1e5   : > { %4065 = vmatpush.bf16.msrb.mxu3 %v5300_v25  ;;  %v8230_v25 = vadd.f32 %v3813_v15, %v3801_v36  ;;  %v5073_v54 = vld [vmem:[%s7125_s27 + $0x618] sm:$0xf0]  ;;  %v6569_v3 = vld [vmem:[%s7125_s27 + $0x70c] sm:$0xf]  ;;  %v4820_v43 = vor.u32 %v6473_v41, %v4817_v45 }
 0x1e6   : > { %4027 = vmatpush.bf16.msrb.mxu0 %v4900_v33  ;;  %v6509_v33 = vld [vmem:[%s7125_s27 + $0x52c] sm:$0xf]  ;;  %v5201_v56 = vld [vmem:[%s7125_s27 + $0x718] sm:$0xf0] }
 0x1e7   : > { %4040 = vmatpush.bf16.msrb.mxu1 %v5028_v39  ;;  %v5236_v39 = vor.u32 %v6577_v18, %v5233_v2  ;;  %v5441_v49 = vld [vmem:[%s7125_s27 + $0x8f8] sm:$0xf0]  ;;  %v6661_v59 = vld [vmem:[%s7125_s27 + $0x9ec] sm:$0xf]  ;;  %v5204_v6 = vor.u32 %v6569_v3, %v5201_v56 }
 0x1e8   : > { %4053 = vmatpush.bf16.msrb.mxu2 %v5156_v63  ;;  %v4961_v63 = vld [vmem:[%s7125_s27 + $0x538] sm:$0xf0]  ;;  %v6693_v52 = vld [vmem:[%s7125_s27 + $0xaec] sm:$0xf] }
 0x1e9   : > { %4066 = vmatpush.bf16.msrb.mxu3 %v5284_v16  ;;  %v5217_v16 = vld [vmem:[%s7125_s27 + $0x738] sm:$0xf0]  ;;  %v4964_v46 = vor.u32 %v6509_v33, %v4961_v63  ;;  %v6625_v11 = vld [vmem:[%s7125_s27 + $0x8cc] sm:$0xf] }
 0x1ea   : > { %4028 = vmatpush.bf16.msrb.mxu0 %v4884_v50  ;;  %v6505_v50 = vld [vmem:[%s7125_s27 + $0x50c] sm:$0xf]  ;;  %v5220_v53 = vor.u32 %v6573_v9, %v5217_v16  ;;  %v5569_v55 = vld [vmem:[%s7125_s27 + $0x9f8] sm:$0xf0] }
 0x1eb   : > { %4041 = vmatpush.bf16.msrb.mxu1 %v5012_v7  ;;  %v6537_v7 = vld [vmem:[%s7125_s27 + $0x60c] sm:$0xf]  ;;  %v5697_v60 = vld [vmem:[%s7125_s27 + $0xaf8] sm:$0xf0]  ;;  %v5572_v10 = vor.u32 %v6661_v59, %v5569_v55 }
 0x1ec   : > { %4054 = vmatpush.bf16.msrb.mxu2 %v5140_v44  ;;  %v3802_v44 = vpop.f32.mrf.mxu2  ;;  %v3815_v57 = vpop.f32.mrf.mxu3  ;;  %v5825_v5 = vld [vmem:[%s7125_s27 + $0xbf8] sm:$0xf0]  ;;  %v6657_v14 = vld [vmem:[%s7125_s27 + $0x9cc] sm:$0xf] }
 0x1ed   : > { %4067 = vmatpush.bf16.msrb.mxu3 %v5268_v58  ;;  %v6629_v58 = vld [vmem:[%s7125_s27 + $0x8ec] sm:$0xf]  ;;  %v5425_v12 = vld [vmem:[%s7125_s27 + $0x8d8] sm:$0xf0] }
 0x1ee   : > { %4029 = vmatpush.bf16.msrb.mxu0 %v4868_v61  ;;  %v4948_v61 = vor.u32 %v6505_v50, %v4945_v51  ;;  %v5444_v62 = vor.u32 %v6629_v58, %v5441_v49  ;;  %v5553_v15 = vld [vmem:[%s7125_s27 + $0x9d8] sm:$0xf0]  ;;  %v6689_v18 = vld [vmem:[%s7125_s27 + $0xacc] sm:$0xf] }
 0x1ef   : > { %4042 = vmatpush.bf16.msrb.mxu1 %v4996_v1  ;;  %v5076_v1 = vor.u32 %v6537_v7, %v5073_v54  ;;  %v5681_v2 = vld [vmem:[%s7125_s27 + $0xad8] sm:$0xf0]  ;;  %v6621_v32 = vld [vmem:[%s7125_s27 + $0x8ac] sm:$0xf] }
 0x1f0   : > { %4055 = vmatpush.bf16.msrb.mxu2 %v5124_v4  ;;  %v6725_v4 = vld [vmem:[%s7125_s27 + $0xbec] sm:$0xf]  ;;  %v5809_v28 = vld [vmem:[%s7125_s27 + $0xbd8] sm:$0xf0]  ;;  %v5684_v31 = vor.u32 %v6689_v18, %v5681_v2 }
 0x1f1   : > { %4068 = vmatpush.bf16.msrb.mxu3 %v5252_v8  ;;  %v5700_v8 = vor.u32 %v6693_v52, %v5697_v60  ;;  %v5828_v36 = vor.u32 %v6725_v4, %v5825_v5  ;;  %v5409_v33 = vld [vmem:[%s7125_s27 + $0x8b8] sm:$0xf0]  ;;  %v6653_v35 = vld [vmem:[%s7125_s27 + $0x9ac] sm:$0xf] }
 0x1f2   : > { %4030 = vmatpush.bf16.msrb.mxu0 %v4852_v48  ;;  %v6721_v48 = vld [vmem:[%s7125_s27 + $0xbcc] sm:$0xf]  ;;  %v5537_v63 = vld [vmem:[%s7125_s27 + $0x9b8] sm:$0xf0] }
 0x1f3   : > { %4043 = vmatpush.bf16.msrb.mxu1 %v4980_v29  ;;  %v5428_v29 = vor.u32 %v6625_v11, %v5425_v12  ;;  %v6685_v22 = vld [vmem:[%s7125_s27 + $0xaac] sm:$0xf]  ;;  %v5665_v0 = vld [vmem:[%s7125_s27 + $0xab8] sm:$0xf0] }
 0x1f4   : > { %4056 = vmatpush.bf16.msrb.mxu2 %v5108_v30  ;;  %v5556_v30 = vor.u32 %v6657_v14, %v5553_v15  ;;  %v6717_v9 = vld [vmem:[%s7125_s27 + $0xbac] sm:$0xf]  ;;  %v5793_v16 = vld [vmem:[%s7125_s27 + $0xbb8] sm:$0xf0]  ;;  %v5668_v41 = vor.u32 %v6685_v22, %v5665_v0 }
 0x1f5   : > { %4069 = vmatpush.bf16.msrb.mxu3 %v5236_v39  ;;  %v5812_v39 = vor.u32 %v6721_v48, %v5809_v28  ;;  %v6617_v45 = vld [vmem:[%s7125_s27 + $0x88c] sm:$0xf]  ;;  %v5649_v51 = vld [vmem:[%s7125_s27 + $0xa98] sm:$0xf0] }
 0x1f6   : > { %4031 = vmatpush.bf16.msrb.mxu0 %v4836_v42  ;;  %v5412_v42 = vor.u32 %v6621_v32, %v5409_v33  ;;  %v6681_v50 = vld [vmem:[%s7125_s27 + $0xa8c] sm:$0xf]  ;;  %v5777_v44 = vld [vmem:[%s7125_s27 + $0xb98] sm:$0xf0] }
 0x1f7   : > { %4044 = vmatpush.bf16.msrb.mxu1 %v4964_v46  ;;  %v5393_v46 = vld [vmem:[%s7125_s27 + $0x898] sm:$0xf0]  ;;  %v6713_v7 = vld [vmem:[%s7125_s27 + $0xb8c] sm:$0xf]  ;;  %v5652_v3 = vor.u32 %v6681_v50, %v5649_v51 }
 0x1f8   : > { %4057 = vmatpush.bf16.msrb.mxu2 %v5092_v17  ;;  %v5521_v17 = vld [vmem:[%s7125_s27 + $0x998] sm:$0xf0]  ;;  %v6613_v56 = vld [vmem:[%s7125_s27 + $0x86c] sm:$0xf]  ;;  %v5780_v59 = vor.u32 %v6713_v7, %v5777_v44 }
 0x1f9   : > { %4070 = vmatpush.bf16.msrb.mxu3 %v5220_v53  ;;  %v5377_v57 = vld [vmem:[%s7125_s27 + $0x878] sm:$0xf0]  ;;  %v6645_v58 = vld [vmem:[%s7125_s27 + $0x96c] sm:$0xf] }
 0x1fa   : > { %4032 = vmatpush.bf16.msrb.mxu0 %v4820_v43  ;;  %v8284_v53 = vpop.f32.mrf.mxu0  ;;  %v5505_v43 = vld [vmem:[%s7125_s27 + $0x978] sm:$0xf0]  ;;  %v6677_v55 = vld [vmem:[%s7125_s27 + $0xa6c] sm:$0xf] }
 0x1fb   : > { %4045 = vmatpush.bf16.msrb.mxu1 %v4948_v61  ;;  %v8289_v49 = vpop.f32.mrf.mxu1  ;;  %v5633_v52 = vld [vmem:[%s7125_s27 + $0xa78] sm:$0xf0]  ;;  %v6709_v60 = vld [vmem:[%s7125_s27 + $0xb6c] sm:$0xf]  ;;  %v5508_v4 = vor.u32 %v6645_v58, %v5505_v43 }
 0x1fc   : > { %4058 = vmatpush.bf16.msrb.mxu2 %v5076_v1  ;;  %v5761_v61 = vld [vmem:[%s7125_s27 + $0xb78] sm:$0xf0]  ;;  %v5380_v1 = vor.u32 %v6613_v56, %v5377_v57  ;;  %v5636_v5 = vor.u32 %v6677_v55, %v5633_v52  ;;  %v6673_v14 = vld [vmem:[%s7125_s27 + $0xa4c] sm:$0xf] }
 0x1fd   : > { %4071 = vmatpush.bf16.msrb.mxu3 %v5204_v6  ;;  %4033 = vmatmul.bf16.vlgmr.msrb.gmra.mxu0 %v7319_v37  ;;  %v6649_v37 = vld [vmem:[%s7125_s27 + $0x98c] sm:$0xf]  ;;  %v5764_v11 = vor.u32 %v6709_v60, %v5761_v61  ;;  %v5489_v12 = vld [vmem:[%s7125_s27 + $0x958] sm:$0xf0] }
 0x1fe   : > { %4077 = vmatpush.bf16.msra.mxu0 %v5444_v62  ;;  %4046 = vmatmul.bf16.vlgmr.msrb.gmra.mxu1 %v7323_v40  ;;  %v5396_v40 = vor.u32 %v6617_v45, %v5393_v46  ;;  %v5524_v54 = vor.u32 %v6649_v37, %v5521_v17  ;;  %v6609_v6 = vld [vmem:[%s7125_s27 + $0x84c] sm:$0xf]  ;;  %v5361_v62 = vld [vmem:[%s7125_s27 + $0x858] sm:$0xf0] }
 0x1ff   : > { %4090 = vmatpush.bf16.msra.mxu1 %v5572_v10  ;;  %4059 = vmatmul.bf16.vlgmr.msrb.gmra.mxu2 %v7315_v34  ;;  %v5540_v34 = vor.u32 %v6653_v35, %v5537_v63  ;;  %v6641_v10 = vld [vmem:[%s7125_s27 + $0x94c] sm:$0xf]  ;;  %v5745_v2 = vld [vmem:[%s7125_s27 + $0xb58] sm:$0xf0]  ;;  %v5364_v48 = vor.u32 %v6609_v6, %v5361_v62 }
 0x200   : > { %4103 = vmatpush.bf16.msra.mxu2 %v5700_v8  ;;  %4072 = vmatmul.bf16.vlgmr.msrb.gmra.mxu3 %v7321_v38  ;;  %v5796_v38 = vor.u32 %v6717_v9, %v5793_v16  ;;  %v6705_v18 = vld [vmem:[%s7125_s27 + $0xb4c] sm:$0xf]  ;;  %v5345_v32 = vld [vmem:[%s7125_s27 + $0x838] sm:$0xf0] }
 0x201   : > { %4116 = vmatpush.bf16.msra.mxu3 %v5828_v36  ;;  %v5617_v36 = vld [vmem:[%s7125_s27 + $0xa58] sm:$0xf0]  ;;  %v6637_v33 = vld [vmem:[%s7125_s27 + $0x92c] sm:$0xf] }
 0x202   : > { %4078 = vmatpush.bf16.msra.mxu0 %v5428_v29  ;;  %v8299_v8 = vpop.f32.mrf.mxu2  ;;  %v3828_v28 = vpop.f32.mrf.mxu0  ;;  %v5492_v29 = vor.u32 %v6641_v10, %v5489_v12  ;;  %v5473_v63 = vld [vmem:[%s7125_s27 + $0x938] sm:$0xf0]  ;;  %v6669_v22 = vld [vmem:[%s7125_s27 + $0xa2c] sm:$0xf] }
 0x203   : > { %4091 = vmatpush.bf16.msra.mxu1 %v5556_v30  ;;  %v8304_v15 = vpop.f32.mrf.mxu3  ;;  %v5620_v30 = vor.u32 %v6673_v14, %v5617_v36  ;;  %v3841_v35 = vpop.f32.mrf.mxu1  ;;  %v5601_v0 = vld [vmem:[%s7125_s27 + $0xa38] sm:$0xf0]  ;;  %v6701_v9 = vld [vmem:[%s7125_s27 + $0xb2c] sm:$0xf]  ;;  %v5476_v45 = vor.u32 %v6637_v33, %v5473_v63 }
 0x204   : > { %4104 = vmatpush.bf16.msra.mxu2 %v5684_v31  ;;  %v6605_v31 = vld [vmem:[%s7125_s27 + $0x82c] sm:$0xf]  ;;  %v5729_v16 = vld [vmem:[%s7125_s27 + $0xb38] sm:$0xf0]  ;;  %v5604_v46 = vor.u32 %v6669_v22, %v5601_v0 }
 0x205   : > { %4117 = vmatpush.bf16.msra.mxu3 %v5812_v39  ;;  %v5748_v39 = vor.u32 %v6705_v18, %v5745_v2  ;;  %v6633_v37 = vld [vmem:[%s7125_s27 + $0x90c] sm:$0xf]  ;;  %v5732_v51 = vor.u32 %v6701_v9, %v5729_v16  ;;  %v5585_v7 = vld [vmem:[%s7125_s27 + $0xa18] sm:$0xf0] }
 0x206   : > { %4079 = vmatpush.bf16.msra.mxu0 %v5412_v42  ;;  %v5348_v42 = vor.u32 %v6605_v31, %v5345_v32  ;;  %v6665_v17 = vld [vmem:[%s7125_s27 + $0xa0c] sm:$0xf]  ;;  %v5953_v56 = vld [vmem:[%s7125_s27 + $0xcf8] sm:$0xf0] }
 0x207   : > { %4092 = vmatpush.bf16.msra.mxu1 %v5540_v34  ;;  %v6601_v34 = vld [vmem:[%s7125_s27 + $0x80c] sm:$0xf]  ;;  %v6209_v55 = vld [vmem:[%s7125_s27 + $0xef8] sm:$0xf0]  ;;  %v5588_v60 = vor.u32 %v6665_v17, %v5585_v7 }
 0x208   : > { %4105 = vmatpush.bf16.msra.mxu2 %v5668_v41  ;;  %v5329_v41 = vld [vmem:[%s7125_s27 + $0x818] sm:$0xf0]  ;;  %v6697_v44 = vld [vmem:[%s7125_s27 + $0xb0c] sm:$0xf] }
 0x209   : > { %4118 = vmatpush.bf16.msra.mxu3 %v5796_v38  ;;  %v5457_v38 = vld [vmem:[%s7125_s27 + $0x918] sm:$0xf0]  ;;  %v6789_v57 = vld [vmem:[%s7125_s27 + $0xdec] sm:$0xf]  ;;  %v5332_v58 = vor.u32 %v6601_v34, %v5329_v41 }
 0x20a   : > { %4080 = vmatpush.bf16.msra.mxu0 %v5396_v40  ;;  %v3854_v50 = vpop.f32.mrf.mxu2  ;;  %v5713_v40 = vld [vmem:[%s7125_s27 + $0xb18] sm:$0xf0]  ;;  %v6821_v43 = vld [vmem:[%s7125_s27 + $0xeec] sm:$0xf]  ;;  %v5460_v52 = vor.u32 %v6633_v37, %v5457_v38 }
 0x20b   : > { %4093 = vmatpush.bf16.msra.mxu1 %v5524_v54  ;;  %v3867_v54 = vpop.f32.mrf.mxu3  ;;  %v6853_v61 = vld [vmem:[%s7125_s27 + $0xfec] sm:$0xf]  ;;  %v6212_v62 = vor.u32 %v6821_v43, %v6209_v55  ;;  %v6065_v36 = vld [vmem:[%s7125_s27 + $0xdd8] sm:$0xf0] }
 0x20c   : > { %4106 = vmatpush.bf16.msra.mxu2 %v5652_v3  ;;  %v6757_v3 = vld [vmem:[%s7125_s27 + $0xcec] sm:$0xf]  ;;  %v6193_v2 = vld [vmem:[%s7125_s27 + $0xed8] sm:$0xf0] }
 0x20d   : > { %4119 = vmatpush.bf16.msra.mxu3 %v5780_v59  ;;  %v6081_v59 = vld [vmem:[%s7125_s27 + $0xdf8] sm:$0xf0]  ;;  %v6753_v10 = vld [vmem:[%s7125_s27 + $0xccc] sm:$0xf] }
 0x20e   : > { %4081 = vmatpush.bf16.msra.mxu0 %v5380_v1  ;;  %v6337_v1 = vld [vmem:[%s7125_s27 + $0xff8] sm:$0xf0]  ;;  %v6084_v6 = vor.u32 %v6789_v57, %v6081_v59  ;;  %v6785_v12 = vld [vmem:[%s7125_s27 + $0xdcc] sm:$0xf] }
 0x20f   : > { %4094 = vmatpush.bf16.msra.mxu1 %v5508_v4  ;;  %v5716_v4 = vor.u32 %v6697_v44, %v5713_v40  ;;  %v6340_v14 = vor.u32 %v6853_v61, %v6337_v1  ;;  %v6817_v18 = vld [vmem:[%s7125_s27 + $0xecc] sm:$0xf]  ;;  %v6321_v28 = vld [vmem:[%s7125_s27 + $0xfd8] sm:$0xf0]  ;;  %v3827_v61 = vadd.f32 %v8284_v53, %v8230_v25 }
 0x210   : > { %4107 = vmatpush.bf16.msra.mxu2 %v5636_v5  ;;  %v5956_v5 = vor.u32 %v6757_v3, %v5953_v56  ;;  %v6196_v31 = vor.u32 %v6817_v18, %v6193_v2  ;;  %v6749_v32 = vld [vmem:[%s7125_s27 + $0xcac] sm:$0xf]  ;;  %v5921_v33 = vld [vmem:[%s7125_s27 + $0xcb8] sm:$0xf0] }
 0x211   : > { %4120 = vmatpush.bf16.msra.mxu3 %v5764_v11  ;;  %v5937_v11 = vld [vmem:[%s7125_s27 + $0xcd8] sm:$0xf0]  ;;  %v6781_v35 = vld [vmem:[%s7125_s27 + $0xdac] sm:$0xf] }
 0x212   : > { %4082 = vmatpush.bf16.msra.mxu0 %v5364_v48  ;;  %v6849_v48 = vld [vmem:[%s7125_s27 + $0xfcc] sm:$0xf]  ;;  %v6049_v63 = vld [vmem:[%s7125_s27 + $0xdb8] sm:$0xf0] }
 0x213   : > { %4095 = vmatpush.bf16.msra.mxu1 %v5492_v29  ;;  %v5940_v29 = vor.u32 %v6753_v10, %v5937_v11  ;;  %v6813_v22 = vld [vmem:[%s7125_s27 + $0xeac] sm:$0xf]  ;;  %v6177_v0 = vld [vmem:[%s7125_s27 + $0xeb8] sm:$0xf0] }
 0x214   : > { %4108 = vmatpush.bf16.msra.mxu2 %v5620_v30  ;;  %v6068_v30 = vor.u32 %v6785_v12, %v6065_v36  ;;  %v6845_v9 = vld [vmem:[%s7125_s27 + $0xfac] sm:$0xf]  ;;  %v6305_v16 = vld [vmem:[%s7125_s27 + $0xfb8] sm:$0xf0]  ;;  %v6180_v34 = vor.u32 %v6813_v22, %v6177_v0 }
 0x215   : > { %4121 = vmatpush.bf16.msra.mxu3 %v5748_v39  ;;  %v6324_v39 = vor.u32 %v6849_v48, %v6321_v28  ;;  %v6745_v41 = vld [vmem:[%s7125_s27 + $0xc8c] sm:$0xf]  ;;  %v6161_v38 = vld [vmem:[%s7125_s27 + $0xe98] sm:$0xf0] }
 0x216   : > { %4083 = vmatpush.bf16.msra.mxu0 %v5348_v42  ;;  %v6052_v42 = vor.u32 %v6781_v35, %v6049_v63  ;;  %v6809_v37 = vld [vmem:[%s7125_s27 + $0xe8c] sm:$0xf]  ;;  %v6289_v50 = vld [vmem:[%s7125_s27 + $0xf98] sm:$0xf0] }
 0x217   : > { %4096 = vmatpush.bf16.msra.mxu1 %v5476_v45  ;;  %v5905_v45 = vld [vmem:[%s7125_s27 + $0xc98] sm:$0xf0]  ;;  %v6841_v17 = vld [vmem:[%s7125_s27 + $0xf8c] sm:$0xf]  ;;  %v6164_v40 = vor.u32 %v6809_v37, %v6161_v38 }
 0x218   : > { %4109 = vmatpush.bf16.msra.mxu2 %v5604_v46  ;;  %v6033_v46 = vld [vmem:[%s7125_s27 + $0xd98] sm:$0xf0]  ;;  %v6741_v54 = vld [vmem:[%s7125_s27 + $0xc6c] sm:$0xf]  ;;  %v6292_v57 = vor.u32 %v6841_v17, %v6289_v50 }
 0x219   : > { %4122 = vmatpush.bf16.msra.mxu3 %v5732_v51  ;;  %v5908_v51 = vor.u32 %v6745_v41, %v5905_v45  ;;  %v5889_v3 = vld [vmem:[%s7125_s27 + $0xc78] sm:$0xf0]  ;;  %v6773_v56 = vld [vmem:[%s7125_s27 + $0xd6c] sm:$0xf] }
 0x21a   : > { %4084 = vmatpush.bf16.msra.mxu0 %v5332_v58  ;;  %v6017_v58 = vld [vmem:[%s7125_s27 + $0xd78] sm:$0xf0]  ;;  %v6805_v59 = vld [vmem:[%s7125_s27 + $0xe6c] sm:$0xf] }
 0x21b   : > { %4097 = vmatpush.bf16.msra.mxu1 %v5460_v52  ;;  %v8362_v7 = vpop.f32.mrf.mxu1  ;;  %v6145_v43 = vld [vmem:[%s7125_s27 + $0xe78] sm:$0xf0]  ;;  %v6837_v55 = vld [vmem:[%s7125_s27 + $0xf6c] sm:$0xf]  ;;  %v6020_v1 = vor.u32 %v6773_v56, %v6017_v58 }
 0x21c   : > { %4110 = vmatpush.bf16.msra.mxu2 %v5588_v60  ;;  %v6273_v52 = vld [vmem:[%s7125_s27 + $0xf78] sm:$0xf0]  ;;  %v5892_v60 = vor.u32 %v6741_v54, %v5889_v3  ;;  %v6833_v25 = vld [vmem:[%s7125_s27 + $0xf4c] sm:$0xf] }
 0x21d   : > { %4123 = vmatpush.bf16.msra.mxu3 %v5716_v4  ;;  %4085 = vmatmul.bf16.vlgmr.msra.gmra.mxu0 %v7400_v19  ;;  %v5924_v19 = vor.u32 %v6749_v32, %v5921_v33  ;;  %v6148_v4 = vor.u32 %v6805_v59, %v6145_v43  ;;  %v6276_v10 = vor.u32 %v6837_v55, %v6273_v52  ;;  %v6001_v12 = vld [vmem:[%s7125_s27 + $0xd58] sm:$0xf0]  ;;  %v6733_v32 = vld [vmem:[%s7125_s27 + $0xc2c] sm:$0xf] }
 0x21e   : > { %4129 = vmatpush.bf16.msrb.mxu0 %v5956_v5  ;;  %4098 = vmatmul.bf16.vlgmr.msra.gmra.mxu1 %v7407_v24  ;;  %v6308_v24 = vor.u32 %v6845_v9, %v6305_v16  ;;  %v6737_v5 = vld [vmem:[%s7125_s27 + $0xc4c] sm:$0xf]  ;;  %v6129_v36 = vld [vmem:[%s7125_s27 + $0xe58] sm:$0xf0] }
 0x21f   : > { %4142 = vmatpush.bf16.msrb.mxu1 %v6084_v6  ;;  %4111 = vmatmul.bf16.vlgmr.msra.gmra.mxu2 %v7405_v23  ;;  %v6777_v23 = vld [vmem:[%s7125_s27 + $0xd8c] sm:$0xf]  ;;  %v5873_v6 = vld [vmem:[%s7125_s27 + $0xc58] sm:$0xf0] }
 0x220   : > { %4155 = vmatpush.bf16.msrb.mxu2 %v6212_v62  ;;  %4124 = vmatmul.bf16.vlgmr.msra.gmra.mxu3 %v7411_v27  ;;  %v8358_v27 = vpop.f32.mrf.mxu0  ;;  %v6036_v44 = vor.u32 %v6777_v23, %v6033_v46  ;;  %v6769_v62 = vld [vmem:[%s7125_s27 + $0xd4c] sm:$0xf]  ;;  %v6257_v53 = vld [vmem:[%s7125_s27 + $0xf58] sm:$0xf0]  ;;  %v5876_v48 = vor.u32 %v6737_v5, %v5873_v6 }
 0x221   : > { %4168 = vmatpush.bf16.msrb.mxu3 %v6340_v14  ;;  %v6801_v14 = vld [vmem:[%s7125_s27 + $0xe4c] sm:$0xf]  ;;  %v5857_v33 = vld [vmem:[%s7125_s27 + $0xc38] sm:$0xf0] }
 0x222   : > { %4130 = vmatpush.bf16.msrb.mxu0 %v5940_v29  ;;  %v8377_v11 = vpop.f32.mrf.mxu2  ;;  %v3840_v29 = vadd.f32 %v8289_v49, %v3827_v61  ;;  %v6765_v35 = vld [vmem:[%s7125_s27 + $0xd2c] sm:$0xf]  ;;  %v5985_v63 = vld [vmem:[%s7125_s27 + $0xd38] sm:$0xf0]  ;;  %v5860_v16 = vor.u32 %v6733_v32, %v5857_v33 }
 0x223   : > { %4143 = vmatpush.bf16.msrb.mxu1 %v6068_v30  ;;  %v3917_v18 = vpop.f32.mrf.mxu3  ;;  %v3893_v28 = vpop.f32.mrf.mxu1  ;;  %v6004_v30 = vor.u32 %v6769_v62, %v6001_v12  ;;  %v6797_v22 = vld [vmem:[%s7125_s27 + $0xe2c] sm:$0xf]  ;;  %v6113_v0 = vld [vmem:[%s7125_s27 + $0xe38] sm:$0xf0] }
 0x224   : > { %4156 = vmatpush.bf16.msrb.mxu2 %v6196_v31  ;;  %v6132_v31 = vor.u32 %v6801_v14, %v6129_v36  ;;  %v6829_v9 = vld [vmem:[%s7125_s27 + $0xf2c] sm:$0xf]  ;;  %v6241_v49 = vld [vmem:[%s7125_s27 + $0xf38] sm:$0xf0] }
 0x225   : > { %4169 = vmatpush.bf16.msrb.mxu3 %v6324_v39  ;;  %v6260_v39 = vor.u32 %v6833_v25, %v6257_v53  ;;  %v6729_v41 = vld [vmem:[%s7125_s27 + $0xc0c] sm:$0xf]  ;;  %v5841_v45 = vld [vmem:[%s7125_s27 + $0xc18] sm:$0xf0] }
 0x226   : > { %4131 = vmatpush.bf16.msrb.mxu0 %v5924_v19  ;;  %v3853_v19 = vadd.f32 %v8299_v8, %v3840_v29  ;;  %v6761_v23 = vld [vmem:[%s7125_s27 + $0xd0c] sm:$0xf]  ;;  %v5969_v46 = vld [vmem:[%s7125_s27 + $0xd18] sm:$0xf0] }
 0x227   : > { %4144 = vmatpush.bf16.msrb.mxu1 %v6052_v42  ;;  %v5988_v42 = vor.u32 %v6765_v35, %v5985_v63  ;;  %v6793_v37 = vld [vmem:[%s7125_s27 + $0xe0c] sm:$0xf]  ;;  %v6097_v38 = vld [vmem:[%s7125_s27 + $0xe18] sm:$0xf0]  ;;  %v5972_v54 = vor.u32 %v6761_v23, %v5969_v46 }
 0x228   : > { %4157 = vmatpush.bf16.msrb.mxu2 %v6180_v34  ;;  %v3880_v2 = vpop.f32.mrf.mxu0  ;;  %v6116_v34 = vor.u32 %v6797_v22, %v6113_v0  ;;  %v6825_v50 = vld [vmem:[%s7125_s27 + $0xf0c] sm:$0xf]  ;;  %v3866_v8 = vadd.f32 %v8304_v15, %v3853_v19  ;;  %v6100_v3 = vor.u32 %v6793_v37, %v6097_v38 }
 0x229   : > { %4170 = vmatpush.bf16.msrb.mxu3 %v6308_v24  ;;  %v6244_v24 = vor.u32 %v6829_v9, %v6241_v49 }
 0x22a   : > { %4132 = vmatpush.bf16.msrb.mxu0 %v5908_v51  ;;  %v3906_v17 = vpop.f32.mrf.mxu2  ;;  %v6225_v51 = vld [vmem:[%s7125_s27 + $0xf18] sm:$0xf0] }
 0x22b   : > { %4145 = vmatpush.bf16.msrb.mxu1 %v6036_v44  ;;  %v3919_v44 = vpop.f32.mrf.mxu3  ;;  %v6228_v56 = vor.u32 %v6825_v50, %v6225_v51 }
 0x22c   : > { %4158 = vmatpush.bf16.msrb.mxu2 %v6164_v40  ;;  %v5844_v40 = vor.u32 %v6729_v41, %v5841_v45 }
 0x22d   : > { %4171 = vmatpush.bf16.msrb.mxu3 %v6292_v57  ;;  %v3879_v57 = vadd.f32 %v8358_v27, %v3866_v8 }
 0x22e   : > { %4133 = vmatpush.bf16.msrb.mxu0 %v5892_v60 }
 0x22f   : > { %4146 = vmatpush.bf16.msrb.mxu1 %v6020_v1  ;;  %v3892_v58 = vadd.f32 %v8362_v7, %v3879_v57 }
 0x230   : > { %4159 = vmatpush.bf16.msrb.mxu2 %v6148_v4 }
 0x231   : > { %4172 = vmatpush.bf16.msrb.mxu3 %v6276_v10  ;;  %v3905_v15 = vadd.f32 %v8377_v11, %v3892_v58 }
 0x232   : > { %4134 = vmatpush.bf16.msrb.mxu0 %v5876_v48 }
 0x233   : > { %4147 = vmatpush.bf16.msrb.mxu1 %v6004_v30  ;;  %v3918_v59 = vadd.f32 %v3917_v18, %v3905_v15 }
 0x234   : > { %4160 = vmatpush.bf16.msrb.mxu2 %v6132_v31 }
 0x235   : > { %4173 = vmatpush.bf16.msrb.mxu3 %v6260_v39 }
 0x236   : > { %4135 = vmatpush.bf16.msrb.mxu0 %v5860_v16 }
 0x237   : > { %4148 = vmatpush.bf16.msrb.mxu1 %v5988_v42 }
 0x238   : > { %4161 = vmatpush.bf16.msrb.mxu2 %v6116_v34 }
 0x239   : > { %4174 = vmatpush.bf16.msrb.mxu3 %v6244_v24 }
 0x23a   : > { %4136 = vmatpush.bf16.msrb.mxu0 %v5844_v40  ;;  %v3930_v43 = vpop.f32.mrf.mxu0 }
 0x23b   : > { %4149 = vmatpush.bf16.msrb.mxu1 %v5972_v54  ;;  %v3943_v27 = vpop.f32.mrf.mxu1  ;;  %v3931_v55 = vadd.f32 %v3930_v43, %v3918_v59 }
 0x23c   : > { %4162 = vmatpush.bf16.msrb.mxu2 %v6100_v3 }
 0x23d   : > { %4175 = vmatpush.bf16.msrb.mxu3 %v6228_v56  ;;  %4137 = vmatmul.bf16.vlgmr.msrb.gmra.mxu0 %v7488_v13  ;;  %v3944_v52 = vadd.f32 %v3943_v27, %v3931_v55 }
 0x23e   : > { %4150 = vmatmul.bf16.vlgmr.msrb.gmra.mxu1 %v7495_v21 }
 0x23f   : > { %4163 = vmatmul.bf16.vlgmr.msrb.gmra.mxu2 %v7493_v20  ;;  %v784_v20 = vperm.slane %v8206_v47, 3 }
 0x240   : > { %4176 = vmatmul.bf16.vlgmr.msrb.gmra.mxu3 %v7499_v26 }
 0x242   : > { %v3956_v60 = vpop.f32.mrf.mxu2  ;;  %v3932_v7 = vpop.f32.mrf.mxu0 }
 0x243   : > { %v3957_v61 = vadd.f32 %v3956_v60, %v3944_v52  ;;  %v3969_v1 = vpop.f32.mrf.mxu3  ;;  %v3945_v4 = vpop.f32.mrf.mxu1 }
 0x245   : > { %v3970_v13 = vadd.f32 %v3969_v1, %v3957_v61 }
 0x247   : > { %v4183_v5 = vmax.f32 %v3970_v13, 0.0 }
 0x249   : > { %4187 = vst [vmem:[%s7857_s24 + $0x10] sm:$0xff] %v4183_v5 }
 0x24a   : > { %v3958_v21 = vpop.f32.mrf.mxu2 }
 0x24b   : > { %v3971_v6 = vpop.f32.mrf.mxu3 }
 0x25a   : > { %v3982_v62 = vpop.f32.mrf.mxu0 }
 0x25b   : > { %v3983_v10 = vadd.f32 %v3982_v62, %v784_v20  ;;  %v3995_v26 = vpop.f32.mrf.mxu1 }
 0x25d   : > { %v3996_v11 = vadd.f32 %v3995_v26, %v3983_v10 }
 0x262   : > { %v4008_v12 = vpop.f32.mrf.mxu2  ;;  %v3984_v25 = vpop.f32.mrf.mxu0 }
 0x263   : > { %v4009_v14 = vadd.f32 %v4008_v12, %v3996_v11  ;;  %v4021_v36 = vpop.f32.mrf.mxu3  ;;  %v3997_v53 = vpop.f32.mrf.mxu1 }
 0x265   : > { %v4022_v18 = vadd.f32 %v4021_v36, %v4009_v14 }
 0x26a   : > { %v4010_v2 = vpop.f32.mrf.mxu2 }
 0x26b   : > { %v4023_v48 = vpop.f32.mrf.mxu3 }
 0x27a   : > { %v4034_v28 = vpop.f32.mrf.mxu0 }
 0x27b   : > { %v4047_v29 = vpop.f32.mrf.mxu1  ;;  %v4035_v22 = vadd.f32 %v4034_v28, %v4022_v18 }
 0x27d   : > { %v4048_v16 = vadd.f32 %v4047_v29, %v4035_v22 }
 0x282   : > { %v4060_v30 = vpop.f32.mrf.mxu2  ;;  %v4036_v32 = vpop.f32.mrf.mxu0 }
 0x283   : > { %v4073_v31 = vpop.f32.mrf.mxu3  ;;  %v4049_v33 = vpop.f32.mrf.mxu1  ;;  %v4061_v42 = vadd.f32 %v4060_v30, %v4048_v16 }
 0x285   : > { %v4074_v45 = vadd.f32 %v4073_v31, %v4061_v42 }
 0x28a   : > { %v4062_v35 = vpop.f32.mrf.mxu2 }
 0x28b   : > { %v4075_v47 = vpop.f32.mrf.mxu3 }
 0x29a   : > { %v4086_v39 = vpop.f32.mrf.mxu0 }
 0x29b   : > { %v4099_v63 = vpop.f32.mrf.mxu1  ;;  %v4087_v23 = vadd.f32 %v4086_v39, %v4074_v45 }
 0x29d   : > { %v4100_v24 = vadd.f32 %v4099_v63, %v4087_v23 }
 0x2a2   : > { %v4112_v0 = vpop.f32.mrf.mxu2  ;;  %v4088_v49 = vpop.f32.mrf.mxu0 }
 0x2a3   : > { %v4125_v9 = vpop.f32.mrf.mxu3  ;;  %v4101_v19 = vpop.f32.mrf.mxu1  ;;  %v4113_v46 = vadd.f32 %v4112_v0, %v4100_v24 }
 0x2a5   : > { %v4126_v37 = vadd.f32 %v4125_v9, %v4113_v46 }
 0x2aa   : > { %v4114_v34 = vpop.f32.mrf.mxu2 }
 0x2ab   : > { %v4127_v41 = vpop.f32.mrf.mxu3 }
 0x2ba   : > { %v4138_v38 = vpop.f32.mrf.mxu0 }
 0x2bb   : > { %v4151_v17 = vpop.f32.mrf.mxu1  ;;  %v4139_v50 = vadd.f32 %v4138_v38, %v4126_v37 }
 0x2bd   : > { %v4152_v51 = vadd.f32 %v4151_v17, %v4139_v50 }
 0x2c2   : > { %v4164_v44 = vpop.f32.mrf.mxu2  ;;  %v4140_v54 = vpop.f32.mrf.mxu0 }
 0x2c3   : > { %v4165_v40 = vadd.f32 %v4164_v44, %v4152_v51  ;;  %v4177_v8 = vpop.f32.mrf.mxu3  ;;  %v4153_v3 = vpop.f32.mrf.mxu1 }
 0x2c5   : > { %v4178_v56 = vadd.f32 %v4177_v8, %v4165_v40 }
 0x2c7   : > { %v4184_v57 = vmax.f32 %v4178_v56, 0.0 }
 0x2c9   : > { %4188 = vst [vmem:[%s7857_s24 + $0x18] sm:$0xff] %v4184_v57 }
 0x2ca   : > { %v4166_v58 = vpop.f32.mrf.mxu2 }
 0x2cb   : > { %v4179_v15 = vpop.f32.mrf.mxu3 }
 0x2cc PF: > { %p16_p8 = scmp.ge.s32.totalorder %s7048_s17, 6   ;;  %s8434_s12 = smov %s6995_s13 }
 0x2cd   : > { %s8435_s13 = smov %s6999_s14  ;;  %s8436_s14 = smov %s7058_s20 }
 0x2ce   : > { %s8437_s15 = smov %s7048_s17  ;;  %18 = sbr.rel (!%p16_p8) target bundleno = 5 (0x5), region = 85 }
 0x2d3   :  { %4211 = vsyncpa [#allocation3], 1 }
 0x2d4   :  { %4213 = vsyncpa [#allocation3 + $0x1], 1 }
 0x2d5   :  { %4214 = vsyncpa [#allocation5], 1 }
 0x2d6   :  { %4216 = vsyncpa [#allocation5 + $0x1], 1 }

</bundles_post_ra>
